<compile_context>
chip_gen: v5e
topology: v5e:2x2
jax: 0.10.0
libtpu: 0.0.40
codegen_flags: <defaults>
</compile_context>

<pallas_src>
import functools
import math

import jax
import jax.numpy as jnp
import numpy as np
from jax import lax
from jax.experimental import pallas as pl
from jax.experimental.pallas import tpu as pltpu


# ---------------------------------------------------------------------------
# Kernel
# ---------------------------------------------------------------------------
def _rcab_kernel(x_ref,                 # (B, C, HW) f32   B images, pixels on lanes
                 mask_ref,              # (9, HW)    f32   {0,1} boundary mask per tap
                 wa_ref,                # (C, 9C)    bf16  first 3x3 conv (im2col layout)
                 wb_ref,                # (C, 9C)    bf16  second 3x3 conv
                 bias_ref,              # (C, 4)     f32   [ba | bb | bdu2 | bdu1(pad)]
                 wdu1t_ref,             # (Cr, C)    f32   CA squeeze 1x1
                 wdu2t_ref,             # (C, Cr)    f32   CA excite 1x1
                 out_ref,               # (B, C, HW) f32
                 col_ref,               # (9C, B*HW) bf16  VMEM im2col scratch
                 *, W, Cr):
    B, C, HW = x_ref.shape

    # Flat pixel shift of each 3x3 tap, row-major (ky, kx) -- must match the
    # (c_out, ky*3*C + kx*C + c_in) column order of wa_ref / wb_ref.
    shifts = [(ky - 1) * W + (kx - 1) for ky in range(3) for kx in range(3)]

    masks = mask_ref[...]               # (9, HW) f32, loaded once per step
    bias = bias_ref[...]                # (C, 4)  f32
    ba = bias[:, 0:1]
    bb = bias[:, 1:2]
    bdu2 = bias[:, 2:3]
    bdu1 = bias[0:Cr, 3:4]

    def fill_taps(img_f32, b):
        """Write the 9 shifted+masked taps of image b into the im2col scratch."""
        for t, s in enumerate(shifts):
            if s == 0:
                tap = img_f32
            else:
                # pltpu.roll matches jnp.roll (out[p] = in[(p - shift) % n]),
                # so shift by (-s) % HW realizes tap[p] = img[p + s].  Rolls
                # stay inside this image's lane slab; out-of-image lanes are
                # zeroed by the precomputed {0,1} mask (single f32 multiply,
                # no compare/and chains, v5e-friendly).
                tap = pltpu.roll(img_f32, shift=(-s) % HW, axis=1)
                tap = tap * masks[t:t + 1, :]
            # bf16 cast is the last per-tap op; scratch stores are lane/sublane
            # aligned (t*C multiple of 64, b*HW multiple of 256).
            col_ref[t * C:(t + 1) * C, b * HW:(b + 1) * HW] = tap.astype(jnp.bfloat16)

    # ---- conv1 (3x3, pad=1): one MXU matmul over all B images ----
    for b in range(B):
        fill_taps(x_ref[b], b)
    h = jnp.dot(wa_ref[...], col_ref[...], preferred_element_type=jnp.float32)
    h = jnp.maximum(h + ba, 0.0)                     # (C, B*HW) f32, ReLU

    # ---- conv2 (3x3, pad=1) ----
    for b in range(B):
        fill_taps(h[:, b * HW:(b + 1) * HW], b)
    r = jnp.dot(wb_ref[...], col_ref[...], preferred_element_type=jnp.float32)
    r = r + bb                                       # (C, B*HW) f32

    # ---- channel attention: GAP -> 1x1 -> ReLU -> 1x1 -> sigmoid (tiny, f32) ----
    pooled = jnp.concatenate(
        [jnp.mean(r[:, b * HW:(b + 1) * HW], axis=1, keepdims=True)
         for b in range(B)], axis=1)                 # (C, B)
    y1 = jnp.maximum(
        jnp.dot(wdu1t_ref[...], pooled, preferred_element_type=jnp.float32)
        + bdu1, 0.0)                                 # (Cr, B)
    y2 = jax.nn.sigmoid(
        jnp.dot(wdu2t_ref[...], y1, preferred_element_type=jnp.float32)
        + bdu2)                                      # (C, B)

    # ---- scale + residual add; lane-dense (C, HW) stores per image ----
    for b in range(B):
        out_ref[b] = (r[:, b * HW:(b + 1) * HW] * y2[:, b:b + 1]
                      + x_ref[b]).astype(out_ref.dtype)


# ---------------------------------------------------------------------------
# Wrapper
# ---------------------------------------------------------------------------
def rcab_pallas(x_nchw, params, lane_batch=2):
    """x_nchw: (N, C, H, W) float32.  Returns (N, C, H, W) float32."""
    wa, ba, wb, bb, wdu1, bdu1, wdu2, bdu2 = params
    N, C, H, W = x_nchw.shape
    HW = H * W
    Cr = wdu1.shape[1]
    B = math.gcd(N, lane_batch)          # images per grid step (lane batching)

    # Free reshape: pixels on the lane axis, channels on sublanes (no transpose).
    x_flat = x_nchw.reshape(N, C, HW)

    # Precomputed {0,1} boundary masks, one per tap, row-major (ky, kx) order.
    pix = np.arange(HW)
    prow, pcol = pix // W, pix % W
    masks_np = np.stack(
        [((prow + ky - 1 >= 0) & (prow + ky - 1 < H)
          & (pcol + kx - 1 >= 0) & (pcol + kx - 1 < W))
         for ky in range(3) for kx in range(3)], axis=0)
    mask_arr = jnp.asarray(masks_np, dtype=jnp.float32)          # (9, HW)

    # Conv weights (HWIO) -> (C_out, 9*C_in) im2col layout, bf16 for the MXU.
    wa_mat = wa.transpose(3, 0, 1, 2).reshape(C, 9 * C).astype(jnp.bfloat16)
    wb_mat = wb.transpose(3, 0, 1, 2).reshape(C, 9 * C).astype(jnp.bfloat16)

    # All four bias vectors packed into one resident (C, 4) f32 slab:
    #   col 0: conv1 bias, col 1: conv2 bias, col 2: CA excite bias,
    #   col 3 (rows 0:Cr): CA squeeze bias (zero padded below).
    bdu1_pad = jnp.concatenate(
        [bdu1.reshape(Cr, 1), jnp.zeros((C - Cr, 1), jnp.float32)], axis=0)
    bias_slab = jnp.concatenate(
        [ba.reshape(C, 1), bb.reshape(C, 1), bdu2.reshape(C, 1), bdu1_pad], axis=1)

    wdu1t = wdu1.T                       # (Cr, C)
    wdu2t = wdu2.T                       # (C, Cr)

    kernel = functools.partial(_rcab_kernel, W=W, Cr=Cr)
    # Constant index maps => parameters are DMA'd once and stay resident.
    const = lambda shape: pl.BlockSpec(shape, lambda g: (0,) * len(shape))

    out_flat = pl.pallas_call(
        kernel,
        out_shape=jax.ShapeDtypeStruct((N, C, HW), jnp.float32),
        grid=(N // B,),
        in_specs=[
            pl.BlockSpec((B, C, HW), lambda g: (g, 0, 0)),
            const((9, HW)),
            const((C, 9 * C)),
            const((C, 9 * C)),
            const((C, 4)),
            const((Cr, C)),
            const((C, Cr)),
        ],
        out_specs=pl.BlockSpec((B, C, HW), lambda g: (g, 0, 0)),
        scratch_shapes=[pltpu.VMEM((9 * C, B * HW), jnp.bfloat16)],
        compiler_params=pltpu.CompilerParams(
            dimension_semantics=("parallel",)),      # batch groups -> megacore
    )(x_flat, mask_arr, wa_mat, wb_mat, bias_slab, wdu1t, wdu2t)

    return out_flat.reshape(N, C, H, W)


# ---------------------------------------------------------------------------
# Pure-JAX reference (matches the PyTorch RCAB forward) for verification
# ---------------------------------------------------------------------------
def rcab_reference(x_nchw, params):
    wa, ba, wb, bb, wdu1, bdu1, wdu2, bdu2 = params
    x = jnp.transpose(x_nchw, (0, 2, 3, 1))  # NHWC
    dn = lax.conv_dimension_numbers(x.shape, wa.shape, ("NHWC", "HWIO", "NHWC"))
    h = lax.conv_general_dilated(x, wa, (1, 1), "SAME", dimension_numbers=dn,
                                 precision=lax.Precision.HIGHEST) + ba
    h = jnp.maximum(h, 0.0)
    h = lax.conv_general_dilated(h, wb, (1, 1), "SAME", dimension_numbers=dn,
                                 precision=lax.Precision.HIGHEST) + bb
    pooled = jnp.mean(h, axis=(1, 2), keepdims=True)                 # (N,1,1,C)
    y = jnp.maximum(jnp.einsum("nhwc,cr->nhwr", pooled, wdu1) + bdu1, 0.0)
    y = jax.nn.sigmoid(jnp.einsum("nhwr,rc->nhwc", y, wdu2) + bdu2)
    out = h * y + x
    return jnp.transpose(out, (0, 3, 1, 2))


def make_params(key, n_feat, reduction=16):
    c, cr = n_feat, n_feat // reduction
    ks = jax.random.split(key, 8)
    scale = 0.05
    wa = scale * jax.random.normal(ks[0], (3, 3, c, c), jnp.float32)   # HWIO
    ba = scale * jax.random.normal(ks[1], (1, c), jnp.float32)
    wb = scale * jax.random.normal(ks[2], (3, 3, c, c), jnp.float32)
    bb = scale * jax.random.normal(ks[3], (1, c), jnp.float32)
    wdu1 = scale * jax.random.normal(ks[4], (c, cr), jnp.float32)
    bdu1 = scale * jax.random.normal(ks[5], (1, cr), jnp.float32)
    wdu2 = scale * jax.random.normal(ks[6], (cr, c), jnp.float32)
    bdu2 = scale * jax.random.normal(ks[7], (1, c), jnp.float32)
    return (wa, ba, wb, bb, wdu1, bdu1, wdu2, bdu2)


if __name__ == "__main__":
    key = jax.random.PRNGKey(0)
    k_x, k_p = jax.random.split(key)

    # RCAB(channel * 2) with channel=32, as used by DENet_VGG.rcab_sal_edge.
    N, C, H, W = 4, 64, 16, 16
    x = jax.random.normal(k_x, (N, C, H, W), jnp.float32)
    params = make_params(k_p, C, reduction=16)

    # Wrapper is jit-compatible now that the roll-convention probe is static.
    rcab_fn = jax.jit(functools.partial(rcab_pallas, lane_batch=2))
    out = jax.block_until_ready(rcab_fn(x, params))
    ref = jax.block_until_ready(rcab_reference(x, params))

    assert out.shape == (N, C, H, W)
    # Conv matmuls run in bf16 (f32 accumulation) -> looser tolerance than pure f32.
    np.testing.assert_allclose(np.asarray(out), np.asarray(ref), rtol=2e-2, atol=3e-2)

    print("KERNEL_OK")
</pallas_src>

<mosaic_0001>
module attributes {stable_mosaic.version = 11 : i64} {
  func.func @_rcab_kernel(%arg0: i32, %arg1: memref<2x64x256xf32, #tpu.memory_space<vmem>>, %arg2: memref<9x256xf32, #tpu.memory_space<vmem>>, %arg3: memref<64x576xbf16, #tpu.memory_space<vmem>>, %arg4: memref<64x576xbf16, #tpu.memory_space<vmem>>, %arg5: memref<64x4xf32, #tpu.memory_space<vmem>>, %arg6: memref<4x64xf32, #tpu.memory_space<vmem>>, %arg7: memref<64x4xf32, #tpu.memory_space<vmem>>, %arg8: memref<2x64x256xf32, #tpu.memory_space<vmem>>, %arg9: memref<576x512xbf16, #tpu.memory_space<vmem>>) attributes {dimension_semantics = [#tpu.dimension_semantics<parallel>], iteration_bounds = array<i64: 2>, scalar_prefetch = 0 : i64, scratch_operands = 1 : i64, tpu.core_type = #tpu.core_type<tc>, window_params = [{transform_indices = @transform_0, window_bounds = array<i64: 2, 64, 256>}, {pipeline_mode = #tpu.pipeline_mode<synchronous>, transform_indices = @transform_1, window_bounds = array<i64: 9, 256>}, {pipeline_mode = #tpu.pipeline_mode<synchronous>, transform_indices = @transform_2, window_bounds = array<i64: 64, 576>}, {pipeline_mode = #tpu.pipeline_mode<synchronous>, transform_indices = @transform_3, window_bounds = array<i64: 64, 576>}, {pipeline_mode = #tpu.pipeline_mode<synchronous>, transform_indices = @transform_4, window_bounds = array<i64: 64, 4>}, {pipeline_mode = #tpu.pipeline_mode<synchronous>, transform_indices = @transform_5, window_bounds = array<i64: 4, 64>}, {pipeline_mode = #tpu.pipeline_mode<synchronous>, transform_indices = @transform_6, window_bounds = array<i64: 64, 4>}, {transform_indices = @transform_7, window_bounds = array<i64: 2, 64, 256>}]} {
    %c0 = arith.constant 0 : index
    %c0_0 = arith.constant 0 : index
    %0 = vector.load %arg2[%c0, %c0_0] : memref<9x256xf32, #tpu.memory_space<vmem>>, vector<9x256xf32>
    %c0_1 = arith.constant 0 : index
    %c0_2 = arith.constant 0 : index
    %1 = vector.load %arg5[%c0_1, %c0_2] : memref<64x4xf32, #tpu.memory_space<vmem>>, vector<64x4xf32>
    %2 = vector.extract_strided_slice %1 {offsets = [0, 0], sizes = [64, 1], strides = [1, 1]} : vector<64x4xf32> to vector<64x1xf32>
    %3 = vector.extract_strided_slice %1 {offsets = [0, 1], sizes = [64, 1], strides = [1, 1]} : vector<64x4xf32> to vector<64x1xf32>
    %4 = vector.extract_strided_slice %1 {offsets = [0, 2], sizes = [64, 1], strides = [1, 1]} : vector<64x4xf32> to vector<64x1xf32>
    %5 = vector.extract_strided_slice %1 {offsets = [0, 3], sizes = [4, 1], strides = [1, 1]} : vector<64x4xf32> to vector<4x1xf32>
    %c0_3 = arith.constant 0 : index
    %c0_4 = arith.constant 0 : index
    %c0_5 = arith.constant 0 : index
    %6 = vector.load %arg1[%c0_3, %c0_4, %c0_5] : memref<2x64x256xf32, #tpu.memory_space<vmem>>, vector<1x64x256xf32>
    %7 = vector.shape_cast %6 : vector<1x64x256xf32> to vector<64x256xf32>
    %c17_i32 = arith.constant 17 : i32
    %8 = tpu.dynamic_rotate %7 by %c17_i32 dim 1 : vector<64x256xf32>, i32 -> vector<64x256xf32>
    %9 = vector.extract_strided_slice %0 {offsets = [0, 0], sizes = [1, 256], strides = [1, 1]} : vector<9x256xf32> to vector<1x256xf32>
    %10 = vector.broadcast %9 : vector<1x256xf32> to vector<64x256xf32>
    %11 = arith.mulf %8, %10 : vector<64x256xf32>
    %12 = arith.truncf %11 : vector<64x256xf32> to vector<64x256xbf16>
    %c0_6 = arith.constant 0 : index
    %c0_7 = arith.constant 0 : index
    %13 = vector.load %arg9[%c0_6, %c0_7] : memref<576x512xbf16, #tpu.memory_space<vmem>>, vector<64x256xbf16>
    tpu.vector_store %arg9[%c0_6, %c0_7], %12 {strides = array<i32>} : memref<576x512xbf16, #tpu.memory_space<vmem>>, vector<64x256xbf16>,
    %c16_i32 = arith.constant 16 : i32
    %14 = tpu.dynamic_rotate %7 by %c16_i32 dim 1 : vector<64x256xf32>, i32 -> vector<64x256xf32>
    %15 = vector.extract_strided_slice %0 {offsets = [1, 0], sizes = [1, 256], strides = [1, 1]} : vector<9x256xf32> to vector<1x256xf32>
    %16 = vector.broadcast %15 : vector<1x256xf32> to vector<64x256xf32>
    %17 = arith.mulf %14, %16 : vector<64x256xf32>
    %18 = arith.truncf %17 : vector<64x256xf32> to vector<64x256xbf16>
    %c64 = arith.constant 64 : index
    %c0_8 = arith.constant 0 : index
    %19 = vector.load %arg9[%c64, %c0_8] : memref<576x512xbf16, #tpu.memory_space<vmem>>, vector<64x256xbf16>
    tpu.vector_store %arg9[%c64, %c0_8], %18 {strides = array<i32>} : memref<576x512xbf16, #tpu.memory_space<vmem>>, vector<64x256xbf16>,
    %c15_i32 = arith.constant 15 : i32
    %20 = tpu.dynamic_rotate %7 by %c15_i32 dim 1 : vector<64x256xf32>, i32 -> vector<64x256xf32>
    %21 = vector.extract_strided_slice %0 {offsets = [2, 0], sizes = [1, 256], strides = [1, 1]} : vector<9x256xf32> to vector<1x256xf32>
    %22 = vector.broadcast %21 : vector<1x256xf32> to vector<64x256xf32>
    %23 = arith.mulf %20, %22 : vector<64x256xf32>
    %24 = arith.truncf %23 : vector<64x256xf32> to vector<64x256xbf16>
    %c128 = arith.constant 128 : index
    %c0_9 = arith.constant 0 : index
    %25 = vector.load %arg9[%c128, %c0_9] : memref<576x512xbf16, #tpu.memory_space<vmem>>, vector<64x256xbf16>
    tpu.vector_store %arg9[%c128, %c0_9], %24 {strides = array<i32>} : memref<576x512xbf16, #tpu.memory_space<vmem>>, vector<64x256xbf16>,
    %c1_i32 = arith.constant 1 : i32
    %26 = tpu.dynamic_rotate %7 by %c1_i32 dim 1 : vector<64x256xf32>, i32 -> vector<64x256xf32>
    %27 = vector.extract_strided_slice %0 {offsets = [3, 0], sizes = [1, 256], strides = [1, 1]} : vector<9x256xf32> to vector<1x256xf32>
    %28 = vector.broadcast %27 : vector<1x256xf32> to vector<64x256xf32>
    %29 = arith.mulf %26, %28 : vector<64x256xf32>
    %30 = arith.truncf %29 : vector<64x256xf32> to vector<64x256xbf16>
    %c192 = arith.constant 192 : index
    %c0_10 = arith.constant 0 : index
    %31 = vector.load %arg9[%c192, %c0_10] : memref<576x512xbf16, #tpu.memory_space<vmem>>, vector<64x256xbf16>
    tpu.vector_store %arg9[%c192, %c0_10], %30 {strides = array<i32>} : memref<576x512xbf16, #tpu.memory_space<vmem>>, vector<64x256xbf16>,
    %32 = arith.truncf %7 : vector<64x256xf32> to vector<64x256xbf16>
    %c256 = arith.constant 256 : index
    %c0_11 = arith.constant 0 : index
    %33 = vector.load %arg9[%c256, %c0_11] : memref<576x512xbf16, #tpu.memory_space<vmem>>, vector<64x256xbf16>
    tpu.vector_store %arg9[%c256, %c0_11], %32 {strides = array<i32>} : memref<576x512xbf16, #tpu.memory_space<vmem>>, vector<64x256xbf16>,
    %c255_i32 = arith.constant 255 : i32
    %34 = tpu.dynamic_rotate %7 by %c255_i32 dim 1 : vector<64x256xf32>, i32 -> vector<64x256xf32>
    %35 = vector.extract_strided_slice %0 {offsets = [5, 0], sizes = [1, 256], strides = [1, 1]} : vector<9x256xf32> to vector<1x256xf32>
    %36 = vector.broadcast %35 : vector<1x256xf32> to vector<64x256xf32>
    %37 = arith.mulf %34, %36 : vector<64x256xf32>
    %38 = arith.truncf %37 : vector<64x256xf32> to vector<64x256xbf16>
    %c320 = arith.constant 320 : index
    %c0_12 = arith.constant 0 : index
    %39 = vector.load %arg9[%c320, %c0_12] : memref<576x512xbf16, #tpu.memory_space<vmem>>, vector<64x256xbf16>
    tpu.vector_store %arg9[%c320, %c0_12], %38 {strides = array<i32>} : memref<576x512xbf16, #tpu.memory_space<vmem>>, vector<64x256xbf16>,
    %c241_i32 = arith.constant 241 : i32
    %40 = tpu.dynamic_rotate %7 by %c241_i32 dim 1 : vector<64x256xf32>, i32 -> vector<64x256xf32>
    %41 = vector.extract_strided_slice %0 {offsets = [6, 0], sizes = [1, 256], strides = [1, 1]} : vector<9x256xf32> to vector<1x256xf32>
    %42 = vector.broadcast %41 : vector<1x256xf32> to vector<64x256xf32>
    %43 = arith.mulf %40, %42 : vector<64x256xf32>
    %44 = arith.truncf %43 : vector<64x256xf32> to vector<64x256xbf16>
    %c384 = arith.constant 384 : index
    %c0_13 = arith.constant 0 : index
    %45 = vector.load %arg9[%c384, %c0_13] : memref<576x512xbf16, #tpu.memory_space<vmem>>, vector<64x256xbf16>
    tpu.vector_store %arg9[%c384, %c0_13], %44 {strides = array<i32>} : memref<576x512xbf16, #tpu.memory_space<vmem>>, vector<64x256xbf16>,
    %c240_i32 = arith.constant 240 : i32
    %46 = tpu.dynamic_rotate %7 by %c240_i32 dim 1 : vector<64x256xf32>, i32 -> vector<64x256xf32>
    %47 = vector.extract_strided_slice %0 {offsets = [7, 0], sizes = [1, 256], strides = [1, 1]} : vector<9x256xf32> to vector<1x256xf32>
    %48 = vector.broadcast %47 : vector<1x256xf32> to vector<64x256xf32>
    %49 = arith.mulf %46, %48 : vector<64x256xf32>
    %50 = arith.truncf %49 : vector<64x256xf32> to vector<64x256xbf16>
    %c448 = arith.constant 448 : index
    %c0_14 = arith.constant 0 : index
    %51 = vector.load %arg9[%c448, %c0_14] : memref<576x512xbf16, #tpu.memory_space<vmem>>, vector<64x256xbf16>
    tpu.vector_store %arg9[%c448, %c0_14], %50 {strides = array<i32>} : memref<576x512xbf16, #tpu.memory_space<vmem>>, vector<64x256xbf16>,
    %c239_i32 = arith.constant 239 : i32
    %52 = tpu.dynamic_rotate %7 by %c239_i32 dim 1 : vector<64x256xf32>, i32 -> vector<64x256xf32>
    %53 = vector.extract_strided_slice %0 {offsets = [8, 0], sizes = [1, 256], strides = [1, 1]} : vector<9x256xf32> to vector<1x256xf32>
    %54 = vector.broadcast %53 : vector<1x256xf32> to vector<64x256xf32>
    %55 = arith.mulf %52, %54 : vector<64x256xf32>
    %56 = arith.truncf %55 : vector<64x256xf32> to vector<64x256xbf16>
    %c512 = arith.constant 512 : index
    %c0_15 = arith.constant 0 : index
    %57 = vector.load %arg9[%c512, %c0_15] : memref<576x512xbf16, #tpu.memory_space<vmem>>, vector<64x256xbf16>
    tpu.vector_store %arg9[%c512, %c0_15], %56 {strides = array<i32>} : memref<576x512xbf16, #tpu.memory_space<vmem>>, vector<64x256xbf16>,
    %c1 = arith.constant 1 : index
    %c0_16 = arith.constant 0 : index
    %c0_17 = arith.constant 0 : index
    %58 = vector.load %arg1[%c1, %c0_16, %c0_17] : memref<2x64x256xf32, #tpu.memory_space<vmem>>, vector<1x64x256xf32>
    %59 = vector.shape_cast %58 : vector<1x64x256xf32> to vector<64x256xf32>
    %c17_i32_18 = arith.constant 17 : i32
    %60 = tpu.dynamic_rotate %59 by %c17_i32_18 dim 1 : vector<64x256xf32>, i32 -> vector<64x256xf32>
    %61 = vector.extract_strided_slice %0 {offsets = [0, 0], sizes = [1, 256], strides = [1, 1]} : vector<9x256xf32> to vector<1x256xf32>
    %62 = vector.broadcast %61 : vector<1x256xf32> to vector<64x256xf32>
    %63 = arith.mulf %60, %62 : vector<64x256xf32>
    %64 = arith.truncf %63 : vector<64x256xf32> to vector<64x256xbf16>
    %c0_19 = arith.constant 0 : index
    %c256_20 = arith.constant 256 : index
    %65 = vector.load %arg9[%c0_19, %c256_20] : memref<576x512xbf16, #tpu.memory_space<vmem>>, vector<64x256xbf16>
    tpu.vector_store %arg9[%c0_19, %c256_20], %64 {strides = array<i32>} : memref<576x512xbf16, #tpu.memory_space<vmem>>, vector<64x256xbf16>,
    %c16_i32_21 = arith.constant 16 : i32
    %66 = tpu.dynamic_rotate %59 by %c16_i32_21 dim 1 : vector<64x256xf32>, i32 -> vector<64x256xf32>
    %67 = vector.extract_strided_slice %0 {offsets = [1, 0], sizes = [1, 256], strides = [1, 1]} : vector<9x256xf32> to vector<1x256xf32>
    %68 = vector.broadcast %67 : vector<1x256xf32> to vector<64x256xf32>
    %69 = arith.mulf %66, %68 : vector<64x256xf32>
    %70 = arith.truncf %69 : vector<64x256xf32> to vector<64x256xbf16>
    %c64_22 = arith.constant 64 : index
    %c256_23 = arith.constant 256 : index
    %71 = vector.load %arg9[%c64_22, %c256_23] : memref<576x512xbf16, #tpu.memory_space<vmem>>, vector<64x256xbf16>
    tpu.vector_store %arg9[%c64_22, %c256_23], %70 {strides = array<i32>} : memref<576x512xbf16, #tpu.memory_space<vmem>>, vector<64x256xbf16>,
    %c15_i32_24 = arith.constant 15 : i32
    %72 = tpu.dynamic_rotate %59 by %c15_i32_24 dim 1 : vector<64x256xf32>, i32 -> vector<64x256xf32>
    %73 = vector.extract_strided_slice %0 {offsets = [2, 0], sizes = [1, 256], strides = [1, 1]} : vector<9x256xf32> to vector<1x256xf32>
    %74 = vector.broadcast %73 : vector<1x256xf32> to vector<64x256xf32>
    %75 = arith.mulf %72, %74 : vector<64x256xf32>
    %76 = arith.truncf %75 : vector<64x256xf32> to vector<64x256xbf16>
    %c128_25 = arith.constant 128 : index
    %c256_26 = arith.constant 256 : index
    %77 = vector.load %arg9[%c128_25, %c256_26] : memref<576x512xbf16, #tpu.memory_space<vmem>>, vector<64x256xbf16>
    tpu.vector_store %arg9[%c128_25, %c256_26], %76 {strides = array<i32>} : memref<576x512xbf16, #tpu.memory_space<vmem>>, vector<64x256xbf16>,
    %c1_i32_27 = arith.constant 1 : i32
    %78 = tpu.dynamic_rotate %59 by %c1_i32_27 dim 1 : vector<64x256xf32>, i32 -> vector<64x256xf32>
    %79 = vector.extract_strided_slice %0 {offsets = [3, 0], sizes = [1, 256], strides = [1, 1]} : vector<9x256xf32> to vector<1x256xf32>
    %80 = vector.broadcast %79 : vector<1x256xf32> to vector<64x256xf32>
    %81 = arith.mulf %78, %80 : vector<64x256xf32>
    %82 = arith.truncf %81 : vector<64x256xf32> to vector<64x256xbf16>
    %c192_28 = arith.constant 192 : index
    %c256_29 = arith.constant 256 : index
    %83 = vector.load %arg9[%c192_28, %c256_29] : memref<576x512xbf16, #tpu.memory_space<vmem>>, vector<64x256xbf16>
    tpu.vector_store %arg9[%c192_28, %c256_29], %82 {strides = array<i32>} : memref<576x512xbf16, #tpu.memory_space<vmem>>, vector<64x256xbf16>,
    %84 = arith.truncf %59 : vector<64x256xf32> to vector<64x256xbf16>
    %c256_30 = arith.constant 256 : index
    %c256_31 = arith.constant 256 : index
    %85 = vector.load %arg9[%c256_30, %c256_31] : memref<576x512xbf16, #tpu.memory_space<vmem>>, vector<64x256xbf16>
    tpu.vector_store %arg9[%c256_30, %c256_31], %84 {strides = array<i32>} : memref<576x512xbf16, #tpu.memory_space<vmem>>, vector<64x256xbf16>,
    %c255_i32_32 = arith.constant 255 : i32
    %86 = tpu.dynamic_rotate %59 by %c255_i32_32 dim 1 : vector<64x256xf32>, i32 -> vector<64x256xf32>
    %87 = vector.extract_strided_slice %0 {offsets = [5, 0], sizes = [1, 256], strides = [1, 1]} : vector<9x256xf32> to vector<1x256xf32>
    %88 = vector.broadcast %87 : vector<1x256xf32> to vector<64x256xf32>
    %89 = arith.mulf %86, %88 : vector<64x256xf32>
    %90 = arith.truncf %89 : vector<64x256xf32> to vector<64x256xbf16>
    %c320_33 = arith.constant 320 : index
    %c256_34 = arith.constant 256 : index
    %91 = vector.load %arg9[%c320_33, %c256_34] : memref<576x512xbf16, #tpu.memory_space<vmem>>, vector<64x256xbf16>
    tpu.vector_store %arg9[%c320_33, %c256_34], %90 {strides = array<i32>} : memref<576x512xbf16, #tpu.memory_space<vmem>>, vector<64x256xbf16>,
    %c241_i32_35 = arith.constant 241 : i32
    %92 = tpu.dynamic_rotate %59 by %c241_i32_35 dim 1 : vector<64x256xf32>, i32 -> vector<64x256xf32>
    %93 = vector.extract_strided_slice %0 {offsets = [6, 0], sizes = [1, 256], strides = [1, 1]} : vector<9x256xf32> to vector<1x256xf32>
    %94 = vector.broadcast %93 : vector<1x256xf32> to vector<64x256xf32>
    %95 = arith.mulf %92, %94 : vector<64x256xf32>
    %96 = arith.truncf %95 : vector<64x256xf32> to vector<64x256xbf16>
    %c384_36 = arith.constant 384 : index
    %c256_37 = arith.constant 256 : index
    %97 = vector.load %arg9[%c384_36, %c256_37] : memref<576x512xbf16, #tpu.memory_space<vmem>>, vector<64x256xbf16>
    tpu.vector_store %arg9[%c384_36, %c256_37], %96 {strides = array<i32>} : memref<576x512xbf16, #tpu.memory_space<vmem>>, vector<64x256xbf16>,
    %c240_i32_38 = arith.constant 240 : i32
    %98 = tpu.dynamic_rotate %59 by %c240_i32_38 dim 1 : vector<64x256xf32>, i32 -> vector<64x256xf32>
    %99 = vector.extract_strided_slice %0 {offsets = [7, 0], sizes = [1, 256], strides = [1, 1]} : vector<9x256xf32> to vector<1x256xf32>
    %100 = vector.broadcast %99 : vector<1x256xf32> to vector<64x256xf32>
    %101 = arith.mulf %98, %100 : vector<64x256xf32>
    %102 = arith.truncf %101 : vector<64x256xf32> to vector<64x256xbf16>
    %c448_39 = arith.constant 448 : index
    %c256_40 = arith.constant 256 : index
    %103 = vector.load %arg9[%c448_39, %c256_40] : memref<576x512xbf16, #tpu.memory_space<vmem>>, vector<64x256xbf16>
    tpu.vector_store %arg9[%c448_39, %c256_40], %102 {strides = array<i32>} : memref<576x512xbf16, #tpu.memory_space<vmem>>, vector<64x256xbf16>,
    %c239_i32_41 = arith.constant 239 : i32
    %104 = tpu.dynamic_rotate %59 by %c239_i32_41 dim 1 : vector<64x256xf32>, i32 -> vector<64x256xf32>
    %105 = vector.extract_strided_slice %0 {offsets = [8, 0], sizes = [1, 256], strides = [1, 1]} : vector<9x256xf32> to vector<1x256xf32>
    %106 = vector.broadcast %105 : vector<1x256xf32> to vector<64x256xf32>
    %107 = arith.mulf %104, %106 : vector<64x256xf32>
    %108 = arith.truncf %107 : vector<64x256xf32> to vector<64x256xbf16>
    %c512_42 = arith.constant 512 : index
    %c256_43 = arith.constant 256 : index
    %109 = vector.load %arg9[%c512_42, %c256_43] : memref<576x512xbf16, #tpu.memory_space<vmem>>, vector<64x256xbf16>
    tpu.vector_store %arg9[%c512_42, %c256_43], %108 {strides = array<i32>} : memref<576x512xbf16, #tpu.memory_space<vmem>>, vector<64x256xbf16>,
    %c0_44 = arith.constant 0 : index
    %c0_45 = arith.constant 0 : index
    %110 = vector.load %arg3[%c0_44, %c0_45] : memref<64x576xbf16, #tpu.memory_space<vmem>>, vector<64x576xbf16>
    %c0_46 = arith.constant 0 : index
    %c0_47 = arith.constant 0 : index
    %111 = vector.load %arg9[%c0_46, %c0_47] : memref<576x512xbf16, #tpu.memory_space<vmem>>, vector<576x512xbf16>
    %cst = arith.constant dense<0.000000e+00> : vector<64x512xf32>
    %112 = tpu.matmul %110, %111, %cst {dimension_numbers = #tpu.dot_dimension_numbers<[1], [0], [0], [1], [0, 0, 1, 1], [], []>} : vector<64x576xbf16>, vector<576x512xbf16>, vector<64x512xf32> -> vector<64x512xf32>
    %113 = vector.broadcast %2 : vector<64x1xf32> to vector<64x512xf32>
    %114 = arith.addf %112, %113 : vector<64x512xf32>
    %cst_48 = arith.constant 0.000000e+00 : f32
    %115 = vector.broadcast %cst_48 : f32 to vector<64x512xf32>
    %116 = arith.maximumf %114, %115 : vector<64x512xf32>
    %117 = vector.extract_strided_slice %116 {offsets = [0, 0], sizes = [64, 256], strides = [1, 1]} : vector<64x512xf32> to vector<64x256xf32>
    %c17_i32_49 = arith.constant 17 : i32
    %118 = tpu.dynamic_rotate %117 by %c17_i32_49 dim 1 : vector<64x256xf32>, i32 -> vector<64x256xf32>
    %119 = vector.extract_strided_slice %0 {offsets = [0, 0], sizes = [1, 256], strides = [1, 1]} : vector<9x256xf32> to vector<1x256xf32>
    %120 = vector.broadcast %119 : vector<1x256xf32> to vector<64x256xf32>
    %121 = arith.mulf %118, %120 : vector<64x256xf32>
    %122 = arith.truncf %121 : vector<64x256xf32> to vector<64x256xbf16>
    %c0_50 = arith.constant 0 : index
    %c0_51 = arith.constant 0 : index
    %123 = vector.load %arg9[%c0_50, %c0_51] : memref<576x512xbf16, #tpu.memory_space<vmem>>, vector<64x256xbf16>
    tpu.vector_store %arg9[%c0_50, %c0_51], %122 {strides = array<i32>} : memref<576x512xbf16, #tpu.memory_space<vmem>>, vector<64x256xbf16>,
    %c16_i32_52 = arith.constant 16 : i32
    %124 = tpu.dynamic_rotate %117 by %c16_i32_52 dim 1 : vector<64x256xf32>, i32 -> vector<64x256xf32>
    %125 = vector.extract_strided_slice %0 {offsets = [1, 0], sizes = [1, 256], strides = [1, 1]} : vector<9x256xf32> to vector<1x256xf32>
    %126 = vector.broadcast %125 : vector<1x256xf32> to vector<64x256xf32>
    %127 = arith.mulf %124, %126 : vector<64x256xf32>
    %128 = arith.truncf %127 : vector<64x256xf32> to vector<64x256xbf16>
    %c64_53 = arith.constant 64 : index
    %c0_54 = arith.constant 0 : index
    %129 = vector.load %arg9[%c64_53, %c0_54] : memref<576x512xbf16, #tpu.memory_space<vmem>>, vector<64x256xbf16>
    tpu.vector_store %arg9[%c64_53, %c0_54], %128 {strides = array<i32>} : memref<576x512xbf16, #tpu.memory_space<vmem>>, vector<64x256xbf16>,
    %c15_i32_55 = arith.constant 15 : i32
    %130 = tpu.dynamic_rotate %117 by %c15_i32_55 dim 1 : vector<64x256xf32>, i32 -> vector<64x256xf32>
    %131 = vector.extract_strided_slice %0 {offsets = [2, 0], sizes = [1, 256], strides = [1, 1]} : vector<9x256xf32> to vector<1x256xf32>
    %132 = vector.broadcast %131 : vector<1x256xf32> to vector<64x256xf32>
    %133 = arith.mulf %130, %132 : vector<64x256xf32>
    %134 = arith.truncf %133 : vector<64x256xf32> to vector<64x256xbf16>
    %c128_56 = arith.constant 128 : index
    %c0_57 = arith.constant 0 : index
    %135 = vector.load %arg9[%c128_56, %c0_57] : memref<576x512xbf16, #tpu.memory_space<vmem>>, vector<64x256xbf16>
    tpu.vector_store %arg9[%c128_56, %c0_57], %134 {strides = array<i32>} : memref<576x512xbf16, #tpu.memory_space<vmem>>, vector<64x256xbf16>,
    %c1_i32_58 = arith.constant 1 : i32
    %136 = tpu.dynamic_rotate %117 by %c1_i32_58 dim 1 : vector<64x256xf32>, i32 -> vector<64x256xf32>
    %137 = vector.extract_strided_slice %0 {offsets = [3, 0], sizes = [1, 256], strides = [1, 1]} : vector<9x256xf32> to vector<1x256xf32>
    %138 = vector.broadcast %137 : vector<1x256xf32> to vector<64x256xf32>
    %139 = arith.mulf %136, %138 : vector<64x256xf32>
    %140 = arith.truncf %139 : vector<64x256xf32> to vector<64x256xbf16>
    %c192_59 = arith.constant 192 : index
    %c0_60 = arith.constant 0 : index
    %141 = vector.load %arg9[%c192_59, %c0_60] : memref<576x512xbf16, #tpu.memory_space<vmem>>, vector<64x256xbf16>
    tpu.vector_store %arg9[%c192_59, %c0_60], %140 {strides = array<i32>} : memref<576x512xbf16, #tpu.memory_space<vmem>>, vector<64x256xbf16>,
    %142 = arith.truncf %117 : vector<64x256xf32> to vector<64x256xbf16>
    %c256_61 = arith.constant 256 : index
    %c0_62 = arith.constant 0 : index
    %143 = vector.load %arg9[%c256_61, %c0_62] : memref<576x512xbf16, #tpu.memory_space<vmem>>, vector<64x256xbf16>
    tpu.vector_store %arg9[%c256_61, %c0_62], %142 {strides = array<i32>} : memref<576x512xbf16, #tpu.memory_space<vmem>>, vector<64x256xbf16>,
    %c255_i32_63 = arith.constant 255 : i32
    %144 = tpu.dynamic_rotate %117 by %c255_i32_63 dim 1 : vector<64x256xf32>, i32 -> vector<64x256xf32>
    %145 = vector.extract_strided_slice %0 {offsets = [5, 0], sizes = [1, 256], strides = [1, 1]} : vector<9x256xf32> to vector<1x256xf32>
    %146 = vector.broadcast %145 : vector<1x256xf32> to vector<64x256xf32>
    %147 = arith.mulf %144, %146 : vector<64x256xf32>
    %148 = arith.truncf %147 : vector<64x256xf32> to vector<64x256xbf16>
    %c320_64 = arith.constant 320 : index
    %c0_65 = arith.constant 0 : index
    %149 = vector.load %arg9[%c320_64, %c0_65] : memref<576x512xbf16, #tpu.memory_space<vmem>>, vector<64x256xbf16>
    tpu.vector_store %arg9[%c320_64, %c0_65], %148 {strides = array<i32>} : memref<576x512xbf16, #tpu.memory_space<vmem>>, vector<64x256xbf16>,
    %c241_i32_66 = arith.constant 241 : i32
    %150 = tpu.dynamic_rotate %117 by %c241_i32_66 dim 1 : vector<64x256xf32>, i32 -> vector<64x256xf32>
    %151 = vector.extract_strided_slice %0 {offsets = [6, 0], sizes = [1, 256], strides = [1, 1]} : vector<9x256xf32> to vector<1x256xf32>
    %152 = vector.broadcast %151 : vector<1x256xf32> to vector<64x256xf32>
    %153 = arith.mulf %150, %152 : vector<64x256xf32>
    %154 = arith.truncf %153 : vector<64x256xf32> to vector<64x256xbf16>
    %c384_67 = arith.constant 384 : index
    %c0_68 = arith.constant 0 : index
    %155 = vector.load %arg9[%c384_67, %c0_68] : memref<576x512xbf16, #tpu.memory_space<vmem>>, vector<64x256xbf16>
    tpu.vector_store %arg9[%c384_67, %c0_68], %154 {strides = array<i32>} : memref<576x512xbf16, #tpu.memory_space<vmem>>, vector<64x256xbf16>,
    %c240_i32_69 = arith.constant 240 : i32
    %156 = tpu.dynamic_rotate %117 by %c240_i32_69 dim 1 : vector<64x256xf32>, i32 -> vector<64x256xf32>
    %157 = vector.extract_strided_slice %0 {offsets = [7, 0], sizes = [1, 256], strides = [1, 1]} : vector<9x256xf32> to vector<1x256xf32>
    %158 = vector.broadcast %157 : vector<1x256xf32> to vector<64x256xf32>
    %159 = arith.mulf %156, %158 : vector<64x256xf32>
    %160 = arith.truncf %159 : vector<64x256xf32> to vector<64x256xbf16>
    %c448_70 = arith.constant 448 : index
    %c0_71 = arith.constant 0 : index
    %161 = vector.load %arg9[%c448_70, %c0_71] : memref<576x512xbf16, #tpu.memory_space<vmem>>, vector<64x256xbf16>
    tpu.vector_store %arg9[%c448_70, %c0_71], %160 {strides = array<i32>} : memref<576x512xbf16, #tpu.memory_space<vmem>>, vector<64x256xbf16>,
    %c239_i32_72 = arith.constant 239 : i32
    %162 = tpu.dynamic_rotate %117 by %c239_i32_72 dim 1 : vector<64x256xf32>, i32 -> vector<64x256xf32>
    %163 = vector.extract_strided_slice %0 {offsets = [8, 0], sizes = [1, 256], strides = [1, 1]} : vector<9x256xf32> to vector<1x256xf32>
    %164 = vector.broadcast %163 : vector<1x256xf32> to vector<64x256xf32>
    %165 = arith.mulf %162, %164 : vector<64x256xf32>
    %166 = arith.truncf %165 : vector<64x256xf32> to vector<64x256xbf16>
    %c512_73 = arith.constant 512 : index
    %c0_74 = arith.constant 0 : index
    %167 = vector.load %arg9[%c512_73, %c0_74] : memref<576x512xbf16, #tpu.memory_space<vmem>>, vector<64x256xbf16>
    tpu.vector_store %arg9[%c512_73, %c0_74], %166 {strides = array<i32>} : memref<576x512xbf16, #tpu.memory_space<vmem>>, vector<64x256xbf16>,
    %168 = vector.extract_strided_slice %116 {offsets = [0, 256], sizes = [64, 256], strides = [1, 1]} : vector<64x512xf32> to vector<64x256xf32>
    %c17_i32_75 = arith.constant 17 : i32
    %169 = tpu.dynamic_rotate %168 by %c17_i32_75 dim 1 : vector<64x256xf32>, i32 -> vector<64x256xf32>
    %170 = vector.extract_strided_slice %0 {offsets = [0, 0], sizes = [1, 256], strides = [1, 1]} : vector<9x256xf32> to vector<1x256xf32>
    %171 = vector.broadcast %170 : vector<1x256xf32> to vector<64x256xf32>
    %172 = arith.mulf %169, %171 : vector<64x256xf32>
    %173 = arith.truncf %172 : vector<64x256xf32> to vector<64x256xbf16>
    %c0_76 = arith.constant 0 : index
    %c256_77 = arith.constant 256 : index
    %174 = vector.load %arg9[%c0_76, %c256_77] : memref<576x512xbf16, #tpu.memory_space<vmem>>, vector<64x256xbf16>
    tpu.vector_store %arg9[%c0_76, %c256_77], %173 {strides = array<i32>} : memref<576x512xbf16, #tpu.memory_space<vmem>>, vector<64x256xbf16>,
    %c16_i32_78 = arith.constant 16 : i32
    %175 = tpu.dynamic_rotate %168 by %c16_i32_78 dim 1 : vector<64x256xf32>, i32 -> vector<64x256xf32>
    %176 = vector.extract_strided_slice %0 {offsets = [1, 0], sizes = [1, 256], strides = [1, 1]} : vector<9x256xf32> to vector<1x256xf32>
    %177 = vector.broadcast %176 : vector<1x256xf32> to vector<64x256xf32>
    %178 = arith.mulf %175, %177 : vector<64x256xf32>
    %179 = arith.truncf %178 : vector<64x256xf32> to vector<64x256xbf16>
    %c64_79 = arith.constant 64 : index
    %c256_80 = arith.constant 256 : index
    %180 = vector.load %arg9[%c64_79, %c256_80] : memref<576x512xbf16, #tpu.memory_space<vmem>>, vector<64x256xbf16>
    tpu.vector_store %arg9[%c64_79, %c256_80], %179 {strides = array<i32>} : memref<576x512xbf16, #tpu.memory_space<vmem>>, vector<64x256xbf16>,
    %c15_i32_81 = arith.constant 15 : i32
    %181 = tpu.dynamic_rotate %168 by %c15_i32_81 dim 1 : vector<64x256xf32>, i32 -> vector<64x256xf32>
    %182 = vector.extract_strided_slice %0 {offsets = [2, 0], sizes = [1, 256], strides = [1, 1]} : vector<9x256xf32> to vector<1x256xf32>
    %183 = vector.broadcast %182 : vector<1x256xf32> to vector<64x256xf32>
    %184 = arith.mulf %181, %183 : vector<64x256xf32>
    %185 = arith.truncf %184 : vector<64x256xf32> to vector<64x256xbf16>
    %c128_82 = arith.constant 128 : index
    %c256_83 = arith.constant 256 : index
    %186 = vector.load %arg9[%c128_82, %c256_83] : memref<576x512xbf16, #tpu.memory_space<vmem>>, vector<64x256xbf16>
    tpu.vector_store %arg9[%c128_82, %c256_83], %185 {strides = array<i32>} : memref<576x512xbf16, #tpu.memory_space<vmem>>, vector<64x256xbf16>,
    %c1_i32_84 = arith.constant 1 : i32
    %187 = tpu.dynamic_rotate %168 by %c1_i32_84 dim 1 : vector<64x256xf32>, i32 -> vector<64x256xf32>
    %188 = vector.extract_strided_slice %0 {offsets = [3, 0], sizes = [1, 256], strides = [1, 1]} : vector<9x256xf32> to vector<1x256xf32>
    %189 = vector.broadcast %188 : vector<1x256xf32> to vector<64x256xf32>
    %190 = arith.mulf %187, %189 : vector<64x256xf32>
    %191 = arith.truncf %190 : vector<64x256xf32> to vector<64x256xbf16>
    %c192_85 = arith.constant 192 : index
    %c256_86 = arith.constant 256 : index
    %192 = vector.load %arg9[%c192_85, %c256_86] : memref<576x512xbf16, #tpu.memory_space<vmem>>, vector<64x256xbf16>
    tpu.vector_store %arg9[%c192_85, %c256_86], %191 {strides = array<i32>} : memref<576x512xbf16, #tpu.memory_space<vmem>>, vector<64x256xbf16>,
    %193 = arith.truncf %168 : vector<64x256xf32> to vector<64x256xbf16>
    %c256_87 = arith.constant 256 : index
    %c256_88 = arith.constant 256 : index
    %194 = vector.load %arg9[%c256_87, %c256_88] : memref<576x512xbf16, #tpu.memory_space<vmem>>, vector<64x256xbf16>
    tpu.vector_store %arg9[%c256_87, %c256_88], %193 {strides = array<i32>} : memref<576x512xbf16, #tpu.memory_space<vmem>>, vector<64x256xbf16>,
    %c255_i32_89 = arith.constant 255 : i32
    %195 = tpu.dynamic_rotate %168 by %c255_i32_89 dim 1 : vector<64x256xf32>, i32 -> vector<64x256xf32>
    %196 = vector.extract_strided_slice %0 {offsets = [5, 0], sizes = [1, 256], strides = [1, 1]} : vector<9x256xf32> to vector<1x256xf32>
    %197 = vector.broadcast %196 : vector<1x256xf32> to vector<64x256xf32>
    %198 = arith.mulf %195, %197 : vector<64x256xf32>
    %199 = arith.truncf %198 : vector<64x256xf32> to vector<64x256xbf16>
    %c320_90 = arith.constant 320 : index
    %c256_91 = arith.constant 256 : index
    %200 = vector.load %arg9[%c320_90, %c256_91] : memref<576x512xbf16, #tpu.memory_space<vmem>>, vector<64x256xbf16>
    tpu.vector_store %arg9[%c320_90, %c256_91], %199 {strides = array<i32>} : memref<576x512xbf16, #tpu.memory_space<vmem>>, vector<64x256xbf16>,
    %c241_i32_92 = arith.constant 241 : i32
    %201 = tpu.dynamic_rotate %168 by %c241_i32_92 dim 1 : vector<64x256xf32>, i32 -> vector<64x256xf32>
    %202 = vector.extract_strided_slice %0 {offsets = [6, 0], sizes = [1, 256], strides = [1, 1]} : vector<9x256xf32> to vector<1x256xf32>
    %203 = vector.broadcast %202 : vector<1x256xf32> to vector<64x256xf32>
    %204 = arith.mulf %201, %203 : vector<64x256xf32>
    %205 = arith.truncf %204 : vector<64x256xf32> to vector<64x256xbf16>
    %c384_93 = arith.constant 384 : index
    %c256_94 = arith.constant 256 : index
    %206 = vector.load %arg9[%c384_93, %c256_94] : memref<576x512xbf16, #tpu.memory_space<vmem>>, vector<64x256xbf16>
    tpu.vector_store %arg9[%c384_93, %c256_94], %205 {strides = array<i32>} : memref<576x512xbf16, #tpu.memory_space<vmem>>, vector<64x256xbf16>,
    %c240_i32_95 = arith.constant 240 : i32
    %207 = tpu.dynamic_rotate %168 by %c240_i32_95 dim 1 : vector<64x256xf32>, i32 -> vector<64x256xf32>
    %208 = vector.extract_strided_slice %0 {offsets = [7, 0], sizes = [1, 256], strides = [1, 1]} : vector<9x256xf32> to vector<1x256xf32>
    %209 = vector.broadcast %208 : vector<1x256xf32> to vector<64x256xf32>
    %210 = arith.mulf %207, %209 : vector<64x256xf32>
    %211 = arith.truncf %210 : vector<64x256xf32> to vector<64x256xbf16>
    %c448_96 = arith.constant 448 : index
    %c256_97 = arith.constant 256 : index
    %212 = vector.load %arg9[%c448_96, %c256_97] : memref<576x512xbf16, #tpu.memory_space<vmem>>, vector<64x256xbf16>
    tpu.vector_store %arg9[%c448_96, %c256_97], %211 {strides = array<i32>} : memref<576x512xbf16, #tpu.memory_space<vmem>>, vector<64x256xbf16>,
    %c239_i32_98 = arith.constant 239 : i32
    %213 = tpu.dynamic_rotate %168 by %c239_i32_98 dim 1 : vector<64x256xf32>, i32 -> vector<64x256xf32>
    %214 = vector.extract_strided_slice %0 {offsets = [8, 0], sizes = [1, 256], strides = [1, 1]} : vector<9x256xf32> to vector<1x256xf32>
    %215 = vector.broadcast %214 : vector<1x256xf32> to vector<64x256xf32>
    %216 = arith.mulf %213, %215 : vector<64x256xf32>
    %217 = arith.truncf %216 : vector<64x256xf32> to vector<64x256xbf16>
    %c512_99 = arith.constant 512 : index
    %c256_100 = arith.constant 256 : index
    %218 = vector.load %arg9[%c512_99, %c256_100] : memref<576x512xbf16, #tpu.memory_space<vmem>>, vector<64x256xbf16>
    tpu.vector_store %arg9[%c512_99, %c256_100], %217 {strides = array<i32>} : memref<576x512xbf16, #tpu.memory_space<vmem>>, vector<64x256xbf16>,
    %c0_101 = arith.constant 0 : index
    %c0_102 = arith.constant 0 : index
    %219 = vector.load %arg4[%c0_101, %c0_102] : memref<64x576xbf16, #tpu.memory_space<vmem>>, vector<64x576xbf16>
    %c0_103 = arith.constant 0 : index
    %c0_104 = arith.constant 0 : index
    %220 = vector.load %arg9[%c0_103, %c0_104] : memref<576x512xbf16, #tpu.memory_space<vmem>>, vector<576x512xbf16>
    %cst_105 = arith.constant dense<0.000000e+00> : vector<64x512xf32>
    %221 = tpu.matmul %219, %220, %cst_105 {dimension_numbers = #tpu.dot_dimension_numbers<[1], [0], [0], [1], [0, 0, 1, 1], [], []>} : vector<64x576xbf16>, vector<576x512xbf16>, vector<64x512xf32> -> vector<64x512xf32>
    %222 = vector.broadcast %3 : vector<64x1xf32> to vector<64x512xf32>
    %223 = arith.addf %221, %222 : vector<64x512xf32>
    %224 = vector.extract_strided_slice %223 {offsets = [0, 0], sizes = [64, 256], strides = [1, 1]} : vector<64x512xf32> to vector<64x256xf32>
    %cst_106 = arith.constant dense<0.000000e+00> : vector<64xf32>
    %225 = vector.multi_reduction <add>, %224, %cst_106 [1] : vector<64x256xf32> to vector<64xf32>
    %226 = vector.shape_cast %225 : vector<64xf32> to vector<64x1xf32>
    %cst_107 = arith.constant 2.560000e+02 : f32
    %227 = vector.broadcast %cst_107 : f32 to vector<64x1xf32>
    %228 = arith.divf %226, %227 : vector<64x1xf32>
    %229 = vector.extract_strided_slice %223 {offsets = [0, 256], sizes = [64, 256], strides = [1, 1]} : vector<64x512xf32> to vector<64x256xf32>
    %cst_108 = arith.constant dense<0.000000e+00> : vector<64xf32>
    %230 = vector.multi_reduction <add>, %229, %cst_108 [1] : vector<64x256xf32> to vector<64xf32>
    %231 = vector.shape_cast %230 : vector<64xf32> to vector<64x1xf32>
    %cst_109 = arith.constant 2.560000e+02 : f32
    %232 = vector.broadcast %cst_109 : f32 to vector<64x1xf32>
    %233 = arith.divf %231, %232 : vector<64x1xf32>
    %234 = tpu.concatenate %228, %233 in 1 : vector<64x1xf32>, vector<64x1xf32> -> vector<64x2xf32>
    %c0_110 = arith.constant 0 : index
    %c0_111 = arith.constant 0 : index
    %235 = vector.load %arg6[%c0_110, %c0_111] : memref<4x64xf32, #tpu.memory_space<vmem>>, vector<4x64xf32>
    %cst_112 = arith.constant dense<0.000000e+00> : vector<4x2xf32>
    %236 = tpu.matmul %235, %234, %cst_112 {dimension_numbers = #tpu.dot_dimension_numbers<[1], [0], [0], [1], [0, 0, 1, 1], [], []>} : vector<4x64xf32>, vector<64x2xf32>, vector<4x2xf32> -> vector<4x2xf32>
    %237 = vector.broadcast %5 : vector<4x1xf32> to vector<4x2xf32>
    %238 = arith.addf %236, %237 : vector<4x2xf32>
    %cst_113 = arith.constant 0.000000e+00 : f32
    %239 = vector.broadcast %cst_113 : f32 to vector<4x2xf32>
    %240 = arith.maximumf %238, %239 : vector<4x2xf32>
    %c0_114 = arith.constant 0 : index
    %c0_115 = arith.constant 0 : index
    %241 = vector.load %arg7[%c0_114, %c0_115] : memref<64x4xf32, #tpu.memory_space<vmem>>, vector<64x4xf32>
    %cst_116 = arith.constant dense<0.000000e+00> : vector<64x2xf32>
    %242 = tpu.matmul %241, %240, %cst_116 {dimension_numbers = #tpu.dot_dimension_numbers<[1], [0], [0], [1], [0, 0, 1, 1], [], []>} : vector<64x4xf32>, vector<4x2xf32>, vector<64x2xf32> -> vector<64x2xf32>
    %243 = vector.broadcast %4 : vector<64x1xf32> to vector<64x2xf32>
    %244 = arith.addf %242, %243 : vector<64x2xf32>
    %245 = arith.negf %244 : vector<64x2xf32>
    %246 = math.exp %245 : vector<64x2xf32>
    %cst_117 = arith.constant 1.000000e+00 : f32
    %247 = vector.broadcast %cst_117 : f32 to vector<64x2xf32>
    %248 = arith.addf %247, %246 : vector<64x2xf32>
    %249 = arith.divf %247, %248 : vector<64x2xf32>
    %250 = vector.extract_strided_slice %223 {offsets = [0, 0], sizes = [64, 256], strides = [1, 1]} : vector<64x512xf32> to vector<64x256xf32>
    %251 = vector.extract_strided_slice %249 {offsets = [0, 0], sizes = [64, 1], strides = [1, 1]} : vector<64x2xf32> to vector<64x1xf32>
    %252 = vector.broadcast %251 : vector<64x1xf32> to vector<64x256xf32>
    %253 = arith.mulf %250, %252 : vector<64x256xf32>
    %c0_118 = arith.constant 0 : index
    %c0_119 = arith.constant 0 : index
    %c0_120 = arith.constant 0 : index
    %254 = vector.load %arg1[%c0_118, %c0_119, %c0_120] : memref<2x64x256xf32, #tpu.memory_space<vmem>>, vector<1x64x256xf32>
    %255 = vector.shape_cast %254 : vector<1x64x256xf32> to vector<64x256xf32>
    %256 = arith.addf %253, %255 : vector<64x256xf32>
    %c0_121 = arith.constant 0 : index
    %c0_122 = arith.constant 0 : index
    %c0_123 = arith.constant 0 : index
    %257 = vector.load %arg8[%c0_121, %c0_122, %c0_123] : memref<2x64x256xf32, #tpu.memory_space<vmem>>, vector<1x64x256xf32>
    %258 = vector.shape_cast %257 : vector<1x64x256xf32> to vector<64x256xf32>
    %259 = vector.shape_cast %256 : vector<64x256xf32> to vector<1x64x256xf32>
    tpu.vector_store %arg8[%c0_121, %c0_122, %c0_123], %259 {strides = array<i32>} : memref<2x64x256xf32, #tpu.memory_space<vmem>>, vector<1x64x256xf32>,
    %260 = vector.extract_strided_slice %223 {offsets = [0, 256], sizes = [64, 256], strides = [1, 1]} : vector<64x512xf32> to vector<64x256xf32>
    %261 = vector.extract_strided_slice %249 {offsets = [0, 1], sizes = [64, 1], strides = [1, 1]} : vector<64x2xf32> to vector<64x1xf32>
    %262 = vector.broadcast %261 : vector<64x1xf32> to vector<64x256xf32>
    %263 = arith.mulf %260, %262 : vector<64x256xf32>
    %c1_124 = arith.constant 1 : index
    %c0_125 = arith.constant 0 : index
    %c0_126 = arith.constant 0 : index
    %264 = vector.load %arg1[%c1_124, %c0_125, %c0_126] : memref<2x64x256xf32, #tpu.memory_space<vmem>>, vector<1x64x256xf32>
    %265 = vector.shape_cast %264 : vector<1x64x256xf32> to vector<64x256xf32>
    %266 = arith.addf %263, %265 : vector<64x256xf32>
    %c1_127 = arith.constant 1 : index
    %c0_128 = arith.constant 0 : index
    %c0_129 = arith.constant 0 : index
    %267 = vector.load %arg8[%c1_127, %c0_128, %c0_129] : memref<2x64x256xf32, #tpu.memory_space<vmem>>, vector<1x64x256xf32>
    %268 = vector.shape_cast %267 : vector<1x64x256xf32> to vector<64x256xf32>
    %269 = vector.shape_cast %266 : vector<64x256xf32> to vector<1x64x256xf32>
    tpu.vector_store %arg8[%c1_127, %c0_128, %c0_129], %269 {strides = array<i32>} : memref<2x64x256xf32, #tpu.memory_space<vmem>>, vector<1x64x256xf32>,
    return
  }
  func.func @transform_0(%arg0: i32) -> (i32, i32, i32) {
    %c0_i32 = arith.constant 0 : i32
    %c0_i32_0 = arith.constant 0 : i32
    %c0_i32_1 = arith.constant 0 : i32
    return %arg0, %c0_i32, %c0_i32_0 : i32, i32, i32
  }
  func.func @transform_1(%arg0: i32) -> (i32, i32) {
    %c0_i32 = arith.constant 0 : i32
    %c0_i32_0 = arith.constant 0 : i32
    %c0_i32_1 = arith.constant 0 : i32
    return %c0_i32, %c0_i32_0 : i32, i32
  }
  func.func @transform_2(%arg0: i32) -> (i32, i32) {
    %c0_i32 = arith.constant 0 : i32
    %c0_i32_0 = arith.constant 0 : i32
    %c0_i32_1 = arith.constant 0 : i32
    return %c0_i32, %c0_i32_0 : i32, i32
  }
  func.func @transform_3(%arg0: i32) -> (i32, i32) {
    %c0_i32 = arith.constant 0 : i32
    %c0_i32_0 = arith.constant 0 : i32
    %c0_i32_1 = arith.constant 0 : i32
    return %c0_i32, %c0_i32_0 : i32, i32
  }
  func.func @transform_4(%arg0: i32) -> (i32, i32) {
    %c0_i32 = arith.constant 0 : i32
    %c0_i32_0 = arith.constant 0 : i32
    %c0_i32_1 = arith.constant 0 : i32
    return %c0_i32, %c0_i32_0 : i32, i32
  }
  func.func @transform_5(%arg0: i32) -> (i32, i32) {
    %c0_i32 = arith.constant 0 : i32
    %c0_i32_0 = arith.constant 0 : i32
    %c0_i32_1 = arith.constant 0 : i32
    return %c0_i32, %c0_i32_0 : i32, i32
  }
  func.func @transform_6(%arg0: i32) -> (i32, i32) {
    %c0_i32 = arith.constant 0 : i32
    %c0_i32_0 = arith.constant 0 : i32
    %c0_i32_1 = arith.constant 0 : i32
    return %c0_i32, %c0_i32_0 : i32, i32
  }
  func.func @transform_7(%arg0: i32) -> (i32, i32, i32) {
    %c0_i32 = arith.constant 0 : i32
    %c0_i32_0 = arith.constant 0 : i32
    %c0_i32_1 = arith.constant 0 : i32
    return %arg0, %c0_i32, %c0_i32_0 : i32, i32, i32
  }
}

</mosaic_0001>

<bundles_post_ra>
// kernel: rcab_pallas.1
= control target key start
LH: loop header
LB: loop body
LE: loop exit
PB: predicated region body
PF: predicated region fallthrough
CT: control target
= control target key end

     0   :  { %s8836_s24 = smov 0   ;;  %s13992_s0 = inlined_call_operand.vmem [shape: f32[4,64,256], index: 0, kind: input, shape index: {}]   ;;  %s13993_s1 = inlined_call_operand.vmem [shape: f32[9,256], index: 1, kind: input, shape index: {}]   ;;  %s13994_s2 = inlined_call_operand.vmem [shape: bf16[64,576], index: 2, kind: input, shape index: {}]   ;;  %s13995_s3 = inlined_call_operand.vmem [shape: bf16[64,576], index: 3, kind: input, shape index: {}]   ;;  %s13996_s4 = inlined_call_operand.vmem [shape: f32[64,4], index: 4, kind: input, shape index: {}]   ;;  %s13997_s5 = inlined_call_operand.vmem [shape: f32[4,64], index: 5, kind: input, shape index: {}]   ;;  %s13998_s6 = inlined_call_operand.vmem [shape: f32[64,4], index: 6, kind: input, shape index: {}]   ;;  %s13999_s7 = inlined_call_operand.vmem [shape: f32[4,64,256], index: 7, kind: output, shape index: {}]  }
   0x1 LB: > { %s6878_s25 = sadd.s32 4294967295, %s8781_s24   ;;  %p6882_p0 = scmp.ge.s32.totalorder %s8781_s24, 1  ;;  %s8781_s24 = sphi %s8836_s24, %s17_s24  }
   0x2   : > { %p239_p1 = scmp.lt.s32.totalorder %s8781_s24, 3 }
   0x4   : > { %p240_p2 = pnand %p6882_p0, %p239_p1 }
   0x6   : > { %243 = sbr.rel (%p240_p2) target bundleno = 2507 (0x9cb), region = 48 }
   0xb   : > { %s6883_s26 = sshll.u32 %s6878_s25, 1  ;;  %s8783_s8 = smov 17   ;;  %v348_v18 = vlaneseq  ;;  %v8995_v21 = vld [vmem:[%s13993_s1] sm:$0xff]  ;;  %v9000_v22 = vld [vmem:[%s13993_s1 + $0x8] sm:$0xff]  ;;  %vm2699_vm8 = vcmask 523264   ;;  %vm6319_vm10 = vcmask 7168  }
   0xc   : > { %p274_p3 = scmp.lt.s32.totalorder %s6883_s26, 3  ;;  %s8784_s9 = smov 16   ;;  %v9010_v23 = vperm.slane %v8995_v21, 0  ;;  %v9013_v24 = vperm.slane %v9000_v22, 0  ;;  %vm6422_vm11 = vcmask 1043456   ;;  %vm6397_vm12 = vcmask 31744  }
   0xd   : > { %s8785_s10 = smov 15   ;;  %v8990_v20 = vand.u32 127, %v348_v18  ;;  %s8786_s15 = smov 1  }
   0xe   : > { %s14409_s26 = smov (!%p274_p3, %s6883_s26), 3  ;;  %14103 = vst [vmem:[#allocation3_spill] sm:$0xff] %v9010_v23  ;;  %s8787_s16 = smov 127  }
   0xf   : > { %s8301_s27 = sshll.u32 %s14409_s26, 7  ;;  %vm350_vm0 = vcmp.lt.s32.totalorder %v8990_v20, 17  ;;  %14104 = vst [vmem:[#allocation4_spill] sm:$0xff] %v9013_v24  ;;  %vm433_vm1 = vcmp.lt.s32.totalorder %v8990_v20, 16  ;;  %vm516_vm2 = vcmp.lt.s32.totalorder %v8990_v20, 15  ;;  %s8788_s17 = smov 113  }
  0x10   : > { %s8852_s30 = scalar_lea.vmem %s13992_s0, %s8301_s27  ;;  %vm599_vm3 = vcmp.lt.s32.totalorder %v8990_v20, 1  ;;  %s8789_s18 = smov 112   ;;  %vm698_vm4 = vcmp.lt.s32.totalorder %v8990_v20, 127  ;;  %vm781_vm5 = vcmp.lt.s32.totalorder %v8990_v20, 113  ;;  %vm864_vm6 = vcmp.lt.s32.totalorder %v8990_v20, 112 }
  0x11   : > { %v8855_v0 = vld [vmem:[%s8852_s30 + $0x40] sm:$0xff]  ;;  %v8870_v3 = vld [vmem:[%s8852_s30 + $0x50] sm:$0xff]  ;;  %v8888_v7 = vld [vmem:[%s8852_s30 + $0x8] sm:$0xff]  ;;  %s8790_s19 = smov 111   ;;  %vm947_vm7 = vcmp.lt.s32.totalorder %v8990_v20, 111  ;;  %s13895_s11 = scalar_lea.vmem %s13999_s7, %s8301_s27 }
  0x12   : > { %v8858_v1 = vld [vmem:[%s8852_s30 + $0x20] sm:$0xff]  ;;  %324 = vrot.lane.b32.xlu2 %v8855_v0, %s8783_s8  ;;  %v8873_v4 = vld [vmem:[%s8852_s30 + $0x30] sm:$0xff]  ;;  %v8900_v9 = vld [vmem:[%s8852_s30 + $0x28] sm:$0xff] }
  0x13   : > { %v8861_v2 = vld [vmem:[%s8852_s30] sm:$0xff]  ;;  %320 = vrot.lane.b32.xlu1 %v8858_v1, %s8783_s8  ;;  %v8876_v5 = vld [vmem:[%s8852_s30 + $0x10] sm:$0xff]  ;;  %v8903_v10 = vld [vmem:[%s8852_s30 + $0x38] sm:$0xff] }
  0x14   : > { %316 = vrot.lane.b32.xlu0 %v8861_v2, %s8783_s8  ;;  %v8885_v6 = vld [vmem:[%s8852_s30 + $0x70] sm:$0xff]  ;;  %v8891_v8 = vld [vmem:[%s8852_s30 + $0x60] sm:$0xff]  ;;  %v8906_v11 = vld [vmem:[%s8852_s30 + $0x18] sm:$0xff] }
  0x15   : > { %v8915_v12 = vld [vmem:[%s8852_s30 + $0x58] sm:$0xff]  ;;  %v8918_v13 = vld [vmem:[%s8852_s30 + $0x68] sm:$0xff] }
  0x16   : > { %v8921_v14 = vld [vmem:[%s8852_s30 + $0x48] sm:$0xff]  ;;  %v8930_v15 = vld [vmem:[%s8852_s30 + $0x78] sm:$0xff] }
  0x1a   : > { %326 = vrot.lane.b32.xlu2 %v8870_v3, %s8783_s8 }
  0x1b   : > { %322 = vrot.lane.b32.xlu1 %v8873_v4, %s8783_s8 }
  0x1c   : > { %318 = vrot.lane.b32.xlu0 %v8876_v5, %s8783_s8 }
  0x22   : > { %332 = vrot.lane.b32.xlu2 %v8888_v7, %s8783_s8 }
  0x23   : > { %330 = vrot.lane.b32.xlu1 %v8885_v6, %s8783_s8 }
  0x24   : > { %328 = vrot.lane.b32.xlu0 %v8891_v8, %s8783_s8 }
  0x2a   : > { %338 = vrot.lane.b32.xlu2 %v8903_v10, %s8783_s8 }
  0x2b   : > { %336 = vrot.lane.b32.xlu1 %v8900_v9, %s8783_s8 }
  0x2c   : > { %334 = vrot.lane.b32.xlu0 %v8906_v11, %s8783_s8 }
  0x32   : > { %344 = vrot.lane.b32.xlu2 %v8918_v13, %s8783_s8 }
  0x33   : > { %342 = vrot.lane.b32.xlu1 %v8915_v12, %s8783_s8 }
  0x34   : > { %340 = vrot.lane.b32.xlu0 %v8921_v14, %s8783_s8 }
  0x3a   : > { %403 = vrot.lane.b32.xlu2 %v8876_v5, %s8784_s9 }
  0x3b   : > { %401 = vrot.lane.b32.xlu1 %v8861_v2, %s8784_s9 }
  0x3c   : > { %346 = vrot.lane.b32.xlu0 %v8930_v15, %s8783_s8 }
  0x42   : > { %409 = vrot.lane.b32.xlu2 %v8855_v0, %s8784_s9 }
  0x43   : > { %407 = vrot.lane.b32.xlu1 %v8873_v4, %s8784_s9 }
  0x44   : > { %405 = vrot.lane.b32.xlu0 %v8858_v1, %s8784_s9 }
  0x4a   : > { %415 = vrot.lane.b32.xlu2 %v8885_v6, %s8784_s9 }
  0x4b   : > { %413 = vrot.lane.b32.xlu1 %v8891_v8, %s8784_s9 }
  0x4c   : > { %411 = vrot.lane.b32.xlu0 %v8870_v3, %s8784_s9 }
  0x52   : > { %421 = vrot.lane.b32.xlu2 %v8900_v9, %s8784_s9 }
  0x53   : > { %419 = vrot.lane.b32.xlu1 %v8906_v11, %s8784_s9 }
  0x54   : > { %417 = vrot.lane.b32.xlu0 %v8888_v7, %s8784_s9 }
  0x5a   : > { %427 = vrot.lane.b32.xlu2 %v8915_v12, %s8784_s9 }
  0x5b   : > { %425 = vrot.lane.b32.xlu1 %v8921_v14, %s8784_s9 }
  0x5c   : > { %423 = vrot.lane.b32.xlu0 %v8903_v10, %s8784_s9 }
  0x62   : > { %484 = vrot.lane.b32.xlu2 %v8861_v2, %s8785_s10 }
  0x63   : > { %431 = vrot.lane.b32.xlu1 %v8930_v15, %s8784_s9 }
  0x64   : > { %429 = vrot.lane.b32.xlu0 %v8918_v13, %s8784_s9 }
  0x6a   : > { %490 = vrot.lane.b32.xlu2 %v8873_v4, %s8785_s10 }
  0x6b   : > { %488 = vrot.lane.b32.xlu1 %v8858_v1, %s8785_s10 }
  0x6c   : > { %486 = vrot.lane.b32.xlu0 %v8876_v5, %s8785_s10  ;;  %v8974_v16 = vpop.permute.xlu2 %324 }
  0x72   : > { %496 = vrot.lane.b32.xlu2 %v8891_v8, %s8785_s10 }
  0x73   : > { %494 = vrot.lane.b32.xlu1 %v8870_v3, %s8785_s10 }
  0x74   : > { %492 = vrot.lane.b32.xlu0 %v8855_v0, %s8785_s10  ;;  %v8982_v17 = vpop.permute.xlu2 %326 }
  0x7a   : > { %502 = vrot.lane.b32.xlu2 %v8906_v11, %s8785_s10 }
  0x7b   : > { %500 = vrot.lane.b32.xlu1 %v8888_v7, %s8785_s10 }
  0x7c   : > { %498 = vrot.lane.b32.xlu0 %v8885_v6, %s8785_s10  ;;  %v333_v19 = vpop.permute.xlu2 %332 }
  0x82   : > { %508 = vrot.lane.b32.xlu2 %v8921_v14, %s8785_s10 }
  0x83   : > { %506 = vrot.lane.b32.xlu1 %v8903_v10, %s8785_s10 }
  0x84   : > { %504 = vrot.lane.b32.xlu0 %v8900_v9, %s8785_s10  ;;  %v339_v26 = vpop.permute.xlu2 %338 }
  0x85   : > { %v321_v25 = vpop.permute.xlu1 %320 }
  0x86   : > { %v317_v27 = vpop.permute.xlu0 %316 }
  0x87   : > { %v351_v28 = vsel %vm350_vm0, %v317_v27, %v333_v19  ;;  %v359_v29 = vsel %vm350_vm0, %v333_v19, %v317_v27 }
  0x88   : > { %v369_v30 = vmul.f32 %v9010_v23, %v359_v29  ;;  %v370_v31 = vmul.f32 %v9013_v24, %v351_v28 }
  0x8a   : > { %v385_v32 = vpack.c.bf16 %v370_v31, %v369_v30  ;;  %514 = vrot.lane.b32.xlu2 %v8930_v15, %s8785_s10 }
  0x8b   : > { %512 = vrot.lane.b32.xlu1 %v8918_v13, %s8785_s10 }
  0x8c   : > { %393 = vst [vmem:[#allocation2] sm:$0xff] %v385_v32  ;;  %510 = vrot.lane.b32.xlu0 %v8915_v12, %s8785_s10  ;;  %v345_v34 = vpop.permute.xlu2 %344 }
  0x8d   : > { %v323_v33 = vpop.permute.xlu1 %322 }
  0x8e   : > { %v354_v35 = vsel %vm350_vm0, %v323_v33, %v339_v26  ;;  %v362_v36 = vsel %vm350_vm0, %v339_v26, %v323_v33  ;;  %v319_v37 = vpop.permute.xlu0 %318 }
  0x8f   : > { %v375_v38 = vmul.f32 %v9010_v23, %v362_v36  ;;  %v376_v39 = vmul.f32 %v9013_v24, %v354_v35 }
  0x91   : > { %v388_v40 = vpack.c.bf16 %v376_v39, %v375_v38 }
  0x92   : > { %571 = vrot.lane.b32.xlu2 %v8858_v1, %s8786_s15 }
  0x93   : > { %396 = vst [vmem:[#allocation2 + $0x30] sm:$0xff] %v388_v40  ;;  %569 = vrot.lane.b32.xlu1 %v8876_v5, %s8786_s15  ;;  %v9111_v40 = vperm.slane %v8995_v21, 1 }
  0x94   : > { %567 = vrot.lane.b32.xlu0 %v8861_v2, %s8786_s15  ;;  %v9039_v42 = vpop.permute.xlu2 %403 }
  0x95   : > { %v331_v41 = vpop.permute.xlu1 %330  ;;  %14105 = vst [vmem:[#allocation5_spill] sm:$0xff] %v9111_v40 }
  0x96   : > { %v329_v43 = vpop.permute.xlu0 %328 }
  0x97   : > { %v357_v44 = vsel %vm350_vm0, %v329_v43, %v345_v34  ;;  %v365_v45 = vsel %vm350_vm0, %v345_v34, %v329_v43 }
  0x98   : > { %v381_v46 = vmul.f32 %v9010_v23, %v365_v45  ;;  %v382_v47 = vmul.f32 %v9013_v24, %v357_v44 }
  0x9a   : > { %v391_v48 = vpack.c.bf16 %v382_v47, %v381_v46  ;;  %577 = vrot.lane.b32.xlu2 %v8870_v3, %s8786_s15 }
  0x9b   : > { %575 = vrot.lane.b32.xlu1 %v8855_v0, %s8786_s15 }
  0x9c   : > { %399 = vst [vmem:[#allocation2 + $0x60] sm:$0xff] %v391_v48  ;;  %573 = vrot.lane.b32.xlu0 %v8873_v4, %s8786_s15  ;;  %v9053_v50 = vpop.permute.xlu2 %409 }
  0x9d   : > { %v337_v49 = vpop.permute.xlu1 %336 }
  0x9e   : > { %v353_v51 = vsel %vm350_vm0, %v321_v25, %v337_v49  ;;  %v361_v52 = vsel %vm350_vm0, %v337_v49, %v321_v25  ;;  %v335_v53 = vpop.permute.xlu0 %334 }
  0x9f   : > { %v373_v54 = vmul.f32 %v9010_v23, %v361_v52  ;;  %v374_v55 = vmul.f32 %v9013_v24, %v353_v51  ;;  %v352_v56 = vsel %vm350_vm0, %v319_v37, %v335_v53  ;;  %v360_v57 = vsel %vm350_vm0, %v335_v53, %v319_v37 }
  0xa0   : > { %v371_v58 = vmul.f32 %v9010_v23, %v360_v57  ;;  %v372_v59 = vmul.f32 %v9013_v24, %v352_v56 }
  0xa1   : > { %v387_v60 = vpack.c.bf16 %v374_v55, %v373_v54 }
  0xa2   : > { %v386_v61 = vpack.c.bf16 %v372_v59, %v371_v58  ;;  %583 = vrot.lane.b32.xlu2 %v8888_v7, %s8786_s15 }
  0xa3   : > { %395 = vst [vmem:[#allocation2 + $0x20] sm:$0xff] %v387_v60  ;;  %581 = vrot.lane.b32.xlu1 %v8885_v6, %s8786_s15 }
  0xa4   : > { %394 = vst [vmem:[#allocation2 + $0x10] sm:$0xff] %v386_v61  ;;  %579 = vrot.lane.b32.xlu0 %v8891_v8, %s8786_s15  ;;  %v9073_v63 = vpop.permute.xlu2 %415 }
  0xa5   : > { %v343_v62 = vpop.permute.xlu1 %342 }
  0xa6   : > { %v356_v18 = vsel %vm350_vm0, %v8982_v17, %v343_v62  ;;  %v364_v19 = vsel %vm350_vm0, %v343_v62, %v8982_v17  ;;  %v341_v25 = vpop.permute.xlu0 %340 }
  0xa7   : > { %v379_v26 = vmul.f32 %v9010_v23, %v364_v19  ;;  %v380_v27 = vmul.f32 %v9013_v24, %v356_v18  ;;  %v355_v28 = vsel %vm350_vm0, %v8974_v16, %v341_v25  ;;  %v363_v29 = vsel %vm350_vm0, %v341_v25, %v8974_v16 }
  0xa8   : > { %v377_v30 = vmul.f32 %v9010_v23, %v363_v29  ;;  %v378_v31 = vmul.f32 %v9013_v24, %v355_v28 }
  0xa9   : > { %v390_v32 = vpack.c.bf16 %v380_v27, %v379_v26 }
  0xaa   : > { %v389_v33 = vpack.c.bf16 %v378_v31, %v377_v30  ;;  %589 = vrot.lane.b32.xlu2 %v8903_v10, %s8786_s15 }
  0xab   : > { %398 = vst [vmem:[#allocation2 + $0x50] sm:$0xff] %v390_v32  ;;  %587 = vrot.lane.b32.xlu1 %v8900_v9, %s8786_s15 }
  0xac   : > { %397 = vst [vmem:[#allocation2 + $0x40] sm:$0xff] %v389_v33  ;;  %585 = vrot.lane.b32.xlu0 %v8906_v11, %s8786_s15  ;;  %v422_v17 = vpop.permute.xlu2 %421 }
  0xad   : > { %v402_v34 = vpop.permute.xlu1 %401 }
  0xae   : > { %v347_v16 = vpop.permute.xlu0 %346 }
  0xaf   : > { %v358_v35 = vsel %vm350_vm0, %v331_v41, %v347_v16  ;;  %v366_v36 = vsel %vm350_vm0, %v347_v16, %v331_v41  ;;  %v9114_v41 = vperm.slane %v9000_v22, 1 }
  0xb0   : > { %v383_v37 = vmul.f32 %v9010_v23, %v366_v36  ;;  %v384_v38 = vmul.f32 %v9013_v24, %v358_v35 }
  0xb1   : > { %14106 = vst [vmem:[#allocation6_spill] sm:$0xff] %v9114_v41 }
  0xb2   : > { %v392_v39 = vpack.c.bf16 %v384_v38, %v383_v37  ;;  %595 = vrot.lane.b32.xlu2 %v8918_v13, %s8786_s15 }
  0xb3   : > { %593 = vrot.lane.b32.xlu1 %v8915_v12, %s8786_s15 }
  0xb4   : > { %400 = vst [vmem:[#allocation2 + $0x70] sm:$0xff] %v392_v39  ;;  %591 = vrot.lane.b32.xlu0 %v8921_v14, %s8786_s15  ;;  %v428_v43 = vpop.permute.xlu2 %427 }
  0xb5   : > { %v408_v44 = vpop.permute.xlu1 %407 }
  0xb6   : > { %v406_v45 = vpop.permute.xlu0 %405 }
  0xb7   : > { %v436_v46 = vsel %vm433_vm1, %v406_v45, %v422_v17  ;;  %v444_v47 = vsel %vm433_vm1, %v422_v17, %v406_v45 }
  0xb8   : > { %v456_v48 = vmul.f32 %v9111_v40, %v444_v47  ;;  %v457_v49 = vmul.f32 %v9114_v41, %v436_v46 }
  0xba   : > { %v470_v51 = vpack.c.bf16 %v457_v49, %v456_v48  ;;  %668 = vrot.lane.b32.xlu2 %v8876_v5, %s8787_s16 }
  0xbb   : > { %666 = vrot.lane.b32.xlu1 %v8861_v2, %s8787_s16 }
  0xbc   : > { %478 = vst [vmem:[#allocation2 + $0xa0] sm:$0xff] %v470_v51  ;;  %597 = vrot.lane.b32.xlu0 %v8930_v15, %s8786_s15  ;;  %v9128_v52 = vpop.permute.xlu2 %484 }
  0xbd   : > { %v414_v53 = vpop.permute.xlu1 %413 }
  0xbe   : > { %v412_v54 = vpop.permute.xlu0 %411 }
  0xbf   : > { %v439_v55 = vsel %vm433_vm1, %v412_v54, %v428_v43  ;;  %v447_v56 = vsel %vm433_vm1, %v428_v43, %v412_v54 }
  0xc0   : > { %v462_v57 = vmul.f32 %v9111_v40, %v447_v56  ;;  %v463_v58 = vmul.f32 %v9114_v41, %v439_v55 }
  0xc2   : > { %v473_v59 = vpack.c.bf16 %v463_v58, %v462_v57  ;;  %674 = vrot.lane.b32.xlu2 %v8855_v0, %s8787_s16 }
  0xc3   : > { %672 = vrot.lane.b32.xlu1 %v8873_v4, %s8787_s16 }
  0xc4   : > { %481 = vst [vmem:[#allocation2 + $0xd0] sm:$0xff] %v473_v59  ;;  %670 = vrot.lane.b32.xlu0 %v8858_v1, %s8787_s16  ;;  %v9142_v60 = vpop.permute.xlu2 %490 }
  0xc5   : > { %v420_v61 = vpop.permute.xlu1 %419 }
  0xc6   : > { %v435_v62 = vsel %vm433_vm1, %v9039_v42, %v420_v61  ;;  %v443_v18 = vsel %vm433_vm1, %v420_v61, %v9039_v42  ;;  %v418_v19 = vpop.permute.xlu0 %417 }
  0xc7   : > { %v454_v25 = vmul.f32 %v9111_v40, %v443_v18  ;;  %v455_v26 = vmul.f32 %v9114_v41, %v435_v62  ;;  %v434_v27 = vsel %vm433_vm1, %v402_v34, %v418_v19  ;;  %v442_v28 = vsel %vm433_vm1, %v418_v19, %v402_v34 }
  0xc8   : > { %v452_v29 = vmul.f32 %v9111_v40, %v442_v28  ;;  %v453_v30 = vmul.f32 %v9114_v41, %v434_v27 }
  0xc9   : > { %v469_v31 = vpack.c.bf16 %v455_v26, %v454_v25 }
  0xca   : > { %v468_v32 = vpack.c.bf16 %v453_v30, %v452_v29  ;;  %680 = vrot.lane.b32.xlu2 %v8885_v6, %s8787_s16 }
  0xcb   : > { %477 = vst [vmem:[#allocation2 + $0x90] sm:$0xff] %v469_v31  ;;  %678 = vrot.lane.b32.xlu1 %v8891_v8, %s8787_s16 }
  0xcc   : > { %476 = vst [vmem:[#allocation2 + $0x80] sm:$0xff] %v468_v32  ;;  %676 = vrot.lane.b32.xlu0 %v8870_v3, %s8787_s16  ;;  %v9164_v42 = vpop.permute.xlu2 %496 }
  0xcd   : > { %v426_v33 = vpop.permute.xlu1 %425 }
  0xce   : > { %v438_v17 = vsel %vm433_vm1, %v9053_v50, %v426_v33  ;;  %v446_v34 = vsel %vm433_vm1, %v426_v33, %v9053_v50  ;;  %v424_v16 = vpop.permute.xlu0 %423 }
  0xcf   : > { %v460_v35 = vmul.f32 %v9111_v40, %v446_v34  ;;  %v461_v36 = vmul.f32 %v9114_v41, %v438_v17  ;;  %v437_v37 = vsel %vm433_vm1, %v408_v44, %v424_v16  ;;  %v445_v38 = vsel %vm433_vm1, %v424_v16, %v408_v44 }
  0xd0   : > { %v458_v39 = vmul.f32 %v9111_v40, %v445_v38  ;;  %v459_v43 = vmul.f32 %v9114_v41, %v437_v37  ;;  %v8349_v37 = vld [vmem:[#allocation2 + $0xcc] sm:$0xf0] }
  0xd1   : > { %v472_v45 = vpack.c.bf16 %v461_v36, %v460_v35 }
  0xd2   : > { %v471_v46 = vpack.c.bf16 %v459_v43, %v458_v39  ;;  %686 = vrot.lane.b32.xlu2 %v8900_v9, %s8787_s16 }
  0xd3   : > { %480 = vst [vmem:[#allocation2 + $0xc0] sm:$0xff] %v472_v45  ;;  %684 = vrot.lane.b32.xlu1 %v8906_v11, %s8787_s16 }
  0xd4   : > { %479 = vst [vmem:[#allocation2 + $0xb0] sm:$0xff] %v471_v46  ;;  %682 = vrot.lane.b32.xlu0 %v8888_v7, %s8787_s16  ;;  %v503_v50 = vpop.permute.xlu2 %502 }
  0xd5   : > { %v432_v47 = vpop.permute.xlu1 %431 }
  0xd6   : > { %v441_v44 = vsel %vm433_vm1, %v9073_v63, %v432_v47  ;;  %v449_v48 = vsel %vm433_vm1, %v432_v47, %v9073_v63  ;;  %v430_v49 = vpop.permute.xlu0 %429  ;;  %v9208_v63 = vperm.slane %v8995_v21, 2 }
  0xd7   : > { %v466_v51 = vmul.f32 %v9111_v40, %v449_v48  ;;  %v467_v54 = vmul.f32 %v9114_v41, %v441_v44  ;;  %v440_v55 = vsel %vm433_vm1, %v414_v53, %v430_v49  ;;  %v448_v56 = vsel %vm433_vm1, %v430_v49, %v414_v53  ;;  %v7051_v49 = vld [vmem:[#allocation2 + $0x80] sm:$0xf] }
  0xd8   : > { %v464_v57 = vmul.f32 %v9111_v40, %v448_v56  ;;  %v465_v58 = vmul.f32 %v9114_v41, %v440_v55  ;;  %14107 = vst [vmem:[#allocation7_spill] sm:$0xff] %v9208_v63  ;;  %v9211_v53 = vperm.slane %v9000_v22, 2 }
  0xd9   : > { %v475_v59 = vpack.c.bf16 %v467_v54, %v466_v51  ;;  %v8341_v51 = vld [vmem:[#allocation2 + $0x8c] sm:$0xf0] }
  0xda   : > { %v474_v61 = vpack.c.bf16 %v465_v58, %v464_v57  ;;  %692 = vrot.lane.b32.xlu2 %v8915_v12, %s8787_s16  ;;  %14108 = vst [vmem:[#allocation8_spill] sm:$0xff] %v9211_v53  ;;  %v7083_v34 = vld [vmem:[#allocation2 + $0xc0] sm:$0xf] }
  0xdb   : > { %483 = vst [vmem:[#allocation2 + $0xf0] sm:$0xff] %v475_v59  ;;  %690 = vrot.lane.b32.xlu1 %v8921_v14, %s8787_s16  ;;  %v7084_v43 = vor.u32 %v8349_v37, %v7083_v34  ;;  %v8345_v45 = vld [vmem:[#allocation2 + $0xac] sm:$0xf0] }
  0xdc   : > { %482 = vst [vmem:[#allocation2 + $0xe0] sm:$0xff] %v474_v61  ;;  %688 = vrot.lane.b32.xlu0 %v8903_v10, %s8787_s16  ;;  %v509_v62 = vpop.permute.xlu2 %508 }
  0xdd   : > { %v9213_v18 = vpop.permute.xlu1 %488 }
  0xde   : > { %v487_v19 = vpop.permute.xlu0 %486 }
  0xdf   : > { %v518_v25 = vsel %vm516_vm2, %v487_v19, %v503_v50  ;;  %v526_v26 = vsel %vm516_vm2, %v503_v50, %v487_v19  ;;  %v7067_v50 = vld [vmem:[#allocation2 + $0xa0] sm:$0xf] }
  0xe0   : > { %v537_v27 = vmul.f32 %v9208_v63, %v526_v26  ;;  %v538_v28 = vmul.f32 %v9211_v53, %v518_v25  ;;  %v7068_v47 = vor.u32 %v8345_v45, %v7067_v50  ;;  %v7052_v25 = vor.u32 %v8341_v51, %v7051_v49  ;;  %v7003_v50 = vld [vmem:[#allocation2 + $0x20] sm:$0xf] }
  0xe2   : > { %v552_v29 = vpack.c.bf16 %v538_v28, %v537_v27  ;;  %v8353_v30 = vld [vmem:[#allocation2 + $0xec] sm:$0xf0]  ;;  %749 = vrot.lane.b32.xlu2 %v8861_v2, %s8788_s17  ;;  %v7035_v28 = vld [vmem:[#allocation2 + $0x60] sm:$0xf] }
  0xe3   : > { %696 = vrot.lane.b32.xlu1 %v8930_v15, %s8787_s16  ;;  %v7099_v31 = vld [vmem:[#allocation2 + $0xe0] sm:$0xf]  ;;  %v8337_v27 = vld [vmem:[#allocation2 + $0x6c] sm:$0xf0] }
  0xe4   : > { %560 = vst [vmem:[#allocation2 + $0x110] sm:$0xff] %v552_v29  ;;  %694 = vrot.lane.b32.xlu0 %v8918_v13, %s8787_s16  ;;  %v7100_v32 = vor.u32 %v8353_v30, %v7099_v31  ;;  %v515_v33 = vpop.permute.xlu2 %514  ;;  %v7036_v29 = vor.u32 %v8337_v27, %v7035_v28  ;;  %v9314_v28 = vperm.slane %v9000_v22, 3 }
  0xe5   : > { %v9227_v17 = vpop.permute.xlu1 %494 }
  0xe6   : > { %2712 = vmatpush.bf16.msra.mxu0 %v7100_v32  ;;  %v493_v16 = vpop.permute.xlu0 %492  ;;  %v7019_v32 = vld [vmem:[#allocation2 + $0x40] sm:$0xf]  ;;  %14110 = vst [vmem:[#allocation10_spill] sm:$0xff] %v9314_v28 }
  0xe7   : > { %v521_v35 = vsel %vm516_vm2, %v493_v16, %v509_v62  ;;  %v529_v36 = vsel %vm516_vm2, %v509_v62, %v493_v16 }
  0xe8   : > { %v543_v38 = vmul.f32 %v9208_v63, %v529_v36  ;;  %v544_v39 = vmul.f32 %v9211_v53, %v521_v35 }
  0xea   : > { %v555_v46 = vpack.c.bf16 %v544_v39, %v543_v38  ;;  %2713 = vmatpush.bf16.msra.mxu0 %v7084_v43  ;;  %755 = vrot.lane.b32.xlu2 %v8873_v4, %s8788_s17 }
  0xeb   : > { %753 = vrot.lane.b32.xlu1 %v8858_v1, %s8788_s17 }
  0xec   : > { %563 = vst [vmem:[#allocation2 + $0x140] sm:$0xff] %v555_v46  ;;  %751 = vrot.lane.b32.xlu0 %v8876_v5, %s8788_s17  ;;  %v9241_v44 = vpop.permute.xlu2 %571 }
  0xed   : > { %v501_v48 = vpop.permute.xlu1 %500 }
  0xee   : > { %v517_v54 = vsel %vm516_vm2, %v9128_v52, %v501_v48  ;;  %v525_v55 = vsel %vm516_vm2, %v501_v48, %v9128_v52  ;;  %2714 = vmatpush.bf16.msra.mxu0 %v7068_v47  ;;  %v499_v56 = vpop.permute.xlu0 %498  ;;  %v8329_v48 = vld [vmem:[#allocation2 + $0x2c] sm:$0xf0] }
  0xef   : > { %v535_v57 = vmul.f32 %v9208_v63, %v525_v55  ;;  %v536_v58 = vmul.f32 %v9211_v53, %v517_v54  ;;  %v524_v59 = vsel %vm516_vm2, %v499_v56, %v515_v33  ;;  %v532_v61 = vsel %vm516_vm2, %v515_v33, %v499_v56  ;;  %v8333_v33 = vld [vmem:[#allocation2 + $0x4c] sm:$0xf0] }
  0xf0   : > { %v549_v62 = vmul.f32 %v9208_v63, %v532_v61  ;;  %v550_v19 = vmul.f32 %v9211_v53, %v524_v59  ;;  %v7020_v46 = vor.u32 %v8333_v33, %v7019_v32  ;;  %v8325_v54 = vld [vmem:[#allocation2 + $0xc] sm:$0xf0] }
  0xf1   : > { %v551_v26 = vpack.c.bf16 %v536_v58, %v535_v57 }
  0xf2   : > { %v558_v52 = vpack.c.bf16 %v550_v19, %v549_v62  ;;  %2715 = vmatpush.bf16.msra.mxu0 %v7052_v25  ;;  %761 = vrot.lane.b32.xlu2 %v8891_v8, %s8788_s17  ;;  %v6987_v19 = vld [vmem:[#allocation2] sm:$0xf] }
  0xf3   : > { %559 = vst [vmem:[#allocation2 + $0x100] sm:$0xff] %v551_v26  ;;  %759 = vrot.lane.b32.xlu1 %v8870_v3, %s8788_s17 }
  0xf4   : > { %566 = vst [vmem:[#allocation2 + $0x170] sm:$0xff] %v558_v52  ;;  %757 = vrot.lane.b32.xlu0 %v8855_v0, %s8788_s17  ;;  %v9263_v30 = vpop.permute.xlu2 %577 }
  0xf5   : > { %v507_v31 = vpop.permute.xlu1 %506 }
  0xf6   : > { %v520_v34 = vsel %vm516_vm2, %v9142_v60, %v507_v31  ;;  %v528_v16 = vsel %vm516_vm2, %v507_v31, %v9142_v60  ;;  %2716 = vmatpush.bf16.msra.mxu0 %v7036_v29  ;;  %v505_v35 = vpop.permute.xlu0 %504 }
  0xf7   : > { %v541_v36 = vmul.f32 %v9208_v63, %v528_v16  ;;  %v542_v37 = vmul.f32 %v9211_v53, %v520_v34  ;;  %v519_v38 = vsel %vm516_vm2, %v9213_v18, %v505_v35  ;;  %v527_v39 = vsel %vm516_vm2, %v505_v35, %v9213_v18 }
  0xf8   : > { %v539_v43 = vmul.f32 %v9208_v63, %v527_v39  ;;  %v540_v45 = vmul.f32 %v9211_v53, %v519_v38  ;;  %v7004_v18 = vor.u32 %v8329_v48, %v7003_v50 }
  0xf9   : > { %v554_v60 = vpack.c.bf16 %v542_v37, %v541_v36 }
  0xfa   : > { %v553_v47 = vpack.c.bf16 %v540_v45, %v539_v43  ;;  %2717 = vmatpush.bf16.msra.mxu0 %v7020_v46  ;;  %767 = vrot.lane.b32.xlu2 %v8906_v11, %s8788_s17 }
  0xfb   : > { %562 = vst [vmem:[#allocation2 + $0x130] sm:$0xff] %v554_v60  ;;  %765 = vrot.lane.b32.xlu1 %v8888_v7, %s8788_s17 }
  0xfc   : > { %561 = vst [vmem:[#allocation2 + $0x120] sm:$0xff] %v553_v47  ;;  %763 = vrot.lane.b32.xlu0 %v8885_v6, %s8788_s17  ;;  %v584_v49 = vpop.permute.xlu2 %583 }
  0xfd   : > { %v513_v51 = vpop.permute.xlu1 %512 }
  0xfe   : > { %v523_v55 = vsel %vm516_vm2, %v9164_v42, %v513_v51  ;;  %v531_v56 = vsel %vm516_vm2, %v513_v51, %v9164_v42  ;;  %2718 = vmatpush.bf16.msra.mxu0 %v7004_v18  ;;  %v511_v57 = vpop.permute.xlu0 %510  ;;  %v6988_v42 = vor.u32 %v8325_v54, %v6987_v19 }
  0xff   : > { %v547_v58 = vmul.f32 %v9208_v63, %v531_v56  ;;  %v548_v59 = vmul.f32 %v9211_v53, %v523_v55  ;;  %v522_v61 = vsel %vm516_vm2, %v9227_v17, %v511_v57  ;;  %v530_v62 = vsel %vm516_vm2, %v511_v57, %v9227_v17 }
 0x100   : > { %v545_v25 = vmul.f32 %v9208_v63, %v530_v62  ;;  %v546_v26 = vmul.f32 %v9211_v53, %v522_v61  ;;  %v9311_v17 = vperm.slane %v8995_v21, 3 }
 0x101   : > { %v557_v27 = vpack.c.bf16 %v548_v59, %v547_v58 }
 0x102   : > { %v556_v52 = vpack.c.bf16 %v546_v26, %v545_v25  ;;  %2719 = vmatpush.bf16.msra.mxu0 %v6988_v42  ;;  %773 = vrot.lane.b32.xlu2 %v8921_v14, %s8788_s17  ;;  %14109 = vst [vmem:[#allocation9_spill] sm:$0xff] %v9311_v17 }
 0x103   : > { %565 = vst [vmem:[#allocation2 + $0x160] sm:$0xff] %v557_v27  ;;  %771 = vrot.lane.b32.xlu1 %v8903_v10, %s8788_s17 }
 0x104   : > { %564 = vst [vmem:[#allocation2 + $0x150] sm:$0xff] %v556_v52  ;;  %769 = vrot.lane.b32.xlu0 %v8900_v9, %s8788_s17  ;;  %v590_v29 = vpop.permute.xlu2 %589 }
 0x105   : > { %v570_v31 = vpop.permute.xlu1 %569 }
 0x106   : > { %v568_v32 = vpop.permute.xlu0 %567 }
 0x107   : > { %v600_v33 = vsel %vm599_vm3, %v568_v32, %v584_v49  ;;  %v608_v34 = vsel %vm599_vm3, %v584_v49, %v568_v32 }
 0x108   : > { %v618_v16 = vmul.f32 %v9311_v17, %v608_v34  ;;  %v619_v35 = vmul.f32 %v9314_v28, %v600_v33 }
 0x10a   : > { %v634_v36 = vpack.c.bf16 %v619_v35, %v618_v16  ;;  %779 = vrot.lane.b32.xlu2 %v8930_v15, %s8788_s17 }
 0x10b   : > { %777 = vrot.lane.b32.xlu1 %v8918_v13, %s8788_s17 }
 0x10c   : > { %642 = vst [vmem:[#allocation2 + $0x180] sm:$0xff] %v634_v36  ;;  %775 = vrot.lane.b32.xlu0 %v8915_v12, %s8788_s17  ;;  %v596_v37 = vpop.permute.xlu2 %595 }
 0x10d   : > { %v576_v38 = vpop.permute.xlu1 %575 }
 0x10e   : > { %v574_v39 = vpop.permute.xlu0 %573 }
 0x10f   : > { %v603_v43 = vsel %vm599_vm3, %v574_v39, %v590_v29  ;;  %v611_v45 = vsel %vm599_vm3, %v590_v29, %v574_v39 }
 0x110   : > { %v624_v46 = vmul.f32 %v9311_v17, %v611_v45  ;;  %v625_v60 = vmul.f32 %v9314_v28, %v603_v43 }
 0x112   : > { %v637_v50 = vpack.c.bf16 %v625_v60, %v624_v46  ;;  %836 = vrot.lane.b32.xlu2 %v8858_v1, %s8789_s18 }
 0x113   : > { %834 = vrot.lane.b32.xlu1 %v8876_v5, %s8789_s18 }
 0x114   : > { %645 = vst [vmem:[#allocation2 + $0x1b0] sm:$0xff] %v637_v50  ;;  %832 = vrot.lane.b32.xlu0 %v8861_v2, %s8789_s18  ;;  %v9340_v47 = vpop.permute.xlu2 %668 }
 0x115   : > { %v582_v48 = vpop.permute.xlu1 %581 }
 0x116   : > { %v580_v18 = vpop.permute.xlu0 %579 }
 0x117   : > { %v606_v49 = vsel %vm599_vm3, %v580_v18, %v596_v37  ;;  %v614_v51 = vsel %vm599_vm3, %v596_v37, %v580_v18 }
 0x118   : > { %v630_v54 = vmul.f32 %v9311_v17, %v614_v51  ;;  %v631_v55 = vmul.f32 %v9314_v28, %v606_v49 }
 0x11a   : > { %v640_v56 = vpack.c.bf16 %v631_v55, %v630_v54  ;;  %842 = vrot.lane.b32.xlu2 %v8870_v3, %s8789_s18 }
 0x11b   : > { %840 = vrot.lane.b32.xlu1 %v8855_v0, %s8789_s18 }
 0x11c   : > { %648 = vst [vmem:[#allocation2 + $0x1e0] sm:$0xff] %v640_v56  ;;  %838 = vrot.lane.b32.xlu0 %v8873_v4, %s8789_s18  ;;  %v9354_v57 = vpop.permute.xlu2 %674 }
 0x11d   : > { %v588_v58 = vpop.permute.xlu1 %587 }
 0x11e   : > { %v602_v59 = vsel %vm599_vm3, %v9241_v44, %v588_v58  ;;  %v610_v61 = vsel %vm599_vm3, %v588_v58, %v9241_v44  ;;  %v586_v62 = vpop.permute.xlu0 %585 }
 0x11f   : > { %v622_v19 = vmul.f32 %v9311_v17, %v610_v61  ;;  %v623_v25 = vmul.f32 %v9314_v28, %v602_v59  ;;  %v601_v26 = vsel %vm599_vm3, %v570_v31, %v586_v62  ;;  %v609_v42 = vsel %vm599_vm3, %v586_v62, %v570_v31 }
 0x120   : > { %v620_v27 = vmul.f32 %v9311_v17, %v609_v42  ;;  %v621_v52 = vmul.f32 %v9314_v28, %v601_v26 }
 0x121   : > { %v636_v29 = vpack.c.bf16 %v623_v25, %v622_v19 }
 0x122   : > { %v635_v32 = vpack.c.bf16 %v621_v52, %v620_v27  ;;  %848 = vrot.lane.b32.xlu2 %v8888_v7, %s8789_s18 }
 0x123   : > { %644 = vst [vmem:[#allocation2 + $0x1a0] sm:$0xff] %v636_v29  ;;  %846 = vrot.lane.b32.xlu1 %v8885_v6, %s8789_s18 }
 0x124   : > { %643 = vst [vmem:[#allocation2 + $0x190] sm:$0xff] %v635_v32  ;;  %844 = vrot.lane.b32.xlu0 %v8891_v8, %s8789_s18  ;;  %v9376_v44 = vpop.permute.xlu2 %680 }
 0x125   : > { %v594_v31 = vpop.permute.xlu1 %593 }
 0x126   : > { %v605_v33 = vsel %vm599_vm3, %v9263_v30, %v594_v31  ;;  %v613_v34 = vsel %vm599_vm3, %v594_v31, %v9263_v30  ;;  %v592_v16 = vpop.permute.xlu0 %591 }
 0x127   : > { %v628_v7 = vmul.f32 %v9311_v17, %v613_v34  ;;  %v629_v35 = vmul.f32 %v9314_v28, %v605_v33  ;;  %v604_v36 = vsel %vm599_vm3, %v576_v38, %v592_v16  ;;  %v612_v37 = vsel %vm599_vm3, %v592_v16, %v576_v38  ;;  %v8377_v16 = vld [vmem:[#allocation2 + $0x1ac] sm:$0xf0] }
 0x128   : > { %v626_v39 = vmul.f32 %v9311_v17, %v612_v37  ;;  %v627_v43 = vmul.f32 %v9314_v28, %v604_v36 }
 0x129   : > { %v639_v45 = vpack.c.bf16 %v629_v35, %v628_v7 }
 0x12a   : > { %v638_v46 = vpack.c.bf16 %v627_v43, %v626_v39  ;;  %854 = vrot.lane.b32.xlu2 %v8903_v10, %s8789_s18  ;;  %v7195_v33 = vld [vmem:[#allocation2 + $0x1a0] sm:$0xf] }
 0x12b   : > { %647 = vst [vmem:[#allocation2 + $0x1d0] sm:$0xff] %v639_v45  ;;  %852 = vrot.lane.b32.xlu1 %v8900_v9, %s8789_s18  ;;  %v9414_v9 = vperm.slane %v8995_v21, 5  ;;  %v7227_v21 = vld [vmem:[#allocation2 + $0x1e0] sm:$0xf]  ;;  %v7196_v7 = vor.u32 %v8377_v16, %v7195_v33  ;;  %v8373_v37 = vld [vmem:[#allocation2 + $0x18c] sm:$0xf0] }
 0x12c   : > { %646 = vst [vmem:[#allocation2 + $0x1c0] sm:$0xff] %v638_v46  ;;  %850 = vrot.lane.b32.xlu0 %v8906_v11, %s8789_s18  ;;  %v687_v30 = vpop.permute.xlu2 %686  ;;  %v9417_v11 = vperm.slane %v9000_v22, 5  ;;  %v8726_v16 = vld [vmem:[%s8852_s30 + $0x38] sm:$0xff] }
 0x12d   : > { %v9398_v60 = vpop.permute.xlu1 %666  ;;  %14111 = vst [vmem:[#allocation11_spill] sm:$0xff] %v9414_v9 }
 0x12e   : > { %v598_v38 = vpop.permute.xlu0 %597  ;;  %14112 = vst [vmem:[#allocation12_spill] sm:$0xff] %v9417_v11 }
 0x12f   : > { %v607_v50 = vsel %vm599_vm3, %v582_v48, %v598_v38  ;;  %v615_v18 = vsel %vm599_vm3, %v598_v38, %v582_v48 }
 0x130   : > { %v632_v49 = vmul.f32 %v9311_v17, %v615_v18  ;;  %v633_v10 = vmul.f32 %v9314_v28, %v607_v50 }
 0x132   : > { %v641_v51 = vpack.c.bf16 %v633_v10, %v632_v49  ;;  %860 = vrot.lane.b32.xlu2 %v8918_v13, %s8789_s18  ;;  %v8381_v27 = vld [vmem:[#allocation2 + $0x1cc] sm:$0xf0]  ;;  %v7163_v49 = vld [vmem:[#allocation2 + $0x160] sm:$0xf] }
 0x133   : > { %858 = vrot.lane.b32.xlu1 %v8915_v12, %s8789_s18  ;;  %v7211_v42 = vld [vmem:[#allocation2 + $0x1c0] sm:$0xf] }
 0x134   : > { %649 = vst [vmem:[#allocation2 + $0x1f0] sm:$0xff] %v641_v51  ;;  %856 = vrot.lane.b32.xlu0 %v8921_v14, %s8789_s18  ;;  %v693_v48 = vpop.permute.xlu2 %692  ;;  %v7212_v31 = vor.u32 %v8381_v27, %v7211_v42  ;;  %v656_v51 = vpack.c.bf16 %v8918_v13, %v8891_v8  ;;  %v8722_v27 = vld [vmem:[%s8852_s30 + $0x50] sm:$0xff] }
 0x135   : > { %v9419_v54 = vpop.permute.xlu1 %672 }
 0x136   : > { %v671_v55 = vpop.permute.xlu0 %670  ;;  %664 = vst [vmem:[#allocation2 + $0x260] sm:$0xff] %v656_v51 }
 0x137   : > { %v701_v56 = vsel %vm698_vm4, %v671_v55, %v687_v30  ;;  %v709_v58 = vsel %vm698_vm4, %v687_v30, %v671_v55  ;;  %v7179_v30 = vld [vmem:[#allocation2 + $0x180] sm:$0xf] }
 0x138   : > { %v721_v59 = vmul.f32 %v9414_v9, %v701_v56  ;;  %v722_v61 = vmul.f32 %v9417_v11, %v709_v58  ;;  %v7180_v50 = vor.u32 %v8373_v37, %v7179_v30  ;;  %v8365_v58 = vld [vmem:[#allocation2 + $0x14c] sm:$0xf0]  ;;  %v7101_v30 = vld [vmem:[#allocation2 + $0xf0] sm:$0xf0] }
 0x13a   : > { %v735_v62 = vpack.c.bf16 %v722_v61, %v721_v59  ;;  %917 = vrot.lane.b32.xlu2 %v8876_v5, %s8790_s19 }
 0x13b   : > { %915 = vrot.lane.b32.xlu1 %v8861_v2, %s8790_s19  ;;  %v8385_v22 = vld [vmem:[#allocation2 + $0x1ec] sm:$0xf0] }
 0x13c   : > { %743 = vst [vmem:[#allocation2 + $0x2a0] sm:$0xff] %v735_v62  ;;  %862 = vrot.lane.b32.xlu0 %v8930_v15, %s8789_s18  ;;  %v7228_v19 = vor.u32 %v8385_v22, %v7227_v21  ;;  %v9433_v25 = vpop.permute.xlu2 %749  ;;  %v7147_v22 = vld [vmem:[#allocation2 + $0x140] sm:$0xf] }
 0x13d   : > { %v9435_v26 = vpop.permute.xlu1 %678  ;;  %v7148_v42 = vor.u32 %v8365_v58, %v7147_v22  ;;  %v8730_v58 = vld [vmem:[%s8852_s30 + $0x10] sm:$0xff] }
 0x13e   : > { %2741 = vmatpush.bf16.msra.mxu1 %v7228_v19  ;;  %8631 = vmatpush.bf16.msra.mxu2 %v7228_v19  ;;  %v677_v52 = vpop.permute.xlu0 %676 }
 0x13f   : > { %v704_v5 = vsel %vm698_vm4, %v677_v52, %v693_v48  ;;  %v712_v2 = vsel %vm698_vm4, %v693_v48, %v677_v52  ;;  %v657_v48 = vpack.c.bf16 %v8930_v15, %v8885_v6  ;;  %v655_v52 = vpack.c.bf16 %v8915_v12, %v8722_v27  ;;  %v8727_v12 = vld [vmem:[%s8852_s30 + $0x18] sm:$0xff]  ;;  %v7069_v27 = vld [vmem:[#allocation2 + $0xb0] sm:$0xf0] }
 0x140   : > { %v727_v29 = vmul.f32 %v9414_v9, %v704_v5  ;;  %v728_v32 = vmul.f32 %v9417_v11, %v712_v2  ;;  %v7131_v2 = vld [vmem:[#allocation2 + $0x120] sm:$0xf] }
 0x141   : > { %665 = vst [vmem:[#allocation2 + $0x270] sm:$0xff] %v657_v48  ;;  %v8729_v48 = vld [vmem:[%s8852_s30] sm:$0xff] }
 0x142   : > { %v738_v34 = vpack.c.bf16 %v728_v32, %v727_v29  ;;  %2742 = vmatpush.bf16.msra.mxu1 %v7212_v31  ;;  %8632 = vmatpush.bf16.msra.mxu2 %v7212_v31  ;;  %v8361_v29 = vld [vmem:[#allocation2 + $0x12c] sm:$0xf0]  ;;  %663 = vst [vmem:[#allocation2 + $0x250] sm:$0xff] %v655_v52  ;;  %v8724_v31 = vld [vmem:[%s8852_s30 + $0x28] sm:$0xff] }
 0x143   : > { %923 = vrot.lane.b32.xlu2 %v8855_v0, %s8790_s19  ;;  %921 = vrot.lane.b32.xlu1 %v8873_v4, %s8790_s19  ;;  %v7132_v37 = vor.u32 %v8361_v29, %v7131_v2  ;;  %v8343_v2 = vld [vmem:[#allocation2 + $0xa4] sm:$0xf] }
 0x144   : > { %746 = vst [vmem:[#allocation2 + $0x2d0] sm:$0xff] %v738_v34  ;;  %919 = vrot.lane.b32.xlu0 %v8858_v1, %s8790_s19  ;;  %v9449_v35 = vpop.permute.xlu2 %755  ;;  %v8725_v34 = vld [vmem:[%s8852_s30 + $0x30] sm:$0xff] }
 0x145   : > { %v685_v36 = vpop.permute.xlu1 %684 }
 0x146   : > { %v700_v39 = vsel %vm698_vm4, %v9340_v47, %v685_v36  ;;  %v708_v0 = vsel %vm698_vm4, %v685_v36, %v9340_v47  ;;  %2743 = vmatpush.bf16.msra.mxu1 %v7196_v7  ;;  %8633 = vmatpush.bf16.msra.mxu2 %v7196_v7  ;;  %v683_v4 = vpop.permute.xlu0 %682  ;;  %v653_v7 = vpack.c.bf16 %v8726_v16, %v8725_v34  ;;  %v8728_v36 = vld [vmem:[%s8852_s30 + $0x8] sm:$0xff] }
 0x147   : > { %v719_v43 = vmul.f32 %v9414_v9, %v700_v39  ;;  %v720_v1 = vmul.f32 %v9417_v11, %v708_v0  ;;  %v699_v45 = vsel %vm698_vm4, %v9398_v60, %v683_v4  ;;  %v707_v46 = vsel %vm698_vm4, %v683_v4, %v9398_v60  ;;  %v8369_v60 = vld [vmem:[#allocation2 + $0x16c] sm:$0xf0]  ;;  %v7115_v4 = vld [vmem:[#allocation2 + $0x100] sm:$0xf] }
 0x148   : > { %v717_v38 = vmul.f32 %v9414_v9, %v699_v45  ;;  %v718_v47 = vmul.f32 %v9417_v11, %v707_v46  ;;  %v7164_v55 = vor.u32 %v8369_v60, %v7163_v49  ;;  %v8351_v46 = vld [vmem:[#allocation2 + $0xe4] sm:$0xf]  ;;  %661 = vst [vmem:[#allocation2 + $0x230] sm:$0xff] %v653_v7  ;;  %v650_v60 = vpack.c.bf16 %v8728_v36, %v8729_v48 }
 0x149   : > { %v734_v18 = vpack.c.bf16 %v720_v1, %v719_v43  ;;  %v7072_v34 = vor.u32 %v8343_v2, %v7069_v27  ;;  %v8335_v48 = vld [vmem:[#allocation2 + $0x64] sm:$0xf] }
 0x14a   : > { %v733_v10 = vpack.c.bf16 %v718_v47, %v717_v38  ;;  %2744 = vmatpush.bf16.msra.mxu1 %v7180_v50  ;;  %8634 = vmatpush.bf16.msra.mxu2 %v7180_v50  ;;  %658 = vst [vmem:[#allocation2 + $0x200] sm:$0xff] %v650_v60  ;;  %v9583_v60 = vld [vmem:[%s8852_s30 + $0xb0] sm:$0xff] }
 0x14b   : > { %742 = vst [vmem:[#allocation2 + $0x290] sm:$0xff] %v734_v18  ;;  %929 = vrot.lane.b32.xlu2 %v8885_v6, %s8790_s19  ;;  %927 = vrot.lane.b32.xlu1 %v8891_v8, %s8790_s19 }
 0x14c   : > { %741 = vst [vmem:[#allocation2 + $0x280] sm:$0xff] %v733_v10  ;;  %925 = vrot.lane.b32.xlu0 %v8870_v3, %s8790_s19  ;;  %v9477_v56 = vpop.permute.xlu2 %761  ;;  %v8721_v3 = vld [vmem:[%s8852_s30 + $0x40] sm:$0xff] }
 0x14d   : > { %v691_v13 = vpop.permute.xlu1 %690  ;;  %v654_v59 = vpack.c.bf16 %v8921_v14, %v8721_v3  ;;  %v8732_v3 = vld [vmem:[%s8852_s30 + $0x48] sm:$0xff] }
 0x14e   : > { %v703_v15 = vsel %vm698_vm4, %v9354_v57, %v691_v13  ;;  %v711_v6 = vsel %vm698_vm4, %v691_v13, %v9354_v57  ;;  %2745 = vmatpush.bf16.msra.mxu1 %v7164_v55  ;;  %8635 = vmatpush.bf16.msra.mxu2 %v7164_v55  ;;  %v689_v8 = vpop.permute.xlu0 %688  ;;  %v7104_v13 = vor.u32 %v8351_v46, %v7101_v30 }
 0x14f   : > { %v725_v61 = vmul.f32 %v9414_v9, %v703_v15  ;;  %v726_v62 = vmul.f32 %v9417_v11, %v711_v6  ;;  %v702_v21 = vsel %vm698_vm4, %v9419_v54, %v689_v8  ;;  %v710_v57 = vsel %vm698_vm4, %v689_v8, %v9419_v54  ;;  %662 = vst [vmem:[#allocation2 + $0x240] sm:$0xff] %v654_v59  ;;  %v8723_v54 = vld [vmem:[%s8852_s30 + $0x20] sm:$0xff] }
 0x150   : > { %v723_v19 = vmul.f32 %v9414_v9, %v702_v21  ;;  %v724_v14 = vmul.f32 %v9417_v11, %v710_v57  ;;  %v652_v33 = vpack.c.bf16 %v8724_v31, %v8723_v54  ;;  %v651_v15 = vpack.c.bf16 %v8727_v12, %v8730_v58  ;;  %v8347_v8 = vld [vmem:[#allocation2 + $0xc4] sm:$0xf]  ;;  %v7085_v57 = vld [vmem:[#allocation2 + $0xd0] sm:$0xf0] }
 0x151   : > { %v737_v5 = vpack.c.bf16 %v726_v62, %v725_v61  ;;  %v9535_v59 = vld [vmem:[%s13993_s1] sm:$0xff]  ;;  %v9543_v62 = vld [vmem:[%s13993_s1 + $0x8] sm:$0xff]  ;;  %v9589_v58 = vld [vmem:[%s8852_s30 + $0x90] sm:$0xff] }
 0x152   : > { %v736_v32 = vpack.c.bf16 %v724_v14, %v723_v19  ;;  %2746 = vmatpush.bf16.msra.mxu1 %v7148_v42  ;;  %8636 = vmatpush.bf16.msra.mxu2 %v7148_v42  ;;  %660 = vst [vmem:[#allocation2 + $0x220] sm:$0xff] %v652_v33  ;;  %v9538_v61 = vperm.slane %v9535_v59, 6  ;;  %v9546_v21 = vperm.slane %v9543_v62, 6  ;;  %v7088_v14 = vor.u32 %v8347_v8, %v7085_v57  ;;  %v9557_v54 = vld [vmem:[%s8852_s30 + $0x80] sm:$0xff]  ;;  %v6949_v33 = vld [vmem:[%s13994_s2 + $0x64] sm:$0xf0] }
 0x153   : > { %745 = vst [vmem:[#allocation2 + $0x2c0] sm:$0xff] %v737_v5  ;;  %935 = vrot.lane.b32.xlu2 %v8724_v31, %s8790_s19  ;;  %933 = vrot.lane.b32.xlu1 %v8727_v12, %s8790_s19  ;;  %v8313_v31 = vld [vmem:[%s13994_s2 + $0x54] sm:$0xf]  ;;  %v8331_v8 = vld [vmem:[#allocation2 + $0x44] sm:$0xf] }
 0x154   : > { %744 = vst [vmem:[#allocation2 + $0x2b0] sm:$0xff] %v736_v32  ;;  %931 = vrot.lane.b32.xlu0 %v8728_v36, %s8790_s19  ;;  %v768_v39 = vpop.permute.xlu2 %767  ;;  %v8339_v36 = vld [vmem:[#allocation2 + $0x84] sm:$0xf]  ;;  %v7307_v27 = vld [vmem:[#allocation2 + $0x280] sm:$0xf] }
 0x155   : > { %v697_v0 = vpop.permute.xlu1 %696  ;;  %14113 = vst [vmem:[#allocation13_spill] sm:$0xff] %v9538_v61 }
 0x156   : > { %v706_v43 = vsel %vm698_vm4, %v9376_v44, %v697_v0  ;;  %v714_v1 = vsel %vm698_vm4, %v697_v0, %v9376_v44  ;;  %2747 = vmatpush.bf16.msra.mxu1 %v7132_v37  ;;  %8637 = vmatpush.bf16.msra.mxu2 %v7132_v37  ;;  %v695_v45 = vpop.permute.xlu0 %694  ;;  %v8357_v44 = vld [vmem:[#allocation2 + $0x10c] sm:$0xf0]  ;;  %14114 = vst [vmem:[#allocation14_spill] sm:$0xff] %v9546_v21  ;;  %v7053_v37 = vld [vmem:[#allocation2 + $0x90] sm:$0xf0]  ;;  %v8735_v0 = vld [vmem:[%s8852_s30 + $0x78] sm:$0xff] }
 0x157   : > { %v731_v38 = vmul.f32 %v9414_v9, %v706_v43  ;;  %v732_v47 = vmul.f32 %v9417_v11, %v714_v1  ;;  %v705_v50 = vsel %vm698_vm4, %v9435_v26, %v695_v45  ;;  %v713_v18 = vsel %vm698_vm4, %v695_v45, %v9435_v26  ;;  %v8731_v26 = vld [vmem:[%s8852_s30 + $0x58] sm:$0xff]  ;;  %659 = vst [vmem:[#allocation2 + $0x210] sm:$0xff] %v651_v15 }
 0x158   : > { %v729_v49 = vmul.f32 %v9414_v9, %v705_v50  ;;  %v730_v10 = vmul.f32 %v9417_v11, %v713_v18  ;;  %v7116_v51 = vor.u32 %v8357_v44, %v7115_v4  ;;  %v8736_v4 = vld [vmem:[%s8852_s30 + $0x68] sm:$0xff]  ;;  %v7056_v46 = vor.u32 %v8339_v36, %v7053_v37  ;;  %v8413_v44 = vld [vmem:[#allocation2 + $0x2cc] sm:$0xf0] }
 0x159   : > { %v740_v55 = vpack.c.bf16 %v732_v47, %v731_v38  ;;  %v7037_v47 = vld [vmem:[#allocation2 + $0x70] sm:$0xf0]  ;;  %v8401_v36 = vld [vmem:[#allocation2 + $0x26c] sm:$0xf0] }
 0x15a   : > { %v739_v6 = vpack.c.bf16 %v730_v10, %v729_v49  ;;  %2748 = vmatpush.bf16.msra.mxu1 %v7116_v51  ;;  %8638 = vmatpush.bf16.msra.mxu2 %v7116_v51  ;;  %v7339_v30 = vld [vmem:[#allocation2 + $0x2c0] sm:$0xf] }
 0x15b   : > { %748 = vst [vmem:[#allocation2 + $0x2f0] sm:$0xff] %v740_v55  ;;  %941 = vrot.lane.b32.xlu2 %v8731_v26, %s8790_s19  ;;  %939 = vrot.lane.b32.xlu1 %v8732_v3, %s8790_s19  ;;  %v7340_v51 = vor.u32 %v8413_v44, %v7339_v30  ;;  %v7040_v55 = vor.u32 %v8335_v48, %v7037_v47  ;;  %v8409_v15 = vld [vmem:[#allocation2 + $0x2ac] sm:$0xf0]  ;;  %v7021_v26 = vld [vmem:[#allocation2 + $0x50] sm:$0xf0] }
 0x15c   : > { %747 = vst [vmem:[#allocation2 + $0x2e0] sm:$0xff] %v739_v6  ;;  %937 = vrot.lane.b32.xlu0 %v8726_v16, %s8790_s19  ;;  %v774_v22 = vpop.permute.xlu2 %773  ;;  %v9565_v16 = vor.u32 %v8313_v31, %v6949_v33  ;;  %v7323_v3 = vld [vmem:[#allocation2 + $0x2a0] sm:$0xf]  ;;  %v9617_v30 = vld [vmem:[%s8852_s30 + $0xd0] sm:$0xff] }
 0x15d   : > { %v9548_v19 = vpop.permute.xlu1 %753  ;;  %v7324_v57 = vor.u32 %v8409_v15, %v7323_v3  ;;  %v8397_v44 = vld [vmem:[#allocation2 + $0x24c] sm:$0xf0] }
 0x15e   : > { %2857 = vmatpush.bf16.msrb.mxu1 %v7104_v13  ;;  %v752_v42 = vpop.permute.xlu0 %751  ;;  %14115 = vst [vmem:[#allocation15_spill] sm:$0xff] %v9565_v16  ;;  %2759 = vmatmul.bf16.vlgmr.msra.gmra.mxu2 %v9565_v16  ;;  %v9586_v13 = vld [vmem:[%s8852_s30 + $0xa0] sm:$0xff] }
 0x15f   : > { %v783_v52 = vsel %vm781_vm5, %v752_v42, %v768_v39  ;;  %v791_v5 = vsel %vm781_vm5, %v768_v39, %v752_v42  ;;  %v7024_v42 = vor.u32 %v8331_v8, %v7021_v26 }
 0x160   : > { %v802_v29 = vmul.f32 %v9538_v61, %v783_v52  ;;  %v803_v32 = vmul.f32 %v9546_v21, %v791_v5  ;;  %v8405_v52 = vld [vmem:[#allocation2 + $0x28c] sm:$0xf0] }
 0x162   : > { %2858 = vmatpush.bf16.msrb.mxu1 %v7088_v14  ;;  %v817_v7 = vpack.c.bf16 %v803_v32, %v802_v29  ;;  %v8417_v12 = vld [vmem:[#allocation2 + $0x2ec] sm:$0xf0]  ;;  %v8327_v32 = vld [vmem:[#allocation2 + $0x24] sm:$0xf] }
 0x163   : > { %1015 = vrot.lane.b32.xlu2 %v9557_v54, %s8783_s8  ;;  %v7355_v39 = vld [vmem:[#allocation2 + $0x2e0] sm:$0xf]  ;;  %945 = vrot.lane.b32.xlu1 %v8735_v0, %s8790_s19  ;;  %v7005_v0 = vld [vmem:[#allocation2 + $0x30] sm:$0xf0] }
 0x164   : > { %825 = vst [vmem:[#allocation2 + $0x310] sm:$0xff] %v817_v7  ;;  %943 = vrot.lane.b32.xlu0 %v8736_v4, %s8790_s19  ;;  %v7356_v43 = vor.u32 %v8417_v12, %v7355_v39  ;;  %v780_v1 = vpop.permute.xlu2 %779  ;;  %v7291_v12 = vld [vmem:[#allocation2 + $0x260] sm:$0xf]  ;;  %v7308_v39 = vor.u32 %v8405_v52, %v7307_v27  ;;  %v8393_v27 = vld [vmem:[#allocation2 + $0x22c] sm:$0xf0] }
 0x165   : > { %v9573_v45 = vpop.permute.xlu1 %759  ;;  %v9614_v4 = vld [vmem:[%s8852_s30 + $0xe0] sm:$0xff] }
 0x166   : > { %2859 = vmatpush.bf16.msrb.mxu1 %v7072_v34  ;;  %2770 = vmatpush.bf16.msrb.mxu2 %v7356_v43  ;;  %v758_v38 = vpop.permute.xlu0 %757 }
 0x167   : > { %v786_v50 = vsel %vm781_vm5, %v758_v38, %v774_v22  ;;  %v794_v18 = vsel %vm781_vm5, %v774_v22, %v758_v38  ;;  %v9620_v38 = vld [vmem:[%s8852_s30 + $0xc0] sm:$0xff] }
 0x168   : > { %v808_v49 = vmul.f32 %v9538_v61, %v786_v50  ;;  %v809_v10 = vmul.f32 %v9546_v21, %v794_v18  ;;  %v6989_v50 = vld [vmem:[#allocation2 + $0x10] sm:$0xf0]  ;;  %v7275_v18 = vld [vmem:[#allocation2 + $0x240] sm:$0xf] }
 0x169   : > { %v7276_v8 = vor.u32 %v8397_v44, %v7275_v18  ;;  %v8383_v18 = vld [vmem:[#allocation2 + $0x1e4] sm:$0xf]  ;;  %v9678_v44 = vld [vmem:[%s8852_s30 + $0xc8] sm:$0xff] }
 0x16a   : > { %2860 = vmatpush.bf16.msrb.mxu1 %v7056_v46  ;;  %v820_v6 = vpack.c.bf16 %v809_v10, %v808_v49  ;;  %2771 = vmatpush.bf16.msrb.mxu2 %v7340_v51  ;;  %v7008_v46 = vor.u32 %v8327_v32, %v7005_v0  ;;  %v8323_v49 = vld [vmem:[#allocation2 + $0x4] sm:$0xf]  ;;  %v9653_v32 = vld [vmem:[%s8852_s30 + $0xf0] sm:$0xff] }
 0x16b   : > { %1021 = vrot.lane.b32.xlu2 %v9583_v60, %s8783_s8  ;;  %1019 = vrot.lane.b32.xlu1 %v9586_v13, %s8783_s8  ;;  %v6992_v48 = vor.u32 %v8323_v49, %v6989_v50  ;;  %v7229_v0 = vld [vmem:[#allocation2 + $0x1f0] sm:$0xf0] }
 0x16c   : > { %828 = vst [vmem:[#allocation2 + $0x340] sm:$0xff] %v820_v6  ;;  %1017 = vrot.lane.b32.xlu0 %v9589_v58, %s8783_s8  ;;  %v9597_v22 = vpop.permute.xlu2 %836 }
 0x16d   : > { %v766_v14 = vpop.permute.xlu1 %765 }
 0x16e   : > { %2861 = vmatpush.bf16.msrb.mxu1 %v7040_v55  ;;  %v782_v5 = vsel %vm781_vm5, %v9433_v25, %v766_v14  ;;  %v790_v2 = vsel %vm781_vm5, %v766_v14, %v9433_v25  ;;  %2772 = vmatpush.bf16.msrb.mxu2 %v7324_v57  ;;  %v764_v29 = vpop.permute.xlu0 %763 }
 0x16f   : > { %v800_v31 = vmul.f32 %v9538_v61, %v782_v5  ;;  %v801_v33 = vmul.f32 %v9546_v21, %v790_v2  ;;  %v789_v34 = vsel %vm781_vm5, %v764_v29, %v780_v1  ;;  %v797_v7 = vsel %vm781_vm5, %v780_v1, %v764_v29  ;;  %v9647_v5 = vld [vmem:[%s8852_s30 + $0x98] sm:$0xff]  ;;  %v9650_v29 = vld [vmem:[%s8852_s30 + $0x88] sm:$0xff] }
 0x170   : > { %v814_v25 = vmul.f32 %v9538_v61, %v789_v34  ;;  %v815_v37 = vmul.f32 %v9546_v21, %v797_v7  ;;  %v7292_v1 = vor.u32 %v8401_v36, %v7291_v12  ;;  %v8389_v34 = vld [vmem:[#allocation2 + $0x20c] sm:$0xf0] }
 0x171   : > { %v816_v43 = vpack.c.bf16 %v801_v33, %v800_v31 }
 0x172   : > { %2862 = vmatpush.bf16.msrb.mxu1 %v7024_v42  ;;  %v823_v47 = vpack.c.bf16 %v815_v37, %v814_v25  ;;  %2773 = vmatpush.bf16.msrb.mxu2 %v7308_v39  ;;  %v7259_v42 = vld [vmem:[#allocation2 + $0x220] sm:$0xf] }
 0x173   : > { %824 = vst [vmem:[#allocation2 + $0x300] sm:$0xff] %v816_v43  ;;  %1027 = vrot.lane.b32.xlu2 %v9614_v4, %s8783_s8  ;;  %1025 = vrot.lane.b32.xlu1 %v9617_v30, %s8783_s8  ;;  %v7260_v33 = vor.u32 %v8393_v27, %v7259_v42  ;;  %v8375_v27 = vld [vmem:[#allocation2 + $0x1a4] sm:$0xf] }
 0x174   : > { %831 = vst [vmem:[#allocation2 + $0x370] sm:$0xff] %v823_v47  ;;  %1023 = vrot.lane.b32.xlu0 %v9620_v38, %s8783_s8  ;;  %v9628_v10 = vpop.permute.xlu2 %842 }
 0x175   : > { %v772_v51 = vpop.permute.xlu1 %771 }
 0x176   : > { %2863 = vmatpush.bf16.msrb.mxu1 %v7008_v46  ;;  %v785_v55 = vsel %vm781_vm5, %v9449_v35, %v772_v51  ;;  %v793_v15 = vsel %vm781_vm5, %v772_v51, %v9449_v35  ;;  %2774 = vmatpush.bf16.msrb.mxu2 %v7292_v1  ;;  %v770_v6 = vpop.permute.xlu0 %769  ;;  %v7232_v51 = vor.u32 %v8383_v18, %v7229_v0 }
 0x177   : > { %v806_v26 = vmul.f32 %v9538_v61, %v785_v55  ;;  %v807_v3 = vmul.f32 %v9546_v21, %v793_v15  ;;  %v784_v57 = vsel %vm781_vm5, %v9548_v19, %v770_v6  ;;  %v792_v14 = vsel %vm781_vm5, %v770_v6, %v9548_v19  ;;  %v7243_v19 = vld [vmem:[#allocation2 + $0x200] sm:$0xf]  ;;  %v9684_v55 = vld [vmem:[%s8852_s30 + $0xa8] sm:$0xff]  ;;  %v8379_v6 = vld [vmem:[#allocation2 + $0x1c4] sm:$0xf] }
 0x178   : > { %v804_v35 = vmul.f32 %v9538_v61, %v784_v57  ;;  %v805_v52 = vmul.f32 %v9546_v21, %v792_v14  ;;  %v7244_v39 = vor.u32 %v8389_v34, %v7243_v19  ;;  %v9711_v19 = vld [vmem:[%s8852_s30 + $0xe8] sm:$0xff]  ;;  %v9714_v34 = vld [vmem:[%s8852_s30 + $0xd8] sm:$0xff] }
 0x179   : > { %v819_v2 = vpack.c.bf16 %v807_v3, %v806_v26  ;;  %v9697_v26 = vperm.slane %v9543_v62, 7  ;;  %v9708_v62 = vld [vmem:[%s8852_s30 + $0xf8] sm:$0xff] }
 0x17a   : > { %2864 = vmatpush.bf16.msrb.mxu1 %v6992_v48  ;;  %v818_v31 = vpack.c.bf16 %v805_v52, %v804_v35  ;;  %2775 = vmatpush.bf16.msrb.mxu2 %v7276_v8  ;;  %v9681_v48 = vld [vmem:[%s8852_s30 + $0xb8] sm:$0xff]  ;;  %v7213_v8 = vld [vmem:[#allocation2 + $0x1d0] sm:$0xf0] }
 0x17b   : > { %827 = vst [vmem:[#allocation2 + $0x330] sm:$0xff] %v819_v2  ;;  %1033 = vrot.lane.b32.xlu2 %v9647_v5, %s8783_s8  ;;  %1031 = vrot.lane.b32.xlu1 %v9650_v29, %s8783_s8  ;;  %v7216_v14 = vor.u32 %v8379_v6, %v7213_v8 }
 0x17c   : > { %826 = vst [vmem:[#allocation2 + $0x320] sm:$0xff] %v818_v31  ;;  %1029 = vrot.lane.b32.xlu0 %v9653_v32, %s8783_s8  ;;  %v849_v7 = vpop.permute.xlu2 %848  ;;  %v7197_v31 = vld [vmem:[#allocation2 + $0x1b0] sm:$0xf0] }
 0x17d   : > { %v778_v12 = vpop.permute.xlu1 %777  ;;  %14117 = vst [vmem:[#allocation17_spill] sm:$0xff] %v9697_v26 }
 0x17e   : > { %v788_v36 = vsel %vm781_vm5, %v9477_v56, %v778_v12  ;;  %v796_v25 = vsel %vm781_vm5, %v778_v12, %v9477_v56  ;;  %2776 = vmatpush.bf16.msrb.mxu2 %v7260_v33  ;;  %v776_v37 = vpop.permute.xlu0 %775  ;;  %v7200_v33 = vor.u32 %v8375_v27, %v7197_v31  ;;  %v7133_v27 = vld [vmem:[#allocation2 + $0x130] sm:$0xf0] }
 0x17f   : > { %v812_v43 = vmul.f32 %v9538_v61, %v788_v36  ;;  %v813_v46 = vmul.f32 %v9546_v21, %v796_v25  ;;  %v787_v47 = vsel %vm781_vm5, %v9573_v45, %v776_v37  ;;  %v795_v1 = vsel %vm781_vm5, %v776_v37, %v9573_v45  ;;  %v7181_v36 = vld [vmem:[#allocation2 + $0x190] sm:$0xf0] }
 0x180   : > { %v810_v50 = vmul.f32 %v9538_v61, %v787_v47  ;;  %v811_v56 = vmul.f32 %v9546_v21, %v795_v1  ;;  %v9694_v45 = vperm.slane %v9535_v59, 7 }
 0x181   : > { %v822_v49 = vpack.c.bf16 %v813_v46, %v812_v43  ;;  %v8367_v43 = vld [vmem:[#allocation2 + $0x164] sm:$0xf] }
 0x182   : > { %v821_v15 = vpack.c.bf16 %v811_v56, %v810_v50  ;;  %2777 = vmatpush.bf16.msrb.mxu2 %v7244_v39  ;;  %14116 = vst [vmem:[#allocation16_spill] sm:$0xff] %v9694_v45  ;;  %v7165_v56 = vld [vmem:[#allocation2 + $0x170] sm:$0xf0] }
 0x183   : > { %830 = vst [vmem:[#allocation2 + $0x360] sm:$0xff] %v822_v49  ;;  %1039 = vrot.lane.b32.xlu2 %v9678_v44, %s8783_s8  ;;  %1037 = vrot.lane.b32.xlu1 %v9681_v48, %s8783_s8  ;;  %v7168_v18 = vor.u32 %v8367_v43, %v7165_v56 }
 0x184   : > { %829 = vst [vmem:[#allocation2 + $0x350] sm:$0xff] %v821_v15  ;;  %1035 = vrot.lane.b32.xlu0 %v9684_v55, %s8783_s8  ;;  %v855_v3 = vpop.permute.xlu2 %854  ;;  %v8363_v15 = vld [vmem:[#allocation2 + $0x144] sm:$0xf] }
 0x185   : > { %v9699_v57 = vpop.permute.xlu1 %834 }
 0x186   : > { %2886 = vmatpush.bf16.msra.mxu2 %v7232_v51  ;;  %v833_v42 = vpop.permute.xlu0 %832  ;;  %v7149_v51 = vld [vmem:[#allocation2 + $0x150] sm:$0xf0] }
 0x187   : > { %v865_v35 = vsel %vm864_vm6, %v833_v42, %v849_v7  ;;  %v873_v52 = vsel %vm864_vm6, %v849_v7, %v833_v42  ;;  %v8371_v7 = vld [vmem:[#allocation2 + $0x184] sm:$0xf] }
 0x188   : > { %v883_v59 = vmul.f32 %v9694_v45, %v865_v35  ;;  %v884_v2 = vmul.f32 %v9697_v26, %v873_v52  ;;  %v7184_v39 = vor.u32 %v8371_v7, %v7181_v36  ;;  %v8359_v42 = vld [vmem:[#allocation2 + $0x124] sm:$0xf]  ;;  %v7117_v36 = vld [vmem:[#allocation2 + $0x110] sm:$0xf0] }
 0x189   : > { %v7136_v31 = vor.u32 %v8359_v42, %v7133_v27 }
 0x18a   : > { %2887 = vmatpush.bf16.msra.mxu2 %v7216_v14  ;;  %v899_v12 = vpack.c.bf16 %v884_v2, %v883_v59 }
 0x18b   : > { %1045 = vrot.lane.b32.xlu2 %v9708_v62, %s8783_s8  ;;  %1043 = vrot.lane.b32.xlu1 %v9711_v19, %s8783_s8 }
 0x18c   : > { %907 = vst [vmem:[#allocation2 + $0x380] sm:$0xff] %v899_v12  ;;  %1041 = vrot.lane.b32.xlu0 %v9714_v34, %s8783_s8  ;;  %v861_v25 = vpop.permute.xlu2 %860  ;;  %v8355_v12 = vld [vmem:[#allocation2 + $0x104] sm:$0xf] }
 0x18d   : > { %v9722_v37 = vpop.permute.xlu1 %840 }
 0x18e   : > { %2888 = vmatpush.bf16.msra.mxu2 %v7200_v33  ;;  %v839_v0 = vpop.permute.xlu0 %838 }
 0x18f   : > { %v868_v46 = vsel %vm864_vm6, %v839_v0, %v855_v3  ;;  %v876_v47 = vsel %vm864_vm6, %v855_v3, %v839_v0  ;;  %v7152_v3 = vor.u32 %v8363_v15, %v7149_v51 }
 0x190   : > { %v889_v1 = vmul.f32 %v9694_v45, %v868_v46  ;;  %v890_v50 = vmul.f32 %v9697_v26, %v876_v47 }
 0x192   : > { %2889 = vmatpush.bf16.msra.mxu2 %v7184_v39  ;;  %v902_v49 = vpack.c.bf16 %v890_v50, %v889_v1  ;;  %v7120_v39 = vor.u32 %v8355_v12, %v7117_v36 }
 0x193   : > { %1099 = vrot.lane.b32.xlu2 %v9586_v13, %s8784_s9  ;;  %1097 = vrot.lane.b32.xlu1 %v9589_v58, %s8784_s9 }
 0x194   : > { %910 = vst [vmem:[#allocation2 + $0x3b0] sm:$0xff] %v902_v49  ;;  %1095 = vrot.lane.b32.xlu0 %v9557_v54, %s8784_s9  ;;  %v9736_v6 = vpop.permute.xlu2 %917 }
 0x195   : > { %v847_v8 = vpop.permute.xlu1 %846 }
 0x196   : > { %2890 = vmatpush.bf16.msra.mxu2 %v7168_v18  ;;  %v845_v14 = vpop.permute.xlu0 %844 }
 0x197   : > { %v871_v35 = vsel %vm864_vm6, %v845_v14, %v861_v25  ;;  %v879_v52 = vsel %vm864_vm6, %v861_v25, %v845_v14 }
 0x198   : > { %v895_v59 = vmul.f32 %v9694_v45, %v871_v35  ;;  %v896_v2 = vmul.f32 %v9697_v26, %v879_v52 }
 0x19a   : > { %2891 = vmatpush.bf16.msra.mxu2 %v7152_v3  ;;  %v905_v33 = vpack.c.bf16 %v896_v2, %v895_v59 }
 0x19b   : > { %1105 = vrot.lane.b32.xlu2 %v9617_v30, %s8784_s9  ;;  %1103 = vrot.lane.b32.xlu1 %v9620_v38, %s8784_s9 }
 0x19c   : > { %913 = vst [vmem:[#allocation2 + $0x3e0] sm:$0xff] %v905_v33  ;;  %1101 = vrot.lane.b32.xlu0 %v9583_v60, %s8784_s9 }
 0x19d   : > { %v9750_v7 = vpop.permute.xlu2 %923  ;;  %v853_v25 = vpop.permute.xlu1 %852 }
 0x19e   : > { %2892 = vmatpush.bf16.msra.mxu2 %v7136_v31  ;;  %v867_v0 = vsel %vm864_vm6, %v9597_v22, %v853_v25  ;;  %v875_v43 = vsel %vm864_vm6, %v853_v25, %v9597_v22  ;;  %v851_v46 = vpop.permute.xlu0 %850 }
 0x19f   : > { %v887_v47 = vmul.f32 %v9694_v45, %v867_v0  ;;  %v888_v1 = vmul.f32 %v9697_v26, %v875_v43  ;;  %v866_v50 = vsel %vm864_vm6, %v9699_v57, %v851_v46  ;;  %v874_v56 = vsel %vm864_vm6, %v851_v46, %v9699_v57 }
 0x1a0   : > { %v885_v18 = vmul.f32 %v9694_v45, %v866_v50  ;;  %v886_v49 = vmul.f32 %v9697_v26, %v874_v56 }
 0x1a1   : > { %v901_v51 = vpack.c.bf16 %v888_v1, %v887_v47  ;;  %v9821_v47 = vld [vmem:[%s13993_s1 + $0x18] ss:$0 sm:$0xff] }
 0x1a2   : > { %2893 = vmatpush.bf16.msra.mxu2 %v7120_v39  ;;  %v900_v22 = vpack.c.bf16 %v886_v49, %v885_v18 }
 0x1a3   : > { %909 = vst [vmem:[#allocation2 + $0x3a0] sm:$0xff] %v901_v51  ;;  %1111 = vrot.lane.b32.xlu2 %v9650_v29, %s8784_s9  ;;  %1109 = vrot.lane.b32.xlu1 %v9653_v32, %s8784_s9 }
 0x1a4   : > { %908 = vst [vmem:[#allocation2 + $0x390] sm:$0xff] %v900_v22  ;;  %1107 = vrot.lane.b32.xlu0 %v9614_v4, %s8784_s9 }
 0x1a5   : > { %v9774_v15 = vpop.permute.xlu2 %929  ;;  %v859_v57 = vpop.permute.xlu1 %858 }
 0x1a6   : > { %v870_v3 = vsel %vm864_vm6, %v9628_v10, %v859_v57  ;;  %v878_v14 = vsel %vm864_vm6, %v859_v57, %v9628_v10  ;;  %v857_v42 = vpop.permute.xlu0 %856 }
 0x1a7   : > { %v893_v27 = vmul.f32 %v9694_v45, %v870_v3  ;;  %v894_v35 = vmul.f32 %v9697_v26, %v878_v14  ;;  %v869_v52 = vsel %vm864_vm6, %v9722_v37, %v857_v42  ;;  %v877_v59 = vsel %vm864_vm6, %v857_v42, %v9722_v37  ;;  %v7483_v3 = vld [vmem:[#allocation2 + $0x3e0] sm:$0xf] }
 0x1a8   : > { %v891_v2 = vmul.f32 %v9694_v45, %v869_v52  ;;  %v892_v31 = vmul.f32 %v9697_v26, %v877_v59 }
 0x1a9   : > { %v904_v33 = vpack.c.bf16 %v894_v35, %v893_v27 }
 0x1aa   : > { %v903_v12 = vpack.c.bf16 %v892_v31, %v891_v2 }
 0x1ab   : > { %912 = vst [vmem:[#allocation2 + $0x3d0] sm:$0xff] %v904_v33  ;;  %1117 = vrot.lane.b32.xlu2 %v9681_v48, %s8784_s9  ;;  %1115 = vrot.lane.b32.xlu1 %v9684_v55, %s8784_s9 }
 0x1ac   : > { %911 = vst [vmem:[#allocation2 + $0x3c0] sm:$0xff] %v903_v12  ;;  %1113 = vrot.lane.b32.xlu0 %v9647_v5, %s8784_s9 }
 0x1ad   : > { %v936_v10 = vpop.permute.xlu2 %935  ;;  %v9798_v36 = vpop.permute.xlu1 %915 }
 0x1ae   : > { %v863_v37 = vpop.permute.xlu0 %862 }
 0x1af   : > { %v872_v25 = vsel %vm864_vm6, %v847_v8, %v863_v37  ;;  %v880_v39 = vsel %vm864_vm6, %v863_v37, %v847_v8  ;;  %v9816_v8 = vld [vmem:[%s13993_s1 + $0x10] ss:$0 sm:$0xff] }
 0x1b0   : > { %v897_v0 = vmul.f32 %v9694_v45, %v872_v25  ;;  %v898_v43 = vmul.f32 %v9697_v26, %v880_v39  ;;  %v7451_v25 = vld [vmem:[#allocation2 + $0x3a0] sm:$0xf] }
 0x1b2   : > { %v906_v46 = vpack.c.bf16 %v898_v43, %v897_v0  ;;  %v8445_v59 = vld [vmem:[#allocation2 + $0x3cc] sm:$0xf0] }
 0x1b3   : > { %1123 = vrot.lane.b32.xlu2 %v9711_v19, %s8784_s9  ;;  %1121 = vrot.lane.b32.xlu1 %v9714_v34, %s8784_s9  ;;  %v7467_v52 = vld [vmem:[#allocation2 + $0x3c0] sm:$0xf]  ;;  %v8441_v0 = vld [vmem:[#allocation2 + $0x3ac] sm:$0xf0] }
 0x1b4   : > { %914 = vst [vmem:[#allocation2 + $0x3f0] sm:$0xff] %v906_v46  ;;  %1119 = vrot.lane.b32.xlu0 %v9678_v44, %s8784_s9  ;;  %v7468_v37 = vor.u32 %v8445_v59, %v7467_v52  ;;  %v7452_v43 = vor.u32 %v8441_v0, %v7451_v25  ;;  %v8318_v25 = vld [vmem:[%s13994_s2 + $0x7c] sm:$0xf]  ;;  %v8429_v0 = vld [vmem:[#allocation2 + $0x34c] sm:$0xf0] }
 0x1b5   : > { %v942_v1 = vpop.permute.xlu2 %941  ;;  %v9823_v50 = vpop.permute.xlu1 %921 }
 0x1b6   : > { %v920_v56 = vpop.permute.xlu0 %919 }
 0x1b7   : > { %v950_v18 = vsel %vm947_vm7, %v920_v56, %v936_v10  ;;  %v958_v49 = vsel %vm947_vm7, %v936_v10, %v920_v56  ;;  %v8437_v56 = vld [vmem:[#allocation2 + $0x38c] sm:$0xf0] }
 0x1b8   : > { %v970_v51 = vmul.f32 %v9816_v8, %v950_v18  ;;  %v971_v22 = vmul.f32 %v9821_v47, %v958_v49  ;;  %v8303_v18 = vld [vmem:[%s13994_s2 + $0x4] sm:$0xf]  ;;  %v6909_v49 = vld [vmem:[%s13994_s2 + $0x14] sm:$0xf0] }
 0x1ba   : > { %v984_v57 = vpack.c.bf16 %v971_v22, %v970_v51 }
 0x1bb   : > { %1177 = vrot.lane.b32.xlu2 %v9589_v58, %s8785_s10  ;;  %v8449_v14 = vld [vmem:[#allocation2 + $0x3ec] sm:$0xf0]  ;;  %1175 = vrot.lane.b32.xlu1 %v9557_v54, %s8785_s10 }
 0x1bc   : > { %992 = vst [vmem:[#allocation2 + $0x420] sm:$0xff] %v984_v57  ;;  %1125 = vrot.lane.b32.xlu0 %v9708_v62, %s8784_s9  ;;  %v7484_v42 = vor.u32 %v8449_v14, %v7483_v3  ;;  %v9867_v3 = vor.u32 %v8303_v18, %v6909_v49  ;;  %v7403_v18 = vld [vmem:[#allocation2 + $0x340] sm:$0xf] }
 0x1bd   : > { %v9837_v27 = vpop.permute.xlu2 %1015  ;;  %v9839_v35 = vpop.permute.xlu1 %927 }
 0x1be   : > { %2799 = vmatpush.bf16.msra.mxu3 %v7484_v42  ;;  %v926_v2 = vpop.permute.xlu0 %925  ;;  %14118 = vst [vmem:[#allocation18_spill] sm:$0xff] %v9867_v3  ;;  %2749 = vmatmul.bf16.vlgmr.msra.gmra.mxu1 %v9867_v3 }
 0x1bf   : > { %v953_v31 = vsel %vm947_vm7, %v926_v2, %v942_v1  ;;  %v961_v33 = vsel %vm947_vm7, %v942_v1, %v926_v2  ;;  %v7435_v2 = vld [vmem:[#allocation2 + $0x380] sm:$0xf] }
 0x1c0   : > { %v976_v12 = vmul.f32 %v9816_v8, %v953_v31  ;;  %v977_v10 = vmul.f32 %v9821_v47, %v961_v33  ;;  %v7436_v33 = vor.u32 %v8437_v56, %v7435_v2 }
 0x1c2   : > { %v987_v39 = vpack.c.bf16 %v977_v10, %v976_v12  ;;  %2800 = vmatpush.bf16.msra.mxu3 %v7468_v37  ;;  %v7419_v10 = vld [vmem:[#allocation2 + $0x360] sm:$0xf] }
 0x1c3   : > { %1183 = vrot.lane.b32.xlu2 %v9620_v38, %s8785_s10  ;;  %1181 = vrot.lane.b32.xlu1 %v9583_v60, %s8785_s10 }
 0x1c4   : > { %995 = vst [vmem:[#allocation2 + $0x450] sm:$0xff] %v987_v39  ;;  %1179 = vrot.lane.b32.xlu0 %v9586_v13, %s8785_s10  ;;  %v8433_v39 = vld [vmem:[#allocation2 + $0x36c] sm:$0xf0] }
 0x1c5   : > { %v9853_v46 = vpop.permute.xlu2 %1021  ;;  %v934_v1 = vpop.permute.xlu1 %933 }
 0x1c6   : > { %v949_v51 = vsel %vm947_vm7, %v9736_v6, %v934_v1  ;;  %v957_v22 = vsel %vm947_vm7, %v934_v1, %v9736_v6  ;;  %2801 = vmatpush.bf16.msra.mxu3 %v7452_v43  ;;  %v932_v57 = vpop.permute.xlu0 %931  ;;  %v7420_v1 = vor.u32 %v8433_v39, %v7419_v10 }
 0x1c7   : > { %v968_v14 = vmul.f32 %v9816_v8, %v949_v51  ;;  %v969_v42 = vmul.f32 %v9821_v47, %v957_v22  ;;  %v948_v52 = vsel %vm947_vm7, %v9798_v36, %v932_v57  ;;  %v956_v59 = vsel %vm947_vm7, %v932_v57, %v9798_v36  ;;  %v6969_v36 = vld [vmem:[%s13994_s2 + $0x8c] sm:$0xf0] }
 0x1c8   : > { %v966_v31 = vmul.f32 %v9816_v8, %v948_v52  ;;  %v967_v6 = vmul.f32 %v9821_v47, %v956_v59  ;;  %v9888_v43 = vor.u32 %v8318_v25, %v6969_v36  ;;  %v7404_v22 = vor.u32 %v8429_v0, %v7403_v18  ;;  %v8305_v25 = vld [vmem:[%s13994_s2 + $0x10] sm:$0xf0] }
 0x1c9   : > { %v983_v12 = vpack.c.bf16 %v969_v42, %v968_v14 }
 0x1ca   : > { %v982_v37 = vpack.c.bf16 %v967_v6, %v966_v31  ;;  %2802 = vmatpush.bf16.msra.mxu3 %v7436_v33  ;;  %14119 = vst [vmem:[#allocation19_spill] sm:$0xff] %v9888_v43  ;;  %2764 = vmatmul.bf16.gmra.mxu2 %v9888_v43  ;;  %v7387_v33 = vld [vmem:[#allocation2 + $0x320] sm:$0xf] }
 0x1cb   : > { %991 = vst [vmem:[#allocation2 + $0x410] sm:$0xff] %v983_v12  ;;  %1189 = vrot.lane.b32.xlu2 %v9653_v32, %s8785_s10  ;;  %1187 = vrot.lane.b32.xlu1 %v9614_v4, %s8785_s10  ;;  %v8425_v12 = vld [vmem:[#allocation2 + $0x32c] sm:$0xf0] }
 0x1cc   : > { %990 = vst [vmem:[#allocation2 + $0x400] sm:$0xff] %v982_v37  ;;  %1185 = vrot.lane.b32.xlu0 %v9617_v30, %s8785_s10  ;;  %v6907_v37 = vld [vmem:[%s13994_s2] sm:$0xf]  ;;  %v7388_v36 = vor.u32 %v8425_v12, %v7387_v33 }
 0x1cd   : > { %v9894_v56 = vpop.permute.xlu2 %1027  ;;  %v940_v49 = vpop.permute.xlu1 %939  ;;  %v9925_v39 = vor.u32 %v8305_v25, %v6907_v37  ;;  %v6915_v37 = vld [vmem:[%s13994_s2 + $0x8] sm:$0xf] }
 0x1ce   : > { %2803 = vmatpush.bf16.msra.mxu3 %v7420_v1  ;;  %v938_v51 = vpop.permute.xlu0 %937  ;;  %v952_v57 = vsel %vm947_vm7, %v9750_v7, %v940_v49  ;;  %v960_v14 = vsel %vm947_vm7, %v940_v49, %v9750_v7  ;;  %v8421_v1 = vld [vmem:[#allocation2 + $0x30c] sm:$0xf0] }
 0x1cf   : > { %v951_v42 = vsel %vm947_vm7, %v9823_v50, %v938_v51  ;;  %v959_v52 = vsel %vm947_vm7, %v938_v51, %v9823_v50  ;;  %v974_v59 = vmul.f32 %v9816_v8, %v952_v57  ;;  %v975_v2 = vmul.f32 %v9821_v47, %v960_v14  ;;  %v7371_v50 = vld [vmem:[#allocation2 + $0x300] sm:$0xf]  ;;  %v7357_v57 = vld [vmem:[#allocation2 + $0x2f0] sm:$0xf0]  ;;  %2720 = vmatmul.bf16.vlgmr.msra.gmra.mxu0 %v9925_v39 }
 0x1d0   : > { %v972_v31 = vmul.f32 %v9816_v8, %v951_v42  ;;  %v973_v6 = vmul.f32 %v9821_v47, %v959_v52  ;;  %v7372_v51 = vor.u32 %v8421_v1, %v7371_v50 }
 0x1d1   : > { %v986_v10 = vpack.c.bf16 %v975_v2, %v974_v59 }
 0x1d2   : > { %v985_v7 = vpack.c.bf16 %v973_v6, %v972_v31  ;;  %2804 = vmatpush.bf16.msra.mxu3 %v7404_v22  ;;  %v8415_v22 = vld [vmem:[#allocation2 + $0x2e4] sm:$0xf] }
 0x1d3   : > { %1195 = vrot.lane.b32.xlu2 %v9684_v55, %s8785_s10  ;;  %994 = vst [vmem:[#allocation2 + $0x440] sm:$0xff] %v986_v10  ;;  %1193 = vrot.lane.b32.xlu1 %v9647_v5, %s8785_s10  ;;  %v7360_v12 = vor.u32 %v8415_v22, %v7357_v57 }
 0x1d4   : > { %1191 = vrot.lane.b32.xlu0 %v9650_v29, %s8785_s10  ;;  %993 = vst [vmem:[#allocation2 + $0x430] sm:$0xff] %v985_v7 }
 0x1d5   : > { %v1034_v0 = vpop.permute.xlu2 %1033  ;;  %v946_v18 = vpop.permute.xlu1 %945 }
 0x1d6   : > { %2805 = vmatpush.bf16.msra.mxu3 %v7388_v36  ;;  %v944_v49 = vpop.permute.xlu0 %943  ;;  %v955_v14 = vsel %vm947_vm7, %v9774_v15, %v946_v18  ;;  %v963_v42 = vsel %vm947_vm7, %v946_v18, %v9774_v15  ;;  %v8411_v15 = vld [vmem:[#allocation2 + $0x2c4] sm:$0xf]  ;;  %v7325_v18 = vld [vmem:[#allocation2 + $0x2b0] sm:$0xf0] }
 0x1d7   : > { %v954_v52 = vsel %vm947_vm7, %v9839_v35, %v944_v49  ;;  %v962_v59 = vsel %vm947_vm7, %v944_v49, %v9839_v35  ;;  %v980_v2 = vmul.f32 %v9816_v8, %v955_v14  ;;  %v981_v31 = vmul.f32 %v9821_v47, %v963_v42  ;;  %v8306_v35 = vld [vmem:[%s13994_s2 + $0x18] sm:$0xf0]  ;;  %v8407_v14 = vld [vmem:[#allocation2 + $0x2a4] sm:$0xf] }
 0x1d8   : > { %v978_v6 = vmul.f32 %v9816_v8, %v954_v52  ;;  %v979_v33 = vmul.f32 %v9821_v47, %v962_v59  ;;  %v9952_v8 = vor.u32 %v8306_v35, %v6915_v37  ;;  %v7341_v47 = vld [vmem:[#allocation2 + $0x2d0] sm:$0xf0]  ;;  %v7328_v42 = vor.u32 %v8407_v14, %v7325_v18 }
 0x1d9   : > { %v989_v10 = vpack.c.bf16 %v981_v31, %v980_v2  ;;  %v7344_v25 = vor.u32 %v8411_v15, %v7341_v47  ;;  %v7309_v59 = vld [vmem:[#allocation2 + $0x290] sm:$0xf0] }
 0x1da   : > { %v988_v7 = vpack.c.bf16 %v979_v33, %v978_v6  ;;  %2806 = vmatpush.bf16.msra.mxu3 %v7372_v51  ;;  %14120 = vst [vmem:[#allocation20_spill] sm:$0xff] %v9952_v8  ;;  %2778 = vmatmul.bf16.vlgmr.msrb.gmra.mxu2 %v9952_v8  ;;  %v8403_v6 = vld [vmem:[#allocation2 + $0x284] sm:$0xf] }
 0x1db   : > { %1201 = vrot.lane.b32.xlu2 %v9714_v34, %s8785_s10  ;;  %997 = vst [vmem:[#allocation2 + $0x470] sm:$0xff] %v989_v10  ;;  %1199 = vrot.lane.b32.xlu1 %v9678_v44, %s8785_s10  ;;  %v7312_v35 = vor.u32 %v8403_v6, %v7309_v59  ;;  %v8459_v47 = vld [vmem:[#allocation2 + $0x444] sm:$0xf]  ;;  %v7517_v59 = vld [vmem:[#allocation2 + $0x430] sm:$0xf0] }
 0x1dc   : > { %1197 = vrot.lane.b32.xlu0 %v9681_v48, %s8785_s10  ;;  %996 = vst [vmem:[#allocation2 + $0x460] sm:$0xff] %v988_v7  ;;  %v7515_v6 = vld [vmem:[#allocation2 + $0x420] sm:$0xf] }
 0x1dd   : > { %v1040_v50 = vpop.permute.xlu2 %1039  ;;  %v9959_v36 = vpop.permute.xlu1 %1019 }
 0x1de   : > { %2915 = vmatpush.bf16.msrb.mxu3 %v7360_v12  ;;  %v1018_v1 = vpop.permute.xlu0 %1017 }
 0x1df   : > { %v1048_v49 = vsel %vm350_vm0, %v1018_v1, %v1034_v0  ;;  %v1056_v51 = vsel %vm350_vm0, %v1034_v0, %v1018_v1 }
 0x1e0   : > { %v1065_v22 = vmul.f32 %v1056_v51, %v9010_v23  ;;  %v1066_v57 = vmul.f32 %v1048_v49, %v9013_v24  ;;  %v8461_v51 = vld [vmem:[#allocation2 + $0x44c] sm:$0xf0] }
 0x1e2   : > { %2916 = vmatpush.bf16.msrb.mxu3 %v7344_v25  ;;  %v1080_v52 = vpack.c.bf16 %v1066_v57, %v1065_v22  ;;  %v8465_v2 = vld [vmem:[#allocation2 + $0x46c] sm:$0xf0]  ;;  %v7549_v31 = vld [vmem:[#allocation2 + $0x470] sm:$0xf0] }
 0x1e3   : > { %1255 = vrot.lane.b32.xlu2 %v9557_v54, %s8786_s15  ;;  %1205 = vrot.lane.b32.xlu1 %v9708_v62, %s8785_s10  ;;  %v7547_v0 = vld [vmem:[#allocation2 + $0x460] sm:$0xf]  ;;  %v8463_v33 = vld [vmem:[#allocation2 + $0x464] sm:$0xf]  ;;  %v7533_v22 = vld [vmem:[#allocation2 + $0x450] sm:$0xf0] }
 0x1e4   : > { %1088 = vst [vmem:[#allocation2 + $0x18] sm:$0xff] %v1080_v52  ;;  %1203 = vrot.lane.b32.xlu0 %v9711_v19, %s8785_s10  ;;  %v7548_v10 = vor.u32 %v8465_v2, %v7547_v0  ;;  %v7552_v7 = vor.u32 %v8463_v33, %v7549_v31  ;;  %v7531_v54 = vld [vmem:[#allocation2 + $0x440] sm:$0xf]  ;;  %v7536_v14 = vor.u32 %v8459_v47, %v7533_v22  ;;  %v6935_v2 = vld [vmem:[%s13994_s2 + $0x30] sm:$0xf] }
 0x1e5   : > { %v1046_v12 = vpop.permute.xlu2 %1045  ;;  %v9973_v15 = vpop.permute.xlu1 %1025  ;;  %v7532_v57 = vor.u32 %v8461_v51, %v7531_v54  ;;  %v8455_v0 = vld [vmem:[#allocation2 + $0x424] sm:$0xf]  ;;  %v7499_v47 = vld [vmem:[#allocation2 + $0x400] sm:$0xf]  ;;  %v8310_v51 = vld [vmem:[%s13994_s2 + $0x38] sm:$0xf0] }
 0x1e6   : > { %2917 = vmatpush.bf16.msrb.mxu3 %v7328_v42  ;;  %v1024_v37 = vpop.permute.xlu0 %1023  ;;  %2832 = vmatpush.bf16.msrb.mxu0 %v7548_v10  ;;  %v8457_v42 = vld [vmem:[#allocation2 + $0x42c] sm:$0xf0] }
 0x1e7   : > { %2977 = vmatpush.bf16.msra.mxu1 %v7552_v7  ;;  %v1051_v25 = vsel %vm350_vm0, %v1024_v37, %v1040_v50  ;;  %v1059_v1 = vsel %vm350_vm0, %v1040_v50, %v1024_v37  ;;  %v8311_v50 = vld [vmem:[%s13994_s2 + $0x40] sm:$0xf0]  ;;  %v7516_v10 = vor.u32 %v8457_v42, %v7515_v6  ;;  %v7520_v7 = vor.u32 %v8455_v0, %v7517_v59  ;;  %v8453_v37 = vld [vmem:[#allocation2 + $0x40c] sm:$0xf0] }
 0x1e8   : > { %v1071_v18 = vmul.f32 %v1059_v1, %v9010_v23  ;;  %v1072_v49 = vmul.f32 %v1051_v25, %v9013_v24  ;;  %v9987_v31 = vor.u32 %v8311_v50, %v6935_v2  ;;  %v8451_v25 = vld [vmem:[#allocation2 + $0x404] sm:$0xf] }
 0x1e9   : > { %v8447_v2 = vld [vmem:[#allocation2 + $0x3e4] sm:$0xf] }
 0x1ea   : > { %2918 = vmatpush.bf16.msrb.mxu3 %v7312_v35  ;;  %v1083_v52 = vpack.c.bf16 %v1072_v49, %v1071_v18  ;;  %2833 = vmatpush.bf16.msrb.mxu0 %v7532_v57  ;;  %14121 = vst [vmem:[#allocation21_spill] sm:$0xff] %v9987_v31  ;;  %v7485_v18 = vld [vmem:[#allocation2 + $0x3f0] sm:$0xf0]  ;;  %v6927_v49 = vld [vmem:[%s13994_s2 + $0x28] sm:$0xf] }
 0x1eb   : > { %2978 = vmatpush.bf16.msra.mxu1 %v7536_v14  ;;  %1261 = vrot.lane.b32.xlu2 %v9583_v60, %s8786_s15  ;;  %v7501_v60 = vld [vmem:[#allocation2 + $0x410] sm:$0xf0]  ;;  %v7488_v6 = vor.u32 %v8447_v2, %v7485_v18  ;;  %v10018_v0 = vor.u32 %v8310_v51, %v6927_v49 }
 0x1ec   : > { %1091 = vst [vmem:[#allocation2 + $0x48] sm:$0xff] %v1083_v52  ;;  %1259 = vrot.lane.b32.xlu1 %v9586_v13, %s8786_s15  ;;  %1257 = vrot.lane.b32.xlu0 %v9589_v58, %s8786_s15  ;;  %v7500_v52 = vor.u32 %v8453_v37, %v7499_v47  ;;  %v7504_v59 = vor.u32 %v8451_v25, %v7501_v60  ;;  %v8439_v60 = vld [vmem:[#allocation2 + $0x3a4] sm:$0xf]  ;;  %v7453_v49 = vld [vmem:[#allocation2 + $0x3b0] sm:$0xf0] }
 0x1ed   : > { %v9995_v33 = vpop.permute.xlu2 %1099  ;;  %2783 = vmatmul.bf16.gmra.mxu2 %v9987_v31  ;;  %v1032_v35 = vpop.permute.xlu1 %1031  ;;  %2725 = vmatmul.bf16.gmra.mxu0 %v10018_v0 }
 0x1ee   : > { %v1030_v54 = vpop.permute.xlu0 %1029  ;;  %v1047_v13 = vsel %vm350_vm0, %v9837_v27, %v1032_v35  ;;  %v1055_v58 = vsel %vm350_vm0, %v1032_v35, %v9837_v27  ;;  %2834 = vmatpush.bf16.msrb.mxu0 %v7516_v10  ;;  %v7469_v35 = vld [vmem:[#allocation2 + $0x3d0] sm:$0xf0] }
 0x1ef   : > { %2979 = vmatpush.bf16.msra.mxu1 %v7520_v7  ;;  %v1054_v1 = vsel %vm350_vm0, %v1030_v54, %v1046_v12  ;;  %v1063_v22 = vmul.f32 %v1055_v58, %v9010_v23  ;;  %v1064_v57 = vmul.f32 %v1047_v13, %v9013_v24  ;;  %v1062_v27 = vsel %vm350_vm0, %v1046_v12, %v1030_v54  ;;  %v8443_v7 = vld [vmem:[#allocation2 + $0x3c4] sm:$0xf] }
 0x1f0   : > { %v1078_v14 = vmul.f32 %v1054_v1, %v9013_v24  ;;  %v1077_v42 = vmul.f32 %v1062_v27, %v9010_v23  ;;  %v7472_v47 = vor.u32 %v8443_v7, %v7469_v35  ;;  %v7437_v27 = vld [vmem:[#allocation2 + $0x390] sm:$0xf0]  ;;  %v6947_v7 = vld [vmem:[%s13994_s2 + $0x50] sm:$0xf]  ;;  %v8315_v35 = vld [vmem:[%s13994_s2 + $0x60] sm:$0xf0] }
 0x1f1   : > { %v1079_v50 = vpack.c.bf16 %v1064_v57, %v1063_v22  ;;  %v7456_v22 = vor.u32 %v8439_v60, %v7453_v49  ;;  %v6955_v57 = vld [vmem:[%s13994_s2 + $0x58] sm:$0xf]  ;;  %v7405_v60 = vld [vmem:[#allocation2 + $0x350] sm:$0xf0] }
 0x1f2   : > { %v1086_v10 = vpack.c.bf16 %v1078_v14, %v1077_v42  ;;  %2835 = vmatpush.bf16.msrb.mxu0 %v7500_v52  ;;  %v8435_v52 = vld [vmem:[#allocation2 + $0x384] sm:$0xf] }
 0x1f3   : > { %2980 = vmatpush.bf16.msra.mxu1 %v7504_v59  ;;  %1087 = vst [vmem:[#allocation2 + $0x8] sm:$0xff] %v1079_v50  ;;  %1267 = vrot.lane.b32.xlu2 %v9614_v4, %s8786_s15  ;;  %v7440_v50 = vor.u32 %v8435_v52, %v7437_v27  ;;  %v6975_v27 = vld [vmem:[%s13994_s2 + $0x80] sm:$0xf]  ;;  %v8321_v52 = vld [vmem:[%s13994_s2 + $0x90] sm:$0xf0] }
 0x1f4   : > { %1094 = vst [vmem:[#allocation2 + $0x78] sm:$0xff] %v1086_v10  ;;  %1265 = vrot.lane.b32.xlu1 %v9617_v30, %s8786_s15  ;;  %1263 = vrot.lane.b32.xlu0 %v9620_v38, %s8786_s15  ;;  %v8431_v10 = vld [vmem:[#allocation2 + $0x364] sm:$0xf] }
 0x1f5   : > { %v10026_v12 = vpop.permute.xlu2 %1105  ;;  %v1038_v37 = vpop.permute.xlu1 %1037 }
 0x1f6   : > { %2944 = vmatpush.bf16.msra.mxu0 %v7488_v6  ;;  %v1036_v54 = vpop.permute.xlu0 %1035  ;;  %v1050_v25 = vsel %vm350_vm0, %v9853_v46, %v1038_v37  ;;  %v1058_v4 = vsel %vm350_vm0, %v1038_v37, %v9853_v46 }
 0x1f7   : > { %v1049_v30 = vsel %vm350_vm0, %v9959_v36, %v1036_v54  ;;  %v1057_v38 = vsel %vm350_vm0, %v1036_v54, %v9959_v36  ;;  %v1069_v13 = vmul.f32 %v1058_v4, %v9010_v23  ;;  %v1070_v58 = vmul.f32 %v1050_v25, %v9013_v24  ;;  %v8316_v36 = vld [vmem:[%s13994_s2 + $0x68] sm:$0xf0]  ;;  %v7421_v25 = vld [vmem:[#allocation2 + $0x370] sm:$0xf0] }
 0x1f8   : > { %v1067_v1 = vmul.f32 %v1057_v38, %v9010_v23  ;;  %v1068_v18 = vmul.f32 %v1049_v30, %v9013_v24  ;;  %v10051_v14 = vor.u32 %v8316_v36, %v6955_v57  ;;  %v7424_v30 = vor.u32 %v8431_v10, %v7421_v25 }
 0x1f9   : > { %v1082_v46 = vpack.c.bf16 %v1070_v58, %v1069_v13  ;;  %v10082_v38 = vor.u32 %v8315_v35, %v6947_v7  ;;  %v8427_v58 = vld [vmem:[#allocation2 + $0x344] sm:$0xf]  ;;  %v8320_v35 = vld [vmem:[%s13994_s2 + $0x88] sm:$0xf0] }
 0x1fa   : > { %2945 = vmatpush.bf16.msra.mxu0 %v7472_v47  ;;  %v1081_v51 = vpack.c.bf16 %v1068_v18, %v1067_v1  ;;  %14122 = vst [vmem:[#allocation22_spill] sm:$0xff] %v10051_v14  ;;  %v7408_v49 = vor.u32 %v8427_v58, %v7405_v60  ;;  %v10154_v60 = vld [vmem:[%s8852_s30 + $0x90] sm:$0xff] }
 0x1fb   : > { %1090 = vst [vmem:[#allocation2 + $0x38] sm:$0xff] %v1082_v46  ;;  %1273 = vrot.lane.b32.xlu2 %v9647_v5, %s8786_s15 }
 0x1fc   : > { %1089 = vst [vmem:[#allocation2 + $0x28] sm:$0xff] %v1081_v51  ;;  %1271 = vrot.lane.b32.xlu1 %v9650_v29, %s8786_s15  ;;  %1269 = vrot.lane.b32.xlu0 %v9653_v32, %s8786_s15  ;;  %v8423_v51 = vld [vmem:[#allocation2 + $0x324] sm:$0xf] }
 0x1fd   : > { %v1112_v42 = vpop.permute.xlu2 %1111  ;;  %v1044_v59 = vpop.permute.xlu1 %1043  ;;  %2788 = vmatmul.bf16.gmra.mxu2 %v10051_v14  ;;  %2730 = vmatmul.bf16.gmra.mxu0 %v10082_v38 }
 0x1fe   : > { %2946 = vmatpush.bf16.msra.mxu0 %v7456_v22  ;;  %v1042_v2 = vpop.permute.xlu0 %1041  ;;  %v1053_v6 = vsel %vm350_vm0, %v9894_v56, %v1044_v59  ;;  %v1061_v5 = vsel %vm350_vm0, %v1044_v59, %v9894_v56  ;;  %v7389_v22 = vld [vmem:[#allocation2 + $0x330] sm:$0xf0]  ;;  %v8419_v59 = vld [vmem:[#allocation2 + $0x304] sm:$0xf] }
 0x1ff   : > { %v1052_v29 = vsel %vm350_vm0, %v9973_v15, %v1042_v2  ;;  %v1060_v32 = vsel %vm350_vm0, %v1042_v2, %v9973_v15  ;;  %v1075_v37 = vmul.f32 %v1061_v5, %v9010_v23  ;;  %v1076_v56 = vmul.f32 %v1053_v6, %v9013_v24  ;;  %v7373_v5 = vld [vmem:[#allocation2 + $0x310] sm:$0xf0] }
 0x200   : > { %v1073_v54 = vmul.f32 %v1060_v32, %v9010_v23  ;;  %v1074_v47 = vmul.f32 %v1052_v29, %v9013_v24  ;;  %v7392_v36 = vor.u32 %v8423_v51, %v7389_v22  ;;  %v10105_v2 = vor.u32 %v8321_v52, %v6975_v27  ;;  %v10186_v27 = vld [vmem:[%s8852_s30 + $0xc0] sm:$0xff]  ;;  %v10191_v52 = vld [vmem:[%s8852_s30 + $0xb0] sm:$0xff] }
 0x201   : > { %v1085_v15 = vpack.c.bf16 %v1076_v56, %v1075_v37  ;;  %v7376_v10 = vor.u32 %v8419_v59, %v7373_v5 }
 0x202   : > { %2947 = vmatpush.bf16.msra.mxu0 %v7440_v50  ;;  %v1084_v4 = vpack.c.bf16 %v1074_v47, %v1073_v54  ;;  %14123 = vst [vmem:[#allocation23_spill] sm:$0xff] %v10105_v2  ;;  %v6917_v50 = vld [vmem:[%s13994_s2 + $0x1c] sm:$0xf0]  ;;  %v8308_v54 = vld [vmem:[%s13994_s2 + $0x2c] sm:$0xf] }
 0x203   : > { %1093 = vst [vmem:[#allocation2 + $0x68] sm:$0xff] %v1085_v15  ;;  %1279 = vrot.lane.b32.xlu2 %v9678_v44, %s8786_s15  ;;  %v6929_v47 = vld [vmem:[%s13994_s2 + $0x3c] sm:$0xf0] }
 0x204   : > { %1092 = vst [vmem:[#allocation2 + $0x58] sm:$0xff] %v1084_v4  ;;  %1277 = vrot.lane.b32.xlu1 %v9681_v48, %s8786_s15  ;;  %1275 = vrot.lane.b32.xlu0 %v9684_v55, %s8786_s15  ;;  %v10143_v25 = vor.u32 %v8308_v54, %v6929_v47 }
 0x205   : > { %v1118_v13 = vpop.permute.xlu2 %1117  ;;  %v10090_v1 = vpop.permute.xlu1 %1097 }
 0x206   : > { %2948 = vmatpush.bf16.msra.mxu0 %v7424_v30  ;;  %v1096_v18 = vpop.permute.xlu0 %1095  ;;  %14124 = vst [vmem:[#allocation24_spill] sm:$0xff] %v10143_v25  ;;  %2754 = vmatmul.bf16.gmra.mxu1 %v10143_v25  ;;  %v10149_v30 = vld [vmem:[%s8852_s30 + $0xa0] sm:$0xff] }
 0x207   : > { %v1127_v46 = vsel %vm433_vm1, %v1096_v18, %v1112_v42  ;;  %v1135_v44 = vsel %vm433_vm1, %v1112_v42, %v1096_v18  ;;  %v8304_v42 = vld [vmem:[%s13994_s2 + $0xc] sm:$0xf] }
 0x208   : > { %v1143_v48 = vmul.f32 %v1135_v44, %v9111_v40  ;;  %v1144_v55 = vmul.f32 %v1127_v46, %v9114_v41  ;;  %v10119_v29 = vor.u32 %v8304_v42, %v6917_v50 }
 0x20a   : > { %2949 = vmatpush.bf16.msra.mxu0 %v7408_v49  ;;  %v1159_v57 = vpack.c.bf16 %v1144_v55, %v1143_v48  ;;  %2807 = vmatmul.bf16.vlgmr.msra.gmra.mxu3 %v10119_v29  ;;  %v10175_v55 = vld [vmem:[%s8852_s30 + $0xd0] sm:$0xff] }
 0x20b   : > { %1285 = vrot.lane.b32.xlu2 %v9708_v62, %s8786_s15 }
 0x20c   : > { %1167 = vst [vmem:[#allocation2 + $0x88] sm:$0xff] %v1159_v57  ;;  %1283 = vrot.lane.b32.xlu1 %v9711_v19, %s8786_s15  ;;  %1281 = vrot.lane.b32.xlu0 %v9714_v34, %s8786_s15  ;;  %v6967_v34 = vld [vmem:[%s13994_s2 + $0x78] sm:$0xf]  ;;  %v8309_v57 = vld [vmem:[%s13994_s2 + $0x34] sm:$0xf] }
 0x20d   : > { %v1124_v6 = vpop.permute.xlu2 %1123  ;;  %v10121_v32 = vpop.permute.xlu1 %1103  ;;  %2793 = vmatmul.bf16.gmra.mxu2 %v10105_v2  ;;  %v10145_v4 = vor.u32 %v8320_v35, %v6967_v34 }
 0x20e   : > { %2950 = vmatpush.bf16.msra.mxu0 %v7392_v36  ;;  %v1102_v62 = vpop.permute.xlu0 %1101  ;;  %v6937_v36 = vld [vmem:[%s13994_s2 + $0x44] sm:$0xf0] }
 0x20f   : > { %v1130_v7 = vsel %vm433_vm1, %v1102_v62, %v1118_v13  ;;  %v1138_v19 = vsel %vm433_vm1, %v1118_v13, %v1102_v62  ;;  %v10159_v13 = vld [vmem:[%s8852_s30 + $0x80] sm:$0xff]  ;;  %2735 = vmatmul.bf16.gmra.mxu0 %v10145_v4  ;;  %v10197_v42 = vor.u32 %v8309_v57, %v6937_v36 }
 0x210   : > { %v1149_v37 = vmul.f32 %v1138_v19, %v9111_v40  ;;  %v1150_v56 = vmul.f32 %v1130_v7, %v9114_v41  ;;  %v6923_v19 = vld [vmem:[%s13994_s2 + $0x10] sm:$0xf] }
 0x211   : > { %14125 = vst [vmem:[#allocation25_spill] sm:$0xff] %v10197_v42 }
 0x212   : > { %2951 = vmatpush.bf16.msra.mxu0 %v7376_v10  ;;  %v1162_v15 = vpack.c.bf16 %v1150_v56, %v1149_v37 }
 0x213   : > { %1355 = vrot.lane.b32.xlu2 %v10149_v30, %s8787_s16 }
 0x214   : > { %1170 = vst [vmem:[#allocation2 + $0xb8] sm:$0xff] %v1162_v15  ;;  %1353 = vrot.lane.b32.xlu1 %v10154_v60, %s8787_s16  ;;  %1351 = vrot.lane.b32.xlu0 %v10159_v13, %s8787_s16  ;;  %v10227_v15 = vld [vmem:[%s8852_s30 + $0x88] sm:$0xff] }
 0x215   : > { %v10163_v58 = vpop.permute.xlu2 %1177  ;;  %v10165_v18 = vpop.permute.xlu1 %1109 }
 0x216   : > { %v1108_v49 = vpop.permute.xlu0 %1107  ;;  %2865 = vmatmul.bf16.vlgmr.msrb.gmra.mxu1 %v9925_v39 }
 0x217   : > { %v1133_v46 = vsel %vm433_vm1, %v1108_v49, %v1124_v6  ;;  %v1141_v44 = vsel %vm433_vm1, %v1124_v6, %v1108_v49  ;;  %v10232_v49 = vld [vmem:[%s8852_s30 + $0xf0] sm:$0xff] }
 0x218   : > { %v1155_v51 = vmul.f32 %v1141_v44, %v9111_v40  ;;  %v1156_v22 = vmul.f32 %v1133_v46, %v9114_v41  ;;  %v10237_v46 = vld [vmem:[%s8852_s30 + $0xe0] sm:$0xff] }
 0x21a   : > { %v1165_v48 = vpack.c.bf16 %v1156_v22, %v1155_v51  ;;  %2812 = vmatmul.bf16.gmra.mxu3 %v10197_v42 }
 0x21b   : > { %1361 = vrot.lane.b32.xlu2 %v10175_v55, %s8787_s16 }
 0x21c   : > { %1173 = vst [vmem:[#allocation2 + $0xe8] sm:$0xff] %v1165_v48  ;;  %1359 = vrot.lane.b32.xlu1 %v10186_v27, %s8787_s16  ;;  %1357 = vrot.lane.b32.xlu0 %v10191_v52, %s8787_s16 }
 0x21d   : > { %v10195_v59 = vpop.permute.xlu2 %1183  ;;  %v1116_v50 = vpop.permute.xlu1 %1115  ;;  %2894 = vmatmul.bf16.vlgmr.msra.gmra.mxu2 %v9867_v3  ;;  %v8334_v3 = vld [vmem:[#allocation2 + $0x54] sm:$0xf0] }
 0x21e   : > { %v1114_v6 = vpop.permute.xlu0 %1113  ;;  %v1129_v5 = vsel %vm433_vm1, %v9995_v33, %v1116_v50  ;;  %v1137_v62 = vsel %vm433_vm1, %v1116_v50, %v9995_v33  ;;  %v8307_v33 = vld [vmem:[%s13994_s2 + $0x20] sm:$0xf0] }
 0x21f   : > { %v1128_v10 = vsel %vm433_vm1, %v10090_v1, %v1114_v6  ;;  %v1136_v7 = vsel %vm433_vm1, %v1114_v6, %v10090_v1  ;;  %v1147_v34 = vmul.f32 %v1137_v62, %v9111_v40  ;;  %v1148_v35 = vmul.f32 %v1129_v5, %v9114_v41 }
 0x220   : > { %v1145_v37 = vmul.f32 %v1136_v7, %v9111_v40  ;;  %v1146_v1 = vmul.f32 %v1128_v10, %v9114_v41  ;;  %v10223_v47 = vor.u32 %v8307_v33, %v6923_v19  ;;  %v10270_v33 = vld [vmem:[%s8852_s30 + $0xa8] sm:$0xff] }
 0x221   : > { %v1161_v56 = vpack.c.bf16 %v1148_v35, %v1147_v34  ;;  %v10275_v34 = vld [vmem:[%s8852_s30 + $0x98] sm:$0xff] }
 0x222   : > { %v1160_v54 = vpack.c.bf16 %v1146_v1, %v1145_v37  ;;  %14126 = vst [vmem:[#allocation26_spill] sm:$0xff] %v10223_v47  ;;  %7561 = vmatmul.msk.bf16.vlgmr.msrb.gmra.mxu0 %vm2699_vm8, %v10223_v47  ;;  %v6957_v37 = vld [vmem:[%s13994_s2 + $0x6c] sm:$0xf0] }
 0x223   : > { %1169 = vst [vmem:[#allocation2 + $0xa8] sm:$0xff] %v1161_v56  ;;  %1367 = vrot.lane.b32.xlu2 %v10227_v15, %s8787_s16 }
 0x224   : > { %1168 = vst [vmem:[#allocation2 + $0x98] sm:$0xff] %v1160_v54  ;;  %1365 = vrot.lane.b32.xlu1 %v10232_v49, %s8787_s16  ;;  %1363 = vrot.lane.b32.xlu0 %v10237_v46, %s8787_s16 }
 0x225   : > { %v10241_v44 = vpop.permute.xlu2 %1189  ;;  %v1122_v51 = vpop.permute.xlu1 %1121 }
 0x226   : > { %v1120_v22 = vpop.permute.xlu0 %1119  ;;  %v1132_v48 = vsel %vm433_vm1, %v10026_v12, %v1122_v51  ;;  %v1140_v57 = vsel %vm433_vm1, %v1122_v51, %v10026_v12  ;;  %v10262_v12 = vld [vmem:[%s8852_s30 + $0xb8] sm:$0xff]  ;;  %2870 = vmatmul.bf16.gmra.mxu1 %v10018_v0 }
 0x227   : > { %v1131_v36 = vsel %vm433_vm1, %v10121_v32, %v1120_v22  ;;  %v1139_v50 = vsel %vm433_vm1, %v1120_v22, %v10121_v32  ;;  %v1153_v6 = vmul.f32 %v1140_v57, %v9111_v40  ;;  %v1154_v5 = vmul.f32 %v1132_v48, %v9114_v41  ;;  %v8314_v32 = vld [vmem:[%s13994_s2 + $0x5c] sm:$0xf]  ;;  %v6943_v48 = vld [vmem:[%s13994_s2 + $0x38] sm:$0xf]  ;;  %v8312_v57 = vld [vmem:[%s13994_s2 + $0x48] sm:$0xf0] }
 0x228   : > { %v1151_v62 = vmul.f32 %v1139_v50, %v9111_v40  ;;  %v1152_v10 = vmul.f32 %v1131_v36, %v9114_v41  ;;  %v10285_v54 = vor.u32 %v8314_v32, %v6957_v37 }
 0x229   : > { %v1164_v7 = vpack.c.bf16 %v1154_v5, %v1153_v6  ;;  %v10302_v5 = vor.u32 %v8312_v57, %v6943_v48  ;;  %v7107_v57 = vld [vmem:[#allocation2 + $0xe8] sm:$0xf] }
 0x22a   : > { %v1163_v19 = vpack.c.bf16 %v1152_v10, %v1151_v62  ;;  %14127 = vst [vmem:[#allocation27_spill] sm:$0xff] %v10285_v54  ;;  %2817 = vmatmul.bf16.gmra.mxu3 %v10285_v54  ;;  %v10311_v62 = vld [vmem:[%s8852_s30 + $0xd8] sm:$0xff]  ;;  %v10316_v10 = vld [vmem:[%s8852_s30 + $0xc8] sm:$0xff] }
 0x22b   : > { %1172 = vst [vmem:[#allocation2 + $0xd8] sm:$0xff] %v1164_v7  ;;  %1373 = vrot.lane.b32.xlu2 %v10262_v12, %s8787_s16 }
 0x22c   : > { %1171 = vst [vmem:[#allocation2 + $0xc8] sm:$0xff] %v1163_v19  ;;  %1371 = vrot.lane.b32.xlu1 %v10270_v33, %s8787_s16  ;;  %1369 = vrot.lane.b32.xlu0 %v10275_v34, %s8787_s16 }
 0x22d   : > { %v1196_v35 = vpop.permute.xlu2 %1195  ;;  %v10282_v1 = vpop.permute.xlu1 %1175  ;;  %2899 = vmatmul.bf16.gmra.mxu2 %v10143_v25  ;;  %14128 = vst [vmem:[#allocation28_spill] sm:$0xff] %v10302_v5  ;;  %v8346_v25 = vld [vmem:[#allocation2 + $0xb4] sm:$0xf0] }
 0x22e   : > { %v1126_v56 = vpop.permute.xlu0 %1125 }
 0x22f   : > { %v1134_v51 = vsel %vm433_vm1, %v10165_v18, %v1126_v56  ;;  %v1142_v22 = vsel %vm433_vm1, %v1126_v56, %v10165_v18  ;;  %v10306_v18 = vld [vmem:[%s8852_s30 + $0xe8] sm:$0xff] }
 0x230   : > { %v1157_v36 = vmul.f32 %v1142_v22, %v9111_v40  ;;  %v1158_v50 = vmul.f32 %v1134_v51, %v9114_v41  ;;  %v8319_v41 = vld [vmem:[%s13994_s2 + $0x84] sm:$0xf] }
 0x232   : > { %v1166_v6 = vpack.c.bf16 %v1158_v50, %v1157_v36  ;;  %7562 = vmatmul.msk.bf16.gmra.mxu0 %vm2699_vm8, %v10302_v5  ;;  %v8350_v50 = vld [vmem:[#allocation2 + $0xd4] sm:$0xf0] }
 0x233   : > { %1379 = vrot.lane.b32.xlu2 %v10306_v18, %s8787_s16 }
 0x234   : > { %1174 = vst [vmem:[#allocation2 + $0xf8] sm:$0xff] %v1166_v6  ;;  %1377 = vrot.lane.b32.xlu1 %v10311_v62, %s8787_s16  ;;  %1375 = vrot.lane.b32.xlu0 %v10316_v10, %s8787_s16 }
 0x235   : > { %v1202_v7 = vpop.permute.xlu2 %1201  ;;  %v10320_v19 = vpop.permute.xlu1 %1181 }
 0x236   : > { %v1180_v32 = vpop.permute.xlu0 %1179  ;;  %2875 = vmatmul.bf16.gmra.mxu1 %v10082_v38 }
 0x237   : > { %v1209_v37 = vsel %vm516_vm2, %v1180_v32, %v1196_v35  ;;  %v1217_v56 = vsel %vm516_vm2, %v1196_v35, %v1180_v32  ;;  %v6977_v35 = vld [vmem:[%s13994_s2 + $0x94] sm:$0xf0] }
 0x238   : > { %v1227_v51 = vmul.f32 %v1217_v56, %v9208_v63  ;;  %v1228_v22 = vmul.f32 %v1209_v37, %v9211_v53  ;;  %v10341_v32 = vld [vmem:[%s8852_s30 + $0xf8] sm:$0xff]  ;;  %v7091_v56 = vld [vmem:[#allocation2 + $0xc8] sm:$0xf] }
 0x23a   : > { %v1241_v48 = vpack.c.bf16 %v1228_v22, %v1227_v51  ;;  %v10347_v51 = vor.u32 %v8319_v41, %v6977_v35  ;;  %v8399_v22 = vld [vmem:[#allocation2 + $0x264] sm:$0xf]  ;;  %v6963_v41 = vld [vmem:[%s13994_s2 + $0x60] sm:$0xf]  ;;  %v8317_v35 = vld [vmem:[%s13994_s2 + $0x70] sm:$0xf0] }
 0x23b   : > { %v8354_v36 = vld [vmem:[#allocation2 + $0xf4] sm:$0xf0]  ;;  %1433 = vrot.lane.b32.xlu2 %v10154_v60, %s8788_s17 }
 0x23c   : > { %1249 = vst [vmem:[#allocation2 + $0x128] sm:$0xff] %v1241_v48  ;;  %v7108_v6 = vor.u32 %v8354_v36, %v7107_v57  ;;  %1431 = vrot.lane.b32.xlu1 %v10159_v13, %s8788_s17  ;;  %1381 = vrot.lane.b32.xlu0 %v10341_v32, %s8787_s16  ;;  %v7293_v48 = vld [vmem:[#allocation2 + $0x270] sm:$0xf0] }
 0x23d   : > { %v10345_v37 = vpop.permute.xlu2 %1255  ;;  %14129 = vst [vmem:[#allocation29_spill] sm:$0xff] %v10347_v51  ;;  %v10349_v57 = vpop.permute.xlu1 %1187  ;;  %v7296_v40 = vor.u32 %v8399_v22, %v7293_v48  ;;  %2904 = vmatmul.bf16.gmra.mxu2 %v9565_v16  ;;  %v7092_v22 = vor.u32 %v8350_v50, %v7091_v56  ;;  %2822 = vmatmul.bf16.gmra.mxu3 %v10347_v51  ;;  %v7075_v48 = vld [vmem:[#allocation2 + $0xa8] sm:$0xf] }
 0x23e   : > { %v1186_v36 = vpop.permute.xlu0 %1185  ;;  %3002 = vmatpush.bf16.msrb.mxu2 %v7108_v6  ;;  %v10365_v16 = vor.u32 %v8317_v35, %v6963_v41  ;;  %v7059_v41 = vld [vmem:[#allocation2 + $0x88] sm:$0xf] }
 0x23f   : > { %v1212_v24 = vsel %vm516_vm2, %v1186_v36, %v1202_v7  ;;  %v1220_v23 = vsel %vm516_vm2, %v1202_v7, %v1186_v36  ;;  %2919 = vmatpush.bf16.msrb.mxu3 %v7296_v40  ;;  %v8395_v7 = vld [vmem:[#allocation2 + $0x244] sm:$0xf]  ;;  %v7277_v36 = vld [vmem:[#allocation2 + $0x250] sm:$0xf0] }
 0x240   : > { %v1233_v26 = vmul.f32 %v1220_v23, %v9208_v63  ;;  %v1234_v6 = vmul.f32 %v1212_v24, %v9211_v53  ;;  %14130 = vst [vmem:[#allocation30_spill] sm:$0xff] %v10365_v16  ;;  %v7280_v21 = vor.u32 %v8395_v7, %v7277_v36  ;;  %v7076_v23 = vor.u32 %v8346_v25, %v7075_v48  ;;  %v8342_v24 = vld [vmem:[#allocation2 + $0x94] sm:$0xf0]  ;;  %v8391_v40 = vld [vmem:[#allocation2 + $0x224] sm:$0xf] }
 0x242   : > { %v1244_v45 = vpack.c.bf16 %v1234_v6, %v1233_v26  ;;  %3003 = vmatpush.bf16.msrb.mxu2 %v7092_v22  ;;  %v7261_v26 = vld [vmem:[#allocation2 + $0x230] sm:$0xf0]  ;;  %7563 = vmatmul.msk.bf16.gmra.mxu0 %vm2699_vm8, %v10365_v16  ;;  %v7060_v6 = vor.u32 %v8342_v24, %v7059_v41  ;;  %v8387_v24 = vld [vmem:[#allocation2 + $0x204] sm:$0xf]  ;;  %v8338_v41 = vld [vmem:[#allocation2 + $0x74] sm:$0xf0] }
 0x243   : > { %1439 = vrot.lane.b32.xlu2 %v10186_v27, %s8788_s17  ;;  %2920 = vmatpush.bf16.msrb.mxu3 %v7280_v21  ;;  %v7264_v22 = vor.u32 %v8391_v40, %v7261_v26  ;;  %v7245_v21 = vld [vmem:[#allocation2 + $0x210] sm:$0xf0] }
 0x244   : > { %1252 = vst [vmem:[#allocation2 + $0x158] sm:$0xff] %v1244_v45  ;;  %1437 = vrot.lane.b32.xlu1 %v10191_v52, %s8788_s17  ;;  %1435 = vrot.lane.b32.xlu0 %v10149_v30, %s8788_s17 }
 0x245   : > { %v10374_v50 = vpop.permute.xlu2 %1261  ;;  %v1194_v56 = vpop.permute.xlu1 %1193 }
 0x246   : > { %3004 = vmatpush.bf16.msrb.mxu2 %v7076_v23  ;;  %v1208_v45 = vsel %vm516_vm2, %v10163_v58, %v1194_v56  ;;  %v1216_v25 = vsel %vm516_vm2, %v1194_v56, %v10163_v58  ;;  %v1192_v35 = vpop.permute.xlu0 %1191  ;;  %v7043_v56 = vld [vmem:[#allocation2 + $0x68] sm:$0xf]  ;;  %2880 = vmatmul.bf16.gmra.mxu1 %v10145_v4 }
 0x247   : > { %v1225_v48 = vmul.f32 %v1216_v25, %v9208_v63  ;;  %v1226_v7 = vmul.f32 %v1208_v45, %v9211_v53  ;;  %v1207_v36 = vsel %vm516_vm2, %v10282_v1, %v1192_v35  ;;  %v1215_v23 = vsel %vm516_vm2, %v1192_v35, %v10282_v1  ;;  %2921 = vmatpush.bf16.msrb.mxu3 %v7264_v22 }
 0x248   : > { %v1223_v61 = vmul.f32 %v1215_v23, %v9208_v63  ;;  %v1224_v58 = vmul.f32 %v1207_v36, %v9211_v53  ;;  %v7248_v45 = vor.u32 %v8387_v24, %v7245_v21  ;;  %v7044_v25 = vor.u32 %v8338_v41, %v7043_v56  ;;  %v6983_v36 = vld [vmem:[%s13994_s2 + $0x88] sm:$0xf]  ;;  %v8322_v23 = vld [vmem:[%s13994_s2 + $0x98] sm:$0xf0] }
 0x249   : > { %v1240_v40 = vpack.c.bf16 %v1226_v7, %v1225_v48 }
 0x24a   : > { %3005 = vmatpush.bf16.msrb.mxu2 %v7060_v6  ;;  %v1239_v26 = vpack.c.bf16 %v1224_v58, %v1223_v61  ;;  %v7027_v61 = vld [vmem:[#allocation2 + $0x48] sm:$0xf] }
 0x24b   : > { %1248 = vst [vmem:[#allocation2 + $0x118] sm:$0xff] %v1240_v40  ;;  %1445 = vrot.lane.b32.xlu2 %v10232_v49, %s8788_s17  ;;  %v7028_v7 = vor.u32 %v8334_v3, %v7027_v61  ;;  %2922 = vmatpush.bf16.msrb.mxu3 %v7248_v45  ;;  %v7011_v40 = vld [vmem:[#allocation2 + $0x28] sm:$0xf]  ;;  %v10426_v45 = vor.u32 %v8322_v23, %v6983_v36  ;;  %v10435_v61 = vpop.f32.mrf.mxu2 }
 0x24c   : > { %1247 = vst [vmem:[#allocation2 + $0x108] sm:$0xff] %v1239_v26  ;;  %1443 = vrot.lane.b32.xlu1 %v10237_v46, %s8788_s17  ;;  %1441 = vrot.lane.b32.xlu0 %v10175_v55, %s8788_s17  ;;  %v8330_v26 = vld [vmem:[#allocation2 + $0x34] sm:$0xf0] }
 0x24d   : > { %v10400_v1 = vpop.permute.xlu2 %1267  ;;  %v1200_v35 = vpop.permute.xlu1 %1199  ;;  %2909 = vmatmul.bf16.gmra.mxu2 %v9888_v43  ;;  %14131 = vst [vmem:[#allocation31_spill] sm:$0xff] %v10426_v45 }
 0x24e   : > { %3006 = vmatpush.bf16.msrb.mxu2 %v7044_v25  ;;  %v1211_v6 = vsel %vm516_vm2, %v10195_v59, %v1200_v35  ;;  %v1219_v22 = vsel %vm516_vm2, %v1200_v35, %v10195_v59  ;;  %v1198_v48 = vpop.permute.xlu0 %1197  ;;  %2923 = vmatmul.bf16.vlgmr.msrb.gmra.mxu3 %v9952_v8  ;;  %v6995_v35 = vld [vmem:[#allocation2 + $0x8] sm:$0xf] }
 0x24f   : > { %v1231_v58 = vmul.f32 %v1219_v22, %v9208_v63  ;;  %v1232_v56 = vmul.f32 %v1211_v6, %v9211_v53  ;;  %v1210_v59 = vsel %vm516_vm2, %v10320_v19, %v1198_v48  ;;  %v1218_v3 = vsel %vm516_vm2, %v1198_v48, %v10320_v19  ;;  %v8326_v48 = vld [vmem:[#allocation2 + $0x14] sm:$0xf0] }
 0x250   : > { %v1229_v24 = vmul.f32 %v1218_v3, %v9208_v63  ;;  %v1230_v21 = vmul.f32 %v1210_v59, %v9211_v53  ;;  %v7012_v19 = vor.u32 %v8330_v26, %v7011_v40 }
 0x251   : > { %v1243_v41 = vpack.c.bf16 %v1232_v56, %v1231_v58  ;;  %v6996_v58 = vor.u32 %v8326_v48, %v6995_v35 }
 0x252   : > { %3007 = vmatpush.bf16.msrb.mxu2 %v7028_v7  ;;  %v1242_v25 = vpack.c.bf16 %v1230_v21, %v1229_v24  ;;  %7564 = vmatmul.msk.bf16.gmra.mxu0 %vm2699_vm8, %v10426_v45 }
 0x253   : > { %1251 = vst [vmem:[#allocation2 + $0x148] sm:$0xff] %v1243_v41  ;;  %1451 = vrot.lane.b32.xlu2 %v10270_v33, %s8788_s17  ;;  %v10468_v48 = vpop.f32.mrf.mxu2 }
 0x254   : > { %1250 = vst [vmem:[#allocation2 + $0x138] sm:$0xff] %v1242_v25  ;;  %1449 = vrot.lane.b32.xlu1 %v10275_v34, %s8788_s17  ;;  %1447 = vrot.lane.b32.xlu0 %v10227_v15, %s8788_s17 }
 0x255   : > { %v1274_v6 = vpop.permute.xlu2 %1273  ;;  %v1206_v22 = vpop.permute.xlu1 %1205  ;;  %14132 = vst [vmem:[#allocation32_spill] sm:$0xff] %v10468_v48 }
 0x256   : > { %3008 = vmatpush.bf16.msrb.mxu2 %v7012_v19  ;;  %v1214_v7 = vsel %vm516_vm2, %v10241_v44, %v1206_v22  ;;  %v1222_v36 = vsel %vm516_vm2, %v1206_v22, %v10241_v44  ;;  %v1204_v23 = vpop.permute.xlu0 %1203  ;;  %v10462_v19 = vpop.f32.mrf.mxu0  ;;  %7565 = vmatmul.msk.bf16.vlgmr.msra.gmra.mxu1 %vm2699_vm8, %v10223_v47 }
 0x257   : > { %v1237_v56 = vmul.f32 %v1222_v36, %v9208_v63  ;;  %v1238_v59 = vmul.f32 %v1214_v7, %v9211_v53  ;;  %v1213_v3 = vsel %vm516_vm2, %v10349_v57, %v1204_v23  ;;  %v1221_v24 = vsel %vm516_vm2, %v1204_v23, %v10349_v57 }
 0x258   : > { %v1235_v21 = vmul.f32 %v1221_v24, %v9208_v63  ;;  %v1236_v40 = vmul.f32 %v1213_v3, %v9211_v53 }
 0x259   : > { %v1246_v26 = vpack.c.bf16 %v1238_v59, %v1237_v56 }
 0x25a   : > { %3009 = vmatpush.bf16.msrb.mxu2 %v6996_v58  ;;  %v1245_v44 = vpack.c.bf16 %v1236_v40, %v1235_v21 }
 0x25b   : > { %1254 = vst [vmem:[#allocation2 + $0x178] sm:$0xff] %v1246_v26  ;;  %1457 = vrot.lane.b32.xlu2 %v10311_v62, %s8788_s17  ;;  %v10492_v26 = vpop.f32.mrf.mxu2 }
 0x25c   : > { %1253 = vst [vmem:[#allocation2 + $0x168] sm:$0xff] %v1245_v44  ;;  %1455 = vrot.lane.b32.xlu1 %v10316_v10, %s8788_s17  ;;  %1453 = vrot.lane.b32.xlu0 %v10262_v12, %s8788_s17 }
 0x25d   : > { %v1280_v41 = vpop.permute.xlu2 %1279  ;;  %3010 = vmatmul.bf16.vlgmr.msrb.gmra.mxu2 %v9925_v39 }
 0x25e   : > { %v1260_v57 = vpop.permute.xlu1 %1259  ;;  %v1258_v25 = vpop.permute.xlu0 %1257  ;;  %2928 = vmatmul.bf16.gmra.mxu3 %v9987_v31 }
 0x25f   : > { %v1288_v35 = vsel %vm599_vm3, %v1258_v25, %v1274_v6  ;;  %v1296_v22 = vsel %vm599_vm3, %v1274_v6, %v1258_v25  ;;  %v10490_v40 = vpop.f32.mrf.mxu0 }
 0x260   : > { %v1305_v7 = vmul.f32 %v1296_v22, %v9311_v17  ;;  %v1306_v36 = vmul.f32 %v1288_v35, %v9314_v28 }
 0x262   : > { %v1320_v23 = vpack.c.bf16 %v1306_v36, %v1305_v7  ;;  %2952 = vmatmul.bf16.vlgmr.msra.gmra.mxu0 %v10119_v29 }
 0x263   : > { %1539 = vrot.lane.b32.xlu2 %v10306_v18, %s8789_s18 }
 0x264   : > { %1328 = vst [vmem:[#allocation2 + $0x198] sm:$0xff] %v1320_v23  ;;  %1525 = vrot.lane.b32.xlu1 %v10232_v49, %s8789_s18  ;;  %1523 = vrot.lane.b32.xlu0 %v10237_v46, %s8789_s18 }
 0x265   : > { %v1286_v6 = vpop.permute.xlu2 %1285 }
 0x266   : > { %v10482_v58 = vpop.permute.xlu1 %1265  ;;  %v1264_v56 = vpop.permute.xlu0 %1263  ;;  %7566 = vmatmul.msk.bf16.gmra.mxu1 %vm2699_vm8, %v10302_v5 }
 0x267   : > { %v1291_v59 = vsel %vm599_vm3, %v1264_v56, %v1280_v41  ;;  %v1299_v3 = vsel %vm599_vm3, %v1280_v41, %v1264_v56 }
 0x268   : > { %v1311_v24 = vmul.f32 %v1299_v3, %v9311_v17  ;;  %v1312_v21 = vmul.f32 %v1291_v59, %v9314_v28 }
 0x26a   : > { %v1323_v44 = vpack.c.bf16 %v1312_v21, %v1311_v24  ;;  %v10518_v53 = vpop.f32.mrf.mxu0 }
 0x26b   : > { %1521 = vrot.lane.b32.xlu2 %v10175_v55, %s8789_s18  ;;  %14133 = vst [vmem:[#allocation33_spill] sm:$0xff] %v10518_v53  ;;  %v8358_v53 = vld [vmem:[#allocation2 + $0x114] sm:$0xf0] }
 0x26c   : > { %1331 = vst [vmem:[#allocation2 + $0x1c8] sm:$0xff] %v1323_v44  ;;  %1519 = vrot.lane.b32.xlu1 %v10186_v27, %s8789_s18  ;;  %1541 = vrot.lane.b32.xlu0 %v10341_v32, %s8789_s18 }
 0x26d   : > { %v10500_v41 = vpop.permute.xlu2 %1355  ;;  %3015 = vmatmul.bf16.gmra.mxu2 %v10018_v0 }
 0x26e   : > { %v1272_v25 = vpop.permute.xlu1 %1271  ;;  %v1270_v35 = vpop.permute.xlu0 %1269  ;;  %2933 = vmatmul.bf16.gmra.mxu3 %v10051_v14 }
 0x26f   : > { %v1287_v22 = vsel %vm599_vm3, %v10345_v37, %v1272_v25  ;;  %v1295_v7 = vsel %vm599_vm3, %v1272_v25, %v10345_v37  ;;  %v1294_v36 = vsel %vm599_vm3, %v1270_v35, %v1286_v6  ;;  %v1302_v23 = vsel %vm599_vm3, %v1286_v6, %v1270_v35  ;;  %v10524_v37 = vpop.f32.mrf.mxu2 }
 0x270   : > { %v1303_v56 = vmul.f32 %v1295_v7, %v9311_v17  ;;  %v1304_v59 = vmul.f32 %v1287_v22, %v9314_v28  ;;  %v1317_v3 = vmul.f32 %v1302_v23, %v9311_v17  ;;  %v1318_v24 = vmul.f32 %v1294_v36, %v9314_v28  ;;  %14134 = vst [vmem:[#allocation34_spill] sm:$0xff] %v10524_v37 }
 0x272   : > { %v1319_v21 = vpack.c.bf16 %v1304_v59, %v1303_v56  ;;  %v1326_v44 = vpack.c.bf16 %v1318_v24, %v1317_v3  ;;  %2957 = vmatmul.bf16.gmra.mxu0 %v10197_v42  ;;  %v10547_v63 = vpop.f32.mrf.mxu0 }
 0x273   : > { %1515 = vrot.lane.b32.xlu2 %v10149_v30, %s8789_s18  ;;  %14135 = vst [vmem:[#allocation35_spill] sm:$0xff] %v10547_v63 }
 0x274   : > { %1327 = vst [vmem:[#allocation2 + $0x188] sm:$0xff] %v1319_v21  ;;  %1537 = vrot.lane.b32.xlu1 %v10311_v62, %s8789_s18  ;;  %1535 = vrot.lane.b32.xlu0 %v10316_v10, %s8789_s18 }
 0x275   : > { %1334 = vst [vmem:[#allocation2 + $0x1f8] sm:$0xff] %v1326_v44  ;;  %v10530_v6 = vpop.permute.xlu2 %1361 }
 0x276   : > { %v1278_v25 = vpop.permute.xlu1 %1277  ;;  %v1276_v35 = vpop.permute.xlu0 %1275  ;;  %7567 = vmatmul.msk.bf16.gmra.mxu1 %vm2699_vm8, %v10365_v16 }
 0x277   : > { %v1290_v22 = vsel %vm599_vm3, %v10374_v50, %v1278_v25  ;;  %v1298_v7 = vsel %vm599_vm3, %v1278_v25, %v10374_v50  ;;  %v1289_v36 = vsel %vm599_vm3, %v1260_v57, %v1276_v35  ;;  %v1297_v23 = vsel %vm599_vm3, %v1276_v35, %v1260_v57  ;;  %v10555_v57 = vpop.f32.mrf.mxu2 }
 0x278   : > { %v1309_v56 = vmul.f32 %v1298_v7, %v9311_v17  ;;  %v1310_v59 = vmul.f32 %v1290_v22, %v9314_v28  ;;  %v1307_v3 = vmul.f32 %v1297_v23, %v9311_v17  ;;  %v1308_v24 = vmul.f32 %v1289_v36, %v9314_v28  ;;  %14136 = vst [vmem:[#allocation36_spill] sm:$0xff] %v10555_v57 }
 0x27a   : > { %v1322_v21 = vpack.c.bf16 %v1310_v59, %v1309_v56  ;;  %v1321_v44 = vpack.c.bf16 %v1308_v24, %v1307_v3  ;;  %v10570_v56 = vpop.f32.mrf.mxu1 }
 0x27b   : > { %1533 = vrot.lane.b32.xlu2 %v10262_v12, %s8789_s18 }
 0x27c   : > { %1330 = vst [vmem:[#allocation2 + $0x1b8] sm:$0xff] %v1322_v21  ;;  %1531 = vrot.lane.b32.xlu1 %v10270_v33, %s8789_s18  ;;  %1517 = vrot.lane.b32.xlu0 %v10191_v52, %s8789_s18 }
 0x27d   : > { %1329 = vst [vmem:[#allocation2 + $0x1a8] sm:$0xff] %v1321_v44  ;;  %v1368_v50 = vpop.permute.xlu2 %1367  ;;  %3020 = vmatmul.bf16.gmra.mxu2 %v10082_v38 }
 0x27e   : > { %v1284_v25 = vpop.permute.xlu1 %1283  ;;  %v1282_v35 = vpop.permute.xlu0 %1281  ;;  %2938 = vmatmul.bf16.gmra.mxu3 %v10105_v2 }
 0x27f   : > { %v1293_v22 = vsel %vm599_vm3, %v10400_v1, %v1284_v25  ;;  %v1301_v7 = vsel %vm599_vm3, %v1284_v25, %v10400_v1  ;;  %v1292_v36 = vsel %vm599_vm3, %v10482_v58, %v1282_v35  ;;  %v1300_v23 = vsel %vm599_vm3, %v1282_v35, %v10482_v58  ;;  %v10577_v25 = vpop.f32.mrf.mxu0 }
 0x280   : > { %v1315_v59 = vmul.f32 %v1301_v7, %v9311_v17  ;;  %v1316_v3 = vmul.f32 %v1293_v22, %v9314_v28  ;;  %v1313_v24 = vmul.f32 %v1300_v23, %v9311_v17  ;;  %v1314_v21 = vmul.f32 %v1292_v36, %v9314_v28  ;;  %v10594_v23 = vpop.f32.mrf.mxu2  ;;  %v8386_v28 = vld [vmem:[#allocation2 + $0x1f4] sm:$0xf0] }
 0x282   : > { %v1325_v1 = vpack.c.bf16 %v1316_v3, %v1315_v59  ;;  %v1324_v44 = vpack.c.bf16 %v1314_v21, %v1313_v24  ;;  %2962 = vmatmul.bf16.gmra.mxu0 %v10285_v54  ;;  %v10596_v59 = vpop.f32.mrf.mxu1 }
 0x283   : > { %1527 = vrot.lane.b32.xlu2 %v10227_v15, %s8789_s18 }
 0x284   : > { %1333 = vst [vmem:[#allocation2 + $0x1e8] sm:$0xff] %v1325_v1  ;;  %1513 = vrot.lane.b32.xlu1 %v10154_v60, %s8789_s18  ;;  %1511 = vrot.lane.b32.xlu0 %v10159_v13, %s8789_s18  ;;  %v7203_v47 = vld [vmem:[#allocation2 + $0x1a8] sm:$0xf] }
 0x285   : > { %1332 = vst [vmem:[#allocation2 + $0x1d8] sm:$0xff] %v1324_v44  ;;  %v1374_v58 = vpop.permute.xlu2 %1373 }
 0x286   : > { %v10588_v35 = vpop.permute.xlu1 %1353  ;;  %v1352_v22 = vpop.permute.xlu0 %1351  ;;  %7568 = vmatmul.msk.bf16.gmra.mxu1 %vm2699_vm8, %v10426_v45  ;;  %v7171_v45 = vld [vmem:[#allocation2 + $0x168] sm:$0xf] }
 0x287   : > { %v1383_v7 = vsel %vm698_vm4, %v1352_v22, %v1368_v50  ;;  %v1391_v36 = vsel %vm698_vm4, %v1368_v50, %v1352_v22  ;;  %v10600_v1 = vpop.f32.mrf.mxu0 }
 0x288   : > { %v1399_v3 = vmul.f32 %v1383_v7, %v9414_v9  ;;  %v1400_v24 = vmul.f32 %v1391_v36, %v9417_v11  ;;  %14137 = vst [vmem:[#allocation37_spill] sm:$0xff] %v10600_v1  ;;  %v10619_v54 = vpop.f32.mrf.mxu2 }
 0x289   : > { %14139 = vst [vmem:[#allocation39_spill] sm:$0xff] %v10619_v54 }
 0x28a   : > { %v1415_v21 = vpack.c.bf16 %v1400_v24, %v1399_v3  ;;  %v10615_v16 = vpop.f32.mrf.mxu1 }
 0x28b   : > { %1605 = vrot.lane.b32.xlu2 %v10232_v49, %s8790_s19  ;;  %v7235_v44 = vld [vmem:[#allocation2 + $0x1e8] sm:$0xf]  ;;  %14138 = vst [vmem:[#allocation38_spill] sm:$0xff] %v10615_v16 }
 0x28c   : > { %1423 = vst [vmem:[#allocation2 + $0x288] sm:$0xff] %v1415_v21  ;;  %1603 = vrot.lane.b32.xlu1 %v10237_v46, %s8790_s19  ;;  %1529 = vrot.lane.b32.xlu0 %v10275_v34, %s8789_s18  ;;  %v7236_v50 = vor.u32 %v8386_v28, %v7235_v44  ;;  %v8382_v7 = vld [vmem:[#allocation2 + $0x1d4] sm:$0xf0]  ;;  %v7219_v21 = vld [vmem:[#allocation2 + $0x1c8] sm:$0xf] }
 0x28d   : > { %v1380_v22 = vpop.permute.xlu2 %1379  ;;  %3025 = vmatmul.bf16.gmra.mxu2 %v10145_v4  ;;  %v7220_v44 = vor.u32 %v8382_v7, %v7219_v21  ;;  %v10621_v37 = vpop.f32.mrf.mxu3  ;;  %v8374_v21 = vld [vmem:[#allocation2 + $0x194] sm:$0xf0] }
 0x28e   : > { %v10608_v17 = vpop.permute.xlu1 %1359  ;;  %v1358_v36 = vpop.permute.xlu0 %1357  ;;  %3031 = vmatpush.bf16.msra.mxu3 %v7236_v50  ;;  %v8378_v50 = vld [vmem:[#allocation2 + $0x1b4] sm:$0xf0]  ;;  %14140 = vst [vmem:[#allocation40_spill] sm:$0xff] %v10621_v37 }
 0x28f   : > { %v1386_v3 = vsel %vm698_vm4, %v1358_v36, %v1374_v58  ;;  %v1394_v24 = vsel %vm698_vm4, %v1374_v58, %v1358_v36  ;;  %v10623_v1 = vpop.f32.mrf.mxu0  ;;  %v7204_v58 = vor.u32 %v8378_v50, %v7203_v47 }
 0x290   : > { %v1405_v5 = vmul.f32 %v1386_v3, %v9414_v9  ;;  %v1406_v28 = vmul.f32 %v1394_v24, %v9417_v11  ;;  %v10650_v16 = vpop.f32.mrf.mxu2 }
 0x291   : > { %14143 = vst [vmem:[#allocation43_spill] sm:$0xff] %v10650_v16  ;;  %v8362_v16 = vld [vmem:[#allocation2 + $0x134] sm:$0xf0] }
 0x292   : > { %v1418_v48 = vpack.c.bf16 %v1406_v28, %v1405_v5  ;;  %3032 = vmatpush.bf16.msra.mxu3 %v7220_v44  ;;  %v7187_v5 = vld [vmem:[#allocation2 + $0x188] sm:$0xf]  ;;  %2967 = vmatmul.bf16.gmra.mxu0 %v10347_v51  ;;  %v10642_v28 = vpop.f32.mrf.mxu1  ;;  %v8370_v51 = vld [vmem:[#allocation2 + $0x174] sm:$0xf0] }
 0x293   : > { %1459 = vrot.lane.b32.xlu2 %v10306_v18, %s8788_s17  ;;  %14141 = vst [vmem:[#allocation41_spill] sm:$0xff] %v10642_v28  ;;  %v7188_v50 = vor.u32 %v8374_v21, %v7187_v5  ;;  %v7172_v5 = vor.u32 %v8370_v51, %v7171_v45 }
 0x294   : > { %1426 = vst [vmem:[#allocation2 + $0x2b8] sm:$0xff] %v1418_v48  ;;  %1621 = vrot.lane.b32.xlu1 %v10341_v32, %s8790_s19  ;;  %1619 = vrot.lane.b32.xlu0 %v10306_v18, %s8790_s19 }
 0x295   : > { %v10633_v7 = vpop.permute.xlu2 %1433  ;;  %v10646_v42 = vpop.f32.mrf.mxu3 }
 0x296   : > { %v10636_v36 = vpop.permute.xlu1 %1365  ;;  %v1364_v3 = vpop.permute.xlu0 %1363  ;;  %3033 = vmatpush.bf16.msra.mxu3 %v7204_v58 }
 0x297   : > { %v1389_v24 = vsel %vm698_vm4, %v1364_v3, %v1380_v22  ;;  %v1397_v48 = vsel %vm698_vm4, %v1380_v22, %v1364_v3  ;;  %v10648_v58 = vpop.f32.mrf.mxu0  ;;  %v7155_v22 = vld [vmem:[#allocation2 + $0x148] sm:$0xf] }
 0x298   : > { %v1411_v47 = vmul.f32 %v1389_v24, %v9414_v9  ;;  %v1412_v44 = vmul.f32 %v1397_v48, %v9417_v11  ;;  %14142 = vst [vmem:[#allocation42_spill] sm:$0xff] %v10648_v58  ;;  %v8366_v24 = vld [vmem:[#allocation2 + $0x154] sm:$0xf0]  ;;  %v14044_v48 = vmov 0  }
 0x299   : > { %8662 = vset.pattern.permute.xlu2 %v14044_v48  ;;  %8661 = vset.pattern.permute.xlu1 %v14044_v48 }
 0x29a   : > { %v1421_v54 = vpack.c.bf16 %v1412_v44, %v1411_v47  ;;  %3034 = vmatpush.bf16.msra.mxu3 %v7188_v50  ;;  %v7156_v44 = vor.u32 %v8366_v24, %v7155_v22  ;;  %8663 = vset.pattern.permute.xlu0 %v14044_v48 }
 0x29b   : > { %1601 = vrot.lane.b32.xlu2 %v10175_v55, %s8790_s19 }
 0x29c   : > { %1429 = vst [vmem:[#allocation2 + $0x2e8] sm:$0xff] %v1421_v54  ;;  %1599 = vrot.lane.b32.xlu1 %v10186_v27, %s8790_s19  ;;  %1461 = vrot.lane.b32.xlu0 %v10341_v32, %s8788_s17 }
 0x29d   : > { %v10658_v3 = vpop.permute.xlu2 %1439  ;;  %v10685_v63 = vpop.f32.mrf.mxu3 }
 0x29e   : > { %v1372_v21 = vpop.permute.xlu1 %1371  ;;  %v1370_v47 = vpop.permute.xlu0 %1369  ;;  %3035 = vmatpush.bf16.msra.mxu3 %v7172_v5  ;;  %14145 = vst [vmem:[#allocation45_spill] sm:$0xff] %v10685_v63 }
 0x29f   : > { %v1385_v54 = vsel %vm698_vm4, %v10500_v41, %v1372_v21  ;;  %v1393_v51 = vsel %vm698_vm4, %v1372_v21, %v10500_v41  ;;  %v1384_v45 = vsel %vm698_vm4, %v10588_v35, %v1370_v47  ;;  %v1392_v50 = vsel %vm698_vm4, %v1370_v47, %v10588_v35  ;;  %v10675_v5 = vpop.f32.mrf.mxu1  ;;  %v10681_v28 = vpop.f32.mrf.mxu0  ;;  %v7139_v35 = vld [vmem:[#allocation2 + $0x128] sm:$0xf] }
 0x2a0   : > { %v1403_v22 = vmul.f32 %v1385_v54, %v9414_v9  ;;  %v1404_v24 = vmul.f32 %v1393_v51, %v9417_v11  ;;  %v1401_v48 = vmul.f32 %v1384_v45, %v9414_v9  ;;  %v1402_v58 = vmul.f32 %v1392_v50, %v9417_v11  ;;  %14144 = vst [vmem:[#allocation44_spill] sm:$0xff] %v10681_v28  ;;  %v7123_v47 = vld [vmem:[#allocation2 + $0x108] sm:$0xf] }
 0x2a1   : > { %v1341_v54 = vpack.c.bf16 %v10306_v18, %v10237_v46  ;;  %v1342_v51 = vpack.c.bf16 %v10341_v32, %v10232_v49  ;;  %v7124_v46 = vor.u32 %v8358_v53, %v7123_v47  ;;  %v7109_v18 = vld [vmem:[#allocation2 + $0xf8] sm:$0xf0] }
 0x2a2   : > { %v1417_v41 = vpack.c.bf16 %v1404_v24, %v1403_v22  ;;  %v1416_v21 = vpack.c.bf16 %v1402_v58, %v1401_v48  ;;  %3036 = vmatpush.bf16.msra.mxu3 %v7156_v44  ;;  %v7140_v58 = vor.u32 %v8362_v16, %v7139_v35  ;;  %v10695_v48 = vpop.f32.mrf.mxu2  ;;  %v8352_v35 = vld [vmem:[#allocation2 + $0xec] sm:$0xf] }
 0x2a3   : > { %1595 = vrot.lane.b32.xlu2 %v10149_v30, %s8790_s19  ;;  %1349 = vst [vmem:[#allocation2 + $0x268] sm:$0xff] %v1341_v54  ;;  %v7112_v47 = vor.u32 %v8352_v35, %v7109_v18  ;;  %v1339_v54 = vpack.c.bf16 %v10316_v10, %v10186_v27  ;;  %v1337_v18 = vpack.c.bf16 %v10270_v33, %v10149_v30 }
 0x2a4   : > { %1425 = vst [vmem:[#allocation2 + $0x2a8] sm:$0xff] %v1417_v41  ;;  %1617 = vrot.lane.b32.xlu1 %v10311_v62, %s8790_s19  ;;  %1615 = vrot.lane.b32.xlu0 %v10316_v10, %s8790_s19  ;;  %v1338_v27 = vpack.c.bf16 %v10262_v12, %v10191_v52 }
 0x2a5   : > { %1424 = vst [vmem:[#allocation2 + $0x298] sm:$0xff] %v1416_v21  ;;  %v10697_v44 = vpop.permute.xlu2 %1445 }
 0x2a6   : > { %v1378_v45 = vpop.permute.xlu1 %1377  ;;  %v1376_v50 = vpop.permute.xlu0 %1375  ;;  %3037 = vmatpush.bf16.msra.mxu3 %v7140_v58  ;;  %1350 = vst [vmem:[#allocation2 + $0x278] sm:$0xff] %v1342_v51  ;;  %v7093_v51 = vld [vmem:[#allocation2 + $0xd8] sm:$0xf0] }
 0x2a7   : > { %v1388_v49 = vsel %vm698_vm4, %v10530_v6, %v1378_v45  ;;  %v1396_v32 = vsel %vm698_vm4, %v1378_v45, %v10530_v6  ;;  %v1387_v16 = vsel %vm698_vm4, %v10608_v17, %v1376_v50  ;;  %v1395_v22 = vsel %vm698_vm4, %v1376_v50, %v10608_v17  ;;  %v10715_v6 = vpop.f32.mrf.mxu1  ;;  %v8348_v17 = vld [vmem:[#allocation2 + $0xcc] sm:$0xf]  ;;  %v10719_v50 = vpop.f32.mrf.mxu0  ;;  %1347 = vst [vmem:[#allocation2 + $0x248] sm:$0xff] %v1339_v54  ;;  %v7061_v54 = vld [vmem:[#allocation2 + $0x98] sm:$0xf0] }
 0x2a8   : > { %v1409_v53 = vmul.f32 %v1388_v49, %v9414_v9  ;;  %v1410_v24 = vmul.f32 %v1396_v32, %v9417_v11  ;;  %v1407_v41 = vmul.f32 %v1387_v16, %v9414_v9  ;;  %v1408_v21 = vmul.f32 %v1395_v22, %v9417_v11  ;;  %v8344_v16 = vld [vmem:[#allocation2 + $0xac] sm:$0xf]  ;;  %1345 = vst [vmem:[#allocation2 + $0x228] sm:$0xff] %v1337_v18 }
 0x2a9   : > { %v1340_v49 = vpack.c.bf16 %v10311_v62, %v10175_v55  ;;  %v14146_v55 = vld [vmem:[#allocation18_spill] sm:$0xff]  ;;  %v7096_v10 = vor.u32 %v8348_v17, %v7093_v51  ;;  %1346 = vst [vmem:[#allocation2 + $0x238] sm:$0xff] %v1338_v27  ;;  %v8336_v27 = vld [vmem:[#allocation2 + $0x6c] sm:$0xf] }
 0x2aa   : > { %v1420_v58 = vpack.c.bf16 %v1410_v24, %v1409_v53  ;;  %v1419_v45 = vpack.c.bf16 %v1408_v21, %v1407_v41  ;;  %3038 = vmatpush.bf16.msra.mxu3 %v7124_v46  ;;  %v10734_v46 = vpop.f32.mrf.mxu3  ;;  %v10738_v22 = vpop.f32.mrf.mxu2  ;;  %v7077_v24 = vld [vmem:[#allocation2 + $0xb8] sm:$0xf0]  ;;  %v1335_v41 = vpack.c.bf16 %v10227_v15, %v10159_v13  ;;  %v1336_v21 = vpack.c.bf16 %v10275_v34, %v10154_v60 }
 0x2ab   : > { %1613 = vrot.lane.b32.xlu2 %v10262_v12, %s8790_s19  ;;  %14147 = vst [vmem:[#allocation18_spill] sm:$0xff] %v10734_v46  ;;  %v7080_v35 = vor.u32 %v8344_v16, %v7077_v24 }
 0x2ac   : > { %1428 = vst [vmem:[#allocation2 + $0x2d8] sm:$0xff] %v1420_v58  ;;  %1611 = vrot.lane.b32.xlu1 %v10270_v33, %s8790_s19  ;;  %1597 = vrot.lane.b32.xlu0 %v10191_v52, %s8790_s19 }
 0x2ad   : > { %1427 = vst [vmem:[#allocation2 + $0x2c8] sm:$0xff] %v1419_v45  ;;  %3039 = vmatmul.bf16.vlgmr.msra.gmra.mxu3 %v14146_v55  ;;  %v1452_v62 = vpop.permute.xlu2 %1451  ;;  %v8340_v45 = vld [vmem:[#allocation2 + $0x8c] sm:$0xf] }
 0x2ae   : > { %3147 = vmatpush.bf16.msrb.mxu3 %v7112_v47  ;;  %v10736_v32 = vpop.permute.xlu1 %1431  ;;  %v1382_v30 = vpop.permute.xlu0 %1381  ;;  %1348 = vst [vmem:[#allocation2 + $0x258] sm:$0xff] %v1340_v49  ;;  %v7064_v51 = vor.u32 %v8340_v45, %v7061_v54 }
 0x2af   : > { %14148 = vst [vmem:[#allocation46_spill] sm:$0xff] %v10738_v22  ;;  %v1390_v33 = vsel %vm698_vm4, %v10636_v36, %v1382_v30  ;;  %v1398_v52 = vsel %vm698_vm4, %v1382_v30, %v10636_v36  ;;  %v10752_v58 = vpop.f32.mrf.mxu0  ;;  %v10756_v36 = vpop.f32.mrf.mxu1 }
 0x2b0   : > { %v1413_v12 = vmul.f32 %v1390_v33, %v9414_v9  ;;  %v1414_v53 = vmul.f32 %v1398_v52, %v9417_v11  ;;  %14149 = vst [vmem:[#allocation47_spill] sm:$0xff] %v10752_v58  ;;  %v14152_v33 = vld [vmem:[#allocation14_spill] sm:$0xff]  ;;  %v294_v9 = vld [vmem:[%s13996_s4 + $0x10] sm:$0xff] }
 0x2b1   : > { %1343 = vst [vmem:[#allocation2 + $0x208] sm:$0xff] %v1335_v41  ;;  %v7045_v52 = vld [vmem:[#allocation2 + $0x78] sm:$0xf0]  ;;  %v292_v41 = vld [vmem:[%s13996_s4] sm:$0xff] }
 0x2b2   : > { %3148 = vmatpush.bf16.msrb.mxu3 %v7096_v10  ;;  %v1422_v47 = vpack.c.bf16 %v1414_v53, %v1413_v12  ;;  %14150 = vst [vmem:[#allocation48_spill] sm:$0xff] %v10756_v36  ;;  %v10768_v30 = vpop.f32.mrf.mxu3  ;;  %v293_v12 = vld [vmem:[%s13996_s4 + $0x8] sm:$0xff]  ;;  %v10775_v53 = vpop.f32.mrf.mxu2  ;;  %v7048_v24 = vor.u32 %v8336_v27, %v7045_v52  ;;  %v295_v11 = vld [vmem:[%s13996_s4 + $0x18] sm:$0xff] }
 0x2b3   : > { %1607 = vrot.lane.b32.xlu2 %v10227_v15, %s8790_s19  ;;  %1344 = vst [vmem:[#allocation2 + $0x218] sm:$0xff] %v1336_v21  ;;  %v7029_v21 = vld [vmem:[#allocation2 + $0x58] sm:$0xf0]  ;;  %v8384_v36 = vld [vmem:[#allocation2 + $0x1ec] sm:$0xf] }
 0x2b4   : > { %1430 = vst [vmem:[#allocation2 + $0x2f8] sm:$0xff] %v1422_v47  ;;  %1593 = vrot.lane.b32.xlu1 %v10154_v60, %s8790_s19  ;;  %1591 = vrot.lane.b32.xlu0 %v10159_v13, %s8790_s19  ;;  %v14151_v60 = vld [vmem:[#allocation13_spill] sm:$0xff] }
 0x2b5   : > { %v1458_v17 = vpop.permute.xlu2 %1457 }
 0x2b6   : > { %3149 = vmatpush.bf16.msrb.mxu3 %v7080_v35  ;;  %v10762_v49 = vpop.permute.xlu1 %1437  ;;  %v1436_v18 = vpop.permute.xlu0 %1435  ;;  %v7363_v35 = vld [vmem:[#allocation2 + $0x2e8] sm:$0xf] }
 0x2b7   : > { %v1465_v15 = vsel %vm781_vm5, %v1436_v18, %v1452_v62  ;;  %v1473_v10 = vsel %vm781_vm5, %v1452_v62, %v1436_v18  ;;  %v10780_v54 = vpop.f32.mrf.mxu0  ;;  %v14154_v18 = vld [vmem:[#allocation24_spill] sm:$0xff] }
 0x2b8   : > { %v1483_v16 = vmul.f32 %v1465_v15, %v14151_v60  ;;  %v1484_v13 = vmul.f32 %v1473_v10, %v14152_v33  ;;  %14153 = vst [vmem:[#allocation49_spill] sm:$0xff] %v10780_v54  ;;  %v7347_v10 = vld [vmem:[#allocation2 + $0x2c8] sm:$0xf] }
 0x2b9   : > { %v7315_v54 = vld [vmem:[#allocation2 + $0x288] sm:$0xf] }
 0x2ba   : > { %3150 = vmatpush.bf16.msrb.mxu3 %v7064_v51  ;;  %v1497_v62 = vpack.c.bf16 %v1484_v13, %v1483_v16  ;;  %v8332_v51 = vld [vmem:[#allocation2 + $0x4c] sm:$0xf]  ;;  %v8414_v16 = vld [vmem:[#allocation2 + $0x2d4] sm:$0xf0]  ;;  %v10787_v13 = vpop.f32.mrf.mxu1 }
 0x2bb   : > { %1846 = vperm.xlu2 %8662, %v293_v12   ;;  %v8418_v47 = vld [vmem:[#allocation2 + $0x2f4] sm:$0xf0]  ;;  %v7032_v15 = vor.u32 %v8332_v51, %v7029_v21  ;;  %14155 = vst [vmem:[#allocation24_spill] sm:$0xff] %v10787_v13  ;;  %v296_v51 = vld [vmem:[%s13996_s4 + $0x20] sm:$0xff]  ;;  %v7189_v13 = vld [vmem:[#allocation2 + $0x198] sm:$0xf0] }
 0x2bc   : > { %1505 = vst [vmem:[#allocation2 + $0x328] sm:$0xff] %v1497_v62  ;;  %1841 = vperm.xlu1 %8661, %v292_v41   ;;  %1609 = vrot.lane.b32.xlu0 %v10275_v34, %s8790_s19  ;;  %v7364_v45 = vor.u32 %v8418_v47, %v7363_v35  ;;  %v7013_v41 = vld [vmem:[#allocation2 + $0x38] sm:$0xf0]  ;;  %v7348_v47 = vor.u32 %v8414_v16, %v7347_v10  ;;  %v10808_v10 = vpop.f32.mrf.mxu2  ;;  %v8410_v16 = vld [vmem:[#allocation2 + $0x2b4] sm:$0xf0] }
 0x2bd   : > { %3044 = vmatmul.bf16.gmra.mxu3 %v14154_v18  ;;  %v10785_v27 = vpop.permute.xlu2 %1539  ;;  %14157 = vst [vmem:[#allocation51_spill] sm:$0xff] %v10808_v10 }
 0x2be   : > { %3151 = vmatpush.bf16.msrb.mxu3 %v7048_v24  ;;  %v10789_v52 = vpop.permute.xlu1 %1443  ;;  %3060 = vmatpush.bf16.msrb.mxu0 %v7364_v45  ;;  %v1442_v12 = vpop.permute.xlu0 %1441  ;;  %v8328_v24 = vld [vmem:[#allocation2 + $0x2c] sm:$0xf] }
 0x2bf   : > { %v1468_v34 = vsel %vm781_vm5, %v1442_v12, %v1458_v17  ;;  %v1476_v62 = vsel %vm781_vm5, %v1458_v17, %v1442_v12  ;;  %v7016_v45 = vor.u32 %v8328_v24, %v7013_v41  ;;  %v7331_v17 = vld [vmem:[#allocation2 + $0x2a8] sm:$0xf]  ;;  %v8406_v24 = vld [vmem:[#allocation2 + $0x294] sm:$0xf0]  ;;  %v10812_v63 = vpop.f32.mrf.mxu0 }
 0x2c0   : > { %v1489_v35 = vmul.f32 %v1468_v34, %v14151_v60  ;;  %v1490_v21 = vmul.f32 %v1476_v62, %v14152_v33  ;;  %v8324_v34 = vld [vmem:[#allocation2 + $0xc] sm:$0xf]  ;;  %v7332_v41 = vor.u32 %v8410_v16, %v7331_v17  ;;  %v6997_v62 = vld [vmem:[#allocation2 + $0x18] sm:$0xf0]  ;;  %v7299_v17 = vld [vmem:[#allocation2 + $0x268] sm:$0xf] }
 0x2c1   : > { %v7000_v58 = vor.u32 %v8324_v34, %v6997_v62 }
 0x2c2   : > { %3152 = vmatpush.bf16.msrb.mxu3 %v7032_v15  ;;  %v10806_v15 = vpop.f32.mrf.mxu3  ;;  %v1500_v12 = vpack.c.bf16 %v1490_v21, %v1489_v35  ;;  %3061 = vmatpush.bf16.msrb.mxu0 %v7348_v47  ;;  %v7316_v47 = vor.u32 %v8406_v24, %v7315_v54  ;;  %v10826_v54 = vpop.f32.mrf.mxu1 }
 0x2c3   : > { %14156 = vst [vmem:[#allocation50_spill] sm:$0xff] %v10806_v15  ;;  %1861 = vperm.xlu2 %8662, %v296_v51   ;;  %v14158_v15 = vld [vmem:[#allocation15_spill] sm:$0xff] }
 0x2c4   : > { %1508 = vst [vmem:[#allocation2 + $0x358] sm:$0xff] %v1500_v12  ;;  %1856 = vperm.xlu1 %8661, %v295_v11   ;;  %1851 = vperm.xlu0 %8663, %v294_v9   ;;  %v8402_v12 = vld [vmem:[#allocation2 + $0x274] sm:$0xf0] }
 0x2c5   : > { %v10810_v22 = vpop.permute.xlu2 %1521 }
 0x2c6   : > { %3153 = vmatpush.bf16.msrb.mxu3 %v7016_v45  ;;  %v1450_v35 = vpop.permute.xlu1 %1449  ;;  %3062 = vmatpush.bf16.msrb.mxu0 %v7332_v41  ;;  %v1448_v21 = vpop.permute.xlu0 %1447  ;;  %v298_v41 = vld [vmem:[%s13996_s4 + $0x30] sm:$0xff] }
 0x2c7   : > { %v1464_v51 = vsel %vm781_vm5, %v10633_v7, %v1450_v35  ;;  %v1472_v9 = vsel %vm781_vm5, %v1450_v35, %v10633_v7  ;;  %v1463_v11 = vsel %vm781_vm5, %v10736_v32, %v1448_v21  ;;  %v1471_v45 = vsel %vm781_vm5, %v1448_v21, %v10736_v32  ;;  %v297_v32 = vld [vmem:[%s13996_s4 + $0x28] sm:$0xff] }
 0x2c8   : > { %v1481_v34 = vmul.f32 %v1464_v51, %v14151_v60  ;;  %v1482_v16 = vmul.f32 %v1472_v9, %v14152_v33  ;;  %v1479_v24 = vmul.f32 %v1463_v11, %v14151_v60  ;;  %v1480_v7 = vmul.f32 %v1471_v45, %v14152_v33  ;;  %v7283_v51 = vld [vmem:[#allocation2 + $0x248] sm:$0xf]  ;;  %v8398_v9 = vld [vmem:[#allocation2 + $0x254] sm:$0xf0]  ;;  %v10843_v45 = vpop.f32.mrf.mxu2 }
 0x2c9   : > { %v7300_v21 = vor.u32 %v8402_v12, %v7299_v17 }
 0x2ca   : > { %3154 = vmatpush.bf16.msrb.mxu3 %v7000_v58  ;;  %v299_v58 = vld [vmem:[%s13996_s4 + $0x38] sm:$0xff]  ;;  %v1496_v62 = vpack.c.bf16 %v1482_v16, %v1481_v34  ;;  %v1495_v35 = vpack.c.bf16 %v1480_v7, %v1479_v24  ;;  %3063 = vmatpush.bf16.msrb.mxu0 %v7316_v47  ;;  %v10841_v11 = vpop.f32.mrf.mxu3  ;;  %v7284_v47 = vor.u32 %v8398_v9, %v7283_v51  ;;  %v7267_v7 = vld [vmem:[#allocation2 + $0x228] sm:$0xf] }
 0x2cb   : > { %1871 = vperm.xlu2 %8662, %v298_v41   ;;  %v8394_v41 = vld [vmem:[#allocation2 + $0x234] sm:$0xf0] }
 0x2cc   : > { %1504 = vst [vmem:[#allocation2 + $0x318] sm:$0xff] %v1496_v62  ;;  %1866 = vperm.xlu1 %8661, %v297_v32   ;;  %1876 = vperm.xlu0 %8663, %v299_v58   ;;  %v10860_v32 = vpop.f32.mrf.mxu0  ;;  %v7268_v9 = vor.u32 %v8394_v41, %v7267_v7  ;;  %v14162_v41 = vld [vmem:[#allocation16_spill] sm:$0xff] }
 0x2cd   : > { %1503 = vst [vmem:[#allocation2 + $0x308] sm:$0xff] %v1495_v35  ;;  %3049 = vmatmul.bf16.gmra.mxu3 %v14158_v15  ;;  %v10846_v10 = vpop.permute.xlu2 %1515  ;;  %v7251_v15 = vld [vmem:[#allocation2 + $0x208] sm:$0xf] }
 0x2ce   : > { %v1456_v46 = vpop.permute.xlu1 %1455  ;;  %3064 = vmatpush.bf16.msrb.mxu0 %v7300_v21  ;;  %v1454_v34 = vpop.permute.xlu0 %1453  ;;  %14159 = vst [vmem:[#allocation52_spill] sm:$0xff] %v10860_v32 }
 0x2cf   : > { %v1467_v17 = vsel %vm781_vm5, %v10658_v3, %v1456_v46  ;;  %v1475_v12 = vsel %vm781_vm5, %v1456_v46, %v10658_v3  ;;  %v1466_v16 = vsel %vm781_vm5, %v10762_v49, %v1454_v34  ;;  %v1474_v24 = vsel %vm781_vm5, %v1454_v34, %v10762_v49  ;;  %v10866_v46 = vpop.f32.mrf.mxu1  ;;  %v8390_v49 = vld [vmem:[#allocation2 + $0x214] sm:$0xf0] }
 0x2d0   : > { %v1487_v58 = vmul.f32 %v1467_v17, %v14151_v60  ;;  %v1488_v62 = vmul.f32 %v1475_v12, %v14152_v33  ;;  %v1485_v35 = vmul.f32 %v1466_v16, %v14151_v60  ;;  %v1486_v3 = vmul.f32 %v1474_v24, %v14152_v33  ;;  %14160 = vst [vmem:[#allocation53_spill] sm:$0xff] %v10866_v46  ;;  %v10872_v24 = vpop.f32.mrf.mxu2 }
 0x2d1   : > { %v7252_v16 = vor.u32 %v8390_v49, %v7251_v15 }
 0x2d2   : > { %v1499_v21 = vpack.c.bf16 %v1488_v62, %v1487_v58  ;;  %v1498_v51 = vpack.c.bf16 %v1486_v3, %v1485_v35  ;;  %3065 = vmatpush.bf16.msrb.mxu0 %v7284_v47  ;;  %v10870_v32 = vpop.f32.mrf.mxu3  ;;  %v14163_v62 = vld [vmem:[#allocation17_spill] sm:$0xff]  ;;  %v7237_v3 = vld [vmem:[#allocation2 + $0x1f8] sm:$0xf0] }
 0x2d3   : > { %14161 = vst [vmem:[#allocation54_spill] sm:$0xff] %v10870_v32  ;;  %v8380_v32 = vld [vmem:[#allocation2 + $0x1cc] sm:$0xf] }
 0x2d4   : > { %1507 = vst [vmem:[#allocation2 + $0x348] sm:$0xff] %v1499_v21  ;;  %v7240_v21 = vor.u32 %v8384_v36, %v7237_v3  ;;  %v8376_v36 = vld [vmem:[#allocation2 + $0x1ac] sm:$0xf]  ;;  %v7205_v3 = vld [vmem:[#allocation2 + $0x1b8] sm:$0xf0] }
 0x2d5   : > { %1506 = vst [vmem:[#allocation2 + $0x338] sm:$0xff] %v1498_v51  ;;  %v10868_v34 = vpop.permute.xlu2 %1533  ;;  %v10882_v51 = vpop.f32.mrf.mxu0 }
 0x2d6   : > { %v1526_v17 = vpop.permute.xlu1 %1525  ;;  %3066 = vmatpush.bf16.msrb.mxu0 %v7268_v9  ;;  %v1524_v12 = vpop.permute.xlu0 %1523  ;;  %v7221_v9 = vld [vmem:[#allocation2 + $0x1d8] sm:$0xf0] }
 0x2d7   : > { %v1549_v47 = vsel %vm864_vm6, %v1524_v12, %v10785_v27  ;;  %v1557_v7 = vsel %vm864_vm6, %v10785_v27, %v1524_v12  ;;  %v10884_v49 = vpop.f32.mrf.mxu1  ;;  %v7224_v12 = vor.u32 %v8380_v32, %v7221_v9  ;;  %v7208_v32 = vor.u32 %v8376_v36, %v7205_v3 }
 0x2d8   : > { %v1571_v58 = vmul.f32 %v1549_v47, %v14162_v41  ;;  %v1572_v35 = vmul.f32 %v1557_v7, %v14163_v62 }
 0x2da   : > { %v1581_v15 = vpack.c.bf16 %v1572_v35, %v1571_v58  ;;  %3067 = vmatpush.bf16.msrb.mxu0 %v7252_v16  ;;  %v10894_v35 = vpop.f32.mrf.mxu3 }
 0x2db   : > { %14164 = vst [vmem:[#allocation55_spill] sm:$0xff] %v10894_v35  ;;  %v7173_v35 = vld [vmem:[#allocation2 + $0x178] sm:$0xf0] }
 0x2dc   : > { %1589 = vst [vmem:[#allocation2 + $0x3e8] sm:$0xff] %v1581_v15 }
 0x2dd   : > { %3054 = vmatmul.bf16.gmra.mxu3 %v9888_v43  ;;  %3068 = vmatmul.bf16.vlgmr.msrb.gmra.mxu0 %v9952_v8  ;;  %v10888_v27 = vpop.permute.xlu2 %1527  ;;  %v10898_v8 = vpop.f32.mrf.mxu2  ;;  %v8372_v43 = vld [vmem:[#allocation2 + $0x18c] sm:$0xf] }
 0x2de   : > { %3176 = vmatpush.bf16.msra.mxu0 %v7240_v21  ;;  %v1520_v47 = vpop.permute.xlu1 %1519  ;;  %v1542_v7 = vpop.permute.xlu0 %1541  ;;  %14165 = vst [vmem:[#allocation56_spill] sm:$0xff] %v10898_v8 }
 0x2df   : > { %v1550_v16 = vsel %vm864_vm6, %v1526_v17, %v1542_v7  ;;  %v1558_v58 = vsel %vm864_vm6, %v1542_v7, %v1526_v17  ;;  %v10900_v46 = vpop.f32.mrf.mxu0  ;;  %v7192_v17 = vor.u32 %v8372_v43, %v7189_v13 }
 0x2e0   : > { %v1573_v21 = vmul.f32 %v1550_v16, %v14162_v41  ;;  %v1574_v15 = vmul.f32 %v1558_v58, %v14163_v62  ;;  %14166 = vst [vmem:[#allocation57_spill] sm:$0xff] %v10900_v46  ;;  %v8368_v16 = vld [vmem:[#allocation2 + $0x16c] sm:$0xf] }
 0x2e2   : > { %3177 = vmatpush.bf16.msra.mxu0 %v7224_v12  ;;  %v1582_v9 = vpack.c.bf16 %v1574_v15, %v1573_v21  ;;  %v10904_v12 = vpop.f32.mrf.mxu1  ;;  %v10920_v46 = vpop.f32.mrf.mxu3 }
 0x2e3   : > { %14167 = vst [vmem:[#allocation58_spill] sm:$0xff] %v10904_v12  ;;  %v7491_v57 = vld [vmem:[#allocation2 + $0x3e8] sm:$0xf] }
 0x2e4   : > { %1590 = vst [vmem:[#allocation2 + $0x3f8] sm:$0xff] %v1582_v9  ;;  %v7176_v9 = vor.u32 %v8368_v16, %v7173_v35 }
 0x2e5   : > { %v10902_v28 = vpop.permute.xlu2 %1605  ;;  %v10922_v8 = vpop.f32.mrf.mxu2 }
 0x2e6   : > { %3178 = vmatpush.bf16.msra.mxu0 %v7208_v32  ;;  %v1538_v7 = vpop.permute.xlu1 %1537  ;;  %v1536_v37 = vpop.permute.xlu0 %1535  ;;  %14168 = vst [vmem:[#allocation59_spill] sm:$0xff] %v10922_v8 }
 0x2e7   : > { %v1548_v36 = vsel %vm864_vm6, %v10810_v22, %v1538_v7  ;;  %v1556_v3 = vsel %vm864_vm6, %v1538_v7, %v10810_v22  ;;  %v1547_v58 = vsel %vm864_vm6, %v1520_v47, %v1536_v37  ;;  %v1555_v43 = vsel %vm864_vm6, %v1536_v37, %v1520_v47  ;;  %v8364_v7 = vld [vmem:[#allocation2 + $0x14c] sm:$0xf]  ;;  %v10926_v16 = vpop.f32.mrf.mxu0 }
 0x2e8   : > { %v1569_v13 = vmul.f32 %v1548_v36, %v14162_v41  ;;  %v1570_v21 = vmul.f32 %v1556_v3, %v14163_v62  ;;  %v1567_v15 = vmul.f32 %v1547_v58, %v14162_v41  ;;  %v1568_v32 = vmul.f32 %v1555_v43, %v14163_v62  ;;  %v7141_v43 = vld [vmem:[#allocation2 + $0x138] sm:$0xf0] }
 0x2ea   : > { %3179 = vmatpush.bf16.msra.mxu0 %v7192_v17  ;;  %v1580_v12 = vpack.c.bf16 %v1570_v21, %v1569_v13  ;;  %v1579_v22 = vpack.c.bf16 %v1568_v32, %v1567_v15  ;;  %v7157_v17 = vld [vmem:[#allocation2 + $0x158] sm:$0xf0]  ;;  %v10942_v32 = vpop.f32.mrf.mxu1 }
 0x2eb   : > { %v8450_v37 = vld [vmem:[#allocation2 + $0x3f4] sm:$0xf0]  ;;  %v7160_v35 = vor.u32 %v8364_v7, %v7157_v17 }
 0x2ec   : > { %1588 = vst [vmem:[#allocation2 + $0x3d8] sm:$0xff] %v1580_v12  ;;  %v7492_v47 = vor.u32 %v8450_v37, %v7491_v57  ;;  %v8360_v37 = vld [vmem:[#allocation2 + $0x12c] sm:$0xf] }
 0x2ed   : > { %1587 = vst [vmem:[#allocation2 + $0x3c8] sm:$0xff] %v1579_v22  ;;  %3073 = vmatmul.bf16.gmra.mxu0 %v9987_v31  ;;  %3155 = vmatmul.bf16.vlgmr.msrb.gmra.mxu3 %v9925_v39  ;;  %v1460_v36 = vpop.permute.xlu2 %1459  ;;  %v10956_v8 = vpop.f32.mrf.mxu2 }
 0x2ee   : > { %3180 = vmatpush.bf16.msra.mxu0 %v7176_v9  ;;  %v1469_v3 = vsel %vm781_vm5, %v10789_v52, %v1460_v36  ;;  %v1477_v58 = vsel %vm781_vm5, %v1460_v36, %v10789_v52  ;;  %v1532_v12 = vpop.permute.xlu1 %1531  ;;  %3089 = vmatpush.bf16.msrb.mxu1 %v7492_v47  ;;  %v1518_v57 = vpop.permute.xlu0 %1517  ;;  %v7144_v36 = vor.u32 %v8360_v37, %v7141_v43 }
 0x2ef   : > { %v1491_v13 = vmul.f32 %v1469_v3, %v14151_v60  ;;  %v1492_v39 = vmul.f32 %v1477_v58, %v14152_v33  ;;  %v1545_v21 = vsel %vm864_vm6, %v10846_v10, %v1532_v12  ;;  %v1553_v15 = vsel %vm864_vm6, %v1532_v12, %v10846_v10  ;;  %v8356_v3 = vld [vmem:[#allocation2 + $0x10c] sm:$0xf]  ;;  %v7125_v58 = vld [vmem:[#allocation2 + $0x118] sm:$0xf0] }
 0x2f0   : > { %v1563_v52 = vmul.f32 %v1545_v21, %v14162_v41  ;;  %v1564_v9 = vmul.f32 %v1553_v15, %v14163_v62  ;;  %v1546_v22 = vsel %vm864_vm6, %v1518_v57, %v10868_v34  ;;  %v1554_v7 = vsel %vm864_vm6, %v10868_v34, %v1518_v57  ;;  %v10954_v15 = vpop.f32.mrf.mxu3 }
 0x2f1   : > { %v1501_v47 = vpack.c.bf16 %v1492_v39, %v1491_v13  ;;  %v1565_v17 = vmul.f32 %v1546_v22, %v14162_v41  ;;  %v1566_v10 = vmul.f32 %v1554_v7, %v14163_v62  ;;  %v7128_v13 = vor.u32 %v8356_v3, %v7125_v58  ;;  %v10966_v22 = vpop.f32.mrf.mxu0 }
 0x2f2   : > { %3181 = vmatpush.bf16.msra.mxu0 %v7160_v35  ;;  %v1577_v35 = vpack.c.bf16 %v1564_v9, %v1563_v52 }
 0x2f3   : > { %1509 = vst [vmem:[#allocation2 + $0x368] sm:$0xff] %v1501_v47  ;;  %v1578_v12 = vpack.c.bf16 %v1566_v10, %v1565_v17  ;;  %v8446_v21 = vld [vmem:[#allocation2 + $0x3d4] sm:$0xf0] }
 0x2f4   : > { %1585 = vst [vmem:[#allocation2 + $0x3a8] sm:$0xff] %v1577_v35  ;;  %v7475_v31 = vld [vmem:[#allocation2 + $0x3c8] sm:$0xf] }
 0x2f5   : > { %1586 = vst [vmem:[#allocation2 + $0x3b8] sm:$0xff] %v1578_v12  ;;  %v10958_v34 = vpop.permute.xlu2 %1601  ;;  %v7476_v57 = vor.u32 %v8446_v21, %v7475_v31  ;;  %v10970_v31 = vpop.f32.mrf.mxu1 }
 0x2f6   : > { %3182 = vmatpush.bf16.msra.mxu0 %v7144_v36  ;;  %v1514_v39 = vpop.permute.xlu1 %1513  ;;  %v1512_v43 = vpop.permute.xlu0 %1511 }
 0x2f7   : > { %3090 = vmatpush.bf16.msrb.mxu1 %v7476_v57  ;;  %v1543_v52 = vsel %vm864_vm6, %v1512_v43, %v10888_v27  ;;  %v1551_v9 = vsel %vm864_vm6, %v10888_v27, %v1512_v43  ;;  %v10982_v57 = vpop.f32.mrf.mxu2 }
 0x2f8   : > { %v1559_v7 = vmul.f32 %v1543_v52, %v14162_v41  ;;  %v1560_v37 = vmul.f32 %v1551_v9, %v14163_v62  ;;  %v10976_v35 = vpop.f32.mrf.mxu3  ;;  %14169 = vst [vmem:[#allocation60_spill] sm:$0xff] %v10982_v57 }
 0x2f9   : > { %v10986_v43 = vpop.f32.mrf.mxu0 }
 0x2fa   : > { %3183 = vmatpush.bf16.msra.mxu0 %v7128_v13  ;;  %v1575_v47 = vpack.c.bf16 %v1560_v37, %v1559_v7  ;;  %14170 = vst [vmem:[#allocation61_spill] sm:$0xff] %v10986_v43 }
 0x2fb   : > { %v7459_v17 = vld [vmem:[#allocation2 + $0x3a8] sm:$0xf] }
 0x2fc   : > { %1583 = vst [vmem:[#allocation2 + $0x388] sm:$0xff] %v1575_v47  ;;  %v8442_v10 = vld [vmem:[#allocation2 + $0x3b4] sm:$0xf0] }
 0x2fd   : > { %3078 = vmatmul.bf16.gmra.mxu0 %v10051_v14  ;;  %3160 = vmatmul.bf16.gmra.mxu3 %v10018_v0  ;;  %v10974_v36 = vpop.permute.xlu2 %1595  ;;  %v7460_v27 = vor.u32 %v8442_v10, %v7459_v17  ;;  %v10988_v9 = vpop.f32.mrf.mxu1 }
 0x2fe   : > { %v1604_v3 = vpop.permute.xlu1 %1603  ;;  %v1530_v58 = vpop.permute.xlu0 %1529  ;;  %14171 = vst [vmem:[#allocation62_spill] sm:$0xff] %v10988_v9 }
 0x2ff   : > { %3091 = vmatpush.bf16.msrb.mxu1 %v7460_v27  ;;  %v1544_v12 = vsel %vm864_vm6, %v1514_v39, %v1530_v58  ;;  %v1552_v21 = vsel %vm864_vm6, %v1530_v58, %v1514_v39 }
 0x300   : > { %v1561_v13 = vmul.f32 %v1544_v12, %v14162_v41  ;;  %v1562_v0 = vmul.f32 %v1552_v21, %v14163_v62  ;;  %v11002_v58 = vpop.f32.mrf.mxu3  ;;  %v11007_v12 = vld [vmem:[%s13993_s1 + $0x10] ss:$0 sm:$0xff] }
 0x301   : > { %v11020_v14 = vpop.f32.mrf.mxu0 }
 0x302   : > { %v1576_v52 = vpack.c.bf16 %v1562_v0, %v1561_v13  ;;  %v11013_v13 = vld [vmem:[%s13993_s1 + $0x18] ss:$0 sm:$0xff]  ;;  %14172 = vst [vmem:[#allocation63_spill] sm:$0xff] %v11020_v14 }
 0x303   : > { %v7443_v62 = vld [vmem:[#allocation2 + $0x388] sm:$0xf] }
 0x304   : > { %1584 = vst [vmem:[#allocation2 + $0x398] sm:$0xff] %v1576_v52  ;;  %v11018_v52 = vpop.f32.mrf.mxu2 }
 0x305   : > { %v10990_v7 = vpop.permute.xlu2 %1613 }
 0x306   : > { %v1622_v37 = vpop.permute.xlu1 %1621  ;;  %v1620_v47 = vpop.permute.xlu0 %1619 }
 0x307   : > { %v1630_v39 = vsel %vm947_vm7, %v10902_v28, %v1622_v37  ;;  %v1638_v17 = vsel %vm947_vm7, %v1622_v37, %v10902_v28  ;;  %v1629_v10 = vsel %vm947_vm7, %v1604_v3, %v1620_v47  ;;  %v1637_v27 = vsel %vm947_vm7, %v1620_v47, %v1604_v3 }
 0x308   : > { %v1653_v21 = vmul.f32 %v11007_v12, %v1630_v39  ;;  %v1654_v28 = vmul.f32 %v11013_v13, %v1638_v17  ;;  %v1651_v0 = vmul.f32 %v11007_v12, %v1629_v10  ;;  %v1652_v3 = vmul.f32 %v11013_v13, %v1637_v27  ;;  %v11026_v10 = vpop.f32.mrf.mxu1 }
 0x309   : > { %14173 = vst [vmem:[#allocation64_spill] sm:$0xff] %v11026_v10  ;;  %v11042_v14 = vpop.f32.mrf.mxu0 }
 0x30a   : > { %v1662_v37 = vpack.c.bf16 %v1654_v28, %v1653_v21  ;;  %v1661_v47 = vpack.c.bf16 %v1652_v3, %v1651_v0 }
 0x30b   : > { %v8438_v41 = vld [vmem:[#allocation2 + $0x394] sm:$0xf0] }
 0x30c   : > { %1670 = vst [vmem:[#allocation2 + $0x478] sm:$0xff] %v1662_v37  ;;  %v7444_v39 = vor.u32 %v8438_v41, %v7443_v62 }
 0x30d   : > { %1669 = vst [vmem:[#allocation2 + $0x468] sm:$0xff] %v1661_v47  ;;  %3083 = vmatmul.bf16.gmra.mxu0 %v10105_v2  ;;  %3165 = vmatmul.bf16.gmra.mxu3 %v10082_v38  ;;  %v11024_v17 = vpop.permute.xlu2 %1607  ;;  %v11036_v38 = vpop.f32.mrf.mxu3 }
 0x30e   : > { %v1600_v27 = vpop.permute.xlu1 %1599  ;;  %3092 = vmatpush.bf16.msrb.mxu1 %v7444_v39  ;;  %v1462_v57 = vpop.permute.xlu0 %1461 }
 0x30f   : > { %v1470_v21 = vsel %vm781_vm5, %v10697_v44, %v1462_v57  ;;  %v1478_v41 = vsel %vm781_vm5, %v1462_v57, %v10697_v44  ;;  %v11038_v47 = vpop.f32.mrf.mxu2 }
 0x310   : > { %v1493_v62 = vmul.f32 %v1470_v21, %v14151_v60  ;;  %v1494_v28 = vmul.f32 %v1478_v41, %v14152_v33 }
 0x312   : > { %v1502_v0 = vpack.c.bf16 %v1494_v28, %v1493_v62 }
 0x313   : > { %v8466_v3 = vld [vmem:[#allocation2 + $0x474] sm:$0xf0]  ;;  %v7557_v37 = vld [vmem:[#allocation2 + $0x478] sm:$0xf0] }
 0x314   : > { %1510 = vst [vmem:[#allocation2 + $0x378] sm:$0xff] %v1502_v0  ;;  %v7555_v39 = vld [vmem:[#allocation2 + $0x468] sm:$0xf]  ;;  %v8464_v2 = vld [vmem:[#allocation2 + $0x46c] sm:$0xf] }
 0x315   : > { %v11040_v9 = vpop.permute.xlu2 %1846  ;;  %v7556_v10 = vor.u32 %v8466_v3, %v7555_v39  ;;  %v7560_v43 = vor.u32 %v8464_v2, %v7557_v37  ;;  %v11062_v39 = vpop.f32.mrf.mxu1 }
 0x316   : > { %v2724_v44 = vadd.f32 %v10490_v40, %v11040_v9  ;;  %v2869_v57 = vadd.f32 %v10715_v6, %v11040_v9  ;;  %v1618_v21 = vpop.permute.xlu1 %1617  ;;  %v1616_v41 = vpop.permute.xlu0 %1615 }
 0x317   : > { %v1628_v62 = vsel %vm947_vm7, %v10958_v34, %v1618_v21  ;;  %v1636_v28 = vsel %vm947_vm7, %v1618_v21, %v10958_v34  ;;  %v1627_v2 = vsel %vm947_vm7, %v1600_v27, %v1616_v41  ;;  %v1635_v0 = vsel %vm947_vm7, %v1616_v41, %v1600_v27  ;;  %3122 = vmatpush.bf16.msra.mxu2 %v7556_v10  ;;  %v7411_v41 = vld [vmem:[#allocation2 + $0x348] sm:$0xf] }
 0x318   : > { %v2753_v40 = vadd.f32 %v10596_v59, %v2724_v44  ;;  %v2898_v6 = vadd.f32 %v10872_v24, %v2869_v57  ;;  %v1649_v3 = vmul.f32 %v11007_v12, %v1628_v62  ;;  %v1650_v37 = vmul.f32 %v11013_v13, %v1636_v28  ;;  %3267 = vmatpush.bf16.msra.mxu3 %v7560_v43  ;;  %v7427_v44 = vld [vmem:[#allocation2 + $0x368] sm:$0xf]  ;;  %v11068_v57 = vpop.f32.mrf.mxu3 }
 0x319   : > { %v1647_v34 = vmul.f32 %v11007_v12, %v1627_v2  ;;  %v1648_v21 = vmul.f32 %v11013_v13, %v1635_v0  ;;  %v8430_v2 = vld [vmem:[#allocation2 + $0x354] sm:$0xf0] }
 0x31a   : > { %v2782_v33 = vadd.f32 %v10594_v23, %v2753_v40  ;;  %v2927_v27 = vadd.f32 %v10920_v46, %v2898_v6  ;;  %v1660_v10 = vpack.c.bf16 %v1650_v37, %v1649_v3  ;;  %v7412_v46 = vor.u32 %v8430_v2, %v7411_v41  ;;  %v11082_v3 = vpop.f32.mrf.mxu2  ;;  %v7395_v2 = vld [vmem:[#allocation2 + $0x328] sm:$0xf] }
 0x31b   : > { %v1659_v59 = vpack.c.bf16 %v1648_v21, %v1647_v34  ;;  %v8434_v24 = vld [vmem:[#allocation2 + $0x374] sm:$0xf0]  ;;  %v11102_v21 = vpop.f32.mrf.mxu0 }
 0x31c   : > { %v2811_v62 = vadd.f32 %v10646_v42, %v2782_v33  ;;  %v2956_v43 = vadd.f32 %v10966_v22, %v2927_v27  ;;  %1668 = vst [vmem:[#allocation2 + $0x458] sm:$0xff] %v1660_v10  ;;  %v7428_v28 = vor.u32 %v8434_v24, %v7427_v44  ;;  %v7379_v44 = vld [vmem:[#allocation2 + $0x308] sm:$0xf]  ;;  %v8422_v24 = vld [vmem:[#allocation2 + $0x314] sm:$0xf0] }
 0x31d   : > { %1667 = vst [vmem:[#allocation2 + $0x448] sm:$0xff] %v1659_v59  ;;  %3170 = vmatmul.bf16.gmra.mxu3 %v10145_v4  ;;  %3184 = vmatmul.bf16.vlgmr.msra.gmra.mxu0 %v14146_v55  ;;  %v11074_v23 = vpop.permute.xlu2 %1861  ;;  %v8426_v59 = vld [vmem:[#allocation2 + $0x334] sm:$0xf0] }
 0x31e   : > { %v2840_v0 = vadd.f32 %v10719_v50, %v2811_v62  ;;  %v2985_v40 = vadd.f32 %v10970_v31, %v2956_v43  ;;  %v2732_v42 = vadd.f32 %v10577_v25, %v11074_v23  ;;  %v1612_v33 = vpop.permute.xlu1 %1611  ;;  %v2877_v22 = vadd.f32 %v10826_v54, %v11074_v23  ;;  %3093 = vmatpush.bf16.msrb.mxu1 %v7428_v28  ;;  %v1598_v6 = vpop.permute.xlu0 %1597 }
 0x31f   : > { %v1625_v4 = vsel %vm947_vm7, %v10974_v36, %v1612_v33  ;;  %v1633_v50 = vsel %vm947_vm7, %v1612_v33, %v10974_v36  ;;  %v1626_v25 = vsel %vm947_vm7, %v1598_v6, %v10990_v7  ;;  %v1634_v55 = vsel %vm947_vm7, %v10990_v7, %v1598_v6 }
 0x320   : > { %v11096_v54 = vmax.f32 %v2840_v0, 0.0  ;;  %v11098_v31 = vmax.f32 %v2985_v40, 0.0  ;;  %v2761_v37 = vadd.f32 %v10435_v61, %v2732_v42  ;;  %v1643_v34 = vmul.f32 %v11007_v12, %v1625_v4  ;;  %v11111_v61 = vpop.f32.mrf.mxu1 }
 0x321   : > { %v1644_v36 = vmul.f32 %v11013_v13, %v1633_v50  ;;  %v2906_v27 = vadd.f32 %v10956_v8, %v2877_v22  ;;  %v1645_v10 = vmul.f32 %v11007_v12, %v1626_v25  ;;  %v1646_v41 = vmul.f32 %v11013_v13, %v1634_v55  ;;  %v11120_v25 = vpop.f32.mrf.mxu3 }
 0x322   : > { %v2790_v7 = vadd.f32 %v10695_v48, %v2761_v37  ;;  %3094 = vmatpush.bf16.msrb.mxu1 %v7412_v46  ;;  %3326 = vrot.lane.b32.xlu2 %v11096_v54, %s8783_s8  ;;  %v3645_v62 = vpack.c.bf16 %v11098_v31, %v11096_v54  ;;  %v7396_v46 = vor.u32 %v8426_v59, %v7395_v2 }
 0x323   : > { %v1657_v43 = vpack.c.bf16 %v1644_v36, %v1643_v34  ;;  %v2935_v8 = vadd.f32 %v11002_v58, %v2906_v27  ;;  %v1658_v28 = vpack.c.bf16 %v1646_v41, %v1645_v10  ;;  %v8462_v0 = vld [vmem:[#allocation2 + $0x454] sm:$0xf0]  ;;  %v7541_v40 = vld [vmem:[#allocation2 + $0x458] sm:$0xf0]  ;;  %v7380_v58 = vor.u32 %v8422_v24, %v7379_v44 }
 0x324   : > { %v2819_v48 = vadd.f32 %v10768_v30, %v2790_v7  ;;  %v7539_v42 = vld [vmem:[#allocation2 + $0x448] sm:$0xf]  ;;  %v8460_v33 = vld [vmem:[#allocation2 + $0x44c] sm:$0xf]  ;;  %3653 = vst [vmem:[#allocation2 + $0x210] sm:$0xff] %v3645_v62 }
 0x325   : > { %1665 = vst [vmem:[#allocation2 + $0x428] sm:$0xff] %v1657_v43  ;;  %v2964_v22 = vadd.f32 %v11042_v14, %v2935_v8  ;;  %v11118_v6 = vpop.permute.xlu2 %1871  ;;  %v7540_v4 = vor.u32 %v8462_v0, %v7539_v42  ;;  %v7544_v50 = vor.u32 %v8460_v33, %v7541_v40  ;;  %v7365_v36 = vld [vmem:[#allocation2 + $0x2f8] sm:$0xf0]  ;;  %v8416_v7 = vld [vmem:[#allocation2 + $0x2ec] sm:$0xf] }
 0x326   : > { %14174 = vst [vmem:[#allocation65_spill] sm:$0xff] %v11118_v6  ;;  %v2848_v55 = vadd.f32 %v10812_v63, %v2819_v48  ;;  %v2737_v30 = vadd.f32 %v10623_v1, %v11118_v6  ;;  %v1594_v37 = vpop.permute.xlu1 %1593  ;;  %3095 = vmatpush.bf16.msrb.mxu1 %v7396_v46  ;;  %v1592_v34 = vpop.permute.xlu0 %1591  ;;  %v2882_v14 = vadd.f32 %v10884_v49, %v11118_v6  ;;  %v8412_v8 = vld [vmem:[#allocation2 + $0x2cc] sm:$0xf] }
 0x327   : > { %1666 = vst [vmem:[#allocation2 + $0x438] sm:$0xff] %v1658_v28  ;;  %v2993_v27 = vadd.f32 %v11062_v39, %v2964_v22  ;;  %v1623_v10 = vsel %vm947_vm7, %v1592_v34, %v11024_v17  ;;  %v1631_v63 = vsel %vm947_vm7, %v11024_v17, %v1592_v34  ;;  %3123 = vmatpush.bf16.msra.mxu2 %v7540_v4  ;;  %v11139_v39 = vpop.f32.mrf.mxu2  ;;  %v7349_v28 = vld [vmem:[#allocation2 + $0x2d8] sm:$0xf0]  ;;  %v8408_v40 = vld [vmem:[#allocation2 + $0x2ac] sm:$0xf] }
 0x328   : > { %3268 = vmatpush.bf16.msra.mxu3 %v7544_v50  ;;  %v11134_v1 = vmax.f32 %v2848_v55, 0.0  ;;  %v2766_v41 = vadd.f32 %v10492_v26, %v2737_v30  ;;  %v1639_v59 = vmul.f32 %v11007_v12, %v1623_v10  ;;  %v1640_v49 = vmul.f32 %v11013_v13, %v1631_v63  ;;  %v2968_v26 = vpop.f32.mrf.mxu0 }
 0x329   : > { %v11141_v44 = vmax.f32 %v2993_v27, 0.0  ;;  %v7368_v24 = vor.u32 %v8416_v7, %v7365_v36  ;;  %v2911_v62 = vadd.f32 %v11018_v52, %v2882_v14  ;;  %v2997_v52 = vpop.f32.mrf.mxu1  ;;  %v7352_v4 = vor.u32 %v8412_v8, %v7349_v28  ;;  %v7333_v14 = vld [vmem:[#allocation2 + $0x2b8] sm:$0xf0]  ;;  %v8404_v8 = vld [vmem:[#allocation2 + $0x28c] sm:$0xf] }
 0x32a   : > { %v2795_v17 = vadd.f32 %v10775_v53, %v2766_v41  ;;  %v1655_v43 = vpack.c.bf16 %v1640_v49, %v1639_v59  ;;  %3096 = vmatpush.bf16.msrb.mxu1 %v7380_v58  ;;  %3332 = vrot.lane.b32.xlu2 %v11134_v1, %s8783_s8  ;;  %v7317_v7 = vld [vmem:[#allocation2 + $0x298] sm:$0xf0] }
 0x32b   : > { %14175 = vst [vmem:[#allocation66_spill] sm:$0xff] %v11141_v44  ;;  %v3648_v2 = vpack.c.bf16 %v11141_v44, %v11134_v1  ;;  %v2940_v0 = vadd.f32 %v11068_v57, %v2911_v62  ;;  %v14176_v62 = vld [vmem:[#allocation36_spill] sm:$0xff] }
 0x32c   : > { %v2824_v48 = vadd.f32 %v10841_v11, %v2795_v17  ;;  %1663 = vst [vmem:[#allocation2 + $0x408] sm:$0xff] %v1655_v43  ;;  %v7523_v53 = vld [vmem:[#allocation2 + $0x428] sm:$0xf]  ;;  %v8456_v46 = vld [vmem:[#allocation2 + $0x42c] sm:$0xf]  ;;  %v14177_v17 = vld [vmem:[#allocation55_spill] sm:$0xff] }
 0x32d   : > { %3656 = vst [vmem:[#allocation2 + $0x240] sm:$0xff] %v3648_v2  ;;  %v2969_v42 = vadd.f32 %v2968_v26, %v2940_v0  ;;  %3097 = vmatmul.bf16.vlgmr.msrb.gmra.mxu1 %v10119_v29  ;;  %3189 = vmatmul.bf16.gmra.mxu0 %v14154_v18  ;;  %v7320_v2 = vor.u32 %v8404_v8, %v7317_v7 }
 0x32e   : > { %3205 = vmatpush.bf16.msra.mxu1 %v7368_v24  ;;  %v8458_v33 = vld [vmem:[#allocation2 + $0x434] sm:$0xf0]  ;;  %v7525_v22 = vld [vmem:[#allocation2 + $0x438] sm:$0xf0]  ;;  %v2853_v50 = vadd.f32 %v10882_v51, %v2824_v48  ;;  %v11154_v58 = vpop.permute.xlu1 %1841  ;;  %v1610_v57 = vpop.permute.xlu0 %1609 }
 0x32f   : > { %v7524_v55 = vor.u32 %v8458_v33, %v7523_v53  ;;  %v7528_v11 = vor.u32 %v8456_v46, %v7525_v22  ;;  %v2722_v30 = vadd.f32 %v10462_v19, %v11154_v58  ;;  %v2867_v34 = vadd.f32 %v10675_v5, %v11154_v58  ;;  %v11174_v24 = vpop.f32.mrf.mxu2  ;;  %v14180_v53 = vld [vmem:[#allocation35_spill] sm:$0xff] }
 0x330   : > { %v2998_v36 = vadd.f32 %v2997_v52, %v2969_v42  ;;  %v1624_v18 = vsel %vm947_vm7, %v1594_v37, %v1610_v57  ;;  %v11162_v27 = vmax.f32 %v2853_v50, 0.0  ;;  %v1632_v51 = vsel %vm947_vm7, %v1610_v57, %v1594_v37  ;;  %v11167_v63 = vpop.f32.mrf.mxu3  ;;  %v14181_v42 = vld [vmem:[#allocation24_spill] sm:$0xff] }
 0x331   : > { %v1641_v10 = vmul.f32 %v11007_v12, %v1624_v18  ;;  %3124 = vmatpush.bf16.msra.mxu2 %v7524_v55  ;;  %3269 = vmatpush.bf16.msra.mxu3 %v7528_v11  ;;  %v7336_v19 = vor.u32 %v8408_v40, %v7333_v14  ;;  %v2751_v5 = vadd.f32 %v10570_v56, %v2722_v30  ;;  %v14178_v56 = vld [vmem:[#allocation40_spill] sm:$0xff]  ;;  %v7493_v18 = vld [vmem:[#allocation2 + $0x3f8] sm:$0xf0] }
 0x332   : > { %3206 = vmatpush.bf16.msra.mxu1 %v7352_v4  ;;  %v2896_v41 = vadd.f32 %v10843_v45, %v2867_v34  ;;  %v11171_v59 = vmax.f32 %v2998_v36, 0.0  ;;  %v1642_v49 = vmul.f32 %v11013_v13, %v1632_v51  ;;  %v14179_v40 = vld [vmem:[#allocation44_spill] sm:$0xff]  ;;  %v14186_v34 = vld [vmem:[#allocation59_spill] sm:$0xff]  ;;  %v14187_v14 = vld [vmem:[#allocation38_spill] sm:$0xff] }
 0x333   : > { %v2780_v37 = vadd.f32 %v14176_v62, %v2751_v5  ;;  %v14183_v4 = vld [vmem:[#allocation48_spill] sm:$0xff] }
 0x334   : > { %v2925_v12 = vadd.f32 %v14177_v17, %v2896_v41  ;;  %v3650_v43 = vpack.c.bf16 %v11171_v59, %v11162_v27  ;;  %v1656_v26 = vpack.c.bf16 %v1642_v49, %v1641_v10  ;;  %v14188_v10 = vld [vmem:[#allocation56_spill] sm:$0xff]  ;;  %v7477_v41 = vld [vmem:[#allocation2 + $0x3d8] sm:$0xf0]  ;;  %v14189_v49 = vld [vmem:[#allocation43_spill] sm:$0xff] }
 0x335   : > { %v2809_v28 = vadd.f32 %v14178_v56, %v2780_v37  ;;  %v11206_v5 = vld [vmem:[#allocation2 + $0x3cc] sm:$0xf]  ;;  %v7507_v8 = vld [vmem:[#allocation2 + $0x408] sm:$0xf] }
 0x336   : > { %3207 = vmatpush.bf16.msra.mxu1 %v7336_v19  ;;  %v2954_v45 = vadd.f32 %v10926_v16, %v2925_v12  ;;  %3658 = vst [vmem:[#allocation2 + $0x260] sm:$0xff] %v3650_v43  ;;  %v11182_v13 = vpop.permute.xlu1 %1856  ;;  %v11184_v0 = vpop.permute.xlu0 %1851  ;;  %v14182_v16 = vld [vmem:[#allocation33_spill] sm:$0xff]  ;;  %v8448_v37 = vld [vmem:[#allocation2 + $0x3ec] sm:$0xf]  ;;  %v14190_v12 = vld [vmem:[#allocation39_spill] sm:$0xff] }
 0x337   : > { %1664 = vst [vmem:[#allocation2 + $0x418] sm:$0xff] %v1656_v26  ;;  %v2838_v48 = vadd.f32 %v14179_v40, %v2809_v28  ;;  %v2729_v46 = vadd.f32 %v14180_v53, %v11182_v13  ;;  %v2874_v33 = vadd.f32 %v14181_v42, %v11182_v13  ;;  %v2727_v22 = vadd.f32 %v14182_v16, %v11184_v0  ;;  %v11216_v28 = vpop.f32.mrf.mxu2  ;;  %v14192_v40 = vld [vmem:[#allocation63_spill] sm:$0xff]  ;;  %v14195_v16 = vld [vmem:[#allocation45_spill] sm:$0xff] }
 0x338   : > { %v2983_v52 = vadd.f32 %v10942_v32, %v2954_v45  ;;  %v2872_v50 = vadd.f32 %v14183_v4, %v11184_v0  ;;  %v11196_v57 = vpop.f32.mrf.mxu3  ;;  %v14185_v32 = vld [vmem:[#allocation41_spill] sm:$0xff]  ;;  %v7496_v56 = vor.u32 %v8448_v37, %v7493_v18  ;;  %v14191_v45 = vld [vmem:[#allocation18_spill] sm:$0xff] }
 0x339   : > { %v11198_v55 = vmax.f32 %v2838_v48, 0.0  ;;  %v2758_v30 = vadd.f32 %v14185_v32, %v2729_v46  ;;  %v2903_v36 = vadd.f32 %v14186_v34, %v2874_v33  ;;  %v2756_v51 = vadd.f32 %v14187_v14, %v2727_v22  ;;  %v8452_v46 = vld [vmem:[#allocation2 + $0x40c] sm:$0xf] }
 0x33a   : > { %3208 = vmatpush.bf16.msra.mxu1 %v7320_v2  ;;  %v11200_v11 = vmax.f32 %v2983_v52, 0.0  ;;  %v2901_v19 = vadd.f32 %v14188_v10, %v2872_v50  ;;  %v14194_v52 = vld [vmem:[#allocation15_spill] sm:$0xff]  ;;  %v7480_v33 = vor.u32 %v11206_v5, %v7477_v41  ;;  %v14199_v14 = vld [vmem:[#allocation64_spill] sm:$0xff]  ;;  %v14200_v10 = vld [vmem:[#allocation37_spill] sm:$0xff] }
 0x33b   : > { %14184 = vst [vmem:[#allocation36_spill] sm:$0xff] %v11198_v55  ;;  %v2787_v7 = vadd.f32 %v14189_v49, %v2758_v30  ;;  %v2932_v62 = vadd.f32 %v10976_v35, %v2903_v36  ;;  %3324 = vrot.lane.b32.xlu1 %v11198_v55, %s8783_s8  ;;  %v2785_v43 = vadd.f32 %v14190_v12, %v2756_v51  ;;  %v14193_v35 = vld [vmem:[#allocation25_spill] sm:$0xff]  ;;  %v14202_v49 = vld [vmem:[#allocation47_spill] sm:$0xff]  ;;  %v14204_v12 = vld [vmem:[#allocation42_spill] sm:$0xff] }
 0x33c   : > { %v3644_v17 = vpack.c.bf16 %v11200_v11, %v11198_v55  ;;  %v2930_v26 = vadd.f32 %v10954_v15, %v2901_v19  ;;  %v14196_v15 = vld [vmem:[#allocation61_spill] sm:$0xff] }
 0x33d   : > { %v2816_v2 = vadd.f32 %v14191_v45, %v2787_v7  ;;  %v2961_v48 = vadd.f32 %v14192_v40, %v2932_v62  ;;  %3102 = vmatmul.bf16.gmra.mxu1 %v14193_v35  ;;  %3194 = vmatmul.bf16.gmra.mxu0 %v14194_v52  ;;  %v2814_v22 = vadd.f32 %v14195_v16, %v2785_v43  ;;  %v14198_v36 = vld [vmem:[#allocation49_spill] sm:$0xff]  ;;  %v14203_v62 = vld [vmem:[#allocation62_spill] sm:$0xff] }
 0x33e   : > { %v8454_v53 = vld [vmem:[#allocation2 + $0x414] sm:$0xf0]  ;;  %v7509_v42 = vld [vmem:[#allocation2 + $0x418] sm:$0xf0]  ;;  %v2959_v4 = vadd.f32 %v14196_v15, %v2930_v26  ;;  %v11225_v50 = vpop.permute.xlu1 %1866  ;;  %v11227_v32 = vpop.permute.xlu0 %1876  ;;  %3652 = vst [vmem:[#allocation2 + $0x200] sm:$0xff] %v3644_v17  ;;  %v14201_v5 = vld [vmem:[#allocation53_spill] sm:$0xff]  ;;  %v3017_v17 = vadd.f32 %v11174_v24, %v11184_v0 }
 0x33f   : > { %14197 = vst [vmem:[#allocation55_spill] sm:$0xff] %v11227_v32  ;;  %v7508_v30 = vor.u32 %v8454_v53, %v7507_v8  ;;  %v7512_v34 = vor.u32 %v8452_v46, %v7509_v42  ;;  %v2845_v18 = vadd.f32 %v14198_v36, %v2816_v2  ;;  %v2990_v51 = vadd.f32 %v14199_v14, %v2961_v48  ;;  %v14207_v2 = vld [vmem:[#allocation32_spill] sm:$0xff]  ;;  %v7301_v46 = vld [vmem:[#allocation2 + $0x278] sm:$0xf0] }
 0x340   : > { %v2734_v19 = vadd.f32 %v14200_v10, %v11225_v50  ;;  %v2879_v41 = vadd.f32 %v14201_v5, %v11225_v50  ;;  %v2843_v7 = vadd.f32 %v14202_v49, %v2814_v22  ;;  %v2988_v37 = vadd.f32 %v14203_v62, %v2959_v4  ;;  %v3045_v26 = vpop.f32.mrf.mxu3  ;;  %v14208_v48 = vld [vmem:[#allocation60_spill] sm:$0xff]  ;;  %v14211_v22 = vld [vmem:[#allocation34_spill] sm:$0xff]  ;;  %v14215_v10 = vld [vmem:[#allocation51_spill] sm:$0xff] }
 0x341   : > { %v2739_v43 = vadd.f32 %v14204_v12, %v11227_v32  ;;  %3125 = vmatpush.bf16.msra.mxu2 %v7508_v30  ;;  %v11241_v8 = vmax.f32 %v2845_v18, 0.0  ;;  %v11243_v45 = vmax.f32 %v2990_v51, 0.0  ;;  %3270 = vmatpush.bf16.msra.mxu3 %v7512_v34  ;;  %v8400_v53 = vld [vmem:[#allocation2 + $0x26c] sm:$0xf]  ;;  %v11252_v24 = vadd.f32 %v3045_v26, %v3017_v17  ;;  %v14212_v4 = vld [vmem:[#allocation46_spill] sm:$0xff]  ;;  %v2970_v26 = vpop.f32.mrf.mxu0 }
 0x342   : > { %v2763_v40 = vadd.f32 %v14207_v2, %v2734_v19  ;;  %v2908_v52 = vadd.f32 %v14208_v48, %v2879_v41  ;;  %v11247_v42 = vmax.f32 %v2843_v7, 0.0  ;;  %v11249_v16 = vmax.f32 %v2988_v37, 0.0  ;;  %v14213_v18 = vld [vmem:[#allocation26_spill] sm:$0xff]  ;;  %v8396_v14 = vld [vmem:[#allocation2 + $0x24c] sm:$0xf]  ;;  %v3021_v48 = vpop.f32.mrf.mxu2 }
 0x343   : > { %14205 = vst [vmem:[#allocation40_spill] sm:$0xff] %v11241_v8  ;;  %v2768_v15 = vadd.f32 %v14211_v22, %v2739_v43  ;;  %3330 = vrot.lane.b32.xlu1 %v11241_v8, %s8783_s8  ;;  %v7285_v51 = vld [vmem:[#allocation2 + $0x258] sm:$0xf0]  ;;  %v8440_v5 = vld [vmem:[#allocation2 + $0x3ac] sm:$0xf]  ;;  %v7304_v49 = vor.u32 %v8400_v53, %v7301_v46 }
 0x344   : > { %14206 = vst [vmem:[#allocation44_spill] sm:$0xff] %v11243_v45  ;;  %v2792_v30 = vadd.f32 %v14212_v4, %v2763_v40  ;;  %v2937_v36 = vadd.f32 %v11036_v38, %v2908_v52  ;;  %7569 = vmatmul.msk.bf16.vlgmr.msra.gmra.mxu2 %vm2699_vm8, %v14213_v18  ;;  %3328 = vrot.lane.b32.xlu0 %v11247_v42, %s8783_s8  ;;  %v7461_v41 = vld [vmem:[#allocation2 + $0x3b8] sm:$0xf0]  ;;  %v14218_v52 = vld [vmem:[#allocation52_spill] sm:$0xff] }
 0x345   : > { %3234 = vmatpush.bf16.msrb.mxu2 %v7496_v56  ;;  %14209 = vst [vmem:[#allocation35_spill] sm:$0xff] %v11247_v42  ;;  %v14214_v56 = vld [vmem:[#allocation58_spill] sm:$0xff]  ;;  %v2797_v19 = vadd.f32 %v14215_v10, %v2768_v15  ;;  %v7288_v12 = vor.u32 %v8396_v14, %v7285_v51  ;;  %3209 = vmatpush.bf16.msra.mxu1 %v7304_v49  ;;  %v8392_v46 = vld [vmem:[#allocation2 + $0x22c] sm:$0xf]  ;;  %v14219_v15 = vld [vmem:[#allocation57_spill] sm:$0xff] }
 0x346   : > { %14210 = vst [vmem:[#allocation24_spill] sm:$0xff] %v11249_v16  ;;  %v2884_v34 = vadd.f32 %v14214_v56, %v11227_v32  ;;  %v14216_v38 = vld [vmem:[#allocation50_spill] sm:$0xff]  ;;  %v2966_v62 = vadd.f32 %v11102_v21, %v2937_v36  ;;  %7573 = vmatmul.msk.bf16.vlgmr.msra.gmra.mxu3 %vm2699_vm8, %v14213_v18  ;;  %v3646_v2 = vpack.c.bf16 %v11249_v16, %v11247_v42 }
 0x347   : > { %v2821_v7 = vadd.f32 %v14216_v38, %v2792_v30  ;;  %v14217_v43 = vld [vmem:[#allocation54_spill] sm:$0xff]  ;;  %v3647_v40 = vpack.c.bf16 %v11243_v45, %v11241_v8  ;;  %v7464_v53 = vor.u32 %v8440_v5, %v7461_v41  ;;  %v2999_v30 = vpop.f32.mrf.mxu1  ;;  %v8388_v5 = vld [vmem:[#allocation2 + $0x20c] sm:$0xf] }
 0x348   : > { %v2913_v37 = vadd.f32 %v11038_v47, %v2884_v34  ;;  %v2826_v17 = vadd.f32 %v14217_v43, %v2797_v19  ;;  %v7269_v22 = vld [vmem:[#allocation2 + $0x238] sm:$0xf0]  ;;  %v11279_v36 = vpop.f32.mrf.mxu3  ;;  %3654 = vst [vmem:[#allocation2 + $0x220] sm:$0xff] %v3646_v2 }
 0x349   : > { %3235 = vmatpush.bf16.msrb.mxu2 %v7480_v33  ;;  %v2850_v21 = vadd.f32 %v14218_v52, %v2821_v7  ;;  %v2995_v33 = vadd.f32 %v11111_v61, %v2966_v62  ;;  %v7445_v18 = vld [vmem:[#allocation2 + $0x398] sm:$0xf0]  ;;  %3655 = vst [vmem:[#allocation2 + $0x230] sm:$0xff] %v3647_v40  ;;  %3210 = vmatpush.bf16.msra.mxu1 %v7288_v12  ;;  %v14222_v62 = vld [vmem:[#allocation27_spill] sm:$0xff]  ;;  %v8432_v12 = vld [vmem:[#allocation2 + $0x36c] sm:$0xf] }
 0x34a   : > { %v2942_v47 = vadd.f32 %v11120_v25, %v2913_v37  ;;  %v2855_v4 = vadd.f32 %v14219_v15, %v2826_v17  ;;  %v8436_v25 = vld [vmem:[#allocation2 + $0x38c] sm:$0xf]  ;;  %v7272_v51 = vor.u32 %v8392_v46, %v7269_v22  ;;  %v7253_v41 = vld [vmem:[#allocation2 + $0x218] sm:$0xf0]  ;;  %v14223_v37 = vld [vmem:[#allocation19_spill] sm:$0xff]  ;;  %v3022_v17 = vadd.f32 %v3021_v48, %v11074_v23 }
 0x34b   : > { %v11281_v56 = vmax.f32 %v2850_v21, 0.0  ;;  %v11283_v34 = vmax.f32 %v2995_v33, 0.0  ;;  %v7448_v19 = vor.u32 %v8436_v25, %v7445_v18  ;;  %3336 = vrot.lane.b32.xlu1 %v11162_v27, %s8783_s8  ;;  %v7429_v38 = vld [vmem:[#allocation2 + $0x378] sm:$0xf0]  ;;  %v7256_v43 = vor.u32 %v8388_v5, %v7253_v41  ;;  %v8428_v52 = vld [vmem:[#allocation2 + $0x34c] sm:$0xf]  ;;  %v11302_v33 = vpop.f32.mrf.mxu2 }
 0x34c   : > { %v2971_v14 = vadd.f32 %v2970_v26, %v2942_v47  ;;  %v11285_v61 = vmax.f32 %v2855_v4, 0.0  ;;  %v7432_v2 = vor.u32 %v8432_v12, %v7429_v38  ;;  %v7413_v47 = vld [vmem:[#allocation2 + $0x358] sm:$0xf0]  ;;  %v3012_v22 = vadd.f32 %v11082_v3, %v11154_v58  ;;  %v8424_v15 = vld [vmem:[#allocation2 + $0x32c] sm:$0xf]  ;;  %v14225_v5 = vld [vmem:[#allocation29_spill] sm:$0xff] }
 0x34d   : > { %14220 = vst [vmem:[#allocation33_spill] sm:$0xff] %v11281_v56  ;;  %3236 = vmatpush.bf16.msrb.mxu2 %v7464_v53  ;;  %v3649_v49 = vpack.c.bf16 %v11283_v34, %v11281_v56  ;;  %3334 = vrot.lane.b32.xlu0 %v11281_v56, %s8783_s8  ;;  %v14224_v53 = vld [vmem:[#allocation28_spill] sm:$0xff]  ;;  %v7416_v46 = vor.u32 %v8428_v52, %v7413_v47  ;;  %v7397_v48 = vld [vmem:[#allocation2 + $0x338] sm:$0xf0]  ;;  %v14229_v52 = vld [vmem:[#allocation21_spill] sm:$0xff] }
 0x34e   : > { %14221 = vst [vmem:[#allocation48_spill] sm:$0xff] %v11283_v34  ;;  %v3000_v10 = vadd.f32 %v2999_v30, %v2971_v14  ;;  %3338 = vrot.lane.b32.xlu2 %v11285_v61, %s8783_s8  ;;  %3107 = vmatmul.bf16.gmra.mxu1 %v14222_v62  ;;  %v7400_v4 = vor.u32 %v8424_v15, %v7397_v48  ;;  %v8420_v18 = vld [vmem:[#allocation2 + $0x30c] sm:$0xf]  ;;  %v7381_v14 = vld [vmem:[#allocation2 + $0x318] sm:$0xf0] }
 0x34f   : > { %3657 = vst [vmem:[#allocation2 + $0x250] sm:$0xff] %v3649_v49  ;;  %3199 = vmatmul.bf16.gmra.mxu0 %v14223_v37  ;;  %3211 = vmatpush.bf16.msra.mxu1 %v7272_v51  ;;  %v3041_v25 = vadd.f32 %v11167_v63, %v3012_v22  ;;  %v14226_v37 = vld [vmem:[#allocation30_spill] sm:$0xff] }
 0x350   : > { %v11295_v7 = vmax.f32 %v3000_v10, 0.0  ;;  %v3050_v40 = vpop.f32.mrf.mxu3 }
 0x351   : > { %3237 = vmatpush.bf16.msrb.mxu2 %v7448_v19  ;;  %v3051_v21 = vadd.f32 %v3050_v40, %v3022_v17  ;;  %v7384_v19 = vor.u32 %v8420_v18, %v7381_v14  ;;  %v14227_v17 = vld [vmem:[#allocation20_spill] sm:$0xff] }
 0x352   : > { %v3651_v26 = vpack.c.bf16 %v11295_v7, %v11285_v61 }
 0x353   : > { %3212 = vmatpush.bf16.msra.mxu1 %v7256_v43  ;;  %3342 = vrot.lane.b32.xlu1 %v11098_v31, %s8783_s8  ;;  %v3026_v3 = vpop.f32.mrf.mxu2 }
 0x354   : > { %3659 = vst [vmem:[#allocation2 + $0x270] sm:$0xff] %v3651_v26  ;;  %7570 = vmatmul.msk.bf16.gmra.mxu2 %vm2699_vm8, %v14224_v53  ;;  %v3027_v63 = vadd.f32 %v3026_v3, %v11118_v6 }
 0x355   : > { %3238 = vmatpush.bf16.msrb.mxu2 %v7432_v2  ;;  %3340 = vrot.lane.b32.xlu0 %v11200_v11, %s8783_s8  ;;  %v14228_v2 = vld [vmem:[#allocation31_spill] sm:$0xff] }
 0x356   : > { %3344 = vrot.lane.b32.xlu2 %v11249_v16, %s8783_s8  ;;  %7574 = vmatmul.msk.bf16.gmra.mxu3 %vm2699_vm8, %v14224_v53 }
 0x358   : > { %v11316_v30 = vpop.f32.mrf.mxu3 }
 0x359   : > { %3239 = vmatpush.bf16.msrb.mxu2 %v7416_v46 }
 0x35a   : > { %v3069_v51 = vpop.f32.mrf.mxu0 }
 0x35b   : > { %v11319_v10 = vadd.f32 %v3069_v51, %v3041_v25  ;;  %3348 = vrot.lane.b32.xlu1 %v11141_v44, %s8783_s8 }
 0x35d   : > { %3240 = vmatpush.bf16.msrb.mxu2 %v7400_v4  ;;  %3346 = vrot.lane.b32.xlu0 %v11243_v45, %s8783_s8 }
 0x35e   : > { %3350 = vrot.lane.b32.xlu2 %v11283_v34, %s8783_s8  ;;  %3112 = vmatmul.bf16.gmra.mxu1 %v14225_v5 }
 0x360   : > { %v3055_v41 = vpop.f32.mrf.mxu3 }
 0x361   : > { %3241 = vmatpush.bf16.msrb.mxu2 %v7384_v19  ;;  %v3056_v49 = vadd.f32 %v3055_v41, %v3027_v63 }
 0x362   : > { %v11329_v38 = vpop.f32.mrf.mxu0 }
 0x363   : > { %3354 = vrot.lane.b32.xlu1 %v11295_v7, %s8783_s8 }
 0x364   : > { %7571 = vmatmul.msk.bf16.gmra.mxu2 %vm2699_vm8, %v14226_v37 }
 0x365   : > { %3352 = vrot.lane.b32.xlu0 %v11171_v59, %s8783_s8 }
 0x366   : > { %3404 = vrot.lane.b32.xlu2 %v11198_v55, %s8784_s9  ;;  %7575 = vmatmul.msk.bf16.gmra.mxu3 %vm2699_vm8, %v14226_v37  ;;  %v14234_v37 = vld [vmem:[#allocation3_spill] sm:$0xff] }
 0x368   : > { %v11406_v22 = vpop.f32.mrf.mxu3 }
 0x369   : > { %14233 = vst [vmem:[#allocation59_spill] sm:$0xff] %v11406_v22 }
 0x36a   : > { %v3074_v12 = vpop.f32.mrf.mxu0 }
 0x36b   : > { %v11342_v43 = vadd.f32 %v3074_v12, %v11252_v24  ;;  %3408 = vrot.lane.b32.xlu1 %v11247_v42, %s8784_s9  ;;  %v14235_v12 = vld [vmem:[#allocation4_spill] sm:$0xff] }
 0x36d   : > { %3406 = vrot.lane.b32.xlu0 %v11096_v54, %s8784_s9 }
 0x36e   : > { %3410 = vrot.lane.b32.xlu2 %v11241_v8, %s8784_s9  ;;  %3213 = vmatmul.bf16.vlgmr.msra.gmra.mxu1 %v14227_v17 }
 0x370   : > { %v11417_v4 = vpop.f32.mrf.mxu3 }
 0x372   : > { %v11351_v26 = vpop.f32.mrf.mxu0 }
 0x373   : > { %3672 = vrot.lane.b32.xlu1 %v11162_v27, %s8787_s16 }
 0x374   : > { %7572 = vmatmul.msk.bf16.gmra.mxu2 %vm2699_vm8, %v14228_v2 }
 0x375   : > { %3412 = vrot.lane.b32.xlu0 %v11134_v1, %s8784_s9 }
 0x376   : > { %3674 = vrot.lane.b32.xlu2 %v11285_v61, %s8787_s16  ;;  %7576 = vmatmul.msk.bf16.gmra.mxu3 %vm2699_vm8, %v14228_v2 }
 0x378   : > { %v11428_v19 = vpop.f32.mrf.mxu3 }
 0x37a   : > { %v3079_v24 = vpop.f32.mrf.mxu0 }
 0x37b   : > { %v11363_v40 = vadd.f32 %v3079_v24, %v3051_v21  ;;  %3690 = vrot.lane.b32.xlu1 %v11295_v7, %s8787_s16 }
 0x37c   : > { %v3327_v46 = vpop.permute.xlu2 %3326 }
 0x37d   : > { %3688 = vrot.lane.b32.xlu0 %v11171_v59, %s8787_s16 }
 0x37e   : > { %3416 = vrot.lane.b32.xlu2 %v11162_v27, %s8784_s9  ;;  %3218 = vmatmul.bf16.gmra.mxu1 %v14229_v52 }
 0x382   : > { %v11372_v47 = vpop.f32.mrf.mxu0 }
 0x383   : > { %14230 = vst [vmem:[#allocation41_spill] sm:$0xff] %v11372_v47  ;;  %3432 = vrot.lane.b32.xlu1 %v11171_v59, %s8784_s9 }
 0x384   : > { %3242 = vmatmul.bf16.vlgmr.msrb.gmra.mxu2 %v10119_v29  ;;  %v14231_v29 = vld [vmem:[#allocation22_spill] sm:$0xff]  ;;  %v11404_v48 = vpop.permute.xlu2 %3332 }
 0x385   : > { %3418 = vrot.lane.b32.xlu0 %v11285_v61, %s8784_s9 }
 0x386   : > { %3434 = vrot.lane.b32.xlu2 %v11295_v7, %s8784_s9 }
 0x38a   : > { %v3084_v21 = vpop.f32.mrf.mxu0 }
 0x38b   : > { %v11381_v53 = vadd.f32 %v3084_v21, %v3056_v49  ;;  %3834 = vrot.lane.b32.xlu1 %v11285_v61, %s8789_s18  ;;  %v11448_v21 = vpop.f32.mrf.mxu2 }
 0x38c   : > { %14236 = vst [vmem:[#allocation38_spill] sm:$0xff] %v11448_v21 }
 0x38d   : > { %3832 = vrot.lane.b32.xlu0 %v11162_v27, %s8789_s18 }
 0x38e   : > { %3848 = vrot.lane.b32.xlu2 %v11171_v59, %s8789_s18  ;;  %3223 = vmatmul.bf16.gmra.mxu1 %v14231_v29  ;;  %v11454_v29 = vpop.f32.mrf.mxu3 }
 0x393   : > { %3576 = vrot.lane.b32.xlu1 %v11162_v27, %s8786_s15 }
 0x394   : > { %3247 = vmatmul.bf16.gmra.mxu2 %v14193_v35  ;;  %v14232_v35 = vld [vmem:[#allocation23_spill] sm:$0xff] }
 0x395   : > { %3850 = vrot.lane.b32.xlu0 %v11295_v7, %s8789_s18 }
 0x396   : > { %3578 = vrot.lane.b32.xlu2 %v11285_v61, %s8786_s15 }
 0x39b   : > { %3594 = vrot.lane.b32.xlu1 %v11295_v7, %s8786_s15 }
 0x39d   : > { %3592 = vrot.lane.b32.xlu0 %v11171_v59, %s8786_s15 }
 0x39e   : > { %3668 = vrot.lane.b32.xlu2 %v11134_v1, %s8787_s16  ;;  %3228 = vmatmul.bf16.gmra.mxu1 %v14232_v35 }
 0x3a3   : > { %3684 = vrot.lane.b32.xlu1 %v11141_v44, %s8787_s16 }
 0x3a4   : > { %3252 = vmatmul.bf16.gmra.mxu2 %v14222_v62 }
 0x3a5   : > { %3670 = vrot.lane.b32.xlu0 %v11281_v56, %s8787_s16 }
 0x3a6   : > { %3686 = vrot.lane.b32.xlu2 %v11283_v34, %s8787_s16 }
 0x3a8   : > { %v11415_v15 = vpop.permute.xlu2 %3338 }
 0x3aa   : > { %v3098_v18 = vpop.f32.mrf.mxu1 }
 0x3ab   : > { %v3099_v14 = vadd.f32 %v3098_v18, %v11319_v10  ;;  %3428 = vrot.lane.b32.xlu1 %v11141_v44, %s8784_s9 }
 0x3ad   : > { %3414 = vrot.lane.b32.xlu0 %v11281_v56, %s8784_s9  ;;  %v3325_v62 = vpop.permute.xlu1 %3324 }
 0x3ae   : > { %3430 = vrot.lane.b32.xlu2 %v11283_v34, %s8784_s9 }
 0x3b0   : > { %v3345_v25 = vpop.permute.xlu2 %3344 }
 0x3b2   : > { %v11426_v51 = vpop.f32.mrf.mxu1 }
 0x3b3   : > { %3830 = vrot.lane.b32.xlu1 %v11281_v56, %s8789_s18 }
 0x3b4   : > { %3257 = vmatmul.bf16.gmra.mxu2 %v14225_v5 }
 0x3b5   : > { %3828 = vrot.lane.b32.xlu0 %v11134_v1, %s8789_s18  ;;  %v3331_v10 = vpop.permute.xlu1 %3330 }
 0x3b6   : > { %3844 = vrot.lane.b32.xlu2 %v11141_v44, %s8789_s18  ;;  %v3329_v3 = vpop.permute.xlu0 %3328 }
 0x3b7   : > { %v3358_v41 = vsel %vm350_vm0, %v3329_v3, %v3345_v25  ;;  %v3366_v49 = vsel %vm350_vm0, %v3345_v25, %v3329_v3 }
 0x3b8   : > { %v3351_v63 = vpop.permute.xlu2 %3350  ;;  %v3376_v5 = vmul.f32 %v3366_v49, %v14234_v37  ;;  %v3377_v17 = vmul.f32 %v3358_v41, %v14235_v12 }
 0x3ba   : > { %v3390_v2 = vpack.c.bf16 %v3377_v17, %v3376_v5  ;;  %v3103_v24 = vpop.f32.mrf.mxu1 }
 0x3bb   : > { %v11444_v52 = vadd.f32 %v3103_v24, %v11342_v43  ;;  %3572 = vrot.lane.b32.xlu1 %v11134_v1, %s8786_s15 }
 0x3bc   : > { %3398 = vst [vmem:[#allocation2 + $0x20] sm:$0xff] %v3390_v2 }
 0x3bd   : > { %3846 = vrot.lane.b32.xlu0 %v11283_v34, %s8789_s18  ;;  %v11456_v35 = vpop.permute.xlu1 %3336 }
 0x3be   : > { %3574 = vrot.lane.b32.xlu2 %v11281_v56, %s8786_s15 }
 0x3bf   : > { %v3335_v18 = vpop.permute.xlu0 %3334 }
 0x3c0   : > { %v11458_v25 = vpop.permute.xlu2 %3404  ;;  %v3361_v43 = vsel %vm350_vm0, %v3335_v18, %v3351_v63  ;;  %v3369_v3 = vsel %vm350_vm0, %v3351_v63, %v3335_v18 }
 0x3c1   : > { %14237 = vst [vmem:[#allocation56_spill] sm:$0xff] %v11458_v25  ;;  %v3382_v41 = vmul.f32 %v3369_v3, %v14234_v37  ;;  %v3383_v49 = vmul.f32 %v3361_v43, %v14235_v12  ;;  %v11480_v3 = vpop.f32.mrf.mxu3 }
 0x3c2   : > { %v11466_v17 = vpop.f32.mrf.mxu1 }
 0x3c3   : > { %v3393_v5 = vpack.c.bf16 %v3383_v49, %v3382_v41  ;;  %3590 = vrot.lane.b32.xlu1 %v11283_v34, %s8786_s15 }
 0x3c5   : > { %3401 = vst [vmem:[#allocation2 + $0x50] sm:$0xff] %v3393_v5  ;;  %3588 = vrot.lane.b32.xlu0 %v11141_v44, %s8786_s15  ;;  %v3343_v2 = vpop.permute.xlu1 %3342 }
 0x3c6   : > { %3664 = vrot.lane.b32.xlu2 %v11247_v42, %s8787_s16  ;;  %v3357_v18 = vsel %vm350_vm0, %v3327_v46, %v3343_v2  ;;  %v3365_v43 = vsel %vm350_vm0, %v3343_v2, %v3327_v46 }
 0x3c7   : > { %v3127_v24 = vpop.f32.mrf.mxu2  ;;  %v3374_v49 = vmul.f32 %v3365_v43, %v14234_v37  ;;  %v3375_v5 = vmul.f32 %v3357_v18, %v14235_v12  ;;  %v3341_v60 = vpop.permute.xlu0 %3340 }
 0x3c8   : > { %v11474_v63 = vpop.permute.xlu2 %3410  ;;  %v11482_v41 = vadd.f32 %v3127_v24, %v3099_v14  ;;  %v3356_v25 = vsel %vm350_vm0, %v3325_v62, %v3341_v60 }
 0x3c9   : > { %14238 = vst [vmem:[#allocation43_spill] sm:$0xff] %v11474_v63  ;;  %v3364_v63 = vsel %vm350_vm0, %v3341_v60, %v3325_v62  ;;  %v3389_v22 = vpack.c.bf16 %v3375_v5, %v3374_v49  ;;  %v3373_v46 = vmul.f32 %v3356_v25, %v14235_v12  ;;  %v11515_v5 = vpop.f32.mrf.mxu3 }
 0x3ca   : > { %v3372_v21 = vmul.f32 %v3364_v63, %v14234_v37 }
 0x3cb   : > { %v3108_v2 = vpop.f32.mrf.mxu1  ;;  %3397 = vst [vmem:[#allocation2 + $0x10] sm:$0xff] %v3389_v22  ;;  %3680 = vrot.lane.b32.xlu1 %v11249_v16, %s8787_s16 }
 0x3cc   : > { %v3388_v14 = vpack.c.bf16 %v3373_v46, %v3372_v21  ;;  %v3109_v24 = vadd.f32 %v3108_v2, %v11363_v40 }
 0x3cd   : > { %3666 = vrot.lane.b32.xlu0 %v11241_v8, %s8787_s16  ;;  %v3349_v60 = vpop.permute.xlu1 %3348 }
 0x3ce   : > { %3682 = vrot.lane.b32.xlu2 %v11243_v45, %s8787_s16  ;;  %3396 = vst [vmem:[#allocation2] sm:$0xff] %v3388_v14  ;;  %v3360_v22 = vsel %vm350_vm0, %v11404_v48, %v3349_v60  ;;  %v3368_v40 = vsel %vm350_vm0, %v3349_v60, %v11404_v48 }
 0x3cf   : > { %v11499_v62 = vpop.f32.mrf.mxu2  ;;  %v3380_v21 = vmul.f32 %v3368_v40, %v14234_v37  ;;  %v3381_v25 = vmul.f32 %v3360_v22, %v14235_v12  ;;  %v3347_v18 = vpop.permute.xlu0 %3346 }
 0x3d0   : > { %v11501_v63 = vpop.permute.xlu2 %3674  ;;  %v3359_v43 = vsel %vm350_vm0, %v3331_v10, %v3347_v18  ;;  %v3367_v49 = vsel %vm350_vm0, %v3347_v18, %v3331_v10 }
 0x3d1   : > { %v3392_v46 = vpack.c.bf16 %v3381_v25, %v3380_v21  ;;  %v3378_v2 = vmul.f32 %v3367_v49, %v14234_v37  ;;  %v3379_v14 = vmul.f32 %v3359_v43, %v14235_v12 }
 0x3d3   : > { %v11519_v32 = vpop.f32.mrf.mxu1  ;;  %3400 = vst [vmem:[#allocation2 + $0x40] sm:$0xff] %v3392_v46  ;;  %v3391_v48 = vpack.c.bf16 %v3379_v14, %v3378_v2  ;;  %3426 = vrot.lane.b32.xlu1 %v11243_v45, %s8784_s9 }
 0x3d4   : > { %14239 = vst [vmem:[#allocation39_spill] sm:$0xff] %v11519_v32 }
 0x3d5   : > { %3424 = vrot.lane.b32.xlu0 %v11249_v16, %s8784_s9  ;;  %3399 = vst [vmem:[#allocation2 + $0x30] sm:$0xff] %v3391_v48  ;;  %v3355_v10 = vpop.permute.xlu1 %3354 }
 0x3d6   : > { %3824 = vrot.lane.b32.xlu2 %v11247_v42, %s8789_s18  ;;  %v3363_v40 = vsel %vm350_vm0, %v11415_v15, %v3355_v10  ;;  %v3371_v21 = vsel %vm350_vm0, %v3355_v10, %v11415_v15  ;;  %v11548_v10 = vpop.f32.mrf.mxu3 }
 0x3d7   : > { %v3132_v60 = vpop.f32.mrf.mxu2  ;;  %v3386_v18 = vmul.f32 %v3371_v21, %v14234_v37  ;;  %v3387_v43 = vmul.f32 %v3363_v40, %v14235_v12  ;;  %v3353_v49 = vpop.permute.xlu0 %3352  ;;  %14240 = vst [vmem:[#allocation18_spill] sm:$0xff] %v11548_v10 }
 0x3d8   : > { %v11527_v22 = vpop.permute.xlu2 %3416  ;;  %v11536_v25 = vadd.f32 %v3132_v60, %v11444_v52  ;;  %v3362_v46 = vsel %vm350_vm0, %v11456_v35, %v3353_v49  ;;  %v3370_v2 = vsel %vm350_vm0, %v3353_v49, %v11456_v35 }
 0x3d9   : > { %v3395_v14 = vpack.c.bf16 %v3387_v43, %v3386_v18  ;;  %v3384_v48 = vmul.f32 %v3370_v2, %v14234_v37  ;;  %v3385_v15 = vmul.f32 %v3362_v46, %v14235_v12 }
 0x3db   : > { %v3113_v52 = vpop.f32.mrf.mxu1  ;;  %3403 = vst [vmem:[#allocation2 + $0x70] sm:$0xff] %v3395_v14  ;;  %v3394_v60 = vpack.c.bf16 %v3385_v15, %v3384_v48  ;;  %3840 = vrot.lane.b32.xlu1 %v11249_v16, %s8789_s18  ;;  %v11573_v14 = vpop.f32.mrf.mxu0 }
 0x3dc   : > { %v3114_v40 = vadd.f32 %v3113_v52, %v11381_v53  ;;  %14244 = vst [vmem:[#allocation45_spill] sm:$0xff] %v11573_v14 }
 0x3dd   : > { %3826 = vrot.lane.b32.xlu0 %v11241_v8, %s8789_s18  ;;  %3402 = vst [vmem:[#allocation2 + $0x60] sm:$0xff] %v3394_v60  ;;  %v11557_v35 = vpop.permute.xlu1 %3408 }
 0x3de   : > { %3842 = vrot.lane.b32.xlu2 %v11243_v45, %s8789_s18  ;;  %14241 = vst [vmem:[#allocation63_spill] sm:$0xff] %v11557_v35  ;;  %v11569_v53 = vpop.f32.mrf.mxu3  ;;  %v14249_v35 = vld [vmem:[#allocation11_spill] sm:$0xff] }
 0x3df   : > { %v11559_v21 = vpop.f32.mrf.mxu2  ;;  %v11561_v43 = vpop.permute.xlu0 %3406  ;;  %14243 = vst [vmem:[#allocation15_spill] sm:$0xff] %v11569_v53 }
 0x3e0   : > { %v3435_v18 = vpop.permute.xlu2 %3434  ;;  %14242 = vst [vmem:[#allocation25_spill] sm:$0xff] %v11561_v43 }
 0x3e3   : > { %3570 = vrot.lane.b32.xlu1 %v11241_v8, %s8786_s15  ;;  %v11579_v52 = vpop.f32.mrf.mxu1  ;;  %v14250_v8 = vld [vmem:[#allocation12_spill] sm:$0xff]  ;;  %v3185_v53 = vpop.f32.mrf.mxu0 }
 0x3e4   : > { %14246 = vst [vmem:[#allocation49_spill] sm:$0xff] %v11579_v52 }
 0x3e5   : > { %3568 = vrot.lane.b32.xlu0 %v11247_v42, %s8786_s15  ;;  %v3673_v49 = vpop.permute.xlu1 %3672 }
 0x3e6   : > { %3584 = vrot.lane.b32.xlu2 %v11249_v16, %s8786_s15  ;;  %v11597_v43 = vpop.f32.mrf.mxu3 }
 0x3e7   : > { %v3137_v46 = vpop.f32.mrf.mxu2  ;;  %v11577_v15 = vpop.permute.xlu0 %3412  ;;  %14248 = vst [vmem:[#allocation37_spill] sm:$0xff] %v11597_v43 }
 0x3e8   : > { %v11571_v2 = vpop.permute.xlu2 %3848  ;;  %v11575_v48 = vadd.f32 %v3137_v46, %v3109_v24 }
 0x3ea   : > { %14245 = vst [vmem:[#allocation61_spill] sm:$0xff] %v11575_v48 }
 0x3eb   : > { %3660 = vrot.lane.b32.xlu1 %v11198_v55, %s8787_s16 }
 0x3ed   : > { %3586 = vrot.lane.b32.xlu0 %v11243_v45, %s8786_s15  ;;  %v3691_v60 = vpop.permute.xlu1 %3690 }
 0x3ee   : > { %3662 = vrot.lane.b32.xlu2 %v11096_v54, %s8787_s16  ;;  %v3699_v24 = vsel %vm698_vm4, %v11501_v63, %v3691_v60  ;;  %v3707_v46 = vsel %vm698_vm4, %v3691_v60, %v11501_v63  ;;  %v3214_v63 = vpop.f32.mrf.mxu1 }
 0x3ef   : > { %v11587_v12 = vpop.f32.mrf.mxu2  ;;  %v3722_v16 = vmul.f32 %v3699_v24, %v14249_v35  ;;  %v3723_v52 = vmul.f32 %v3707_v46, %v14250_v8  ;;  %v3689_v45 = vpop.permute.xlu0 %3688 }
 0x3f0   : > { %14247 = vst [vmem:[#allocation64_spill] sm:$0xff] %v11587_v12  ;;  %v11589_v37 = vpop.permute.xlu2 %3578  ;;  %v3698_v42 = vsel %vm698_vm4, %v3673_v49, %v3689_v45  ;;  %v3706_v14 = vsel %vm698_vm4, %v3689_v45, %v3673_v49 }
 0x3f1   : > { %v3731_v6 = vpack.c.bf16 %v3723_v52, %v3722_v16  ;;  %v3720_v12 = vmul.f32 %v3698_v42, %v14249_v35  ;;  %v3721_v32 = vmul.f32 %v3706_v14, %v14250_v8  ;;  %v14253_v52 = vld [vmem:[#allocation6_spill] sm:$0xff] }
 0x3f3   : > { %3739 = vst [vmem:[#allocation2 + $0x2f0] sm:$0xff] %v3731_v6  ;;  %v3730_v60 = vpack.c.bf16 %v3721_v32, %v3720_v12  ;;  %3678 = vrot.lane.b32.xlu1 %v11098_v31, %s8787_s16  ;;  %v14252_v12 = vld [vmem:[#allocation5_spill] sm:$0xff] }
 0x3f5   : > { %3676 = vrot.lane.b32.xlu0 %v11200_v11, %s8787_s16  ;;  %3738 = vst [vmem:[#allocation2 + $0x2e0] sm:$0xff] %v3730_v60  ;;  %v3433_v45 = vpop.permute.xlu1 %3432  ;;  %v3272_v60 = vpop.f32.mrf.mxu3 }
 0x3f6   : > { %3420 = vrot.lane.b32.xlu2 %v11200_v11, %s8784_s9  ;;  %v3442_v42 = vsel %vm433_vm1, %v11527_v22, %v3433_v45  ;;  %v3450_v6 = vsel %vm433_vm1, %v3433_v45, %v11527_v22 }
 0x3f7   : > { %v3142_v49 = vpop.f32.mrf.mxu2  ;;  %v3464_v14 = vmul.f32 %v3450_v6, %v14252_v12  ;;  %v3465_v24 = vmul.f32 %v3442_v42, %v14253_v52  ;;  %v3419_v46 = vpop.permute.xlu0 %3418 }
 0x3f8   : > { %v11613_v16 = vpop.permute.xlu2 %3668  ;;  %v11621_v32 = vadd.f32 %v3142_v49, %v3114_v40  ;;  %v3443_v43 = vsel %vm433_vm1, %v3419_v46, %v3435_v18  ;;  %v3451_v56 = vsel %vm433_vm1, %v3435_v18, %v3419_v46  ;;  %v3187_v40 = vpop.f32.mrf.mxu0 }
 0x3f9   : > { %v3474_v34 = vpack.c.bf16 %v3465_v24, %v3464_v14  ;;  %v3466_v44 = vmul.f32 %v3451_v56, %v14252_v12  ;;  %v3467_v48 = vmul.f32 %v3443_v43, %v14253_v52  ;;  %v3216_v18 = vpop.f32.mrf.mxu1  ;;  %v3157_v14 = vadd.f32 %v11417_v4, %v11154_v58  ;;  %v14255_v24 = vld [vmem:[#allocation16_spill] sm:$0xff] }
 0x3fa   : > { %14251 = vst [vmem:[#allocation53_spill] sm:$0xff] %v11621_v32  ;;  %v8581_v22 = vld [vmem:[#allocation2 + $0x2ec] sm:$0xf0] }
 0x3fb   : > { %3482 = vst [vmem:[#allocation2 + $0xe0] sm:$0xff] %v3474_v34  ;;  %v3475_v45 = vpack.c.bf16 %v3467_v48, %v3466_v44  ;;  %3820 = vrot.lane.b32.xlu1 %v11198_v55, %s8789_s18  ;;  %v3186_v32 = vadd.f32 %v3185_v53, %v3157_v14 }
 0x3fc   : > { %v8027_v49 = vld [vmem:[#allocation2 + $0x2e0] sm:$0xf] }
 0x3fd   : > { %3422 = vrot.lane.b32.xlu0 %v11098_v31, %s8784_s9  ;;  %3483 = vst [vmem:[#allocation2 + $0xf0] sm:$0xff] %v3475_v45  ;;  %v3835_v42 = vpop.permute.xlu1 %3834  ;;  %v8028_v56 = vor.u32 %v8581_v22, %v8027_v49  ;;  %v14256_v22 = vld [vmem:[#allocation17_spill] sm:$0xff]  ;;  %v3274_v49 = vpop.f32.mrf.mxu3  ;;  %v3215_v58 = vadd.f32 %v3214_v63, %v3186_v32  ;;  %v3159_v32 = vadd.f32 %v11428_v19, %v11040_v9 }
 0x3fe   : > { %3822 = vrot.lane.b32.xlu2 %v11096_v54, %s8789_s18 }
 0x3ff   : > { %v11637_v6 = vpop.f32.mrf.mxu2  ;;  %5726 = vmatpush.bf16.msra.mxu2 %v8028_v56  ;;  %v3833_v44 = vpop.permute.xlu0 %3832 }
 0x400   : > { %14254 = vst [vmem:[#allocation47_spill] sm:$0xff] %v11637_v6  ;;  %v11639_v43 = vpop.permute.xlu2 %3686  ;;  %v3858_v34 = vsel %vm864_vm6, %v3833_v44, %v11571_v2  ;;  %v3866_v48 = vsel %vm864_vm6, %v11571_v2, %v3833_v44  ;;  %v3190_v44 = vpop.f32.mrf.mxu0 }
 0x401   : > { %v3880_v46 = vmul.f32 %v3858_v34, %v14255_v24  ;;  %v3881_v45 = vmul.f32 %v3866_v48, %v14256_v22  ;;  %v3014_v48 = vadd.f32 %v11139_v39, %v11040_v9 }
 0x402   : > { %v7771_v6 = vld [vmem:[#allocation2 + $0xe0] sm:$0xf] }
 0x403   : > { %v3890_v56 = vpack.c.bf16 %v3881_v45, %v3880_v46  ;;  %3838 = vrot.lane.b32.xlu1 %v11098_v31, %s8789_s18  ;;  %v3219_v46 = vpop.f32.mrf.mxu1 }
 0x404   : > { %v8517_v2 = vld [vmem:[#allocation2 + $0xec] sm:$0xf0] }
 0x405   : > { %3836 = vrot.lane.b32.xlu0 %v11200_v11, %s8789_s18  ;;  %3898 = vst [vmem:[#allocation2 + $0x3e0] sm:$0xff] %v3890_v56  ;;  %v3577_v4 = vpop.permute.xlu1 %3576  ;;  %v7772_v34 = vor.u32 %v8517_v2, %v7771_v6 }
 0x406   : > { %3564 = vrot.lane.b32.xlu2 %v11198_v55, %s8786_s15  ;;  %v3043_v55 = vadd.f32 %v11196_v57, %v3014_v48 }
 0x407   : > { %v3243_v53 = vpop.f32.mrf.mxu2  ;;  %5668 = vmatpush.bf16.msrb.mxu0 %v7772_v34  ;;  %v3851_v47 = vpop.permute.xlu0 %3850  ;;  %v11672_v34 = vmax.f32 %v11482_v41, 0.0 }
 0x408   : > { %v11659_v14 = vpop.permute.xlu2 %3430  ;;  %v3244_v45 = vadd.f32 %v3243_v53, %v3215_v58  ;;  %v3859_v10 = vsel %vm864_vm6, %v3835_v42, %v3851_v47  ;;  %v3867_v63 = vsel %vm864_vm6, %v3851_v47, %v3835_v42  ;;  %v3072_v2 = vadd.f32 %v11329_v38, %v3043_v55  ;;  %v3277_v47 = vpop.f32.mrf.mxu3  ;;  %v14257_v53 = vld [vmem:[#allocation9_spill] sm:$0xff] }
 0x409   : > { %v3882_v39 = vmul.f32 %v3859_v10, %v14255_v24  ;;  %v3883_v6 = vmul.f32 %v3867_v63, %v14256_v22  ;;  %v3188_v58 = vadd.f32 %v3187_v40, %v3159_v32  ;;  %v3192_v42 = vpop.f32.mrf.mxu0  ;;  %v14258_v63 = vld [vmem:[#allocation10_spill] sm:$0xff] }
 0x40a   : > { %v3273_v56 = vadd.f32 %v3272_v60, %v3244_v45  ;;  %v3101_v9 = vadd.f32 %v11426_v51, %v3072_v2 }
 0x40b   : > { %v3891_v57 = vpack.c.bf16 %v3883_v6, %v3882_v39  ;;  %3580 = vrot.lane.b32.xlu1 %v11200_v11, %s8786_s15  ;;  %v3217_v55 = vadd.f32 %v3216_v18, %v3188_v58  ;;  %v3162_v6 = vadd.f32 %v11454_v29, %v11184_v0 }
 0x40c   : > { %v11674_v48 = vmax.f32 %v3273_v56, 0.0  ;;  %v3130_v51 = vadd.f32 %v11499_v62, %v3101_v9  ;;  %v8155_v0 = vld [vmem:[#allocation2 + $0x3e0] sm:$0xf] }
 0x40d   : > { %3566 = vrot.lane.b32.xlu0 %v11096_v54, %s8786_s15  ;;  %3899 = vst [vmem:[#allocation2 + $0x3f0] sm:$0xff] %v3891_v57  ;;  %v3595_v19 = vpop.permute.xlu1 %3594 }
 0x40e   : > { %3582 = vrot.lane.b32.xlu2 %v11098_v31, %s8786_s15  ;;  %v4300_v38 = vpack.c.bf16 %v11674_v48, %v11672_v34  ;;  %v3603_v60 = vsel %vm599_vm3, %v11589_v37, %v3595_v19  ;;  %v3611_v40 = vsel %vm599_vm3, %v3595_v19, %v11589_v37  ;;  %v3221_v37 = vpop.f32.mrf.mxu1 }
 0x40f   : > { %v3245_v41 = vpop.f32.mrf.mxu2  ;;  %v3626_v45 = vmul.f32 %v3611_v40, %v14257_v53  ;;  %v3627_v32 = vmul.f32 %v3603_v60, %v14258_v63  ;;  %v3593_v39 = vpop.permute.xlu0 %3592 }
 0x410   : > { %v11685_v10 = vpop.permute.xlu2 %3844  ;;  %4308 = vst [vmem:[#allocation2 + $0x208] sm:$0xff] %v4300_v38  ;;  %v3246_v18 = vadd.f32 %v3245_v41, %v3217_v55  ;;  %v3602_v56 = vsel %vm599_vm3, %v3577_v4, %v3593_v39  ;;  %v3610_v2 = vsel %vm599_vm3, %v3593_v39, %v3577_v4  ;;  %v3191_v55 = vadd.f32 %v3190_v44, %v3162_v6  ;;  %v3279_v40 = vpop.f32.mrf.mxu3 }
 0x411   : > { %v3635_v58 = vpack.c.bf16 %v3627_v32, %v3626_v45  ;;  %v3624_v62 = vmul.f32 %v3610_v2, %v14257_v53  ;;  %v3625_v57 = vmul.f32 %v3602_v56, %v14258_v63  ;;  %v11704_v38 = vmax.f32 %v3130_v51, 0.0 }
 0x412   : > { %v3275_v9 = vadd.f32 %v3274_v49, %v3246_v18  ;;  %v3220_v4 = vadd.f32 %v3219_v46, %v3191_v55  ;;  %v3019_v51 = vadd.f32 %v11216_v28, %v11182_v13 }
 0x413   : > { %3643 = vst [vmem:[#allocation2 + $0x1f0] sm:$0xff] %v3635_v58  ;;  %v3634_v19 = vpack.c.bf16 %v3625_v57, %v3624_v62  ;;  %3754 = vrot.lane.b32.xlu1 %v11285_v61, %s8788_s17  ;;  %v3164_v58 = vadd.f32 %v11480_v3, %v11182_v13  ;;  %v3195_v57 = vpop.f32.mrf.mxu0  ;;  %v11741_v13 = vmax.f32 %v11536_v25, 0.0 }
 0x414   : > { %v11706_v41 = vmax.f32 %v3275_v9, 0.0  ;;  %v8613_v29 = vld [vmem:[#allocation2 + $0x3ec] sm:$0xf0]  ;;  %v3048_v28 = vadd.f32 %v11279_v36, %v3019_v51 }
 0x415   : > { %3752 = vrot.lane.b32.xlu0 %v11162_v27, %s8788_s17  ;;  %3642 = vst [vmem:[#allocation2 + $0x1e0] sm:$0xff] %v3634_v19  ;;  %v3685_v44 = vpop.permute.xlu1 %3684  ;;  %v8156_v60 = vor.u32 %v8613_v29, %v8155_v0 }
 0x416   : > { %3768 = vrot.lane.b32.xlu2 %v11171_v59, %s8788_s17  ;;  %v4301_v49 = vpack.c.bf16 %v11706_v41, %v11704_v38  ;;  %v3696_v32 = vsel %vm698_vm4, %v11613_v16, %v3685_v44  ;;  %v3704_v46 = vsel %vm698_vm4, %v3685_v44, %v11613_v16  ;;  %v3077_v36 = vadd.f32 %v11351_v26, %v3048_v28  ;;  %v3224_v3 = vpop.f32.mrf.mxu1 }
 0x417   : > { %v3248_v18 = vpop.f32.mrf.mxu2  ;;  %v3716_v6 = vmul.f32 %v3696_v32, %v14249_v35  ;;  %v3717_v56 = vmul.f32 %v3704_v46, %v14250_v8  ;;  %5755 = vmatpush.bf16.msrb.mxu3 %v8156_v60  ;;  %v3671_v2 = vpop.permute.xlu0 %3670 }
 0x418   : > { %v11718_v45 = vpop.permute.xlu2 %3574  ;;  %4309 = vst [vmem:[#allocation2 + $0x218] sm:$0xff] %v4301_v49  ;;  %v3249_v39 = vadd.f32 %v3248_v18, %v3220_v4  ;;  %v3697_v62 = vsel %vm698_vm4, %v3671_v2, %v11639_v43  ;;  %v3705_v16 = vsel %vm698_vm4, %v11639_v43, %v3671_v2  ;;  %v3193_v4 = vadd.f32 %v3192_v42, %v3164_v58 }
 0x419   : > { %v3728_v9 = vpack.c.bf16 %v3717_v56, %v3716_v6  ;;  %v3718_v55 = vmul.f32 %v3697_v62, %v14249_v35  ;;  %v3719_v19 = vmul.f32 %v3705_v16, %v14250_v8  ;;  %v3106_v43 = vadd.f32 %v11466_v17, %v3077_v36 }
 0x41a   : > { %v3278_v0 = vadd.f32 %v3277_v47, %v3249_v39  ;;  %v8549_v29 = vld [vmem:[#allocation2 + $0x1ec] sm:$0xf0]  ;;  %v3222_v47 = vadd.f32 %v3221_v37, %v3193_v4  ;;  %v3167_v2 = vadd.f32 %v11515_v5, %v11074_v23 }
 0x41b   : > { %3736 = vst [vmem:[#allocation2 + $0x2c0] sm:$0xff] %v3728_v9  ;;  %v3729_v49 = vpack.c.bf16 %v3719_v19, %v3718_v55  ;;  %3496 = vrot.lane.b32.xlu1 %v11162_v27, %s8785_s10  ;;  %v3135_v51 = vadd.f32 %v11559_v21, %v3106_v43  ;;  %v3282_v21 = vpop.f32.mrf.mxu3  ;;  %v3024_v43 = vadd.f32 %v11302_v33, %v11225_v50 }
 0x41c   : > { %v11743_v44 = vmax.f32 %v3278_v0, 0.0  ;;  %v7899_v26 = vld [vmem:[#allocation2 + $0x1e0] sm:$0xf]  ;;  %v3196_v19 = vadd.f32 %v3195_v57, %v3167_v2  ;;  %v3197_v0 = vpop.f32.mrf.mxu0 }
 0x41d   : > { %3770 = vrot.lane.b32.xlu0 %v11295_v7, %s8788_s17  ;;  %3737 = vst [vmem:[#allocation2 + $0x2d0] sm:$0xff] %v3729_v49  ;;  %v3429_v42 = vpop.permute.xlu1 %3428  ;;  %v7900_v60 = vor.u32 %v8549_v29, %v7899_v26  ;;  %v11775_v36 = vmax.f32 %v3135_v51, 0.0 }
 0x41e   : > { %3498 = vrot.lane.b32.xlu2 %v11285_v61, %s8785_s10  ;;  %v4302_v25 = vpack.c.bf16 %v11743_v44, %v11741_v13  ;;  %v3440_v17 = vsel %vm433_vm1, %v11577_v15, %v3429_v42  ;;  %v3448_v46 = vsel %vm433_vm1, %v3429_v42, %v11577_v15  ;;  %v3226_v29 = vpop.f32.mrf.mxu1 }
 0x41f   : > { %v3250_v18 = vpop.f32.mrf.mxu2  ;;  %v3460_v39 = vmul.f32 %v3448_v46, %v14252_v12  ;;  %v3461_v6 = vmul.f32 %v3440_v17, %v14253_v52  ;;  %5697 = vmatpush.bf16.msrb.mxu1 %v7900_v60  ;;  %v3415_v56 = vpop.permute.xlu0 %3414  ;;  %v3053_v60 = vadd.f32 %v11316_v30, %v3024_v43  ;;  %v14266_v43 = vld [vmem:[#allocation64_spill] sm:$0xff] }
 0x420   : > { %v11755_v32 = vpop.permute.xlu2 %3664  ;;  %4310 = vst [vmem:[#allocation2 + $0x228] sm:$0xff] %v4302_v25  ;;  %v3251_v37 = vadd.f32 %v3250_v18, %v3222_v47  ;;  %v3441_v28 = vsel %vm433_vm1, %v3415_v56, %v11659_v14  ;;  %v3449_v15 = vsel %vm433_vm1, %v11659_v14, %v3415_v56  ;;  %v14259_v18 = vld [vmem:[#allocation18_spill] sm:$0xff] }
 0x421   : > { %v3472_v58 = vpack.c.bf16 %v3461_v6, %v3460_v39  ;;  %v3462_v62 = vmul.f32 %v3449_v15, %v14252_v12  ;;  %v3463_v16 = vmul.f32 %v3441_v28, %v14253_v52  ;;  %v3169_v33 = vadd.f32 %v14259_v18, %v11225_v50  ;;  %v14260_v6 = vld [vmem:[#allocation41_spill] sm:$0xff]  ;;  %v14263_v50 = vld [vmem:[#allocation48_spill] sm:$0xff]  ;;  %v14268_v18 = vld [vmem:[#allocation15_spill] sm:$0xff] }
 0x422   : > { %v3280_v9 = vadd.f32 %v3279_v40, %v3251_v37  ;;  %v8011_v55 = vld [vmem:[#allocation2 + $0x2c0] sm:$0xf]  ;;  %v3225_v40 = vadd.f32 %v3224_v3, %v3196_v19  ;;  %v3082_v56 = vadd.f32 %v14260_v6, %v3053_v60  ;;  %v14261_v28 = vld [vmem:[#allocation61_spill] sm:$0xff] }
 0x423   : > { %3480 = vst [vmem:[#allocation2 + $0xc0] sm:$0xff] %v3472_v58  ;;  %v3473_v23 = vpack.c.bf16 %v3463_v16, %v3462_v62  ;;  %3514 = vrot.lane.b32.xlu1 %v11295_v7, %s8785_s10  ;;  %v3284_v39 = vpop.f32.mrf.mxu3  ;;  %v3198_v2 = vadd.f32 %v3197_v0, %v3169_v33  ;;  %v11804_v15 = vmax.f32 %v14261_v28, 0.0  ;;  %v14264_v16 = vld [vmem:[#allocation33_spill] sm:$0xff] }
 0x424   : > { %v11777_v5 = vmax.f32 %v3280_v9, 0.0  ;;  %v8577_v14 = vld [vmem:[#allocation2 + $0x2cc] sm:$0xf0]  ;;  %v3200_v9 = vpop.f32.mrf.mxu0 }
 0x425   : > { %3512 = vrot.lane.b32.xlu0 %v11171_v59, %s8785_s10  ;;  %3481 = vst [vmem:[#allocation2 + $0xd0] sm:$0xff] %v3473_v23  ;;  %v3831_v4 = vpop.permute.xlu1 %3830  ;;  %v8012_v49 = vor.u32 %v8577_v14, %v8011_v55  ;;  %v14265_v55 = vld [vmem:[#allocation39_spill] sm:$0xff]  ;;  %v3227_v0 = vadd.f32 %v3226_v29, %v3198_v2 }
 0x426   : > { %3748 = vrot.lane.b32.xlu2 %v11134_v1, %s8788_s17  ;;  %v4303_v57 = vpack.c.bf16 %v11777_v5, %v11775_v36  ;;  %v3111_v19 = vadd.f32 %v14265_v55, %v3082_v56  ;;  %v3229_v60 = vpop.f32.mrf.mxu1 }
 0x427   : > { %v3253_v26 = vpop.f32.mrf.mxu2  ;;  %5727 = vmatpush.bf16.msra.mxu2 %v8012_v49  ;;  %v3829_v42 = vpop.permute.xlu0 %3828 }
 0x428   : > { %v11789_v47 = vpop.permute.xlu2 %3682  ;;  %4311 = vst [vmem:[#allocation2 + $0x238] sm:$0xff] %v4303_v57  ;;  %v3254_v25 = vadd.f32 %v3253_v26, %v3225_v40  ;;  %v3856_v3 = vsel %vm864_vm6, %v3829_v42, %v11685_v10  ;;  %v3864_v51 = vsel %vm864_vm6, %v11685_v10, %v3829_v42  ;;  %v14262_v10 = vld [vmem:[#allocation66_spill] sm:$0xff]  ;;  %v3140_v26 = vadd.f32 %v14266_v43, %v3111_v19 }
 0x429   : > { %v3876_v17 = vmul.f32 %v3856_v3, %v14255_v24  ;;  %v3877_v46 = vmul.f32 %v3864_v51, %v14256_v22  ;;  %v14267_v51 = vld [vmem:[#allocation65_spill] sm:$0xff] }
 0x42a   : > { %v3283_v37 = vadd.f32 %v3282_v21, %v3254_v25  ;;  %v7755_v30 = vld [vmem:[#allocation2 + $0xc0] sm:$0xf]  ;;  %v3172_v33 = vadd.f32 %v14268_v18, %v14267_v51  ;;  %v11828_v56 = vmax.f32 %v3140_v26, 0.0 }
 0x42b   : > { %v3888_v58 = vpack.c.bf16 %v3877_v46, %v3876_v17  ;;  %3764 = vrot.lane.b32.xlu1 %v14262_v10, %s8788_s17  ;;  %v3287_v28 = vpop.f32.mrf.mxu3 }
 0x42c   : > { %v11806_v62 = vmax.f32 %v3283_v37, 0.0  ;;  %v8513_v21 = vld [vmem:[#allocation2 + $0xcc] sm:$0xf0]  ;;  %v3201_v6 = vadd.f32 %v3200_v9, %v3172_v33  ;;  %v14270_v9 = vld [vmem:[#allocation38_spill] sm:$0xff]  ;;  %v3202_v51 = vpop.f32.mrf.mxu0 }
 0x42d   : > { %3750 = vrot.lane.b32.xlu0 %v14264_v16, %s8788_s17  ;;  %3896 = vst [vmem:[#allocation2 + $0x3c0] sm:$0xff] %v3888_v58  ;;  %v3573_v14 = vpop.permute.xlu1 %3572  ;;  %v7756_v40 = vor.u32 %v8513_v21, %v7755_v30  ;;  %v14269_v21 = vld [vmem:[#allocation55_spill] sm:$0xff] }
 0x42e   : > { %3766 = vrot.lane.b32.xlu2 %v14263_v50, %s8788_s17  ;;  %v4304_v23 = vpack.c.bf16 %v11806_v62, %v11804_v15  ;;  %v3029_v55 = vadd.f32 %v14270_v9, %v14269_v21 }
 0x42f   : > { %v3255_v57 = vpop.f32.mrf.mxu2  ;;  %5669 = vmatpush.bf16.msrb.mxu0 %v7756_v40  ;;  %v3847_v42 = vpop.permute.xlu0 %3846 }
 0x430   : > { %v11817_v49 = vpop.permute.xlu2 %3824  ;;  %4312 = vst [vmem:[#allocation2 + $0x248] sm:$0xff] %v4304_v23  ;;  %v3256_v25 = vadd.f32 %v3255_v57, %v3227_v0  ;;  %v3857_v3 = vsel %vm864_vm6, %v3831_v4, %v3847_v42  ;;  %v3865_v29 = vsel %vm864_vm6, %v3847_v42, %v3831_v4  ;;  %v3230_v4 = vadd.f32 %v3229_v60, %v3201_v6  ;;  %v14271_v42 = vld [vmem:[#allocation59_spill] sm:$0xff]  ;;  %v14273_v6 = vld [vmem:[#allocation45_spill] sm:$0xff] }
 0x431   : > { %v3878_v17 = vmul.f32 %v3857_v3, %v14255_v24  ;;  %v3879_v46 = vmul.f32 %v3865_v29, %v14256_v22  ;;  %v3058_v60 = vadd.f32 %v14271_v42, %v3029_v55  ;;  %v14272_v3 = vld [vmem:[#allocation37_spill] sm:$0xff] }
 0x432   : > { %v3285_v37 = vadd.f32 %v3284_v39, %v3256_v25  ;;  %v3174_v29 = vadd.f32 %v14272_v3, %v14269_v21  ;;  %v14278_v3 = vld [vmem:[#allocation47_spill] sm:$0xff] }
 0x433   : > { %v3889_v30 = vpack.c.bf16 %v3879_v46, %v3878_v17  ;;  %3494 = vrot.lane.b32.xlu1 %v14264_v16, %s8785_s10 }
 0x434   : > { %v11830_v2 = vmax.f32 %v3285_v37, 0.0 }
 0x435   : > { %3492 = vrot.lane.b32.xlu0 %v11134_v1, %s8785_s10  ;;  %3897 = vst [vmem:[#allocation2 + $0x3d0] sm:$0xff] %v3889_v30  ;;  %v3591_v58 = vpop.permute.xlu1 %3590  ;;  %v3087_v30 = vadd.f32 %v14273_v6, %v3058_v60  ;;  %v3289_v60 = vpop.f32.mrf.mxu3 }
 0x436   : > { %3508 = vrot.lane.b32.xlu2 %v14262_v10, %s8785_s10  ;;  %v4305_v39 = vpack.c.bf16 %v11830_v2, %v11828_v56  ;;  %v3601_v23 = vsel %vm599_vm3, %v11718_v45, %v3591_v58  ;;  %v3609_v40 = vsel %vm599_vm3, %v3591_v58, %v11718_v45  ;;  %v14274_v58 = vld [vmem:[#allocation53_spill] sm:$0xff] }
 0x437   : > { %v3258_v19 = vpop.f32.mrf.mxu2  ;;  %v3622_v43 = vmul.f32 %v3609_v40, %v14257_v53  ;;  %v3623_v26 = vmul.f32 %v3601_v23, %v14258_v63  ;;  %v3589_v25 = vpop.permute.xlu0 %3588  ;;  %v11863_v9 = vmax.f32 %v14274_v58, 0.0  ;;  %v14277_v40 = vld [vmem:[#allocation40_spill] sm:$0xff] }
 0x438   : > { %v11842_v0 = vpop.permute.xlu2 %3842  ;;  %4313 = vst [vmem:[#allocation2 + $0x258] sm:$0xff] %v4305_v39  ;;  %v3259_v57 = vadd.f32 %v3258_v19, %v3230_v4  ;;  %v3600_v18 = vsel %vm599_vm3, %v3573_v14, %v3589_v25  ;;  %v3608_v33 = vsel %vm599_vm3, %v3589_v25, %v3573_v14  ;;  %v3231_v4 = vpop.f32.mrf.mxu1  ;;  %v3203_v39 = vadd.f32 %v3202_v51, %v3174_v29  ;;  %v14275_v19 = vld [vmem:[#allocation35_spill] sm:$0xff]  ;;  %v14276_v14 = vld [vmem:[#allocation49_spill] sm:$0xff] }
 0x439   : > { %v3633_v45 = vpack.c.bf16 %v3623_v26, %v3622_v43  ;;  %v3620_v17 = vmul.f32 %v3608_v33, %v14257_v53  ;;  %v3621_v46 = vmul.f32 %v3600_v18, %v14258_v63  ;;  %v3116_v23 = vadd.f32 %v14276_v14, %v3087_v30 }
 0x43a   : > { %v3288_v37 = vadd.f32 %v3287_v28, %v3259_v57  ;;  %v8139_v28 = vld [vmem:[#allocation2 + $0x3c0] sm:$0xf]  ;;  %v3232_v43 = vadd.f32 %v3231_v4, %v3203_v39 }
 0x43b   : > { %3641 = vst [vmem:[#allocation2 + $0x1d0] sm:$0xff] %v3633_v45  ;;  %v3632_v21 = vpack.c.bf16 %v3621_v46, %v3620_v17  ;;  %3744 = vrot.lane.b32.xlu1 %v14275_v19, %s8788_s17  ;;  %v3145_v29 = vadd.f32 %v14278_v3, %v3116_v23 }
 0x43c   : > { %v11865_v55 = vmax.f32 %v3288_v37, 0.0  ;;  %v8609_v57 = vld [vmem:[#allocation2 + $0x3cc] sm:$0xf0] }
 0x43d   : > { %3510 = vrot.lane.b32.xlu0 %v14263_v50, %s8785_s10  ;;  %3640 = vst [vmem:[#allocation2 + $0x1c0] sm:$0xff] %v3632_v21  ;;  %v3681_v25 = vpop.permute.xlu1 %3680  ;;  %v8140_v42 = vor.u32 %v8609_v57, %v8139_v28  ;;  %v11895_v23 = vmax.f32 %v3145_v29, 0.0  ;;  %v14281_v29 = vld [vmem:[#allocation43_spill] sm:$0xff] }
 0x43e   : > { %3746 = vrot.lane.b32.xlu2 %v14277_v40, %s8788_s17  ;;  %v4306_v26 = vpack.c.bf16 %v11865_v55, %v11863_v9  ;;  %v3694_v33 = vsel %vm698_vm4, %v11755_v32, %v3681_v25  ;;  %v3702_v45 = vsel %vm698_vm4, %v3681_v25, %v11755_v32 }
 0x43f   : > { %v3260_v51 = vpop.f32.mrf.mxu2  ;;  %v3712_v46 = vmul.f32 %v3694_v33, %v14249_v35  ;;  %v3713_v37 = vmul.f32 %v3702_v45, %v14250_v8  ;;  %5756 = vmatpush.bf16.msrb.mxu3 %v8140_v42  ;;  %v3667_v6 = vpop.permute.xlu0 %3666 }
 0x440   : > { %v11877_v18 = vpop.permute.xlu2 %3584  ;;  %4314 = vst [vmem:[#allocation2 + $0x268] sm:$0xff] %v4306_v26  ;;  %v3261_v17 = vadd.f32 %v3260_v51, %v3232_v43  ;;  %v3695_v30 = vsel %vm698_vm4, %v3667_v6, %v11789_v47  ;;  %v3703_v4 = vsel %vm698_vm4, %v11789_v47, %v3667_v6  ;;  %v14279_v43 = vld [vmem:[#allocation44_spill] sm:$0xff] }
 0x441   : > { %v3726_v39 = vpack.c.bf16 %v3713_v37, %v3712_v46  ;;  %v3714_v58 = vmul.f32 %v3695_v30, %v14249_v35  ;;  %v3715_v32 = vmul.f32 %v3703_v4, %v14250_v8  ;;  %v14280_v47 = vld [vmem:[#allocation24_spill] sm:$0xff]  ;;  %v14282_v37 = vld [vmem:[#allocation63_spill] sm:$0xff] }
 0x442   : > { %v3290_v21 = vadd.f32 %v3289_v60, %v3261_v17  ;;  %v8545_v14 = vld [vmem:[#allocation2 + $0x1cc] sm:$0xf0] }
 0x443   : > { %3734 = vst [vmem:[#allocation2 + $0x2a0] sm:$0xff] %v3726_v39  ;;  %v3727_v28 = vpack.c.bf16 %v3715_v32, %v3714_v58  ;;  %3762 = vrot.lane.b32.xlu1 %v14279_v43, %s8788_s17 }
 0x444   : > { %v11897_v57 = vmax.f32 %v3290_v21, 0.0  ;;  %v7883_v26 = vld [vmem:[#allocation2 + $0x1c0] sm:$0xf] }
 0x445   : > { %3760 = vrot.lane.b32.xlu0 %v14280_v47, %s8788_s17  ;;  %3735 = vst [vmem:[#allocation2 + $0x2b0] sm:$0xff] %v3727_v28  ;;  %v3427_v42 = vpop.permute.xlu1 %3426  ;;  %v7884_v60 = vor.u32 %v8545_v14, %v7883_v26 }
 0x446   : > { %3488 = vrot.lane.b32.xlu2 %v14275_v19, %s8785_s10  ;;  %v4307_v25 = vpack.c.bf16 %v11897_v57, %v11895_v23  ;;  %v3439_v51 = vsel %vm433_vm1, %v14281_v29, %v3427_v42  ;;  %v3447_v33 = vsel %vm433_vm1, %v3427_v42, %v14281_v29 }
 0x447   : > { %v3458_v45 = vmul.f32 %v3447_v33, %v14252_v12  ;;  %v3459_v17 = vmul.f32 %v3439_v51, %v14253_v52  ;;  %5698 = vmatpush.bf16.msrb.mxu1 %v7884_v60  ;;  %v3425_v46 = vpop.permute.xlu0 %3424  ;;  %v14283_v33 = vld [vmem:[#allocation56_spill] sm:$0xff] }
 0x448   : > { %v11907_v3 = vpop.permute.xlu2 %3662  ;;  %4315 = vst [vmem:[#allocation2 + $0x278] sm:$0xff] %v4307_v25  ;;  %v3438_v6 = vsel %vm433_vm1, %v14282_v37, %v3425_v46  ;;  %v3446_v30 = vsel %vm433_vm1, %v3425_v46, %v14282_v37 }
 0x449   : > { %v3471_v4 = vpack.c.bf16 %v3459_v17, %v3458_v45  ;;  %v3456_v39 = vmul.f32 %v3446_v30, %v14252_v12  ;;  %v3457_v58 = vmul.f32 %v3438_v6, %v14253_v52 }
 0x44a   : > { %v7995_v32 = vld [vmem:[#allocation2 + $0x2a0] sm:$0xf] }
 0x44b   : > { %3479 = vst [vmem:[#allocation2 + $0xb0] sm:$0xff] %v3471_v4  ;;  %v3470_v21 = vpack.c.bf16 %v3457_v58, %v3456_v39  ;;  %3504 = vrot.lane.b32.xlu1 %v14280_v47, %s8785_s10 }
 0x44c   : > { %v8573_v14 = vld [vmem:[#allocation2 + $0x2ac] sm:$0xf0] }
 0x44d   : > { %3490 = vrot.lane.b32.xlu0 %v14277_v40, %s8785_s10  ;;  %3478 = vst [vmem:[#allocation2 + $0xa0] sm:$0xff] %v3470_v21  ;;  %v3841_v28 = vpop.permute.xlu1 %3840  ;;  %v7996_v26 = vor.u32 %v8573_v14, %v7995_v32 }
 0x44e   : > { %3506 = vrot.lane.b32.xlu2 %v14279_v43, %s8785_s10  ;;  %v3854_v25 = vsel %vm864_vm6, %v11817_v49, %v3841_v28  ;;  %v3862_v42 = vsel %vm864_vm6, %v3841_v28, %v11817_v49  ;;  %v14284_v28 = vld [vmem:[#allocation36_spill] sm:$0xff] }
 0x44f   : > { %v3872_v29 = vmul.f32 %v3854_v25, %v14255_v24  ;;  %v3873_v51 = vmul.f32 %v3862_v42, %v14256_v22  ;;  %5728 = vmatpush.bf16.msra.mxu2 %v7996_v26  ;;  %v3827_v46 = vpop.permute.xlu0 %3826 }
 0x450   : > { %v3421_v60 = vpop.permute.xlu2 %3420  ;;  %v3855_v49 = vsel %vm864_vm6, %v3827_v46, %v11842_v0  ;;  %v3863_v30 = vsel %vm864_vm6, %v11842_v0, %v3827_v46 }
 0x451   : > { %v3436_v45 = vsel %vm433_vm1, %v14283_v33, %v3421_v60  ;;  %v3444_v17 = vsel %vm433_vm1, %v3421_v60, %v14283_v33  ;;  %v3886_v4 = vpack.c.bf16 %v3873_v51, %v3872_v29  ;;  %v3874_v39 = vmul.f32 %v3855_v49, %v14255_v24 }
 0x452   : > { %v3452_v37 = vmul.f32 %v3444_v17, %v14252_v12  ;;  %v3453_v6 = vmul.f32 %v3436_v45, %v14253_v52  ;;  %v3875_v58 = vmul.f32 %v3863_v30, %v14256_v22  ;;  %v8509_v21 = vld [vmem:[#allocation2 + $0xac] sm:$0xf0] }
 0x453   : > { %3894 = vst [vmem:[#allocation2 + $0x3a0] sm:$0xff] %v3886_v4  ;;  %3742 = vrot.lane.b32.xlu1 %v11096_v54, %s8788_s17 }
 0x454   : > { %v3468_v32 = vpack.c.bf16 %v3453_v6, %v3452_v37  ;;  %v3887_v14 = vpack.c.bf16 %v3875_v58, %v3874_v39  ;;  %v7739_v0 = vld [vmem:[#allocation2 + $0xa0] sm:$0xf] }
 0x455   : > { %3740 = vrot.lane.b32.xlu0 %v14284_v28, %s8788_s17  ;;  %v3571_v26 = vpop.permute.xlu1 %3570  ;;  %v7740_v25 = vor.u32 %v8509_v21, %v7739_v0 }
 0x456   : > { %3476 = vst [vmem:[#allocation2 + $0x80] sm:$0xff] %v3468_v32  ;;  %3756 = vrot.lane.b32.xlu2 %v11200_v11, %s8788_s17 }
 0x457   : > { %3895 = vst [vmem:[#allocation2 + $0x3b0] sm:$0xff] %v3887_v14  ;;  %5670 = vmatpush.bf16.msrb.mxu0 %v7740_v25  ;;  %v3569_v60 = vpop.permute.xlu0 %3568 }
 0x458   : > { %v11961_v42 = vpop.permute.xlu2 %3822  ;;  %v3598_v29 = vsel %vm599_vm3, %v3569_v60, %v11877_v18  ;;  %v3606_v51 = vsel %vm599_vm3, %v11877_v18, %v3569_v60 }
 0x459   : > { %v3616_v33 = vmul.f32 %v3606_v51, %v14257_v53  ;;  %v3617_v45 = vmul.f32 %v3598_v29, %v14258_v63 }
 0x45a   : > { %v8123_v17 = vld [vmem:[#allocation2 + $0x3a0] sm:$0xf] }
 0x45b   : > { %v3630_v46 = vpack.c.bf16 %v3617_v45, %v3616_v33  ;;  %3484 = vrot.lane.b32.xlu1 %v14284_v28, %s8785_s10 }
 0x45d   : > { %3758 = vrot.lane.b32.xlu0 %v11098_v31, %s8788_s17  ;;  %3638 = vst [vmem:[#allocation2 + $0x1a0] sm:$0xff] %v3630_v46  ;;  %v3661_v6 = vpop.permute.xlu1 %3660 }
 0x45e   : > { %3486 = vrot.lane.b32.xlu2 %v11096_v54, %s8785_s10  ;;  %v8605_v37 = vld [vmem:[#allocation2 + $0x3ac] sm:$0xf0] }
 0x45f   : > { %v8124_v49 = vor.u32 %v8605_v37, %v8123_v17  ;;  %v3587_v30 = vpop.permute.xlu0 %3586 }
 0x460   : > { %v11977_v18 = vpop.permute.xlu2 %3564  ;;  %v3599_v4 = vsel %vm599_vm3, %v3571_v26, %v3587_v30  ;;  %v3607_v39 = vsel %vm599_vm3, %v3587_v30, %v3571_v26 }
 0x461   : > { %5757 = vmatpush.bf16.msrb.mxu3 %v8124_v49  ;;  %v3618_v58 = vmul.f32 %v3607_v39, %v14257_v53  ;;  %v3619_v32 = vmul.f32 %v3599_v4, %v14258_v63 }
 0x463   : > { %v3631_v21 = vpack.c.bf16 %v3619_v32, %v3618_v58  ;;  %3502 = vrot.lane.b32.xlu1 %v11098_v31, %s8785_s10  ;;  %v14285_v58 = vld [vmem:[#allocation25_spill] sm:$0xff] }
 0x464   : > { %v7867_v37 = vld [vmem:[#allocation2 + $0x1a0] sm:$0xf] }
 0x465   : > { %3500 = vrot.lane.b32.xlu0 %v11200_v11, %s8785_s10  ;;  %3639 = vst [vmem:[#allocation2 + $0x1b0] sm:$0xff] %v3631_v21  ;;  %v3679_v14 = vpop.permute.xlu1 %3678 }
 0x466   : > { %3912 = vrot.lane.b32.xlu2 %v11162_v27, %s8790_s19  ;;  %v3693_v0 = vsel %vm698_vm4, %v11907_v3, %v3679_v14  ;;  %v3701_v26 = vsel %vm698_vm4, %v3679_v14, %v11907_v3 }
 0x467   : > { %v3710_v60 = vmul.f32 %v3693_v0, %v14249_v35  ;;  %v3711_v29 = vmul.f32 %v3701_v26, %v14250_v8  ;;  %v3677_v27 = vpop.permute.xlu0 %3676 }
 0x468   : > { %v11997_v25 = vpop.permute.xlu2 %3582  ;;  %v3692_v51 = vsel %vm698_vm4, %v3661_v6, %v3677_v27  ;;  %v3700_v33 = vsel %vm698_vm4, %v3677_v27, %v3661_v6 }
 0x469   : > { %v3725_v45 = vpack.c.bf16 %v3711_v29, %v3710_v60  ;;  %v3708_v17 = vmul.f32 %v3692_v51, %v14249_v35  ;;  %v3709_v46 = vmul.f32 %v3700_v33, %v14250_v8 }
 0x46b   : > { %3733 = vst [vmem:[#allocation2 + $0x290] sm:$0xff] %v3725_v45  ;;  %v3724_v3 = vpack.c.bf16 %v3709_v46, %v3708_v17  ;;  %3928 = vrot.lane.b32.xlu1 %v11171_v59, %s8790_s19  ;;  %v7963_v46 = vld [vmem:[#allocation2 + $0x260] sm:$0xf] }
 0x46c   : > { %v8541_v49 = vld [vmem:[#allocation2 + $0x1ac] sm:$0xf0] }
 0x46d   : > { %3914 = vrot.lane.b32.xlu0 %v11285_v61, %s8790_s19  ;;  %3732 = vst [vmem:[#allocation2 + $0x280] sm:$0xff] %v3724_v3  ;;  %v3821_v6 = vpop.permute.xlu1 %3820  ;;  %v7868_v30 = vor.u32 %v8541_v49, %v7867_v37 }
 0x46e   : > { %3930 = vrot.lane.b32.xlu2 %v11295_v7, %s8790_s19 }
 0x46f   : > { %5699 = vmatpush.bf16.msrb.mxu1 %v7868_v30  ;;  %v3423_v39 = vpop.permute.xlu0 %3422  ;;  %v8561_v30 = vld [vmem:[#allocation2 + $0x24c] sm:$0xf0] }
 0x470   : > { %v12013_v4 = vpop.permute.xlu2 %3768  ;;  %v3437_v32 = vsel %vm433_vm1, %v14285_v58, %v3423_v39  ;;  %v3445_v59 = vsel %vm433_vm1, %v3423_v39, %v14285_v58 }
 0x471   : > { %v3454_v7 = vmul.f32 %v3445_v59, %v14252_v12  ;;  %v3455_v61 = vmul.f32 %v3437_v32, %v14253_v52  ;;  %v7947_v32 = vld [vmem:[#allocation2 + $0x240] sm:$0xf] }
 0x472   : > { %v8569_v21 = vld [vmem:[#allocation2 + $0x28c] sm:$0xf0] }
 0x473   : > { %v3469_v14 = vpack.c.bf16 %v3455_v61, %v3454_v7  ;;  %3910 = vrot.lane.b32.xlu1 %v14264_v16, %s8790_s19  ;;  %v8565_v16 = vld [vmem:[#allocation2 + $0x26c] sm:$0xf0]  ;;  %v7948_v61 = vor.u32 %v8561_v30, %v7947_v32  ;;  %v8547_v30 = vld [vmem:[#allocation2 + $0x1e4] sm:$0xf] }
 0x474   : > { %v7979_v0 = vld [vmem:[#allocation2 + $0x280] sm:$0xf]  ;;  %v7964_v49 = vor.u32 %v8565_v16, %v7963_v46 }
 0x475   : > { %3908 = vrot.lane.b32.xlu0 %v11134_v1, %s8790_s19  ;;  %3477 = vst [vmem:[#allocation2 + $0x90] sm:$0xff] %v3469_v14  ;;  %v3839_v26 = vpop.permute.xlu1 %3838  ;;  %v7980_v60 = vor.u32 %v8569_v21, %v7979_v0  ;;  %v7931_v21 = vld [vmem:[#allocation2 + $0x220] sm:$0xf]  ;;  %v8557_v14 = vld [vmem:[#allocation2 + $0x22c] sm:$0xf0] }
 0x476   : > { %3924 = vrot.lane.b32.xlu2 %v14262_v10, %s8790_s19  ;;  %v3853_v29 = vsel %vm864_vm6, %v11961_v42, %v3839_v26  ;;  %v3861_v27 = vsel %vm864_vm6, %v3839_v26, %v11961_v42  ;;  %v8501_v26 = vld [vmem:[#allocation2 + $0x6c] sm:$0xf0]  ;;  %v7691_v46 = vld [vmem:[#allocation2 + $0x40] sm:$0xf] }
 0x477   : > { %v3870_v10 = vmul.f32 %v3853_v29, %v14255_v24  ;;  %v3871_v33 = vmul.f32 %v3861_v27, %v14256_v22  ;;  %5729 = vmatpush.bf16.msra.mxu2 %v7980_v60  ;;  %v3837_v1 = vpop.permute.xlu0 %3836 }
 0x478   : > { %v12035_v51 = vpop.permute.xlu2 %3498  ;;  %v3852_v45 = vsel %vm864_vm6, %v3821_v6, %v3837_v1  ;;  %v3860_v17 = vsel %vm864_vm6, %v3837_v1, %v3821_v6  ;;  %v7723_v6 = vld [vmem:[#allocation2 + $0x80] sm:$0xf] }
 0x479   : > { %v3885_v3 = vpack.c.bf16 %v3871_v33, %v3870_v10  ;;  %v3868_v37 = vmul.f32 %v3852_v45, %v14255_v24  ;;  %v3869_v42 = vmul.f32 %v3860_v17, %v14256_v22 }
 0x47b   : > { %3893 = vst [vmem:[#allocation2 + $0x390] sm:$0xff] %v3885_v3  ;;  %v3884_v39 = vpack.c.bf16 %v3869_v42, %v3868_v37  ;;  %5730 = vmatpush.bf16.msra.mxu2 %v7964_v49  ;;  %3904 = vrot.lane.b32.xlu1 %v14275_v19, %s8790_s19  ;;  %v8497_v42 = vld [vmem:[#allocation2 + $0x4c] sm:$0xf0]  ;;  %v7915_v49 = vld [vmem:[#allocation2 + $0x200] sm:$0xf] }
 0x47c   : > { %v8505_v58 = vld [vmem:[#allocation2 + $0x8c] sm:$0xf0] }
 0x47d   : > { %3926 = vrot.lane.b32.xlu0 %v14263_v50, %s8790_s19  ;;  %3892 = vst [vmem:[#allocation2 + $0x380] sm:$0xff] %v3884_v39  ;;  %v3581_v59 = vpop.permute.xlu1 %3580  ;;  %v7724_v7 = vor.u32 %v8505_v58, %v7723_v6  ;;  %v7707_v50 = vld [vmem:[#allocation2 + $0x60] sm:$0xf]  ;;  %v7901_v39 = vld [vmem:[#allocation2 + $0x1f0] sm:$0xf0]  ;;  %v7692_v58 = vor.u32 %v8497_v42, %v7691_v46 }
 0x47e   : > { %3906 = vrot.lane.b32.xlu2 %v14277_v40, %s8790_s19  ;;  %v3596_v0 = vsel %vm599_vm3, %v11977_v18, %v3581_v59  ;;  %v3604_v19 = vsel %vm599_vm3, %v3581_v59, %v11977_v18  ;;  %v7932_v18 = vor.u32 %v8557_v14, %v7931_v21  ;;  %v7708_v17 = vor.u32 %v8501_v26, %v7707_v50  ;;  %v8553_v59 = vld [vmem:[#allocation2 + $0x20c] sm:$0xf0]  ;;  %v7885_v50 = vld [vmem:[#allocation2 + $0x1d0] sm:$0xf0] }
 0x47f   : > { %v3612_v60 = vmul.f32 %v3604_v19, %v14257_v53  ;;  %v3613_v29 = vmul.f32 %v3596_v0, %v14258_v63  ;;  %5671 = vmatpush.bf16.msrb.mxu0 %v7724_v7  ;;  %5731 = vmatpush.bf16.msra.mxu2 %v7948_v61  ;;  %v3567_v27 = vpop.permute.xlu0 %3566  ;;  %v7916_v61 = vor.u32 %v8553_v59, %v7915_v49  ;;  %v8493_v21 = vld [vmem:[#allocation2 + $0x2c] sm:$0xf0]  ;;  %v7675_v0 = vld [vmem:[#allocation2 + $0x20] sm:$0xf]  ;;  %v8543_v19 = vld [vmem:[#allocation2 + $0x1c4] sm:$0xf] }
 0x480   : > { %v12057_v40 = vpop.permute.xlu2 %3748  ;;  %v3597_v16 = vsel %vm599_vm3, %v3567_v27, %v11997_v25  ;;  %v3605_v10 = vsel %vm599_vm3, %v11997_v25, %v3567_v27  ;;  %v7904_v14 = vor.u32 %v8547_v30, %v7901_v39  ;;  %v14286_v26 = vld [vmem:[#allocation13_spill] sm:$0xff]  ;;  %v8539_v49 = vld [vmem:[#allocation2 + $0x1a4] sm:$0xf] }
 0x481   : > { %v3628_v33 = vpack.c.bf16 %v3613_v29, %v3612_v60  ;;  %v3614_v1 = vmul.f32 %v3605_v10, %v14257_v53  ;;  %v3615_v45 = vmul.f32 %v3597_v16, %v14258_v63  ;;  %v14287_v29 = vld [vmem:[#allocation14_spill] sm:$0xff]  ;;  %v7676_v16 = vor.u32 %v8493_v21, %v7675_v0  ;;  %v7659_v10 = vld [vmem:[#allocation2] sm:$0xf]  ;;  %v14289_v0 = vld [vmem:[#allocation8_spill] sm:$0xff] }
 0x482   : > { %v8601_v3 = vld [vmem:[#allocation2 + $0x38c] sm:$0xf0] }
 0x483   : > { %3636 = vst [vmem:[#allocation2 + $0x180] sm:$0xff] %v3628_v33  ;;  %v3629_v37 = vpack.c.bf16 %v3615_v45, %v3614_v1  ;;  %5672 = vmatpush.bf16.msrb.mxu0 %v7708_v17  ;;  %5732 = vmatpush.bf16.msra.mxu2 %v7932_v18  ;;  %v8489_v18 = vld [vmem:[#allocation2 + $0xc] sm:$0xf0]  ;;  %v7888_v45 = vor.u32 %v8543_v19, %v7885_v50  ;;  %v7869_v17 = vld [vmem:[#allocation2 + $0x1b0] sm:$0xf0] }
 0x484   : > { %3922 = vrot.lane.b32.xlu1 %v14279_v43, %s8790_s19  ;;  %v8107_v25 = vld [vmem:[#allocation2 + $0x380] sm:$0xf] }
 0x485   : > { %3637 = vst [vmem:[#allocation2 + $0x190] sm:$0xff] %v3629_v37  ;;  %3920 = vrot.lane.b32.xlu0 %v14280_v47, %s8790_s19  ;;  %v3755_v6 = vpop.permute.xlu1 %3754  ;;  %v8108_v32 = vor.u32 %v8601_v3, %v8107_v25  ;;  %v7660_v3 = vor.u32 %v8489_v18, %v7659_v10 }
 0x486   : > { %3900 = vrot.lane.b32.xlu2 %v14284_v28, %s8790_s19 }
 0x487   : > { %5673 = vmatpush.bf16.msrb.mxu0 %v7692_v58  ;;  %5758 = vmatpush.bf16.msrb.mxu3 %v8108_v32  ;;  %v3753_v43 = vpop.permute.xlu0 %3752 }
 0x488   : > { %v12075_v7 = vpop.permute.xlu2 %3766  ;;  %v3778_v28 = vsel %vm781_vm5, %v3753_v43, %v12013_v4  ;;  %v3786_v47 = vsel %vm781_vm5, %v12013_v4, %v3753_v43  ;;  %5733 = vmatpush.bf16.msra.mxu2 %v7916_v61 }
 0x489   : > { %v3800_v60 = vmul.f32 %v3778_v28, %v14286_v26  ;;  %v3801_v27 = vmul.f32 %v3786_v47, %v14287_v29  ;;  %v14288_v28 = vld [vmem:[#allocation7_spill] sm:$0xff] }
 0x48a   : > { %v7851_v33 = vld [vmem:[#allocation2 + $0x180] sm:$0xf]  ;;  %v8535_v39 = vld [vmem:[#allocation2 + $0x184] sm:$0xf] }
 0x48b   : > { %v3810_v1 = vpack.c.bf16 %v3801_v27, %v3800_v60  ;;  %5674 = vmatpush.bf16.msrb.mxu0 %v7676_v16 }
 0x48c   : > { %5842 = vmatpush.bf16.msrb.mxu2 %v7904_v14  ;;  %3916 = vrot.lane.b32.xlu1 %v11200_v11, %s8790_s19  ;;  %v8537_v4 = vld [vmem:[#allocation2 + $0x18c] sm:$0xf0]  ;;  %v7872_v11 = vor.u32 %v8539_v49, %v7869_v17  ;;  %v7853_v58 = vld [vmem:[#allocation2 + $0x190] sm:$0xf0] }
 0x48d   : > { %3818 = vst [vmem:[#allocation2 + $0x360] sm:$0xff] %v3810_v1  ;;  %3902 = vrot.lane.b32.xlu0 %v11096_v54, %s8790_s19  ;;  %v3497_v46 = vpop.permute.xlu1 %3496  ;;  %v7852_v37 = vor.u32 %v8537_v4, %v7851_v33  ;;  %v7856_v61 = vor.u32 %v8535_v39, %v7853_v58 }
 0x48e   : > { %3918 = vrot.lane.b32.xlu2 %v11098_v31, %s8790_s19 }
 0x48f   : > { %5675 = vmatpush.bf16.msrb.mxu0 %v7660_v3  ;;  %5700 = vmatpush.bf16.msrb.mxu1 %v7852_v37  ;;  %v3771_v25 = vpop.permute.xlu0 %3770 }
 0x490   : > { %5843 = vmatpush.bf16.msrb.mxu2 %v7888_v45  ;;  %v12091_v42 = vpop.permute.xlu2 %3508  ;;  %v3779_v31 = vsel %vm781_vm5, %v3755_v6, %v3771_v25  ;;  %v3787_v30 = vsel %vm781_vm5, %v3771_v25, %v3755_v6 }
 0x491   : > { %v3802_v54 = vmul.f32 %v3779_v31, %v14286_v26  ;;  %v3803_v32 = vmul.f32 %v3787_v30, %v14287_v29 }
 0x493   : > { %v3811_v59 = vpack.c.bf16 %v3803_v32, %v3802_v54 }
 0x494   : > { %5844 = vmatpush.bf16.msrb.mxu2 %v7872_v11  ;;  %4074 = vrot.lane.b32.xlu1 %v11895_v23, %s8784_s9  ;;  %v8091_v33 = vld [vmem:[#allocation2 + $0x360] sm:$0xf] }
 0x495   : > { %3819 = vst [vmem:[#allocation2 + $0x370] sm:$0xff] %v3811_v59  ;;  %4072 = vrot.lane.b32.xlu0 %v11863_v9, %s8784_s9  ;;  %v3515_v6 = vpop.permute.xlu1 %3514 }
 0x496   : > { %4088 = vrot.lane.b32.xlu2 %v11865_v55, %s8784_s9  ;;  %v3523_v21 = vsel %vm516_vm2, %v12035_v51, %v3515_v6  ;;  %v3531_v43 = vsel %vm516_vm2, %v3515_v6, %v12035_v51 }
 0x497   : > { %v3546_v47 = vmul.f32 %v3531_v43, %v14288_v28  ;;  %v3547_v19 = vmul.f32 %v3523_v21, %v14289_v0  ;;  %v3513_v50 = vpop.permute.xlu0 %3512 }
 0x498   : > { %5845 = vmatpush.bf16.msrb.mxu2 %v7856_v61  ;;  %v12111_v14 = vpop.permute.xlu2 %3746  ;;  %v3522_v60 = vsel %vm516_vm2, %v3497_v46, %v3513_v50  ;;  %v3530_v27 = vsel %vm516_vm2, %v3513_v50, %v3497_v46 }
 0x499   : > { %v3555_v16 = vpack.c.bf16 %v3547_v19, %v3546_v47  ;;  %v3544_v10 = vmul.f32 %v3530_v27, %v14288_v28  ;;  %v3545_v18 = vmul.f32 %v3522_v60, %v14289_v0 }
 0x49b   : > { %3563 = vst [vmem:[#allocation2 + $0x170] sm:$0xff] %v3555_v16  ;;  %v3554_v51 = vpack.c.bf16 %v3545_v18, %v3544_v10 }
 0x49c   : > { %4232 = vrot.lane.b32.xlu1 %v11863_v9, %s8786_s15  ;;  %v8597_v1 = vld [vmem:[#allocation2 + $0x36c] sm:$0xf0] }
 0x49d   : > { %3562 = vst [vmem:[#allocation2 + $0x160] sm:$0xff] %v3554_v51  ;;  %4090 = vrot.lane.b32.xlu0 %v11897_v57, %s8784_s9  ;;  %v3765_v45 = vpop.permute.xlu1 %3764  ;;  %v8092_v4 = vor.u32 %v8597_v1, %v8091_v33 }
 0x49e   : > { %4234 = vrot.lane.b32.xlu2 %v11895_v23, %s8786_s15  ;;  %v3776_v17 = vsel %vm781_vm5, %v12057_v40, %v3765_v45  ;;  %v3784_v46 = vsel %vm781_vm5, %v3765_v45, %v12057_v40 }
 0x49f   : > { %v3796_v37 = vmul.f32 %v3776_v17, %v14286_v26  ;;  %v3797_v49 = vmul.f32 %v3784_v46, %v14287_v29  ;;  %5759 = vmatpush.bf16.msrb.mxu3 %v8092_v4  ;;  %v3751_v25 = vpop.permute.xlu0 %3750 }
 0x4a0   : > { %v12133_v3 = vpop.permute.xlu2 %3488  ;;  %v3777_v11 = vsel %vm781_vm5, %v3751_v25, %v12075_v7  ;;  %v3785_v31 = vsel %vm781_vm5, %v12075_v7, %v3751_v25 }
 0x4a1   : > { %v3808_v30 = vpack.c.bf16 %v3797_v49, %v3796_v37  ;;  %v3798_v39 = vmul.f32 %v3777_v11, %v14286_v26  ;;  %v3799_v40 = vmul.f32 %v3785_v31, %v14287_v29 }
 0x4a2   : > { %v8533_v58 = vld [vmem:[#allocation2 + $0x16c] sm:$0xf0]  ;;  %v7837_v54 = vld [vmem:[#allocation2 + $0x170] sm:$0xf0] }
 0x4a3   : > { %3816 = vst [vmem:[#allocation2 + $0x340] sm:$0xff] %v3808_v30  ;;  %v3809_v32 = vpack.c.bf16 %v3799_v40, %v3798_v39 }
 0x4a4   : > { %4250 = vrot.lane.b32.xlu1 %v11897_v57, %s8786_s15  ;;  %v7835_v59 = vld [vmem:[#allocation2 + $0x160] sm:$0xf]  ;;  %v8531_v61 = vld [vmem:[#allocation2 + $0x164] sm:$0xf] }
 0x4a5   : > { %3817 = vst [vmem:[#allocation2 + $0x350] sm:$0xff] %v3809_v32  ;;  %4248 = vrot.lane.b32.xlu0 %v11865_v55, %s8786_s15  ;;  %v3495_v7 = vpop.permute.xlu1 %3494  ;;  %v7836_v6 = vor.u32 %v8533_v58, %v7835_v59  ;;  %v7840_v21 = vor.u32 %v8531_v61, %v7837_v54 }
 0x4a6   : > { %4068 = vrot.lane.b32.xlu2 %v11804_v15, %s8784_s9 }
 0x4a7   : > { %5701 = vmatpush.bf16.msrb.mxu1 %v7836_v6  ;;  %v3493_v47 = vpop.permute.xlu0 %3492  ;;  %5846 = vmatpush.bf16.msrb.mxu2 %v7840_v21 }
 0x4a8   : > { %v12151_v43 = vpop.permute.xlu2 %3506  ;;  %v3520_v19 = vsel %vm516_vm2, %v3493_v47, %v12091_v42  ;;  %v3528_v50 = vsel %vm516_vm2, %v12091_v42, %v3493_v47 }
 0x4a9   : > { %v3540_v60 = vmul.f32 %v3528_v50, %v14288_v28  ;;  %v3541_v27 = vmul.f32 %v3520_v19, %v14289_v0 }
 0x4aa   : > { %v8075_v16 = vld [vmem:[#allocation2 + $0x340] sm:$0xf] }
 0x4ab   : > { %v3552_v10 = vpack.c.bf16 %v3541_v27, %v3540_v60 }
 0x4ac   : > { %4084 = vrot.lane.b32.xlu1 %v11806_v62, %s8784_s9  ;;  %v8593_v18 = vld [vmem:[#allocation2 + $0x34c] sm:$0xf0] }
 0x4ad   : > { %3560 = vst [vmem:[#allocation2 + $0x140] sm:$0xff] %v3552_v10  ;;  %4070 = vrot.lane.b32.xlu0 %v11828_v56, %s8784_s9  ;;  %v3745_v51 = vpop.permute.xlu1 %3744  ;;  %v8076_v33 = vor.u32 %v8593_v18, %v8075_v16 }
 0x4ae   : > { %4086 = vrot.lane.b32.xlu2 %v11830_v2, %s8784_s9 }
 0x4af   : > { %5760 = vmatpush.bf16.msrb.mxu3 %v8076_v33  ;;  %v3511_v1 = vpop.permute.xlu0 %3510 }
 0x4b0   : > { %v12167_v42 = vpop.permute.xlu2 %3756  ;;  %v3521_v45 = vsel %vm516_vm2, %v3495_v7, %v3511_v1  ;;  %v3529_v4 = vsel %vm516_vm2, %v3511_v1, %v3495_v7 }
 0x4b1   : > { %v3542_v17 = vmul.f32 %v3529_v4, %v14288_v28  ;;  %v3543_v46 = vmul.f32 %v3521_v45, %v14289_v0 }
 0x4b3   : > { %v3553_v37 = vpack.c.bf16 %v3543_v46, %v3542_v17 }
 0x4b4   : > { %4230 = vrot.lane.b32.xlu1 %v11828_v56, %s8786_s15  ;;  %v7819_v7 = vld [vmem:[#allocation2 + $0x140] sm:$0xf]  ;;  %v8527_v21 = vld [vmem:[#allocation2 + $0x144] sm:$0xf] }
 0x4b5   : > { %3561 = vst [vmem:[#allocation2 + $0x150] sm:$0xff] %v3553_v37  ;;  %4228 = vrot.lane.b32.xlu0 %v11804_v15, %s8786_s15  ;;  %v3763_v49 = vpop.permute.xlu1 %3762 }
 0x4b6   : > { %4244 = vrot.lane.b32.xlu2 %v11806_v62, %s8786_s15  ;;  %v3775_v25 = vsel %vm781_vm5, %v12111_v14, %v3763_v49  ;;  %v3783_v11 = vsel %vm781_vm5, %v3763_v49, %v12111_v14 }
 0x4b7   : > { %v3794_v30 = vmul.f32 %v3775_v25, %v14286_v26  ;;  %v3795_v39 = vmul.f32 %v3783_v11, %v14287_v29  ;;  %v3761_v40 = vpop.permute.xlu0 %3760 }
 0x4b8   : > { %v12187_v31 = vpop.permute.xlu2 %3486  ;;  %v3774_v58 = vsel %vm781_vm5, %v3745_v51, %v3761_v40  ;;  %v3782_v54 = vsel %vm781_vm5, %v3761_v40, %v3745_v51 }
 0x4b9   : > { %v3807_v32 = vpack.c.bf16 %v3795_v39, %v3794_v30  ;;  %v3792_v59 = vmul.f32 %v3774_v58, %v14286_v26  ;;  %v3793_v61 = vmul.f32 %v3782_v54, %v14287_v29 }
 0x4bb   : > { %3815 = vst [vmem:[#allocation2 + $0x330] sm:$0xff] %v3807_v32  ;;  %v3806_v14 = vpack.c.bf16 %v3793_v61, %v3792_v59 }
 0x4bc   : > { %4064 = vrot.lane.b32.xlu1 %v11741_v13, %s8784_s9  ;;  %v8529_v6 = vld [vmem:[#allocation2 + $0x14c] sm:$0xf0]  ;;  %v7821_v47 = vld [vmem:[#allocation2 + $0x150] sm:$0xf0] }
 0x4bd   : > { %3814 = vst [vmem:[#allocation2 + $0x320] sm:$0xff] %v3806_v14  ;;  %4246 = vrot.lane.b32.xlu0 %v11830_v2, %s8786_s15  ;;  %v3505_v19 = vpop.permute.xlu1 %3504  ;;  %v7820_v50 = vor.u32 %v8529_v6, %v7819_v7  ;;  %v7824_v60 = vor.u32 %v8527_v21, %v7821_v47 }
 0x4be   : > { %4066 = vrot.lane.b32.xlu2 %v11775_v36, %s8784_s9  ;;  %v3518_v27 = vsel %vm516_vm2, %v12133_v3, %v3505_v19  ;;  %v3526_v16 = vsel %vm516_vm2, %v3505_v19, %v12133_v3 }
 0x4bf   : > { %v3536_v18 = vmul.f32 %v3526_v16, %v14288_v28  ;;  %v3537_v51 = vmul.f32 %v3518_v27, %v14289_v0  ;;  %5702 = vmatpush.bf16.msrb.mxu1 %v7820_v50  ;;  %v3491_v33 = vpop.permute.xlu0 %3490  ;;  %5847 = vmatpush.bf16.msrb.mxu2 %v7824_v60 }
 0x4c0   : > { %v12209_v10 = vpop.permute.xlu2 %3912  ;;  %v3519_v1 = vsel %vm516_vm2, %v3491_v33, %v12151_v43  ;;  %v3527_v45 = vsel %vm516_vm2, %v12151_v43, %v3491_v33 }
 0x4c1   : > { %v3550_v4 = vpack.c.bf16 %v3537_v51, %v3536_v18  ;;  %v3538_v3 = vmul.f32 %v3527_v45, %v14288_v28  ;;  %v3539_v17 = vmul.f32 %v3519_v1, %v14289_v0 }
 0x4c2   : > { %v8589_v46 = vld [vmem:[#allocation2 + $0x32c] sm:$0xf0] }
 0x4c3   : > { %3558 = vst [vmem:[#allocation2 + $0x120] sm:$0xff] %v3550_v4  ;;  %v3551_v37 = vpack.c.bf16 %v3539_v17, %v3538_v3 }
 0x4c4   : > { %4082 = vrot.lane.b32.xlu1 %v11777_v5, %s8784_s9  ;;  %v8059_v49 = vld [vmem:[#allocation2 + $0x320] sm:$0xf] }
 0x4c5   : > { %3559 = vst [vmem:[#allocation2 + $0x130] sm:$0xff] %v3551_v37  ;;  %4080 = vrot.lane.b32.xlu0 %v11743_v44, %s8784_s9  ;;  %v3743_v43 = vpop.permute.xlu1 %3742  ;;  %v8060_v25 = vor.u32 %v8589_v46, %v8059_v49 }
 0x4c6   : > { %4224 = vrot.lane.b32.xlu2 %v11741_v13, %s8786_s15 }
 0x4c7   : > { %5761 = vmatpush.bf16.msrb.mxu3 %v8060_v25  ;;  %v3741_v30 = vpop.permute.xlu0 %3740 }
 0x4c8   : > { %v12227_v11 = vpop.permute.xlu2 %3930  ;;  %v3772_v39 = vsel %vm781_vm5, %v3741_v30, %v12167_v42  ;;  %v3780_v40 = vsel %vm781_vm5, %v12167_v42, %v3741_v30  ;;  %v8579_v30 = vld [vmem:[#allocation2 + $0x2e4] sm:$0xf] }
 0x4c9   : > { %v3788_v58 = vmul.f32 %v3772_v39, %v14286_v26  ;;  %v3789_v54 = vmul.f32 %v3780_v40, %v14287_v29  ;;  %v8029_v39 = vld [vmem:[#allocation2 + $0x2f0] sm:$0xf0] }
 0x4ca   : > { %v7803_v32 = vld [vmem:[#allocation2 + $0x120] sm:$0xf]  ;;  %v8523_v59 = vld [vmem:[#allocation2 + $0x124] sm:$0xf] }
 0x4cb   : > { %v3804_v61 = vpack.c.bf16 %v3789_v54, %v3788_v58 }
 0x4cc   : > { %4240 = vrot.lane.b32.xlu1 %v11743_v44, %s8786_s15  ;;  %v8525_v14 = vld [vmem:[#allocation2 + $0x12c] sm:$0xf0]  ;;  %v7805_v7 = vld [vmem:[#allocation2 + $0x130] sm:$0xf0] }
 0x4cd   : > { %3812 = vst [vmem:[#allocation2 + $0x300] sm:$0xff] %v3804_v61  ;;  %4226 = vrot.lane.b32.xlu0 %v11775_v36, %s8786_s15  ;;  %v3485_v42 = vpop.permute.xlu1 %3484  ;;  %v7804_v6 = vor.u32 %v8525_v14, %v7803_v32  ;;  %v7808_v21 = vor.u32 %v8523_v59, %v7805_v7  ;;  %v8032_v7 = vor.u32 %v8579_v30, %v8029_v39 }
 0x4ce   : > { %4242 = vrot.lane.b32.xlu2 %v11777_v5, %s8786_s15 }
 0x4cf   : > { %5703 = vmatpush.bf16.msrb.mxu1 %v7804_v6  ;;  %v3759_v19 = vpop.permute.xlu0 %3758  ;;  %5848 = vmatpush.bf16.msrb.mxu2 %v7808_v21  ;;  %v12296_v21 = vld [vmem:[%s13993_s1 + $0x18] ss:$0 sm:$0xff] }
 0x4d0   : > { %v12243_v47 = vpop.permute.xlu2 %3924  ;;  %v3773_v50 = vsel %vm781_vm5, %v3743_v43, %v3759_v19  ;;  %v3781_v60 = vsel %vm781_vm5, %v3759_v19, %v3743_v43 }
 0x4d1   : > { %v3790_v27 = vmul.f32 %v3773_v50, %v14286_v26  ;;  %v3791_v16 = vmul.f32 %v3781_v60, %v14287_v29  ;;  %v8013_v60 = vld [vmem:[#allocation2 + $0x2d0] sm:$0xf0] }
 0x4d3   : > { %v3805_v18 = vpack.c.bf16 %v3791_v16, %v3790_v27 }
 0x4d4   : > { %4062 = vrot.lane.b32.xlu1 %v11704_v38, %s8784_s9  ;;  %v8043_v40 = vld [vmem:[#allocation2 + $0x300] sm:$0xf] }
 0x4d5   : > { %3813 = vst [vmem:[#allocation2 + $0x310] sm:$0xff] %v3805_v18  ;;  %4060 = vrot.lane.b32.xlu0 %v11672_v34, %s8784_s9  ;;  %v3503_v51 = vpop.permute.xlu1 %3502 }
 0x4d6   : > { %4076 = vrot.lane.b32.xlu2 %v11674_v48, %s8784_s9  ;;  %v3517_v33 = vsel %vm516_vm2, %v12187_v31, %v3503_v51  ;;  %v3525_v1 = vsel %vm516_vm2, %v3503_v51, %v12187_v31 }
 0x4d7   : > { %v3534_v4 = vmul.f32 %v3525_v1, %v14288_v28  ;;  %v3535_v3 = vmul.f32 %v3517_v33, %v14289_v0  ;;  %v3501_v17 = vpop.permute.xlu0 %3500  ;;  %v8515_v1 = vld [vmem:[#allocation2 + $0xe4] sm:$0xf] }
 0x4d8   : > { %v12263_v45 = vpop.permute.xlu2 %3906  ;;  %v3516_v46 = vsel %vm516_vm2, %v3485_v42, %v3501_v17  ;;  %v3524_v37 = vsel %vm516_vm2, %v3501_v17, %v3485_v42  ;;  %v12290_v42 = vld [vmem:[%s13993_s1 + $0x10] ss:$0 sm:$0xff] }
 0x4d9   : > { %v3549_v49 = vpack.c.bf16 %v3535_v3, %v3534_v4  ;;  %v3532_v43 = vmul.f32 %v3524_v37, %v14288_v28  ;;  %v3533_v25 = vmul.f32 %v3516_v46, %v14289_v0  ;;  %v7773_v46 = vld [vmem:[#allocation2 + $0xf0] sm:$0xf0] }
 0x4db   : > { %3557 = vst [vmem:[#allocation2 + $0x110] sm:$0xff] %v3549_v49  ;;  %v3548_v31 = vpack.c.bf16 %v3533_v25, %v3532_v43  ;;  %v8571_v49 = vld [vmem:[#allocation2 + $0x2a4] sm:$0xf]  ;;  %v7997_v43 = vld [vmem:[#allocation2 + $0x2b0] sm:$0xf0] }
 0x4dc   : > { %4220 = vrot.lane.b32.xlu1 %v11672_v34, %s8786_s15  ;;  %v8585_v58 = vld [vmem:[#allocation2 + $0x30c] sm:$0xf0] }
 0x4dd   : > { %3556 = vst [vmem:[#allocation2 + $0x100] sm:$0xff] %v3548_v31  ;;  %4078 = vrot.lane.b32.xlu0 %v11706_v41, %s8784_s9  ;;  %v3929_v54 = vpop.permute.xlu1 %3928  ;;  %v8044_v32 = vor.u32 %v8585_v58, %v8043_v40  ;;  %v8467_v40 = vld [vmem:[%s13995_s3 + $0x4] sm:$0xf]  ;;  %v7581_v58 = vld [vmem:[%s13995_s3 + $0x14] sm:$0xf0] }
 0x4de   : > { %4222 = vrot.lane.b32.xlu2 %v11704_v38, %s8786_s15  ;;  %v3938_v59 = vsel %vm947_vm7, %v12209_v10, %v3929_v54  ;;  %v3946_v61 = vsel %vm947_vm7, %v3929_v54, %v12209_v10  ;;  %v8575_v10 = vld [vmem:[#allocation2 + $0x2c4] sm:$0xf] }
 0x4df   : > { %v3960_v6 = vmul.f32 %v12290_v42, %v3938_v59  ;;  %v3961_v19 = vmul.f32 %v12296_v21, %v3946_v61  ;;  %5762 = vmatpush.bf16.msrb.mxu3 %v8044_v32  ;;  %v3915_v50 = vpop.permute.xlu0 %3914  ;;  %v8016_v4 = vor.u32 %v8575_v10, %v8013_v60  ;;  %v7776_v32 = vor.u32 %v8515_v1, %v7773_v46  ;;  %v8511_v61 = vld [vmem:[#allocation2 + $0xc4] sm:$0xf]  ;;  %v7981_v10 = vld [vmem:[#allocation2 + $0x290] sm:$0xf0] }
 0x4e0   : > { %v12285_v14 = vpop.permute.xlu2 %3900  ;;  %v3939_v27 = vsel %vm947_vm7, %v3915_v50, %v12227_v11  ;;  %v3947_v16 = vsel %vm947_vm7, %v12227_v11, %v3915_v50  ;;  %v8000_v59 = vor.u32 %v8571_v49, %v7997_v43  ;;  %v8567_v50 = vld [vmem:[#allocation2 + $0x284] sm:$0xf]  ;;  %v7965_v46 = vld [vmem:[#allocation2 + $0x270] sm:$0xf0] }
 0x4e1   : > { %v3970_v18 = vpack.c.bf16 %v3961_v19, %v3960_v6  ;;  %v3962_v51 = vmul.f32 %v12290_v42, %v3939_v27  ;;  %v3963_v33 = vmul.f32 %v12296_v21, %v3947_v16  ;;  %v7757_v19 = vld [vmem:[#allocation2 + $0xd0] sm:$0xf0]  ;;  %v8563_v43 = vld [vmem:[#allocation2 + $0x264] sm:$0xf] }
 0x4e2   : > { %v8521_v3 = vld [vmem:[#allocation2 + $0x10c] sm:$0xf0]  ;;  %v7789_v17 = vld [vmem:[#allocation2 + $0x110] sm:$0xf0] }
 0x4e3   : > { %5871 = vmatpush.bf16.msra.mxu3 %v8032_v7  ;;  %3978 = vst [vmem:[#allocation2 + $0x460] sm:$0xff] %v3970_v18  ;;  %v3971_v37 = vpack.c.bf16 %v3963_v33, %v3962_v51  ;;  %v12321_v7 = vor.u32 %v8467_v40, %v7581_v58  ;;  %v7760_v51 = vor.u32 %v8511_v61, %v7757_v19  ;;  %v7725_v40 = vld [vmem:[#allocation2 + $0x90] sm:$0xf0]  ;;  %v7579_v61 = vld [vmem:[%s13995_s3] sm:$0xf] }
 0x4e4   : > { %4238 = vrot.lane.b32.xlu1 %v11706_v41, %s8786_s15  ;;  %v7787_v11 = vld [vmem:[#allocation2 + $0x100] sm:$0xf]  ;;  %v8519_v25 = vld [vmem:[#allocation2 + $0x104] sm:$0xf]  ;;  %v7984_v33 = vor.u32 %v8567_v50, %v7981_v10  ;;  %v7949_v58 = vld [vmem:[#allocation2 + $0x250] sm:$0xf0] }
 0x4e5   : > { %3979 = vst [vmem:[#allocation2 + $0x470] sm:$0xff] %v3971_v37  ;;  %4236 = vrot.lane.b32.xlu0 %v11674_v48, %s8786_s15  ;;  %v3911_v31 = vpop.permute.xlu1 %3910  ;;  %v7788_v30 = vor.u32 %v8521_v3, %v7787_v11  ;;  %v7792_v39 = vor.u32 %v8519_v25, %v7789_v17  ;;  %v8507_v3 = vld [vmem:[#allocation2 + $0xa4] sm:$0xf]  ;;  %v7741_v17 = vld [vmem:[#allocation2 + $0xb0] sm:$0xf0] }
 0x4e6   : > { %3992 = vrot.lane.b32.xlu2 %v11863_v9, %s8783_s8  ;;  %v7744_v25 = vor.u32 %v8507_v3, %v7741_v17  ;;  %v8503_v10 = vld [vmem:[#allocation2 + $0x84] sm:$0xf] }
 0x4e7   : > { %5872 = vmatpush.bf16.msra.mxu3 %v8016_v4  ;;  %5704 = vmatpush.bf16.msrb.mxu1 %v7788_v30  ;;  %v3909_v6 = vpop.permute.xlu0 %3908  ;;  %v7968_v30 = vor.u32 %v8563_v43, %v7965_v46 }
 0x4e8   : > { %v12319_v54 = vpop.permute.xlu2 %3918  ;;  %5849 = vmatpush.bf16.msrb.mxu2 %v7792_v39  ;;  %v3936_v60 = vsel %vm947_vm7, %v3909_v6, %v12243_v47  ;;  %v3944_v27 = vsel %vm947_vm7, %v12243_v47, %v3909_v6  ;;  %v8469_v6 = vld [vmem:[%s13995_s3 + $0x10] sm:$0xf0] }
 0x4e9   : > { %v3956_v16 = vmul.f32 %v12290_v42, %v3936_v60  ;;  %v3957_v18 = vmul.f32 %v12296_v21, %v3944_v27  ;;  %v8559_v60 = vld [vmem:[#allocation2 + $0x244] sm:$0xf]  ;;  %v12352_v27 = vor.u32 %v8469_v6, %v7579_v61 }
 0x4ea   : > { %v8219_v1 = vld [vmem:[#allocation2 + $0x460] sm:$0xf]  ;;  %5705 = vmatmul.bf16.vlgmr.msrb.gmra.mxu1 %v12321_v7 }
 0x4eb   : > { %5813 = vmatpush.bf16.msra.mxu1 %v7776_v32  ;;  %5873 = vmatpush.bf16.msra.mxu3 %v8000_v59  ;;  %v3968_v4 = vpack.c.bf16 %v3957_v18, %v3956_v16  ;;  %v7728_v16 = vor.u32 %v8503_v10, %v7725_v40  ;;  %v7917_v10 = vld [vmem:[#allocation2 + $0x210] sm:$0xf0] }
 0x4ec   : > { %v8629_v37 = vld [vmem:[#allocation2 + $0x46c] sm:$0xf0]  ;;  %4008 = vrot.lane.b32.xlu1 %v11865_v55, %s8783_s8  ;;  %5676 = vmatmul.bf16.vlgmr.msrb.gmra.mxu0 %v12352_v27 }
 0x4ed   : > { %3976 = vst [vmem:[#allocation2 + $0x440] sm:$0xff] %v3968_v4  ;;  %v3905_v47 = vpop.permute.xlu1 %3904  ;;  %v8220_v49 = vor.u32 %v8629_v37, %v8219_v1  ;;  %3994 = vrot.lane.b32.xlu0 %v11895_v23, %s8783_s8  ;;  %v8555_v1 = vld [vmem:[#allocation2 + $0x224] sm:$0xf]  ;;  %v7933_v4 = vld [vmem:[#allocation2 + $0x230] sm:$0xf0] }
 0x4ee   : > { %4010 = vrot.lane.b32.xlu2 %v11897_v57, %s8783_s8 }
 0x4ef   : > { %5814 = vmatpush.bf16.msra.mxu1 %v7760_v51  ;;  %5874 = vmatpush.bf16.msra.mxu3 %v7984_v33  ;;  %v3927_v39 = vpop.permute.xlu0 %3926  ;;  %v8499_v51 = vld [vmem:[#allocation2 + $0x64] sm:$0xf]  ;;  %v7709_v33 = vld [vmem:[#allocation2 + $0x70] sm:$0xf0] }
 0x4f0   : > { %v12338_v11 = vpop.permute.xlu2 %4088  ;;  %5788 = vmatpush.bf16.msra.mxu0 %v8220_v49  ;;  %v3937_v32 = vsel %vm947_vm7, %v3911_v31, %v3927_v39  ;;  %v3945_v59 = vsel %vm947_vm7, %v3927_v39, %v3911_v31  ;;  %v7952_v31 = vor.u32 %v8559_v60, %v7949_v58  ;;  %v7712_v46 = vor.u32 %v8499_v51, %v7709_v33  ;;  %v8491_v33 = vld [vmem:[#allocation2 + $0x24] sm:$0xf] }
 0x4f1   : > { %v3958_v19 = vmul.f32 %v12290_v42, %v3937_v32  ;;  %v3959_v50 = vmul.f32 %v12296_v21, %v3945_v59  ;;  %v8551_v59 = vld [vmem:[#allocation2 + $0x204] sm:$0xf] }
 0x4f3   : > { %5815 = vmatpush.bf16.msra.mxu1 %v7744_v25  ;;  %5875 = vmatpush.bf16.msra.mxu3 %v7968_v30  ;;  %v3969_v18 = vpack.c.bf16 %v3959_v50, %v3958_v19  ;;  %v7936_v25 = vor.u32 %v8555_v1, %v7933_v4  ;;  %v8495_v30 = vld [vmem:[#allocation2 + $0x44] sm:$0xf] }
 0x4f4   : > { %4154 = vrot.lane.b32.xlu1 %v11895_v23, %s8785_s10 }
 0x4f5   : > { %3977 = vst [vmem:[#allocation2 + $0x450] sm:$0xff] %v3969_v18  ;;  %4152 = vrot.lane.b32.xlu0 %v11863_v9, %s8785_s10  ;;  %v8203_v18 = vld [vmem:[#allocation2 + $0x440] sm:$0xf] }
 0x4f6   : > { %4168 = vrot.lane.b32.xlu2 %v11865_v55, %s8785_s10  ;;  %v3923_v3 = vpop.permute.xlu1 %3922 }
 0x4f7   : > { %5816 = vmatpush.bf16.msra.mxu1 %v7728_v16  ;;  %5876 = vmatpush.bf16.msra.mxu3 %v7952_v31  ;;  %v3935_v37 = vsel %vm947_vm7, %v12263_v45, %v3923_v3  ;;  %v3943_v49 = vsel %vm947_vm7, %v3923_v3, %v12263_v45  ;;  %v3921_v43 = vpop.permute.xlu0 %3920  ;;  %v7693_v45 = vld [vmem:[#allocation2 + $0x50] sm:$0xf0]  ;;  %v7920_v16 = vor.u32 %v8551_v59, %v7917_v10  ;;  %v8627_v59 = vld [vmem:[#allocation2 + $0x464] sm:$0xf] }
 0x4f8   : > { %v12361_v17 = vpop.permute.xlu2 %4234  ;;  %v3954_v39 = vmul.f32 %v12290_v42, %v3935_v37  ;;  %v3955_v40 = vmul.f32 %v12296_v21, %v3943_v49  ;;  %v3934_v58 = vsel %vm947_vm7, %v3905_v47, %v3921_v43  ;;  %v3942_v32 = vsel %vm947_vm7, %v3921_v43, %v3905_v47  ;;  %v7677_v31 = vld [vmem:[#allocation2 + $0x30] sm:$0xf0] }
 0x4f9   : > { %v3952_v61 = vmul.f32 %v12290_v42, %v3934_v58  ;;  %v3953_v6 = vmul.f32 %v12296_v21, %v3942_v32  ;;  %v7696_v50 = vor.u32 %v8495_v30, %v7693_v45  ;;  %v7680_v3 = vor.u32 %v8491_v33, %v7677_v31  ;;  %v7587_v30 = vld [vmem:[%s13995_s3 + $0x8] sm:$0xf]  ;;  %v8468_v33 = vld [vmem:[%s13995_s3 + $0xc] sm:$0xf] }
 0x4fa   : > { %v3967_v19 = vpack.c.bf16 %v3955_v40, %v3954_v39  ;;  %v8470_v39 = vld [vmem:[%s13995_s3 + $0x18] sm:$0xf0] }
 0x4fb   : > { %5817 = vmatpush.bf16.msra.mxu1 %v7712_v46  ;;  %5877 = vmatpush.bf16.msra.mxu3 %v7936_v25  ;;  %v3966_v60 = vpack.c.bf16 %v3953_v6, %v3952_v61  ;;  %v7661_v46 = vld [vmem:[#allocation2 + $0x10] sm:$0xf0]  ;;  %v8487_v25 = vld [vmem:[#allocation2 + $0x4] sm:$0xf] }
 0x4fc   : > { %3975 = vst [vmem:[#allocation2 + $0x430] sm:$0xff] %v3967_v19  ;;  %v8625_v51 = vld [vmem:[#allocation2 + $0x44c] sm:$0xf0]  ;;  %3988 = vrot.lane.b32.xlu1 %v11804_v15, %s8783_s8  ;;  %v8221_v61 = vld [vmem:[#allocation2 + $0x470] sm:$0xf0]  ;;  %v12407_v19 = vor.u32 %v8470_v39, %v7587_v30  ;;  %v7664_v10 = vor.u32 %v8487_v25, %v7661_v46 }
 0x4fd   : > { %3974 = vst [vmem:[#allocation2 + $0x420] sm:$0xff] %v3966_v60  ;;  %v8204_v47 = vor.u32 %v8625_v51, %v8203_v18  ;;  %4170 = vrot.lane.b32.xlu0 %v11897_v57, %s8785_s10 }
 0x4fe   : > { %3990 = vrot.lane.b32.xlu2 %v11828_v56, %s8783_s8  ;;  %v3917_v1 = vpop.permute.xlu1 %3916  ;;  %14290 = vst [vmem:[#allocation62_spill] sm:$0xff] %v12407_v19  ;;  %5734 = vmatmul.bf16.vlgmr.msra.gmra.mxu2 %v12407_v19 }
 0x4ff   : > { %5818 = vmatpush.bf16.msra.mxu1 %v7696_v50  ;;  %5878 = vmatpush.bf16.msra.mxu3 %v7920_v16  ;;  %v3932_v37 = vsel %vm947_vm7, %v12285_v14, %v3917_v1  ;;  %v3940_v49 = vsel %vm947_vm7, %v3917_v1, %v12285_v14  ;;  %v3903_v43 = vpop.permute.xlu0 %3902  ;;  %v8224_v16 = vor.u32 %v8627_v59, %v8221_v61  ;;  %v7589_v1 = vld [vmem:[%s13995_s3 + $0x1c] sm:$0xf0]  ;;  %v8157_v59 = vld [vmem:[#allocation2 + $0x3f0] sm:$0xf0] }
 0x500   : > { %v12383_v4 = vpop.permute.xlu2 %4068  ;;  %5789 = vmatpush.bf16.msra.mxu0 %v8204_v47  ;;  %v3948_v40 = vmul.f32 %v12290_v42, %v3932_v37  ;;  %v3949_v58 = vmul.f32 %v12296_v21, %v3940_v49  ;;  %v3933_v32 = vsel %vm947_vm7, %v3903_v43, %v12319_v54  ;;  %v3941_v14 = vsel %vm947_vm7, %v12319_v54, %v3903_v43  ;;  %v8205_v54 = vld [vmem:[#allocation2 + $0x450] sm:$0xf0]  ;;  %v8623_v47 = vld [vmem:[#allocation2 + $0x444] sm:$0xf] }
 0x501   : > { %v3950_v6 = vmul.f32 %v12290_v42, %v3933_v32  ;;  %v3951_v45 = vmul.f32 %v12296_v21, %v3941_v14  ;;  %v8208_v46 = vor.u32 %v8623_v47, %v8205_v54  ;;  %v12424_v37 = vor.u32 %v8468_v33, %v7589_v1  ;;  %v8141_v54 = vld [vmem:[#allocation2 + $0x3d0] sm:$0xf0] }
 0x502   : > { %v3964_v50 = vpack.c.bf16 %v3949_v58, %v3948_v40 }
 0x503   : > { %5819 = vmatpush.bf16.msra.mxu1 %v7680_v3  ;;  %v3965_v60 = vpack.c.bf16 %v3951_v45, %v3950_v6  ;;  %v8621_v31 = vld [vmem:[#allocation2 + $0x42c] sm:$0xf0]  ;;  %v8189_v30 = vld [vmem:[#allocation2 + $0x430] sm:$0xf0]  ;;  %5763 = vmatmul.bf16.vlgmr.msrb.gmra.mxu3 %v12424_v37 }
 0x504   : > { %3972 = vst [vmem:[#allocation2 + $0x400] sm:$0xff] %v3964_v50  ;;  %v8187_v18 = vld [vmem:[#allocation2 + $0x420] sm:$0xf]  ;;  %4006 = vrot.lane.b32.xlu1 %v11830_v2, %s8783_s8  ;;  %v8619_v25 = vld [vmem:[#allocation2 + $0x424] sm:$0xf] }
 0x505   : > { %3973 = vst [vmem:[#allocation2 + $0x410] sm:$0xff] %v3965_v60  ;;  %v8188_v42 = vor.u32 %v8621_v31, %v8187_v18  ;;  %4004 = vrot.lane.b32.xlu0 %v11806_v62, %s8783_s8  ;;  %v8192_v32 = vor.u32 %v8619_v25, %v8189_v30  ;;  %v8611_v50 = vld [vmem:[#allocation2 + $0x3e4] sm:$0xf]  ;;  %v8125_v25 = vld [vmem:[#allocation2 + $0x3b0] sm:$0xf0] }
 0x506   : > { %4148 = vrot.lane.b32.xlu2 %v11804_v15, %s8785_s10  ;;  %v4075_v21 = vpop.permute.xlu1 %4074 }
 0x507   : > { %5820 = vmatpush.bf16.msra.mxu1 %v7664_v10  ;;  %5790 = vmatpush.bf16.msra.mxu0 %v8188_v42  ;;  %v4073_v3 = vpop.permute.xlu0 %4072 }
 0x508   : > { %v12416_v51 = vpop.permute.xlu2 %4086  ;;  %v4098_v49 = vsel %vm433_vm1, %v4073_v3, %v12338_v11  ;;  %v4106_v43 = vsel %vm433_vm1, %v12338_v11, %v4073_v3  ;;  %v8607_v3 = vld [vmem:[#allocation2 + $0x3c4] sm:$0xf] }
 0x509   : > { %v4120_v39 = vmul.f32 %v4106_v43, %v14252_v12  ;;  %v4121_v40 = vmul.f32 %v4098_v49, %v14253_v52  ;;  %v8603_v43 = vld [vmem:[#allocation2 + $0x3a4] sm:$0xf] }
 0x50b   : > { %5933 = vmatpush.bf16.msrb.mxu1 %v8224_v16  ;;  %v4130_v58 = vpack.c.bf16 %v4121_v40, %v4120_v39  ;;  %v8171_v14 = vld [vmem:[#allocation2 + $0x400] sm:$0xf]  ;;  %v8615_v6 = vld [vmem:[#allocation2 + $0x404] sm:$0xf]  ;;  %v8160_v16 = vor.u32 %v8611_v50, %v8157_v59  ;;  %v8128_v39 = vor.u32 %v8603_v43, %v8125_v25  ;;  %v7599_v40 = vld [vmem:[%s13995_s3 + $0x28] sm:$0xf] }
 0x50c   : > { %v8617_v61 = vld [vmem:[#allocation2 + $0x40c] sm:$0xf0]  ;;  %v8173_v45 = vld [vmem:[#allocation2 + $0x410] sm:$0xf0]  ;;  %4164 = vrot.lane.b32.xlu1 %v11806_v62, %s8785_s10  ;;  %v8595_v25 = vld [vmem:[#allocation2 + $0x364] sm:$0xf] }
 0x50d   : > { %4138 = vst [vmem:[#allocation2 + $0xe8] sm:$0xff] %v4130_v58  ;;  %v8172_v11 = vor.u32 %v8617_v61, %v8171_v14  ;;  %4150 = vrot.lane.b32.xlu0 %v11828_v56, %s8785_s10  ;;  %v8176_v18 = vor.u32 %v8615_v6, %v8173_v45  ;;  %v8474_v58 = vld [vmem:[%s13995_s3 + $0x38] sm:$0xf0]  ;;  %v8599_v61 = vld [vmem:[#allocation2 + $0x384] sm:$0xf] }
 0x50e   : > { %4166 = vrot.lane.b32.xlu2 %v11830_v2, %s8785_s10  ;;  %v4233_v10 = vpop.permute.xlu1 %4232  ;;  %v8109_v6 = vld [vmem:[#allocation2 + $0x390] sm:$0xf0]  ;;  %v12469_v45 = vor.u32 %v8474_v58, %v7599_v40 }
 0x50f   : > { %5934 = vmatpush.bf16.msrb.mxu1 %v8208_v46  ;;  %5791 = vmatpush.bf16.msra.mxu0 %v8172_v11  ;;  %v4091_v31 = vpop.permute.xlu0 %4090  ;;  %v8144_v46 = vor.u32 %v8607_v3, %v8141_v54  ;;  %v8093_v3 = vld [vmem:[#allocation2 + $0x370] sm:$0xf0] }
 0x510   : > { %v12441_v60 = vpop.permute.xlu2 %4244  ;;  %v4099_v42 = vsel %vm433_vm1, %v4075_v21, %v4091_v31  ;;  %v4107_v47 = vsel %vm433_vm1, %v4091_v31, %v4075_v21  ;;  %5681 = vmatmul.bf16.gmra.mxu0 %v12469_v45  ;;  %v8096_v40 = vor.u32 %v8595_v25, %v8093_v3  ;;  %v8479_v25 = vld [vmem:[%s13995_s3 + $0x60] sm:$0xf0] }
 0x511   : > { %v4122_v33 = vmul.f32 %v4107_v47, %v14252_v12  ;;  %v4123_v1 = vmul.f32 %v4099_v42, %v14253_v52 }
 0x513   : > { %5935 = vmatpush.bf16.msrb.mxu1 %v8192_v32  ;;  %5900 = vmatpush.bf16.msrb.mxu0 %v8160_v16  ;;  %v4131_v49 = vpack.c.bf16 %v4123_v1, %v4122_v33  ;;  %v8112_v1 = vor.u32 %v8599_v61, %v8109_v6  ;;  %v8077_v61 = vld [vmem:[#allocation2 + $0x350] sm:$0xf0] }
 0x514   : > { %3986 = vrot.lane.b32.xlu1 %v11775_v36, %s8783_s8 }
 0x515   : > { %4139 = vst [vmem:[#allocation2 + $0xf8] sm:$0xff] %v4131_v49  ;;  %3984 = vrot.lane.b32.xlu0 %v11741_v13, %s8783_s8 }
 0x516   : > { %4000 = vrot.lane.b32.xlu2 %v11743_v44, %s8783_s8  ;;  %v4251_v21 = vpop.permute.xlu1 %4250 }
 0x517   : > { %5936 = vmatpush.bf16.msrb.mxu1 %v8176_v18  ;;  %5901 = vmatpush.bf16.msrb.mxu0 %v8144_v46  ;;  %v4259_v32 = vsel %vm599_vm3, %v12361_v17, %v4251_v21  ;;  %v4267_v14 = vsel %vm599_vm3, %v4251_v21, %v12361_v17  ;;  %v4249_v59 = vpop.permute.xlu0 %4248  ;;  %v8472_v17 = vld [vmem:[%s13995_s3 + $0x2c] sm:$0xf]  ;;  %v7601_v18 = vld [vmem:[%s13995_s3 + $0x3c] sm:$0xf0]  ;;  %v7779_v46 = vld [vmem:[#allocation2 + $0xe8] sm:$0xf] }
 0x518   : > { %v12455_v30 = vpop.permute.xlu2 %4066  ;;  %v4282_v11 = vmul.f32 %v4267_v14, %v14257_v53  ;;  %v4283_v50 = vmul.f32 %v4259_v32, %v14258_v63  ;;  %v4258_v16 = vsel %vm599_vm3, %v4233_v10, %v4249_v59  ;;  %v4266_v31 = vsel %vm599_vm3, %v4249_v59, %v4233_v10  ;;  %v8591_v59 = vld [vmem:[#allocation2 + $0x344] sm:$0xf] }
 0x519   : > { %v4280_v54 = vmul.f32 %v4266_v31, %v14257_v53  ;;  %v4281_v42 = vmul.f32 %v4258_v16, %v14258_v63  ;;  %v12486_v47 = vor.u32 %v8472_v17, %v7601_v18  ;;  %v8080_v18 = vor.u32 %v8591_v59, %v8077_v61  ;;  %v8477_v59 = vld [vmem:[%s13995_s3 + $0x54] sm:$0xf]  ;;  %v7621_v61 = vld [vmem:[%s13995_s3 + $0x64] sm:$0xf0] }
 0x51a   : > { %v4291_v33 = vpack.c.bf16 %v4283_v50, %v4282_v11 }
 0x51b   : > { %5902 = vmatpush.bf16.msrb.mxu0 %v8128_v39  ;;  %v4290_v10 = vpack.c.bf16 %v4281_v42, %v4280_v54  ;;  %5710 = vmatmul.bf16.gmra.mxu1 %v12486_v47 }
 0x51c   : > { %4299 = vst [vmem:[#allocation2 + $0x1f8] sm:$0xff] %v4291_v33  ;;  %v8518_v49 = vld [vmem:[#allocation2 + $0xf4] sm:$0xf0]  ;;  %4144 = vrot.lane.b32.xlu1 %v11741_v13, %s8785_s10  ;;  %v8587_v33 = vld [vmem:[#allocation2 + $0x324] sm:$0xf] }
 0x51d   : > { %4298 = vst [vmem:[#allocation2 + $0x1e8] sm:$0xff] %v4290_v10  ;;  %v7780_v43 = vor.u32 %v8518_v49, %v7779_v46  ;;  %4002 = vrot.lane.b32.xlu0 %v11777_v5, %s8783_s8 }
 0x51e   : > { %4146 = vrot.lane.b32.xlu2 %v11775_v36, %s8785_s10  ;;  %v4085_v21 = vpop.permute.xlu1 %4084 }
 0x51f   : > { %5903 = vmatpush.bf16.msrb.mxu0 %v8112_v1  ;;  %v4096_v58 = vsel %vm433_vm1, %v12383_v4, %v4085_v21  ;;  %v4104_v32 = vsel %vm433_vm1, %v4085_v21, %v12383_v4  ;;  %v4071_v14 = vpop.permute.xlu0 %4070  ;;  %5958 = vmatpush.bf16.msra.mxu2 %v7780_v43  ;;  %v8061_v1 = vld [vmem:[#allocation2 + $0x330] sm:$0xf0]  ;;  %v7619_v43 = vld [vmem:[%s13995_s3 + $0x50] sm:$0xf] }
 0x520   : > { %v12495_v39 = vpop.permute.xlu2 %4224  ;;  %v4116_v6 = vmul.f32 %v4104_v32, %v14252_v12  ;;  %v4117_v11 = vmul.f32 %v4096_v58, %v14253_v52  ;;  %v4097_v50 = vsel %vm433_vm1, %v4071_v14, %v12416_v51  ;;  %v4105_v16 = vsel %vm433_vm1, %v12416_v51, %v4071_v14 }
 0x521   : > { %v4118_v31 = vmul.f32 %v4105_v16, %v14252_v12  ;;  %v4119_v4 = vmul.f32 %v4097_v50, %v14253_v52  ;;  %v8064_v49 = vor.u32 %v8587_v33, %v8061_v1  ;;  %v12527_v58 = vor.u32 %v8479_v25, %v7619_v43  ;;  %v8583_v50 = vld [vmem:[#allocation2 + $0x304] sm:$0xf] }
 0x522   : > { %v4128_v17 = vpack.c.bf16 %v4117_v11, %v4116_v6  ;;  %v12544_v16 = vor.u32 %v8477_v59, %v7621_v61 }
 0x523   : > { %5904 = vmatpush.bf16.msrb.mxu0 %v8096_v40  ;;  %v4129_v54 = vpack.c.bf16 %v4119_v4, %v4118_v31  ;;  %v8550_v42 = vld [vmem:[#allocation2 + $0x1f4] sm:$0xf0]  ;;  %v8045_v40 = vld [vmem:[#allocation2 + $0x310] sm:$0xf0] }
 0x524   : > { %4136 = vst [vmem:[#allocation2 + $0xc8] sm:$0xff] %v4128_v17  ;;  %v7907_v10 = vld [vmem:[#allocation2 + $0x1e8] sm:$0xf]  ;;  %4162 = vrot.lane.b32.xlu1 %v11777_v5, %s8785_s10  ;;  %5686 = vmatmul.bf16.gmra.mxu0 %v12527_v58  ;;  %v8048_v31 = vor.u32 %v8583_v50, %v8045_v40  ;;  %v8484_v40 = vld [vmem:[%s13995_s3 + $0x88] sm:$0xf0] }
 0x525   : > { %4137 = vst [vmem:[#allocation2 + $0xd8] sm:$0xff] %v4129_v54  ;;  %v7908_v3 = vor.u32 %v8550_v42, %v7907_v10  ;;  %4160 = vrot.lane.b32.xlu0 %v11743_v44, %s8785_s10 }
 0x526   : > { %3980 = vrot.lane.b32.xlu2 %v11672_v34, %s8783_s8  ;;  %v4231_v51 = vpop.permute.xlu1 %4230  ;;  %14291 = vst [vmem:[#allocation42_spill] sm:$0xff] %v12544_v16 }
 0x527   : > { %5905 = vmatpush.bf16.msrb.mxu0 %v8080_v18  ;;  %v4229_v21 = vpop.permute.xlu0 %4228  ;;  %5987 = vmatpush.bf16.msrb.mxu3 %v7908_v3 }
 0x528   : > { %v12519_v46 = vpop.permute.xlu2 %4242  ;;  %v4256_v32 = vsel %vm599_vm3, %v4229_v21, %v12441_v60  ;;  %v4264_v14 = vsel %vm599_vm3, %v12441_v60, %v4229_v21 }
 0x529   : > { %v4276_v6 = vmul.f32 %v4264_v14, %v14257_v53  ;;  %v4277_v11 = vmul.f32 %v4256_v32, %v14258_v63 }
 0x52b   : > { %5906 = vmatpush.bf16.msrb.mxu0 %v8064_v49  ;;  %v4288_v60 = vpack.c.bf16 %v4277_v11, %v4276_v6  ;;  %v7763_v4 = vld [vmem:[#allocation2 + $0xc8] sm:$0xf]  ;;  %5715 = vmatmul.bf16.gmra.mxu1 %v12544_v16 }
 0x52c   : > { %v8514_v17 = vld [vmem:[#allocation2 + $0xd4] sm:$0xf0]  ;;  %3996 = vrot.lane.b32.xlu1 %v11674_v48, %s8783_s8 }
 0x52d   : > { %4296 = vst [vmem:[#allocation2 + $0x1c8] sm:$0xff] %v4288_v60  ;;  %v7764_v18 = vor.u32 %v8514_v17, %v7763_v4  ;;  %3982 = vrot.lane.b32.xlu0 %v11704_v38, %s8783_s8  ;;  %v8482_v60 = vld [vmem:[%s13995_s3 + $0x7c] sm:$0xf] }
 0x52e   : > { %3998 = vrot.lane.b32.xlu2 %v11706_v41, %s8783_s8  ;;  %v4065_v54 = vpop.permute.xlu1 %4064 }
 0x52f   : > { %5907 = vmatpush.bf16.msrb.mxu0 %v8048_v31  ;;  %v4247_v33 = vpop.permute.xlu0 %4246  ;;  %5959 = vmatpush.bf16.msra.mxu2 %v7764_v18 }
 0x530   : > { %v12553_v42 = vpop.permute.xlu2 %4076  ;;  %v4257_v1 = vsel %vm599_vm3, %v4231_v51, %v4247_v33  ;;  %v4265_v10 = vsel %vm599_vm3, %v4247_v33, %v4231_v51  ;;  %v7639_v51 = vld [vmem:[%s13995_s3 + $0x78] sm:$0xf] }
 0x531   : > { %v4278_v3 = vmul.f32 %v4265_v10, %v14257_v53  ;;  %v4279_v49 = vmul.f32 %v4257_v1, %v14258_v63  ;;  %v12581_v61 = vor.u32 %v8484_v40, %v7639_v51 }
 0x533   : > { %v4289_v43 = vpack.c.bf16 %v4279_v49, %v4278_v3 }
 0x534   : > { %4142 = vrot.lane.b32.xlu1 %v11704_v38, %s8785_s10  ;;  %5691 = vmatmul.bf16.gmra.mxu0 %v12581_v61 }
 0x535   : > { %4297 = vst [vmem:[#allocation2 + $0x1d8] sm:$0xff] %v4289_v43  ;;  %4140 = vrot.lane.b32.xlu0 %v11672_v34, %s8785_s10 }
 0x536   : > { %4156 = vrot.lane.b32.xlu2 %v11674_v48, %s8785_s10  ;;  %v4083_v25 = vpop.permute.xlu1 %4082 }
 0x537   : > { %v4095_v32 = vsel %vm433_vm1, %v12455_v30, %v4083_v25  ;;  %v4103_v14 = vsel %vm433_vm1, %v4083_v25, %v12455_v30  ;;  %v4081_v59 = vpop.permute.xlu0 %4080  ;;  %v7641_v30 = vld [vmem:[%s13995_s3 + $0x8c] sm:$0xf0] }
 0x538   : > { %v12567_v21 = vpop.permute.xlu2 %4222  ;;  %v4114_v6 = vmul.f32 %v4103_v14, %v14252_v12  ;;  %v4115_v11 = vmul.f32 %v4095_v32, %v14253_v52  ;;  %v4094_v50 = vsel %vm433_vm1, %v4065_v54, %v4081_v59  ;;  %v4102_v31 = vsel %vm433_vm1, %v4081_v59, %v4065_v54  ;;  %v7891_v54 = vld [vmem:[#allocation2 + $0x1c8] sm:$0xf] }
 0x539   : > { %v4112_v4 = vmul.f32 %v4102_v31, %v14252_v12  ;;  %v4113_v17 = vmul.f32 %v4094_v50, %v14253_v52  ;;  %v12598_v18 = vor.u32 %v8482_v60, %v7641_v30 }
 0x53a   : > { %v4127_v33 = vpack.c.bf16 %v4115_v11, %v4114_v6 }
 0x53b   : > { %14292 = vst [vmem:[#allocation32_spill] sm:$0xff] %v12598_v18  ;;  %v4126_v1 = vpack.c.bf16 %v4113_v17, %v4112_v4  ;;  %5720 = vmatmul.bf16.gmra.mxu1 %v12598_v18  ;;  %v7595_v17 = vld [vmem:[%s13995_s3 + $0x10] sm:$0xf] }
 0x53c   : > { %4135 = vst [vmem:[#allocation2 + $0xb8] sm:$0xff] %v4127_v33  ;;  %v8546_v10 = vld [vmem:[#allocation2 + $0x1d4] sm:$0xf0]  ;;  %4328 = vrot.lane.b32.xlu1 %v11863_v9, %s8787_s16  ;;  %v8471_v33 = vld [vmem:[%s13995_s3 + $0x20] sm:$0xf0] }
 0x53d   : > { %4134 = vst [vmem:[#allocation2 + $0xa8] sm:$0xff] %v4126_v1  ;;  %v7892_v3 = vor.u32 %v8546_v10, %v7891_v54  ;;  %4158 = vrot.lane.b32.xlu0 %v11706_v41, %s8785_s10  ;;  %v12639_v10 = vor.u32 %v8471_v33, %v7595_v17 }
 0x53e   : > { %4330 = vrot.lane.b32.xlu2 %v11895_v23, %s8787_s16  ;;  %v4241_v49 = vpop.permute.xlu1 %4240 }
 0x53f   : > { %v4254_v43 = vsel %vm599_vm3, %v12495_v39, %v4241_v49  ;;  %v4262_v25 = vsel %vm599_vm3, %v4241_v49, %v12495_v39  ;;  %v4227_v40 = vpop.permute.xlu0 %4226  ;;  %5988 = vmatpush.bf16.msrb.mxu3 %v7892_v3 }
 0x540   : > { %v12613_v51 = vpop.permute.xlu2 %3992  ;;  %v4272_v32 = vmul.f32 %v4262_v25, %v14257_v53  ;;  %v4273_v14 = vmul.f32 %v4254_v43, %v14258_v63  ;;  %v4255_v59 = vsel %vm599_vm3, %v4227_v40, %v12519_v46  ;;  %v4263_v6 = vsel %vm599_vm3, %v12519_v46, %v4227_v40 }
 0x541   : > { %v4274_v11 = vmul.f32 %v4263_v6, %v14257_v53  ;;  %v4275_v39 = vmul.f32 %v4255_v59, %v14258_v63  ;;  %v7607_v59 = vld [vmem:[%s13995_s3 + $0x30] sm:$0xf] }
 0x542   : > { %v4286_v50 = vpack.c.bf16 %v4273_v14, %v4272_v32 }
 0x543   : > { %v4287_v31 = vpack.c.bf16 %v4275_v39, %v4274_v11  ;;  %v8510_v60 = vld [vmem:[#allocation2 + $0xb4] sm:$0xf0] }
 0x544   : > { %4294 = vst [vmem:[#allocation2 + $0x1a8] sm:$0xff] %v4286_v50  ;;  %v7747_v30 = vld [vmem:[#allocation2 + $0xa8] sm:$0xf]  ;;  %4346 = vrot.lane.b32.xlu1 %v11897_v57, %s8787_s16  ;;  %8233 = vmatmul.msk.bf16.vlgmr.msra.gmra.mxu0 %vm2699_vm8, %v12639_v10  ;;  %v8473_v50 = vld [vmem:[%s13995_s3 + $0x34] sm:$0xf] }
 0x545   : > { %4295 = vst [vmem:[#allocation2 + $0x1b8] sm:$0xff] %v4287_v31  ;;  %v7748_v4 = vor.u32 %v8510_v60, %v7747_v30  ;;  %4344 = vrot.lane.b32.xlu0 %v11865_v55, %s8787_s16  ;;  %v7609_v31 = vld [vmem:[%s13995_s3 + $0x44] sm:$0xf0] }
 0x546   : > { %4488 = vrot.lane.b32.xlu2 %v11863_v9, %s8789_s18  ;;  %v4063_v46 = vpop.permute.xlu1 %4062 }
 0x547   : > { %v4061_v54 = vpop.permute.xlu0 %4060  ;;  %5960 = vmatpush.bf16.msra.mxu2 %v7748_v4  ;;  %v12675_v4 = vor.u32 %v8473_v50, %v7609_v31 }
 0x548   : > { %v12637_v1 = vpop.permute.xlu2 %4010  ;;  %v4092_v3 = vsel %vm433_vm1, %v4061_v54, %v12553_v42  ;;  %v4100_v49 = vsel %vm433_vm1, %v12553_v42, %v4061_v54  ;;  %v8475_v42 = vld [vmem:[%s13995_s3 + $0x40] sm:$0xf0] }
 0x549   : > { %v4108_v43 = vmul.f32 %v4100_v49, %v14252_v12  ;;  %v4109_v25 = vmul.f32 %v4092_v3, %v14253_v52  ;;  %v12660_v11 = vor.u32 %v8475_v42, %v7607_v59  ;;  %14294 = vst [vmem:[#allocation34_spill] sm:$0xff] %v12675_v4  ;;  %5768 = vmatmul.bf16.gmra.mxu3 %v12675_v4 }
 0x54b   : > { %v4124_v40 = vpack.c.bf16 %v4109_v25, %v4108_v43  ;;  %v7875_v32 = vld [vmem:[#allocation2 + $0x1a8] sm:$0xf]  ;;  %5821 = vmatmul.bf16.vlgmr.msra.gmra.mxu1 %v12352_v27  ;;  %14293 = vst [vmem:[#allocation60_spill] sm:$0xff] %v12660_v11  ;;  %5739 = vmatmul.bf16.gmra.mxu2 %v12660_v11 }
 0x54c   : > { %v8542_v14 = vld [vmem:[#allocation2 + $0x1b4] sm:$0xf0]  ;;  %4504 = vrot.lane.b32.xlu1 %v11865_v55, %s8789_s18 }
 0x54d   : > { %4132 = vst [vmem:[#allocation2 + $0x88] sm:$0xff] %v4124_v40  ;;  %v7876_v6 = vor.u32 %v8542_v14, %v7875_v32  ;;  %4490 = vrot.lane.b32.xlu0 %v11895_v23, %s8789_s18 }
 0x54e   : > { %4506 = vrot.lane.b32.xlu2 %v11897_v57, %s8789_s18  ;;  %v4221_v39 = vpop.permute.xlu1 %4220 }
 0x54f   : > { %v4079_v30 = vpop.permute.xlu0 %4078  ;;  %5989 = vmatpush.bf16.msrb.mxu3 %v7876_v6 }
 0x550   : > { %v12672_v60 = vpop.permute.xlu2 %4168  ;;  %v4093_v17 = vsel %vm433_vm1, %v4063_v46, %v4079_v30  ;;  %v4101_v33 = vsel %vm433_vm1, %v4079_v30, %v4063_v46 }
 0x551   : > { %v4110_v54 = vmul.f32 %v4101_v33, %v14252_v12  ;;  %v4111_v3 = vmul.f32 %v4093_v17, %v14253_v52  ;;  %v7615_v12 = vld [vmem:[%s13995_s3 + $0x38] sm:$0xf]  ;;  %v8476_v52 = vld [vmem:[%s13995_s3 + $0x48] sm:$0xf0] }
 0x552   : > { %v12702_v32 = vor.u32 %v8476_v52, %v7615_v12 }
 0x553   : > { %v4125_v49 = vpack.c.bf16 %v4111_v3, %v4110_v54  ;;  %v7627_v3 = vld [vmem:[%s13995_s3 + $0x58] sm:$0xf] }
 0x554   : > { %4326 = vrot.lane.b32.xlu1 %v11828_v56, %s8787_s16  ;;  %14295 = vst [vmem:[#allocation46_spill] sm:$0xff] %v12702_v32  ;;  %8234 = vmatmul.msk.bf16.gmra.mxu0 %vm2699_vm8, %v12702_v32  ;;  %v7731_v33 = vld [vmem:[#allocation2 + $0x88] sm:$0xf] }
 0x555   : > { %4133 = vst [vmem:[#allocation2 + $0x98] sm:$0xff] %v4125_v49  ;;  %4324 = vrot.lane.b32.xlu0 %v11804_v15, %s8787_s16  ;;  %v8478_v49 = vld [vmem:[%s13995_s3 + $0x5c] sm:$0xf] }
 0x556   : > { %4340 = vrot.lane.b32.xlu2 %v11806_v62, %s8787_s16  ;;  %v4239_v43 = vpop.permute.xlu1 %4238 }
 0x557   : > { %v4253_v46 = vsel %vm599_vm3, %v12567_v21, %v4239_v43  ;;  %v4261_v25 = vsel %vm599_vm3, %v4239_v43, %v12567_v21  ;;  %v4237_v40 = vpop.permute.xlu0 %4236  ;;  %v7629_v43 = vld [vmem:[%s13995_s3 + $0x6c] sm:$0xf0] }
 0x558   : > { %v4270_v14 = vmul.f32 %v4261_v25, %v14257_v53  ;;  %v4271_v59 = vmul.f32 %v4253_v46, %v14258_v63  ;;  %v12706_v42 = vpop.permute.xlu2 %3990  ;;  %v4252_v6 = vsel %vm599_vm3, %v4221_v39, %v4237_v40  ;;  %v4260_v50 = vsel %vm599_vm3, %v4237_v40, %v4221_v39 }
 0x559   : > { %v4268_v31 = vmul.f32 %v4260_v50, %v14257_v53  ;;  %v4269_v30 = vmul.f32 %v4252_v6, %v14258_v63  ;;  %v8480_v63 = vld [vmem:[%s13995_s3 + $0x68] sm:$0xf0]  ;;  %v12737_v52 = vor.u32 %v8478_v49, %v7629_v43  ;;  %v8481_v49 = vld [vmem:[%s13995_s3 + $0x70] sm:$0xf0] }
 0x55a   : > { %v4285_v21 = vpack.c.bf16 %v4271_v59, %v4270_v14  ;;  %v12729_v39 = vor.u32 %v8480_v63, %v7627_v3  ;;  %v14298_v59 = vld [vmem:[#allocation3_spill] sm:$0xff]  ;;  %v14299_v50 = vld [vmem:[#allocation4_spill] sm:$0xff] }
 0x55b   : > { %v4284_v17 = vpack.c.bf16 %v4269_v30, %v4268_v31  ;;  %5826 = vmatmul.bf16.gmra.mxu1 %v12469_v45  ;;  %14297 = vst [vmem:[#allocation58_spill] sm:$0xff] %v12737_v52  ;;  %5773 = vmatmul.bf16.gmra.mxu3 %v12737_v52 }
 0x55c   : > { %4293 = vst [vmem:[#allocation2 + $0x198] sm:$0xff] %v4285_v21  ;;  %v8506_v54 = vld [vmem:[#allocation2 + $0x94] sm:$0xf0]  ;;  %4484 = vrot.lane.b32.xlu1 %v11804_v15, %s8789_s18  ;;  %5744 = vmatmul.bf16.gmra.mxu2 %v12729_v39 }
 0x55d   : > { %4292 = vst [vmem:[#allocation2 + $0x188] sm:$0xff] %v4284_v17  ;;  %v7732_v53 = vor.u32 %v8506_v54, %v7731_v33  ;;  %4342 = vrot.lane.b32.xlu0 %v11830_v2, %s8787_s16 }
 0x55e   : > { %4486 = vrot.lane.b32.xlu2 %v11828_v56, %s8789_s18  ;;  %14296 = vst [vmem:[#allocation26_spill] sm:$0xff] %v12729_v39  ;;  %v4009_v12 = vpop.permute.xlu1 %4008 }
 0x55f   : > { %5961 = vmatpush.bf16.msra.mxu2 %v7732_v53  ;;  %v4018_v46 = vsel %vm350_vm0, %v12613_v51, %v4009_v12  ;;  %v4026_v25 = vsel %vm350_vm0, %v4009_v12, %v12613_v51  ;;  %v3995_v14 = vpop.permute.xlu0 %3994 }
 0x560   : > { %v12745_v40 = vpop.permute.xlu2 %4148  ;;  %v4040_v6 = vmul.f32 %v4026_v25, %v14298_v59  ;;  %v4041_v31 = vmul.f32 %v4018_v46, %v14299_v50  ;;  %v4019_v30 = vsel %vm350_vm0, %v3995_v14, %v12637_v1  ;;  %v4027_v21 = vsel %vm350_vm0, %v12637_v1, %v3995_v14  ;;  %v7635_v1 = vld [vmem:[%s13995_s3 + $0x60] sm:$0xf] }
 0x561   : > { %v4042_v51 = vmul.f32 %v4027_v21, %v14298_v59  ;;  %v4043_v17 = vmul.f32 %v4019_v30, %v14299_v50  ;;  %v12771_v12 = vor.u32 %v8481_v49, %v7635_v1 }
 0x562   : > { %v4050_v33 = vpack.c.bf16 %v4041_v31, %v4040_v6 }
 0x563   : > { %v8538_v54 = vld [vmem:[#allocation2 + $0x194] sm:$0xf0]  ;;  %v4051_v3 = vpack.c.bf16 %v4043_v17, %v4042_v51  ;;  %14300 = vst [vmem:[#allocation51_spill] sm:$0xff] %v12771_v12  ;;  %v7647_v17 = vld [vmem:[%s13995_s3 + $0x80] sm:$0xf] }
 0x564   : > { %v7859_v53 = vld [vmem:[#allocation2 + $0x188] sm:$0xf]  ;;  %4058 = vst [vmem:[#allocation2 + $0x68] sm:$0xff] %v4050_v33  ;;  %4502 = vrot.lane.b32.xlu1 %v11830_v2, %s8789_s18  ;;  %8235 = vmatmul.msk.bf16.gmra.mxu0 %vm2699_vm8, %v12771_v12  ;;  %v8485_v33 = vld [vmem:[%s13995_s3 + $0x90] sm:$0xf0] }
 0x565   : > { %v7860_v63 = vor.u32 %v8538_v54, %v7859_v53  ;;  %4059 = vst [vmem:[#allocation2 + $0x78] sm:$0xff] %v4051_v3  ;;  %4500 = vrot.lane.b32.xlu0 %v11806_v62, %s8789_s18  ;;  %v12794_v54 = vor.u32 %v8485_v33, %v7647_v17  ;;  %v8483_v53 = vld [vmem:[%s13995_s3 + $0x84] sm:$0xf]  ;;  %v8486_v17 = vld [vmem:[%s13995_s3 + $0x98] sm:$0xf0] }
 0x566   : > { %4320 = vrot.lane.b32.xlu2 %v11741_v13, %s8787_s16  ;;  %v4155_v43 = vpop.permute.xlu1 %4154 }
 0x567   : > { %5990 = vmatpush.bf16.msrb.mxu3 %v7860_v63  ;;  %v4153_v25 = vpop.permute.xlu0 %4152  ;;  %v7649_v63 = vld [vmem:[%s13995_s3 + $0x94] sm:$0xf0] }
 0x568   : > { %v12773_v46 = vpop.permute.xlu2 %4166  ;;  %v4178_v14 = vsel %vm516_vm2, %v4153_v25, %v12672_v60  ;;  %v4186_v6 = vsel %vm516_vm2, %v12672_v60, %v4153_v25  ;;  %v12806_v49 = vor.u32 %v8483_v53, %v7649_v63 }
 0x569   : > { %v4200_v31 = vmul.f32 %v4186_v6, %v14288_v28  ;;  %v4201_v30 = vmul.f32 %v4178_v14, %v14289_v0 }
 0x56a   : > { %14301 = vst [vmem:[#allocation50_spill] sm:$0xff] %v12806_v49 }
 0x56b   : > { %5831 = vmatmul.bf16.gmra.mxu1 %v12527_v58  ;;  %v4210_v21 = vpack.c.bf16 %v4201_v30, %v4200_v31  ;;  %v7715_v51 = vld [vmem:[#allocation2 + $0x68] sm:$0xf]  ;;  %5778 = vmatmul.bf16.gmra.mxu3 %v12806_v49 }
 0x56c   : > { %4336 = vrot.lane.b32.xlu1 %v11743_v44, %s8787_s16  ;;  %v8502_v60 = vld [vmem:[#allocation2 + $0x74] sm:$0xf0]  ;;  %5749 = vmatmul.bf16.gmra.mxu2 %v12794_v54 }
 0x56d   : > { %4218 = vst [vmem:[#allocation2 + $0x168] sm:$0xff] %v4210_v21  ;;  %4322 = vrot.lane.b32.xlu0 %v11775_v36, %s8787_s16  ;;  %v7716_v3 = vor.u32 %v8502_v60, %v7715_v51 }
 0x56e   : > { %4338 = vrot.lane.b32.xlu2 %v11777_v5, %s8787_s16  ;;  %v3989_v1 = vpop.permute.xlu1 %3988 }
 0x56f   : > { %v4171_v14 = vpop.permute.xlu0 %4170  ;;  %5962 = vmatpush.bf16.msra.mxu2 %v7716_v3 }
 0x570   : > { %v12808_v25 = vpop.permute.xlu2 %4000  ;;  %v4179_v6 = vsel %vm516_vm2, %v4155_v43, %v4171_v14  ;;  %v4187_v31 = vsel %vm516_vm2, %v4171_v14, %v4155_v43  ;;  %v7655_v43 = vld [vmem:[%s13995_s3 + $0x88] sm:$0xf] }
 0x571   : > { %v4202_v30 = vmul.f32 %v4187_v31, %v14288_v28  ;;  %v4203_v21 = vmul.f32 %v4179_v6, %v14289_v0  ;;  %v12830_v60 = vor.u32 %v8486_v17, %v7655_v43 }
 0x573   : > { %v4211_v51 = vpack.c.bf16 %v4203_v21, %v4202_v30  ;;  %14302 = vst [vmem:[#allocation54_spill] sm:$0xff] %v12830_v60 }
 0x574   : > { %4482 = vrot.lane.b32.xlu1 %v11775_v36, %s8789_s18  ;;  %8236 = vmatmul.msk.bf16.gmra.mxu0 %vm2699_vm8, %v12830_v60 }
 0x575   : > { %4219 = vst [vmem:[#allocation2 + $0x178] sm:$0xff] %v4211_v51  ;;  %4480 = vrot.lane.b32.xlu0 %v11741_v13, %s8789_s18 }
 0x576   : > { %4496 = vrot.lane.b32.xlu2 %v11743_v44, %s8789_s18  ;;  %v4007_v33 = vpop.permute.xlu1 %4006 }
 0x577   : > { %v4017_v3 = vsel %vm350_vm0, %v12706_v42, %v4007_v33  ;;  %v4025_v53 = vsel %vm350_vm0, %v4007_v33, %v12706_v42  ;;  %v4005_v14 = vpop.permute.xlu0 %4004  ;;  %v7843_v33 = vld [vmem:[#allocation2 + $0x168] sm:$0xf] }
 0x578   : > { %v12838_v63 = vpop.permute.xlu2 %4146  ;;  %v4038_v6 = vmul.f32 %v4025_v53, %v14298_v59  ;;  %v4039_v31 = vmul.f32 %v4017_v3, %v14299_v50  ;;  %v4016_v30 = vsel %vm350_vm0, %v3989_v1, %v4005_v14  ;;  %v4024_v21 = vsel %vm350_vm0, %v4005_v14, %v3989_v1 }
 0x579   : > { %v4036_v51 = vmul.f32 %v4024_v21, %v14298_v59  ;;  %v4037_v42 = vmul.f32 %v4016_v30, %v14299_v50 }
 0x57a   : > { %v4049_v43 = vpack.c.bf16 %v4039_v31, %v4038_v6 }
 0x57b   : > { %5836 = vmatmul.bf16.gmra.mxu1 %v12581_v61  ;;  %v4048_v17 = vpack.c.bf16 %v4037_v42, %v4036_v51  ;;  %5879 = vmatmul.bf16.vlgmr.msra.gmra.mxu3 %v12407_v19 }
 0x57c   : > { %4057 = vst [vmem:[#allocation2 + $0x58] sm:$0xff] %v4049_v43  ;;  %4316 = vrot.lane.b32.xlu1 %v11672_v34, %s8787_s16  ;;  %v8534_v3 = vld [vmem:[#allocation2 + $0x174] sm:$0xf0]  ;;  %5850 = vmatmul.bf16.vlgmr.msrb.gmra.mxu2 %v12321_v7 }
 0x57d   : > { %4056 = vst [vmem:[#allocation2 + $0x48] sm:$0xff] %v4048_v17  ;;  %4498 = vrot.lane.b32.xlu0 %v11777_v5, %s8789_s18  ;;  %v7844_v1 = vor.u32 %v8534_v3, %v7843_v33 }
 0x57e   : > { %4318 = vrot.lane.b32.xlu2 %v11704_v38, %s8787_s16  ;;  %v4165_v53 = vpop.permute.xlu1 %4164 }
 0x57f   : > { %v4176_v14 = vsel %vm516_vm2, %v12745_v40, %v4165_v53  ;;  %v4184_v6 = vsel %vm516_vm2, %v4165_v53, %v12745_v40  ;;  %v4151_v30 = vpop.permute.xlu0 %4150  ;;  %5991 = vmatpush.bf16.msrb.mxu3 %v7844_v1 }
 0x580   : > { %v12863_v31 = vpop.permute.xlu2 %3980  ;;  %v4196_v21 = vmul.f32 %v4184_v6, %v14288_v28  ;;  %v4197_v51 = vmul.f32 %v4176_v14, %v14289_v0  ;;  %v4177_v42 = vsel %vm516_vm2, %v4151_v30, %v12773_v46  ;;  %v4185_v43 = vsel %vm516_vm2, %v12773_v46, %v4151_v30  ;;  %v12883_v14 = vpop.f32.mrf.mxu0 }
 0x581   : > { %v4198_v40 = vmul.f32 %v4185_v43, %v14288_v28  ;;  %v4199_v17 = vmul.f32 %v4177_v42, %v14289_v0  ;;  %14303 = vst [vmem:[#allocation52_spill] sm:$0xff] %v12883_v14  ;;  %v12885_v6 = vpop.f32.mrf.mxu1 }
 0x582   : > { %v4208_v33 = vpack.c.bf16 %v4197_v51, %v4196_v21  ;;  %14304 = vst [vmem:[#allocation57_spill] sm:$0xff] %v12885_v6 }
 0x583   : > { %v4209_v3 = vpack.c.bf16 %v4199_v17, %v4198_v40  ;;  %v8498_v1 = vld [vmem:[#allocation2 + $0x54] sm:$0xf0] }
 0x584   : > { %4216 = vst [vmem:[#allocation2 + $0x148] sm:$0xff] %v4208_v33  ;;  %4334 = vrot.lane.b32.xlu1 %v11706_v41, %s8787_s16  ;;  %v7699_v53 = vld [vmem:[#allocation2 + $0x48] sm:$0xf]  ;;  %5908 = vmatmul.bf16.vlgmr.msrb.gmra.mxu0 %v12424_v37 }
 0x585   : > { %4217 = vst [vmem:[#allocation2 + $0x158] sm:$0xff] %v4209_v3  ;;  %4332 = vrot.lane.b32.xlu0 %v11674_v48, %s8787_s16  ;;  %v7700_v46 = vor.u32 %v8498_v1, %v7699_v53 }
 0x586   : > { %4476 = vrot.lane.b32.xlu2 %v11672_v34, %s8789_s18  ;;  %v3987_v30 = vpop.permute.xlu1 %3986 }
 0x587   : > { %v3985_v51 = vpop.permute.xlu0 %3984  ;;  %5963 = vmatpush.bf16.msra.mxu2 %v7700_v46 }
 0x588   : > { %v12887_v21 = vpop.permute.xlu2 %3998  ;;  %v4014_v42 = vsel %vm350_vm0, %v3985_v51, %v12808_v25  ;;  %v4022_v43 = vsel %vm350_vm0, %v12808_v25, %v3985_v51  ;;  %v12906_v53 = vpop.f32.mrf.mxu0 }
 0x589   : > { %v4032_v40 = vmul.f32 %v4022_v43, %v14298_v59  ;;  %v4033_v17 = vmul.f32 %v4014_v42, %v14299_v50  ;;  %14305 = vst [vmem:[#allocation27_spill] sm:$0xff] %v12906_v53  ;;  %v12908_v51 = vpop.f32.mrf.mxu1 }
 0x58a   : > { %14306 = vst [vmem:[#allocation19_spill] sm:$0xff] %v12908_v51 }
 0x58b   : > { %8237 = vmatmul.msk.bf16.vlgmr.msrb.gmra.mxu1 %vm2699_vm8, %v12639_v10  ;;  %v4046_v33 = vpack.c.bf16 %v4033_v17, %v4032_v40  ;;  %v7827_v3 = vld [vmem:[#allocation2 + $0x148] sm:$0xf]  ;;  %5884 = vmatmul.bf16.gmra.mxu3 %v12660_v11 }
 0x58c   : > { %4492 = vrot.lane.b32.xlu1 %v11674_v48, %s8789_s18  ;;  %v8530_v1 = vld [vmem:[#allocation2 + $0x154] sm:$0xf0]  ;;  %5855 = vmatmul.bf16.gmra.mxu2 %v12486_v47 }
 0x58d   : > { %4054 = vst [vmem:[#allocation2 + $0x28] sm:$0xff] %v4046_v33  ;;  %4478 = vrot.lane.b32.xlu0 %v11704_v38, %s8789_s18  ;;  %v7828_v25 = vor.u32 %v8530_v1, %v7827_v3 }
 0x58e   : > { %4494 = vrot.lane.b32.xlu2 %v11706_v41, %s8789_s18  ;;  %v4145_v46 = vpop.permute.xlu1 %4144 }
 0x58f   : > { %v4003_v43 = vpop.permute.xlu0 %4002  ;;  %5992 = vmatpush.bf16.msrb.mxu3 %v7828_v25 }
 0x590   : > { %v12910_v42 = vpop.permute.xlu2 %4156  ;;  %v4015_v40 = vsel %vm350_vm0, %v3987_v30, %v4003_v43  ;;  %v4023_v17 = vsel %vm350_vm0, %v4003_v43, %v3987_v30  ;;  %v12926_v30 = vpop.f32.mrf.mxu0 }
 0x591   : > { %v4034_v33 = vmul.f32 %v4023_v17, %v14298_v59  ;;  %v4035_v3 = vmul.f32 %v4015_v40, %v14299_v50  ;;  %14307 = vst [vmem:[#allocation28_spill] sm:$0xff] %v12926_v30 }
 0x593   : > { %v4047_v1 = vpack.c.bf16 %v4035_v3, %v4034_v33 }
 0x594   : > { %4570 = vrot.lane.b32.xlu1 %v11895_v23, %s8790_s19  ;;  %5913 = vmatmul.bf16.gmra.mxu0 %v12675_v4 }
 0x595   : > { %4055 = vst [vmem:[#allocation2 + $0x38] sm:$0xff] %v4047_v1  ;;  %4568 = vrot.lane.b32.xlu0 %v11863_v9, %s8790_s19 }
 0x596   : > { %4584 = vrot.lane.b32.xlu2 %v11865_v55, %s8790_s19  ;;  %v4163_v25 = vpop.permute.xlu1 %4162 }
 0x597   : > { %v4175_v43 = vsel %vm516_vm2, %v12838_v63, %v4163_v25  ;;  %v4183_v40 = vsel %vm516_vm2, %v4163_v25, %v12838_v63  ;;  %v4161_v33 = vpop.permute.xlu0 %4160 }
 0x598   : > { %v12934_v17 = vpop.permute.xlu2 %4330  ;;  %v4194_v3 = vmul.f32 %v4183_v40, %v14288_v28  ;;  %v4195_v1 = vmul.f32 %v4175_v43, %v14289_v0  ;;  %v4174_v6 = vsel %vm516_vm2, %v4145_v46, %v4161_v33  ;;  %v4182_v14 = vsel %vm516_vm2, %v4161_v33, %v4145_v46  ;;  %v12942_v30 = vpop.f32.mrf.mxu1  ;;  %v7683_v43 = vld [vmem:[#allocation2 + $0x28] sm:$0xf] }
 0x599   : > { %14308 = vst [vmem:[#allocation29_spill] sm:$0xff] %v12942_v30  ;;  %v4192_v51 = vmul.f32 %v4182_v14, %v14288_v28  ;;  %v4193_v63 = vmul.f32 %v4174_v6, %v14289_v0  ;;  %v12955_v6 = vpop.f32.mrf.mxu0  ;;  %v8508_v30 = vld [vmem:[#allocation2 + $0xac] sm:$0xf] }
 0x59a   : > { %v4207_v25 = vpack.c.bf16 %v4195_v1, %v4194_v3  ;;  %14309 = vst [vmem:[#allocation30_spill] sm:$0xff] %v12955_v6  ;;  %v7749_v6 = vld [vmem:[#allocation2 + $0xb8] sm:$0xf0] }
 0x59b   : > { %8238 = vmatmul.msk.bf16.gmra.mxu1 %vm2699_vm8, %v12702_v32  ;;  %v4206_v40 = vpack.c.bf16 %v4193_v63, %v4192_v51  ;;  %5889 = vmatmul.bf16.gmra.mxu3 %v12729_v39 }
 0x59c   : > { %4215 = vst [vmem:[#allocation2 + $0x138] sm:$0xff] %v4207_v25  ;;  %4408 = vrot.lane.b32.xlu1 %v11863_v9, %s8788_s17  ;;  %v8494_v53 = vld [vmem:[#allocation2 + $0x34] sm:$0xf0]  ;;  %5860 = vmatmul.bf16.gmra.mxu2 %v12544_v16 }
 0x59d   : > { %4214 = vst [vmem:[#allocation2 + $0x128] sm:$0xff] %v4206_v40  ;;  %4586 = vrot.lane.b32.xlu0 %v11897_v57, %s8790_s19  ;;  %v7684_v14 = vor.u32 %v8494_v53, %v7683_v43 }
 0x59e   : > { %4410 = vrot.lane.b32.xlu2 %v11895_v23, %s8788_s17  ;;  %v3997_v46 = vpop.permute.xlu1 %3996 }
 0x59f   : > { %v4012_v51 = vsel %vm350_vm0, %v12863_v31, %v3997_v46  ;;  %v4020_v9 = vsel %vm350_vm0, %v3997_v46, %v12863_v31  ;;  %v3983_v3 = vpop.permute.xlu0 %3982  ;;  %5964 = vmatpush.bf16.msra.mxu2 %v7684_v14 }
 0x5a0   : > { %v12963_v33 = vpop.permute.xlu2 %4488  ;;  %v4028_v23 = vmul.f32 %v4020_v9, %v14298_v59  ;;  %v4029_v1 = vmul.f32 %v4012_v51, %v14299_v50  ;;  %v4013_v53 = vsel %vm350_vm0, %v3983_v3, %v12887_v21  ;;  %v4021_v63 = vsel %vm350_vm0, %v12887_v21, %v3983_v3  ;;  %v12974_v25 = vpop.f32.mrf.mxu1 }
 0x5a1   : > { %14310 = vst [vmem:[#allocation20_spill] sm:$0xff] %v12974_v25  ;;  %v4030_v31 = vmul.f32 %v4021_v63, %v14298_v59  ;;  %v4031_v40 = vmul.f32 %v4013_v53, %v14299_v50  ;;  %v12985_v21 = vpop.f32.mrf.mxu0 }
 0x5a2   : > { %v4044_v43 = vpack.c.bf16 %v4029_v1, %v4028_v23 }
 0x5a3   : > { %v4045_v14 = vpack.c.bf16 %v4031_v40, %v4030_v31  ;;  %v8526_v46 = vld [vmem:[#allocation2 + $0x134] sm:$0xf0] }
 0x5a4   : > { %4052 = vst [vmem:[#allocation2 + $0x8] sm:$0xff] %v4044_v43  ;;  %4426 = vrot.lane.b32.xlu1 %v11897_v57, %s8788_s17  ;;  %v7811_v51 = vld [vmem:[#allocation2 + $0x128] sm:$0xf]  ;;  %5918 = vmatmul.bf16.gmra.mxu0 %v12737_v52  ;;  %v7877_v52 = vld [vmem:[#allocation2 + $0x1b8] sm:$0xf0] }
 0x5a5   : > { %4053 = vst [vmem:[#allocation2 + $0x18] sm:$0xff] %v4045_v14  ;;  %4424 = vrot.lane.b32.xlu0 %v11865_v55, %s8788_s17  ;;  %v7812_v59 = vor.u32 %v8526_v46, %v7811_v51 }
 0x5a6   : > { %4564 = vrot.lane.b32.xlu2 %v11804_v15, %s8790_s19  ;;  %v4143_v50 = vpop.permute.xlu1 %4142 }
 0x5a7   : > { %v4141_v3 = vpop.permute.xlu0 %4140  ;;  %5993 = vmatpush.bf16.msrb.mxu3 %v7812_v59 }
 0x5a8   : > { %v12987_v9 = vpop.permute.xlu2 %4506  ;;  %v4172_v57 = vsel %vm516_vm2, %v4141_v3, %v12910_v42  ;;  %v4180_v23 = vsel %vm516_vm2, %v12910_v42, %v4141_v3  ;;  %v12995_v1 = vpop.f32.mrf.mxu1 }
 0x5a9   : > { %v4188_v55 = vmul.f32 %v4180_v23, %v14288_v28  ;;  %v4189_v53 = vmul.f32 %v4172_v57, %v14289_v0  ;;  %v13008_v43 = vpop.f32.mrf.mxu0 }
 0x5aa   : > { %14311 = vst [vmem:[#allocation31_spill] sm:$0xff] %v13008_v43 }
 0x5ab   : > { %8239 = vmatmul.msk.bf16.gmra.mxu1 %vm2699_vm8, %v12771_v12  ;;  %v4204_v63 = vpack.c.bf16 %v4189_v53, %v4188_v55  ;;  %v7667_v31 = vld [vmem:[#allocation2 + $0x8] sm:$0xf]  ;;  %5894 = vmatmul.bf16.gmra.mxu3 %v12794_v54 }
 0x5ac   : > { %4580 = vrot.lane.b32.xlu1 %v11806_v62, %s8790_s19  ;;  %v8490_v40 = vld [vmem:[#allocation2 + $0x14] sm:$0xf0]  ;;  %5865 = vmatmul.bf16.gmra.mxu2 %v12598_v18 }
 0x5ad   : > { %4212 = vst [vmem:[#allocation2 + $0x108] sm:$0xff] %v4204_v63  ;;  %4566 = vrot.lane.b32.xlu0 %v11828_v56, %s8790_s19  ;;  %v7668_v42 = vor.u32 %v8490_v40, %v7667_v31 }
 0x5ae   : > { %4582 = vrot.lane.b32.xlu2 %v11830_v2, %s8790_s19  ;;  %v4329_v14 = vpop.permute.xlu1 %4328 }
 0x5af   : > { %v4159_v51 = vpop.permute.xlu0 %4158  ;;  %5965 = vmatpush.bf16.msra.mxu2 %v7668_v42 }
 0x5b0   : > { %v13010_v46 = vpop.permute.xlu2 %4340  ;;  %v4173_v59 = vsel %vm516_vm2, %v4143_v50, %v4159_v51  ;;  %v4181_v3 = vsel %vm516_vm2, %v4159_v51, %v4143_v50  ;;  %v13017_v57 = vpop.f32.mrf.mxu1 }
 0x5b1   : > { %14312 = vst [vmem:[#allocation21_spill] sm:$0xff] %v13017_v57  ;;  %v4190_v23 = vmul.f32 %v4181_v3, %v14288_v28  ;;  %v4191_v55 = vmul.f32 %v4173_v59, %v14289_v0  ;;  %v13028_v50 = vpop.f32.mrf.mxu0 }
 0x5b3   : > { %v4205_v53 = vpack.c.bf16 %v4191_v55, %v4190_v23  ;;  %v7781_v55 = vld [vmem:[#allocation2 + $0xf8] sm:$0xf0] }
 0x5b4   : > { %4406 = vrot.lane.b32.xlu1 %v11828_v56, %s8788_s17  ;;  %5923 = vmatmul.bf16.gmra.mxu0 %v12806_v49  ;;  %v8558_v49 = vld [vmem:[#allocation2 + $0x234] sm:$0xf0] }
 0x5b5   : > { %4213 = vst [vmem:[#allocation2 + $0x118] sm:$0xff] %v4205_v53  ;;  %4404 = vrot.lane.b32.xlu0 %v11804_v15, %s8788_s17  ;;  %v7795_v53 = vld [vmem:[#allocation2 + $0x108] sm:$0xf] }
 0x5b6   : > { %4420 = vrot.lane.b32.xlu2 %v11806_v62, %s8788_s17  ;;  %v4347_v63 = vpop.permute.xlu1 %4346 }
 0x5b7   : > { %v4355_v28 = vsel %vm698_vm4, %v12934_v17, %v4347_v63  ;;  %v4363_v0 = vsel %vm698_vm4, %v4347_v63, %v12934_v17  ;;  %v4345_v56 = vpop.permute.xlu0 %4344 }
 0x5b8   : > { %v13036_v31 = vpop.permute.xlu2 %4486  ;;  %v4378_v40 = vmul.f32 %v4355_v28, %v14249_v35  ;;  %v4379_v62 = vmul.f32 %v4363_v0, %v14250_v8  ;;  %v4354_v15 = vsel %vm698_vm4, %v4329_v14, %v4345_v56  ;;  %v4362_v42 = vsel %vm698_vm4, %v4345_v56, %v4329_v14  ;;  %v13044_v51 = vpop.f32.mrf.mxu1  ;;  %v8516_v28 = vld [vmem:[#allocation2 + $0xec] sm:$0xf] }
 0x5b9   : > { %v4376_v59 = vmul.f32 %v4354_v15, %v14249_v35  ;;  %v4377_v17 = vmul.f32 %v4362_v42, %v14250_v8  ;;  %v13057_v0 = vpop.f32.mrf.mxu0 }
 0x5ba   : > { %v4387_v3 = vpack.c.bf16 %v4379_v62, %v4378_v40  ;;  %v7784_v40 = vor.u32 %v8516_v28, %v7781_v55  ;;  %v13079_v28 = vpop.f32.mrf.mxu2 }
 0x5bb   : > { %8240 = vmatmul.msk.bf16.gmra.mxu1 %vm2699_vm8, %v12830_v60  ;;  %v4386_v23 = vpack.c.bf16 %v4377_v17, %v4376_v59  ;;  %v8512_v17 = vld [vmem:[#allocation2 + $0xcc] sm:$0xf]  ;;  %14313 = vst [vmem:[#allocation22_spill] sm:$0xff] %v13079_v28 }
 0x5bc   : > { %4395 = vst [vmem:[#allocation2 + $0x2f8] sm:$0xff] %v4387_v3  ;;  %4560 = vrot.lane.b32.xlu1 %v11741_v13, %s8790_s19  ;;  %v8522_v14 = vld [vmem:[#allocation2 + $0x114] sm:$0xf0]  ;;  %5966 = vmatmul.bf16.vlgmr.msra.gmra.mxu2 %v12352_v27 }
 0x5bd   : > { %4394 = vst [vmem:[#allocation2 + $0x2e8] sm:$0xff] %v4386_v23  ;;  %4422 = vrot.lane.b32.xlu0 %v11830_v2, %s8788_s17  ;;  %v7796_v63 = vor.u32 %v8522_v14, %v7795_v53  ;;  %v7765_v2 = vld [vmem:[#allocation2 + $0xd8] sm:$0xf0] }
 0x5be   : > { %4562 = vrot.lane.b32.xlu2 %v11775_v36, %s8790_s19  ;;  %v4505_v56 = vpop.permute.xlu1 %4504 }
 0x5bf   : > { %v4514_v62 = vsel %vm864_vm6, %v12963_v33, %v4505_v56  ;;  %v4522_v15 = vsel %vm864_vm6, %v4505_v56, %v12963_v33  ;;  %v4491_v59 = vpop.permute.xlu0 %4490  ;;  %5994 = vmatpush.bf16.msrb.mxu3 %v7796_v63 }
 0x5c0   : > { %v13065_v42 = vpop.permute.xlu2 %4320  ;;  %v4536_v3 = vmul.f32 %v4514_v62, %v14255_v24  ;;  %v4537_v23 = vmul.f32 %v4522_v15, %v14256_v22  ;;  %v4515_v55 = vsel %vm864_vm6, %v4491_v59, %v12987_v9  ;;  %v4523_v53 = vsel %vm864_vm6, %v12987_v9, %v4491_v59  ;;  %v13075_v33 = vpop.f32.mrf.mxu1 }
 0x5c1   : > { %v4538_v14 = vmul.f32 %v4515_v55, %v14255_v24  ;;  %v4539_v63 = vmul.f32 %v4523_v53, %v14256_v22  ;;  %v7768_v62 = vor.u32 %v8512_v17, %v7765_v2  ;;  %v13083_v9 = vpop.f32.mrf.mxu3  ;;  %v13091_v17 = vpop.f32.mrf.mxu0 }
 0x5c2   : > { %v4546_v56 = vpack.c.bf16 %v4537_v23, %v4536_v3  ;;  %5995 = vmatmul.bf16.vlgmr.msrb.gmra.mxu3 %v12321_v7  ;;  %14314 = vst [vmem:[#allocation23_spill] sm:$0xff] %v13083_v9  ;;  %v7752_v3 = vor.u32 %v8508_v30, %v7749_v6  ;;  %v14084_v23 = vmov 1  }
 0x5c3   : > { %6103 = vmatpush.bf16.msra.mxu3 %v7784_v40  ;;  %v4547_v15 = vpack.c.bf16 %v4539_v63, %v4538_v14  ;;  %v8582_v25 = vld [vmem:[#allocation2 + $0x2f4] sm:$0xf0]  ;;  %14315 = vst [vmem:[#allocation11_spill] sm:$0xff] %v13091_v17  ;;  %8664 = vset.pattern.permute.xlu2 %v14084_v23  ;;  %v7733_v14 = vld [vmem:[#allocation2 + $0x98] sm:$0xf0] }
 0x5c4   : > { %4554 = vst [vmem:[#allocation2 + $0x3e8] sm:$0xff] %v4546_v56  ;;  %4578 = vrot.lane.b32.xlu1 %v11777_v5, %s8790_s19  ;;  %v8035_v40 = vld [vmem:[#allocation2 + $0x2e8] sm:$0xf]  ;;  %8665 = vset.pattern.permute.xlu0 %v14084_v23  ;;  %v8504_v56 = vld [vmem:[#allocation2 + $0x8c] sm:$0xf] }
 0x5c5   : > { %4555 = vst [vmem:[#allocation2 + $0x3f8] sm:$0xff] %v4547_v15  ;;  %4576 = vrot.lane.b32.xlu0 %v11743_v44, %s8790_s19  ;;  %v8036_v59 = vor.u32 %v8582_v25, %v8035_v40  ;;  %8666 = vset.pattern.permute.xlu1 %v14084_v23  ;;  %v7736_v15 = vor.u32 %v8504_v56, %v7733_v14  ;;  %v8500_v23 = vld [vmem:[#allocation2 + $0x6c] sm:$0xf]  ;;  %v7717_v17 = vld [vmem:[#allocation2 + $0x78] sm:$0xf0] }
 0x5c6   : > { %4400 = vrot.lane.b32.xlu2 %v11741_v13, %s8788_s17  ;;  %v4327_v2 = vpop.permute.xlu1 %4326  ;;  %v7701_v56 = vld [vmem:[#allocation2 + $0x58] sm:$0xf0] }
 0x5c7   : > { %6104 = vmatpush.bf16.msra.mxu3 %v7768_v62  ;;  %6016 = vmatpush.bf16.msra.mxu0 %v8036_v59  ;;  %v4325_v53 = vpop.permute.xlu0 %4324  ;;  %v13108_v62 = vpop.f32.mrf.mxu2 }
 0x5c8   : > { %v13095_v55 = vpop.permute.xlu2 %4338  ;;  %v4352_v13 = vsel %vm698_vm4, %v4325_v53, %v13010_v46  ;;  %v4360_v30 = vsel %vm698_vm4, %v13010_v46, %v4325_v53  ;;  %v13104_v6 = vpop.f32.mrf.mxu1  ;;  %14317 = vst [vmem:[#allocation5_spill] sm:$0xff] %v13108_v62  ;;  %v8566_v62 = vld [vmem:[#allocation2 + $0x274] sm:$0xf0] }
 0x5c9   : > { %14316 = vst [vmem:[#allocation12_spill] sm:$0xff] %v13104_v6  ;;  %v4372_v25 = vmul.f32 %v4352_v13, %v14249_v35  ;;  %v4373_v63 = vmul.f32 %v4360_v30, %v14250_v8  ;;  %v13110_v9 = vpop.f32.mrf.mxu3  ;;  %v13118_v53 = vpop.f32.mrf.mxu0  ;;  %v7720_v13 = vor.u32 %v8500_v23, %v7717_v17 }
 0x5ca   : > { %14318 = vst [vmem:[#allocation6_spill] sm:$0xff] %v13110_v9 }
 0x5cb   : > { %6105 = vmatpush.bf16.msra.mxu3 %v7752_v3  ;;  %v4384_v40 = vpack.c.bf16 %v4373_v63, %v4372_v25  ;;  %v8163_v59 = vld [vmem:[#allocation2 + $0x3e8] sm:$0xf]  ;;  %14319 = vst [vmem:[#allocation16_spill] sm:$0xff] %v13118_v53  ;;  %v8496_v63 = vld [vmem:[#allocation2 + $0x4c] sm:$0xf] }
 0x5cc   : > { %4416 = vrot.lane.b32.xlu1 %v11743_v44, %s8788_s17  ;;  %v8614_v46 = vld [vmem:[#allocation2 + $0x3f4] sm:$0xf0]  ;;  %5971 = vmatmul.bf16.gmra.mxu2 %v12469_v45  ;;  %v7704_v23 = vor.u32 %v8496_v63, %v7701_v56 }
 0x5cd   : > { %4392 = vst [vmem:[#allocation2 + $0x2c8] sm:$0xff] %v4384_v40  ;;  %4402 = vrot.lane.b32.xlu0 %v11775_v36, %s8788_s17  ;;  %v8164_v3 = vor.u32 %v8614_v46, %v8163_v59  ;;  %v7685_v46 = vld [vmem:[#allocation2 + $0x38] sm:$0xf0] }
 0x5ce   : > { %4418 = vrot.lane.b32.xlu2 %v11777_v5, %s8788_s17  ;;  %v4485_v14 = vpop.permute.xlu1 %4484 }
 0x5cf   : > { %6106 = vmatpush.bf16.msra.mxu3 %v7736_v15  ;;  %6045 = vmatpush.bf16.msra.mxu1 %v8164_v3  ;;  %v4343_v25 = vpop.permute.xlu0 %4342  ;;  %v13130_v17 = vpop.f32.mrf.mxu2 }
 0x5d0   : > { %v13120_v30 = vpop.permute.xlu2 %4496  ;;  %v4353_v44 = vsel %vm698_vm4, %v4327_v2, %v4343_v25  ;;  %v4361_v5 = vsel %vm698_vm4, %v4343_v25, %v4327_v2  ;;  %v13126_v15 = vpop.f32.mrf.mxu1  ;;  %14321 = vst [vmem:[#allocation9_spill] sm:$0xff] %v13130_v17  ;;  %v8492_v2 = vld [vmem:[#allocation2 + $0x2c] sm:$0xf] }
 0x5d1   : > { %14320 = vst [vmem:[#allocation17_spill] sm:$0xff] %v13126_v15  ;;  %v4374_v36 = vmul.f32 %v4353_v44, %v14249_v35  ;;  %v4375_v40 = vmul.f32 %v4361_v5, %v14250_v8  ;;  %v13134_v3 = vpop.f32.mrf.mxu3  ;;  %v7688_v63 = vor.u32 %v8492_v2, %v7685_v46 }
 0x5d2   : > { %6000 = vmatmul.bf16.gmra.mxu3 %v12486_v47  ;;  %14322 = vst [vmem:[#allocation10_spill] sm:$0xff] %v13134_v3 }
 0x5d3   : > { %6107 = vmatpush.bf16.msra.mxu3 %v7720_v13  ;;  %v4385_v59 = vpack.c.bf16 %v4375_v40, %v4374_v36  ;;  %v13142_v13 = vpop.f32.mrf.mxu0  ;;  %v8488_v40 = vld [vmem:[#allocation2 + $0xc] sm:$0xf] }
 0x5d4   : > { %4558 = vrot.lane.b32.xlu1 %v11704_v38, %s8790_s19  ;;  %14323 = vst [vmem:[#allocation18_spill] sm:$0xff] %v13142_v13 }
 0x5d5   : > { %4393 = vst [vmem:[#allocation2 + $0x2d8] sm:$0xff] %v4385_v59  ;;  %4556 = vrot.lane.b32.xlu0 %v11672_v34, %s8790_s19 }
 0x5d6   : > { %4572 = vrot.lane.b32.xlu2 %v11674_v48, %s8790_s19  ;;  %v4503_v25 = vpop.permute.xlu1 %4502 }
 0x5d7   : > { %6108 = vmatpush.bf16.msra.mxu3 %v7704_v23  ;;  %v4513_v56 = vsel %vm864_vm6, %v13036_v31, %v4503_v25  ;;  %v4521_v44 = vsel %vm864_vm6, %v4503_v25, %v13036_v31  ;;  %v4501_v36 = vpop.permute.xlu0 %4500  ;;  %v7669_v23 = vld [vmem:[#allocation2 + $0x18] sm:$0xf0]  ;;  %v13162_v13 = vpop.f32.mrf.mxu2 }
 0x5d8   : > { %v13150_v5 = vpop.permute.xlu2 %4318  ;;  %v4534_v59 = vmul.f32 %v4513_v56, %v14255_v24  ;;  %v4535_v28 = vmul.f32 %v4521_v44, %v14256_v22  ;;  %v4512_v46 = vsel %vm864_vm6, %v4485_v14, %v4501_v36  ;;  %v4520_v2 = vsel %vm864_vm6, %v4501_v36, %v4485_v14  ;;  %v13158_v6 = vpop.f32.mrf.mxu1  ;;  %14324 = vst [vmem:[#allocation41_spill] sm:$0xff] %v13162_v13  ;;  %v8019_v14 = vld [vmem:[#allocation2 + $0x2c8] sm:$0xf] }
 0x5d9   : > { %v4532_v31 = vmul.f32 %v4512_v46, %v14255_v24  ;;  %v4533_v25 = vmul.f32 %v4520_v2, %v14256_v22  ;;  %v7672_v17 = vor.u32 %v8488_v40, %v7669_v23  ;;  %v13164_v57 = vpop.f32.mrf.mxu3 }
 0x5da   : > { %v4545_v3 = vpack.c.bf16 %v4535_v28, %v4534_v59  ;;  %14325 = vst [vmem:[#allocation61_spill] sm:$0xff] %v13164_v57  ;;  %v8761_v57 = vld [vmem:[%s13996_s4 + $0x18] sm:$0xff] }
 0x5db   : > { %6109 = vmatpush.bf16.msra.mxu3 %v7688_v63  ;;  %v4544_v56 = vpack.c.bf16 %v4533_v25, %v4532_v31  ;;  %v13172_v28 = vpop.f32.mrf.mxu0 }
 0x5dc   : > { %4553 = vst [vmem:[#allocation2 + $0x3d8] sm:$0xff] %v4545_v3  ;;  %4396 = vrot.lane.b32.xlu1 %v11672_v34, %s8788_s17  ;;  %v8578_v63 = vld [vmem:[#allocation2 + $0x2d4] sm:$0xf0]  ;;  %5976 = vmatmul.bf16.gmra.mxu2 %v12527_v58 }
 0x5dd   : > { %4552 = vst [vmem:[#allocation2 + $0x3c8] sm:$0xff] %v4544_v56  ;;  %4574 = vrot.lane.b32.xlu0 %v11706_v41, %s8790_s19  ;;  %v8020_v44 = vor.u32 %v8578_v63, %v8019_v14 }
 0x5de   : > { %4398 = vrot.lane.b32.xlu2 %v11704_v38, %s8788_s17  ;;  %14326 = vst [vmem:[#allocation66_spill] sm:$0xff] %v13172_v28  ;;  %v4337_v36 = vpop.permute.xlu1 %4336 }
 0x5df   : > { %6110 = vmatpush.bf16.msra.mxu3 %v7672_v17  ;;  %v4350_v17 = vsel %vm698_vm4, %v13065_v42, %v4337_v36  ;;  %v4358_v34 = vsel %vm698_vm4, %v4337_v36, %v13065_v42  ;;  %6017 = vmatpush.bf16.msra.mxu0 %v8020_v44  ;;  %v4323_v40 = vpop.permute.xlu0 %4322  ;;  %v13195_v56 = vpop.f32.mrf.mxu2  ;;  %v8757_v36 = vld [vmem:[%s13996_s4 + $0x38] sm:$0xff] }
 0x5e0   : > { %v13180_v3 = vpop.permute.xlu2 %4476  ;;  %v4368_v38 = vmul.f32 %v4350_v17, %v14249_v35  ;;  %v4369_v23 = vmul.f32 %v4358_v34, %v14250_v8  ;;  %v4351_v59 = vsel %vm698_vm4, %v4323_v40, %v13095_v55  ;;  %v4359_v46 = vsel %vm698_vm4, %v13095_v55, %v4323_v40  ;;  %v13190_v2 = vpop.f32.mrf.mxu1 }
 0x5e1   : > { %14327 = vst [vmem:[#allocation48_spill] sm:$0xff] %v13190_v2  ;;  %v4370_v42 = vmul.f32 %v4351_v59, %v14249_v35  ;;  %v4371_v31 = vmul.f32 %v4359_v46, %v14250_v8  ;;  %v13198_v44 = vpop.f32.mrf.mxu3 }
 0x5e2   : > { %v4382_v25 = vpack.c.bf16 %v4369_v23, %v4368_v38  ;;  %6005 = vmatmul.bf16.gmra.mxu3 %v12544_v16 }
 0x5e3   : > { %v4383_v14 = vpack.c.bf16 %v4371_v31, %v4370_v42  ;;  %v8610_v63 = vld [vmem:[#allocation2 + $0x3d4] sm:$0xf0]  ;;  %v13207_v34 = vpop.f32.mrf.mxu0 }
 0x5e4   : > { %4390 = vst [vmem:[#allocation2 + $0x2a8] sm:$0xff] %v4382_v25  ;;  %4414 = vrot.lane.b32.xlu1 %v11706_v41, %s8788_s17  ;;  %v8147_v55 = vld [vmem:[#allocation2 + $0x3c8] sm:$0xf] }
 0x5e5   : > { %4391 = vst [vmem:[#allocation2 + $0x2b8] sm:$0xff] %v4383_v14  ;;  %4412 = vrot.lane.b32.xlu0 %v11674_v48, %s8788_s17  ;;  %v8148_v17 = vor.u32 %v8610_v63, %v8147_v55  ;;  %v8758_v55 = vld [vmem:[%s13996_s4 + $0x28] sm:$0xff] }
 0x5e6   : > { %4833 = vperm.xlu2 %8664, %v8757_v36   ;;  %v4483_v40 = vpop.permute.xlu1 %4482 }
 0x5e7   : > { %6046 = vmatpush.bf16.msra.mxu1 %v8148_v17  ;;  %v4481_v23 = vpop.permute.xlu0 %4480  ;;  %v13221_v31 = vpop.f32.mrf.mxu2  ;;  %v8760_v17 = vld [vmem:[%s13996_s4 + $0x30] sm:$0xff] }
 0x5e8   : > { %v13209_v38 = vpop.permute.xlu2 %4494  ;;  %v4510_v41 = vsel %vm864_vm6, %v4481_v23, %v13120_v30  ;;  %v4518_v59 = vsel %vm864_vm6, %v13120_v30, %v4481_v23  ;;  %v13217_v46 = vpop.f32.mrf.mxu1  ;;  %14328 = vst [vmem:[#allocation33_spill] sm:$0xff] %v13221_v31  ;;  %v8759_v30 = vld [vmem:[%s13996_s4 + $0x20] sm:$0xff] }
 0x5e9   : > { %v4528_v48 = vmul.f32 %v4510_v41, %v14255_v24  ;;  %v4529_v42 = vmul.f32 %v4518_v59, %v14256_v22  ;;  %v13223_v63 = vpop.f32.mrf.mxu3 }
 0x5ea   : > { %14329 = vst [vmem:[#allocation39_spill] sm:$0xff] %v13223_v63 }
 0x5eb   : > { %v4542_v25 = vpack.c.bf16 %v4529_v42, %v4528_v48  ;;  %v8003_v14 = vld [vmem:[#allocation2 + $0x2a8] sm:$0xf]  ;;  %v13234_v41 = vpop.f32.mrf.mxu0 }
 0x5ec   : > { %4825 = vperm.xlu1 %8666, %v8758_v55   ;;  %v8574_v36 = vld [vmem:[#allocation2 + $0x2b4] sm:$0xf0]  ;;  %14330 = vst [vmem:[#allocation64_spill] sm:$0xff] %v13234_v41  ;;  %5981 = vmatmul.bf16.gmra.mxu2 %v12581_v61 }
 0x5ed   : > { %4550 = vst [vmem:[#allocation2 + $0x3a8] sm:$0xff] %v4542_v25  ;;  %4829 = vperm.xlu0 %8665, %v8760_v17   ;;  %v8004_v23 = vor.u32 %v8574_v36, %v8003_v14 }
 0x5ee   : > { %4821 = vperm.xlu2 %8664, %v8759_v30   ;;  %v4317_v59 = vpop.permute.xlu1 %4316 }
 0x5ef   : > { %6018 = vmatpush.bf16.msra.mxu0 %v8004_v23  ;;  %v4499_v42 = vpop.permute.xlu0 %4498  ;;  %v13248_v36 = vpop.f32.mrf.mxu2 }
 0x5f0   : > { %v13236_v48 = vpop.permute.xlu2 %4584  ;;  %v4511_v25 = vsel %vm864_vm6, %v4483_v40, %v4499_v42  ;;  %v4519_v55 = vsel %vm864_vm6, %v4499_v42, %v4483_v40  ;;  %v13242_v30 = vpop.f32.mrf.mxu1  ;;  %v8762_v40 = vld [vmem:[%s13996_s4 + $0x10] sm:$0xff]  ;;  %v8763_v42 = vld [vmem:[%s13996_s4 + $0x8] sm:$0xff] }
 0x5f1   : > { %14331 = vst [vmem:[#allocation65_spill] sm:$0xff] %v13242_v30  ;;  %v4530_v28 = vmul.f32 %v4511_v25, %v14255_v24  ;;  %v4531_v17 = vmul.f32 %v4519_v55, %v14256_v22  ;;  %v13250_v23 = vpop.f32.mrf.mxu3 }
 0x5f2   : > { %6010 = vmatmul.bf16.gmra.mxu3 %v12598_v18 }
 0x5f3   : > { %v4543_v14 = vpack.c.bf16 %v4531_v17, %v4530_v28  ;;  %v13261_v28 = vpop.f32.mrf.mxu0 }
 0x5f4   : > { %4817 = vperm.xlu1 %8666, %v8761_v57  }
 0x5f5   : > { %4551 = vst [vmem:[#allocation2 + $0x3b8] sm:$0xff] %v4543_v14  ;;  %4809 = vperm.xlu0 %8665, %v8763_v42  }
 0x5f6   : > { %4813 = vperm.xlu2 %8664, %v8762_v40   ;;  %v4335_v25 = vpop.permute.xlu1 %4334 }
 0x5f7   : > { %v4349_v55 = vsel %vm698_vm4, %v13150_v5, %v4335_v25  ;;  %v4357_v57 = vsel %vm698_vm4, %v4335_v25, %v13150_v5  ;;  %v4333_v14 = vpop.permute.xlu0 %4332  ;;  %v13281_v30 = vpop.f32.mrf.mxu2 }
 0x5f8   : > { %v13269_v17 = vpop.permute.xlu2 %4410  ;;  %v4366_v40 = vmul.f32 %v4349_v55, %v14249_v35  ;;  %v4367_v13 = vmul.f32 %v4357_v57, %v14250_v8  ;;  %v4348_v42 = vsel %vm698_vm4, %v4317_v59, %v4333_v14  ;;  %v4356_v41 = vsel %vm698_vm4, %v4333_v14, %v4317_v59  ;;  %v13277_v2 = vpop.f32.mrf.mxu1  ;;  %v8764_v55 = vld [vmem:[%s13996_s4] sm:$0xff]  ;;  %v8131_v57 = vld [vmem:[#allocation2 + $0x3a8] sm:$0xf] }
 0x5f9   : > { %v4364_v63 = vmul.f32 %v4348_v42, %v14249_v35  ;;  %v4365_v31 = vmul.f32 %v4356_v41, %v14250_v8  ;;  %v13283_v43 = vpop.f32.mrf.mxu3 }
 0x5fa   : > { %v4381_v5 = vpack.c.bf16 %v4367_v13, %v4366_v40 }
 0x5fb   : > { %v4380_v25 = vpack.c.bf16 %v4365_v31, %v4364_v63  ;;  %v13288_v53 = vpop.f32.mrf.mxu0 }
 0x5fc   : > { %4389 = vst [vmem:[#allocation2 + $0x298] sm:$0xff] %v4381_v5  ;;  %4805 = vperm.xlu1 %8666, %v8764_v55   ;;  %v8606_v59 = vld [vmem:[#allocation2 + $0x3b4] sm:$0xf0] }
 0x5fd   : > { %4388 = vst [vmem:[#allocation2 + $0x288] sm:$0xff] %v4380_v25  ;;  %v8132_v14 = vor.u32 %v8606_v59, %v8131_v57 }
 0x5fe   : > { %v4493_v35 = vpop.permute.xlu1 %4492 }
 0x5ff   : > { %v4508_v8 = vsel %vm864_vm6, %v13180_v3, %v4493_v35  ;;  %v4516_v13 = vsel %vm864_vm6, %v4493_v35, %v13180_v3  ;;  %6047 = vmatpush.bf16.msra.mxu1 %v8132_v14  ;;  %v4479_v63 = vpop.permute.xlu0 %4478  ;;  %v13311_v35 = vpop.f32.mrf.mxu2 }
 0x600   : > { %v13296_v31 = vpop.permute.xlu2 %4564  ;;  %v4524_v41 = vmul.f32 %v4508_v8, %v14255_v24  ;;  %v4525_v40 = vmul.f32 %v4516_v13, %v14256_v22  ;;  %v4509_v42 = vsel %vm864_vm6, %v4479_v63, %v13209_v38  ;;  %v4517_v5 = vsel %vm864_vm6, %v13209_v38, %v4479_v63  ;;  %v13306_v25 = vpop.f32.mrf.mxu1  ;;  %14332 = vst [vmem:[#allocation15_spill] sm:$0xff] %v13311_v35 }
 0x601   : > { %v4526_v3 = vmul.f32 %v4509_v42, %v14255_v24  ;;  %v4527_v55 = vmul.f32 %v4517_v5, %v14256_v22  ;;  %v13313_v13 = vpop.f32.mrf.mxu3  ;;  %v13330_v5 = vld [vmem:[%s13993_s1 + $0x10] ss:$0 sm:$0xff] }
 0x602   : > { %v4540_v57 = vpack.c.bf16 %v4525_v40, %v4524_v41  ;;  %6111 = vmatmul.bf16.vlgmr.msra.gmra.mxu3 %v12352_v27  ;;  %14333 = vst [vmem:[#allocation55_spill] sm:$0xff] %v13313_v13  ;;  %v7971_v40 = vld [vmem:[#allocation2 + $0x268] sm:$0xf] }
 0x603   : > { %v4541_v59 = vpack.c.bf16 %v4527_v55, %v4526_v3  ;;  %v8570_v14 = vld [vmem:[#allocation2 + $0x294] sm:$0xf0]  ;;  %v13315_v38 = vpop.f32.mrf.mxu0 }
 0x604   : > { %4548 = vst [vmem:[#allocation2 + $0x388] sm:$0xff] %v4540_v57  ;;  %v7987_v8 = vld [vmem:[#allocation2 + $0x288] sm:$0xf]  ;;  %v7972_v57 = vor.u32 %v8566_v62, %v7971_v40 }
 0x605   : > { %4549 = vst [vmem:[#allocation2 + $0x398] sm:$0xff] %v4541_v59  ;;  %v7988_v9 = vor.u32 %v8570_v14, %v7987_v8  ;;  %v8562_v59 = vld [vmem:[#allocation2 + $0x254] sm:$0xf0] }
 0x606   : > { %14334 = vst [vmem:[#allocation38_spill] sm:$0xff] %v13315_v38  ;;  %v4571_v63 = vpop.permute.xlu1 %4570 }
 0x607   : > { %6019 = vmatpush.bf16.msra.mxu0 %v7988_v9  ;;  %v4569_v22 = vpop.permute.xlu0 %4568  ;;  %v13336_v9 = vld [vmem:[%s13993_s1 + $0x18] ss:$0 sm:$0xff]  ;;  %v13339_v8 = vpop.f32.mrf.mxu2 }
 0x608   : > { %v13317_v24 = vpop.permute.xlu2 %4582  ;;  %v4594_v27 = vsel %vm947_vm7, %v4569_v22, %v13236_v48  ;;  %v4602_v41 = vsel %vm947_vm7, %v13236_v48, %v4569_v22  ;;  %v13325_v42 = vpop.f32.mrf.mxu1  ;;  %14336 = vst [vmem:[#allocation37_spill] sm:$0xff] %v13339_v8  ;;  %v7955_v22 = vld [vmem:[#allocation2 + $0x248] sm:$0xf]  ;;  %v8540_v8 = vld [vmem:[#allocation2 + $0x1ac] sm:$0xf] }
 0x609   : > { %14335 = vst [vmem:[#allocation59_spill] sm:$0xff] %v13325_v42  ;;  %v4616_v3 = vmul.f32 %v13330_v5, %v4594_v27  ;;  %v4617_v55 = vmul.f32 %v13336_v9, %v4602_v41  ;;  %v13341_v38 = vpop.f32.mrf.mxu3  ;;  %v7956_v27 = vor.u32 %v8562_v59, %v7955_v22  ;;  %v7909_v22 = vld [vmem:[#allocation2 + $0x1f8] sm:$0xf0] }
 0x60a   : > { %14337 = vst [vmem:[#allocation45_spill] sm:$0xff] %v13341_v38 }
 0x60b   : > { %v4626_v48 = vpack.c.bf16 %v4617_v55, %v4616_v3  ;;  %6020 = vmatpush.bf16.msra.mxu0 %v7972_v57  ;;  %v8115_v14 = vld [vmem:[#allocation2 + $0x388] sm:$0xf]  ;;  %v13343_v35 = vpop.f32.mrf.mxu0 }
 0x60c   : > { %v8602_v42 = vld [vmem:[#allocation2 + $0x394] sm:$0xf0]  ;;  %14338 = vst [vmem:[#allocation53_spill] sm:$0xff] %v13343_v35  ;;  %v7939_v3 = vld [vmem:[#allocation2 + $0x228] sm:$0xf] }
 0x60d   : > { %4634 = vst [vmem:[#allocation2 + $0x468] sm:$0xff] %v4626_v48  ;;  %v8116_v13 = vor.u32 %v8602_v42, %v8115_v14  ;;  %v7940_v59 = vor.u32 %v8558_v49, %v7939_v3  ;;  %v8554_v48 = vld [vmem:[#allocation2 + $0x214] sm:$0xf0]  ;;  %v7923_v35 = vld [vmem:[#allocation2 + $0x208] sm:$0xf] }
 0x60e   : > { %v4409_v15 = vpop.permute.xlu1 %4408 }
 0x60f   : > { %6021 = vmatpush.bf16.msra.mxu0 %v7956_v27  ;;  %6048 = vmatpush.bf16.msra.mxu1 %v8116_v13  ;;  %v4587_v62 = vpop.permute.xlu0 %4586  ;;  %v8548_v13 = vld [vmem:[#allocation2 + $0x1ec] sm:$0xf]  ;;  %v13356_v27 = vpop.f32.mrf.mxu2 }
 0x610   : > { %v13345_v60 = vpop.permute.xlu2 %4420  ;;  %v4595_v41 = vsel %vm947_vm7, %v4571_v63, %v4587_v62  ;;  %v4603_v40 = vsel %vm947_vm7, %v4587_v62, %v4571_v63  ;;  %v13351_v55 = vpop.f32.mrf.mxu1  ;;  %v7924_v63 = vor.u32 %v8554_v48, %v7923_v35 }
 0x611   : > { %14339 = vst [vmem:[#allocation35_spill] sm:$0xff] %v13351_v55  ;;  %v4618_v42 = vmul.f32 %v13330_v5, %v4595_v41  ;;  %v4619_v57 = vmul.f32 %v13336_v9, %v4603_v40  ;;  %v13358_v38 = vpop.f32.mrf.mxu3  ;;  %v7912_v55 = vor.u32 %v8548_v13, %v7909_v22  ;;  %v8544_v22 = vld [vmem:[#allocation2 + $0x1cc] sm:$0xf] }
 0x612   : > { %6116 = vmatmul.bf16.gmra.mxu3 %v12469_v45 }
 0x613   : > { %v4627_v14 = vpack.c.bf16 %v4619_v57, %v4618_v42  ;;  %6022 = vmatpush.bf16.msra.mxu0 %v7940_v59  ;;  %v13360_v62 = vpop.f32.mrf.mxu0  ;;  %v7893_v42 = vld [vmem:[#allocation2 + $0x1d8] sm:$0xf0] }
 0x614   : > { %v8628_v18 = vld [vmem:[#allocation2 + $0x46c] sm:$0xf] }
 0x615   : > { %4635 = vst [vmem:[#allocation2 + $0x478] sm:$0xff] %v4627_v14 }
 0x616   : > { %v4427_v41 = vpop.permute.xlu1 %4426 }
 0x617   : > { %v4435_v49 = vsel %vm781_vm5, %v13269_v17, %v4427_v41  ;;  %v4443_v45 = vsel %vm781_vm5, %v4427_v41, %v13269_v17  ;;  %6023 = vmatpush.bf16.msra.mxu0 %v7924_v63  ;;  %v4425_v3 = vpop.permute.xlu0 %4424  ;;  %v7896_v41 = vor.u32 %v8544_v22, %v7893_v42  ;;  %v13381_v12 = vpop.f32.mrf.mxu2 }
 0x618   : > { %v13368_v40 = vpop.permute.xlu2 %4562  ;;  %v4458_v57 = vmul.f32 %v4435_v49, %v14286_v26  ;;  %v4459_v35 = vmul.f32 %v4443_v45, %v14287_v29  ;;  %v4434_v59 = vsel %vm781_vm5, %v4409_v15, %v4425_v3  ;;  %v4442_v48 = vsel %vm781_vm5, %v4425_v3, %v4409_v15  ;;  %v13376_v14 = vpop.f32.mrf.mxu1  ;;  %v8227_v45 = vld [vmem:[#allocation2 + $0x468] sm:$0xf]  ;;  %14341 = vst [vmem:[#allocation40_spill] sm:$0xff] %v13381_v12 }
 0x619   : > { %14340 = vst [vmem:[#allocation49_spill] sm:$0xff] %v13376_v14  ;;  %v4456_v17 = vmul.f32 %v4434_v59, %v14286_v26  ;;  %v4457_v13 = vmul.f32 %v4442_v48, %v14287_v29  ;;  %v13383_v3 = vpop.f32.mrf.mxu3 }
 0x61a   : > { %v4467_v63 = vpack.c.bf16 %v4459_v35, %v4458_v57  ;;  %6024 = vmatmul.bf16.vlgmr.msra.gmra.mxu0 %v12407_v19  ;;  %14342 = vst [vmem:[#allocation47_spill] sm:$0xff] %v13383_v3  ;;  %v7880_v35 = vor.u32 %v8540_v8, %v7877_v52 }
 0x61b   : > { %6132 = vmatpush.bf16.msrb.mxu0 %v7912_v55  ;;  %v4466_v49 = vpack.c.bf16 %v4457_v13, %v4456_v17  ;;  %v13385_v57 = vpop.f32.mrf.mxu0 }
 0x61c   : > { %4475 = vst [vmem:[#allocation2 + $0x378] sm:$0xff] %v4467_v63  ;;  %v8630_v15 = vld [vmem:[#allocation2 + $0x474] sm:$0xf0]  ;;  %v8229_v55 = vld [vmem:[#allocation2 + $0x478] sm:$0xf0] }
 0x61d   : > { %4474 = vst [vmem:[#allocation2 + $0x368] sm:$0xff] %v4466_v49  ;;  %v8228_v59 = vor.u32 %v8630_v15, %v8227_v45  ;;  %v8232_v48 = vor.u32 %v8628_v18, %v8229_v55  ;;  %v7861_v49 = vld [vmem:[#allocation2 + $0x198] sm:$0xf0] }
 0x61e   : > { %14343 = vst [vmem:[#allocation44_spill] sm:$0xff] %v13385_v57  ;;  %v4581_v42 = vpop.permute.xlu1 %4580 }
 0x61f   : > { %6133 = vmatpush.bf16.msrb.mxu0 %v7896_v41  ;;  %v4592_v17 = vsel %vm947_vm7, %v13296_v31, %v4581_v42  ;;  %v4600_v13 = vsel %vm947_vm7, %v4581_v42, %v13296_v31  ;;  %v4567_v63 = vpop.permute.xlu0 %4566  ;;  %6078 = vmatpush.bf16.msrb.mxu2 %v8228_v59  ;;  %v8536_v41 = vld [vmem:[#allocation2 + $0x18c] sm:$0xf]  ;;  %v13408_v14 = vpop.f32.mrf.mxu2 }
 0x620   : > { %v13393_v22 = vpop.permute.xlu2 %4400  ;;  %6223 = vmatpush.bf16.msrb.mxu3 %v8232_v48  ;;  %v4612_v18 = vmul.f32 %v13330_v5, %v4592_v17  ;;  %v4613_v45 = vmul.f32 %v13336_v9, %v4600_v13  ;;  %v4593_v52 = vsel %vm947_vm7, %v4567_v63, %v13317_v24  ;;  %v4601_v8 = vsel %vm947_vm7, %v13317_v24, %v4567_v63  ;;  %v13403_v31 = vpop.f32.mrf.mxu1  ;;  %v7845_v13 = vld [vmem:[#allocation2 + $0x178] sm:$0xf0]  ;;  %v8532_v63 = vld [vmem:[#allocation2 + $0x16c] sm:$0xf] }
 0x621   : > { %14344 = vst [vmem:[#allocation24_spill] sm:$0xff] %v13403_v31  ;;  %v4614_v15 = vmul.f32 %v13330_v5, %v4593_v52  ;;  %v4615_v55 = vmul.f32 %v13336_v9, %v4601_v8  ;;  %v7864_v48 = vor.u32 %v8536_v41, %v7861_v49  ;;  %v13410_v24 = vpop.f32.mrf.mxu3  ;;  %v7848_v31 = vor.u32 %v8532_v63, %v7845_v13  ;;  %v8528_v49 = vld [vmem:[#allocation2 + $0x14c] sm:$0xf] }
 0x622   : > { %v4624_v59 = vpack.c.bf16 %v4613_v45, %v4612_v18  ;;  %6121 = vmatmul.bf16.gmra.mxu3 %v12527_v58  ;;  %v7829_v18 = vld [vmem:[#allocation2 + $0x158] sm:$0xf0]  ;;  %v8524_v63 = vld [vmem:[#allocation2 + $0x12c] sm:$0xf] }
 0x623   : > { %6134 = vmatpush.bf16.msrb.mxu0 %v7880_v35  ;;  %v4625_v42 = vpack.c.bf16 %v4615_v55, %v4614_v15  ;;  %v8598_v17 = vld [vmem:[#allocation2 + $0x374] sm:$0xf0]  ;;  %v13412_v8 = vpop.f32.mrf.mxu0 }
 0x624   : > { %4632 = vst [vmem:[#allocation2 + $0x448] sm:$0xff] %v4624_v59  ;;  %v8099_v57 = vld [vmem:[#allocation2 + $0x368] sm:$0xf] }
 0x625   : > { %4633 = vst [vmem:[#allocation2 + $0x458] sm:$0xff] %v4625_v42  ;;  %v8100_v35 = vor.u32 %v8598_v17, %v8099_v57  ;;  %v7813_v42 = vld [vmem:[#allocation2 + $0x138] sm:$0xf0] }
 0x626   : > { %v4407_v52 = vpop.permute.xlu1 %4406 }
 0x627   : > { %6135 = vmatpush.bf16.msrb.mxu0 %v7864_v48  ;;  %6049 = vmatpush.bf16.msra.mxu1 %v8100_v35  ;;  %v4405_v58 = vpop.permute.xlu0 %4404  ;;  %v7832_v48 = vor.u32 %v8528_v49, %v7829_v18  ;;  %v13427_v19 = vpop.f32.mrf.mxu2 }
 0x628   : > { %v13414_v41 = vpop.permute.xlu2 %4418  ;;  %v4432_v45 = vsel %vm781_vm5, %v4405_v58, %v13345_v60  ;;  %v4440_v15 = vsel %vm781_vm5, %v13345_v60, %v4405_v58  ;;  %v13422_v57 = vpop.f32.mrf.mxu1  ;;  %14345 = vst [vmem:[#allocation43_spill] sm:$0xff] %v13427_v19 }
 0x629   : > { %v4452_v55 = vmul.f32 %v4432_v45, %v14286_v26  ;;  %v4453_v59 = vmul.f32 %v4440_v15, %v14287_v29  ;;  %v7816_v45 = vor.u32 %v8524_v63, %v7813_v42  ;;  %v13429_v16 = vpop.f32.mrf.mxu3  ;;  %v7797_v15 = vld [vmem:[#allocation2 + $0x118] sm:$0xf0]  ;;  %v8520_v42 = vld [vmem:[#allocation2 + $0x10c] sm:$0xf] }
 0x62a   : > { %6029 = vmatmul.bf16.gmra.mxu0 %v12660_v11  ;;  %14346 = vst [vmem:[#allocation63_spill] sm:$0xff] %v13429_v16 }
 0x62b   : > { %6136 = vmatpush.bf16.msrb.mxu0 %v7848_v31  ;;  %v4464_v17 = vpack.c.bf16 %v4453_v59, %v4452_v55  ;;  %v8211_v13 = vld [vmem:[#allocation2 + $0x448] sm:$0xf]  ;;  %v8624_v35 = vld [vmem:[#allocation2 + $0x44c] sm:$0xf] }
 0x62c   : > { %v8626_v3 = vld [vmem:[#allocation2 + $0x454] sm:$0xf0]  ;;  %v8213_v12 = vld [vmem:[#allocation2 + $0x458] sm:$0xf0] }
 0x62d   : > { %4472 = vst [vmem:[#allocation2 + $0x348] sm:$0xff] %v4464_v17  ;;  %v8212_v60 = vor.u32 %v8626_v3, %v8211_v13  ;;  %v8216_v31 = vor.u32 %v8624_v35, %v8213_v12  ;;  %v7800_v17 = vor.u32 %v8520_v42, %v7797_v15 }
 0x62e   : > { %v4561_v58 = vpop.permute.xlu1 %4560 }
 0x62f   : > { %6137 = vmatpush.bf16.msrb.mxu0 %v7832_v48  ;;  %v4423_v18 = vpop.permute.xlu0 %4422  ;;  %6079 = vmatpush.bf16.msrb.mxu2 %v8212_v60  ;;  %v13437_v48 = vpop.f32.mrf.mxu0 }
 0x630   : > { %v13431_v49 = vpop.permute.xlu2 %4572  ;;  %6224 = vmatpush.bf16.msrb.mxu3 %v8216_v31  ;;  %v4433_v55 = vsel %vm781_vm5, %v4407_v52, %v4423_v18  ;;  %v4441_v59 = vsel %vm781_vm5, %v4423_v18, %v4407_v52  ;;  %14347 = vst [vmem:[#allocation56_spill] sm:$0xff] %v13437_v48  ;;  %v13441_v13 = vpop.f32.mrf.mxu1 }
 0x631   : > { %v4454_v12 = vmul.f32 %v4433_v55, %v14286_v26  ;;  %v4455_v3 = vmul.f32 %v4441_v59, %v14287_v29  ;;  %14348 = vst [vmem:[#allocation36_spill] sm:$0xff] %v13441_v13  ;;  %v13444_v60 = vpop.f32.mrf.mxu2 }
 0x632   : > { %6126 = vmatmul.bf16.gmra.mxu3 %v12581_v61 }
 0x633   : > { %6138 = vmatpush.bf16.msrb.mxu0 %v7816_v45  ;;  %v4465_v35 = vpack.c.bf16 %v4455_v3, %v4454_v12  ;;  %v13460_v12 = vpop.f32.mrf.mxu3 }
 0x635   : > { %4473 = vst [vmem:[#allocation2 + $0x358] sm:$0xff] %v4465_v35 }
 0x636   : > { %v4579_v63 = vpop.permute.xlu1 %4578 }
 0x637   : > { %6139 = vmatpush.bf16.msrb.mxu0 %v7800_v17  ;;  %v4591_v52 = vsel %vm947_vm7, %v13368_v40, %v4579_v63  ;;  %v4599_v31 = vsel %vm947_vm7, %v4579_v63, %v13368_v40  ;;  %v4577_v18 = vpop.permute.xlu0 %4576  ;;  %v13465_v17 = vpop.f32.mrf.mxu0  ;;  %v8083_v63 = vld [vmem:[#allocation2 + $0x348] sm:$0xf] }
 0x638   : > { %v13452_v45 = vpop.permute.xlu2 %4398  ;;  %v4610_v15 = vmul.f32 %v13330_v5, %v4591_v52  ;;  %v4611_v61 = vmul.f32 %v13336_v9, %v4599_v31  ;;  %v4590_v55 = vsel %vm947_vm7, %v4561_v58, %v4577_v18  ;;  %v4598_v59 = vsel %vm947_vm7, %v4577_v18, %v4561_v58  ;;  %v13467_v31 = vpop.f32.mrf.mxu1 }
 0x639   : > { %v4608_v3 = vmul.f32 %v13330_v5, %v4590_v55  ;;  %v4609_v42 = vmul.f32 %v13336_v9, %v4598_v59 }
 0x63a   : > { %v4623_v40 = vpack.c.bf16 %v4611_v61, %v4610_v15  ;;  %6034 = vmatmul.bf16.gmra.mxu0 %v12729_v39 }
 0x63b   : > { %v4622_v35 = vpack.c.bf16 %v4609_v42, %v4608_v3 }
 0x63c   : > { %4631 = vst [vmem:[#allocation2 + $0x438] sm:$0xff] %v4623_v40  ;;  %v8594_v52 = vld [vmem:[#allocation2 + $0x354] sm:$0xf0] }
 0x63d   : > { %4630 = vst [vmem:[#allocation2 + $0x428] sm:$0xff] %v4622_v35  ;;  %v8084_v13 = vor.u32 %v8594_v52, %v8083_v63  ;;  %v5868_v35 = vpop.f32.mrf.mxu2 }
 0x63e   : > { %v4417_v58 = vpop.permute.xlu1 %4416 }
 0x63f   : > { %v4430_v18 = vsel %vm781_vm5, %v13393_v22, %v4417_v58  ;;  %v4438_v15 = vsel %vm781_vm5, %v4417_v58, %v13393_v22  ;;  %6050 = vmatpush.bf16.msra.mxu1 %v8084_v13  ;;  %v4403_v55 = vpop.permute.xlu0 %4402  ;;  %v5926_v4 = vpop.f32.mrf.mxu0 }
 0x640   : > { %v13475_v61 = vpop.permute.xlu2 %4833  ;;  %v4448_v59 = vmul.f32 %v4430_v18, %v14286_v26  ;;  %v4449_v3 = vmul.f32 %v4438_v15, %v14287_v29  ;;  %v4431_v40 = vsel %vm781_vm5, %v4403_v55, %v13414_v41  ;;  %v4439_v22 = vsel %vm781_vm5, %v13414_v41, %v4403_v55 }
 0x641   : > { %v5695_v42 = vadd.f32 %v13057_v0, %v13475_v61  ;;  %v4450_v63 = vmul.f32 %v4431_v40, %v14286_v26  ;;  %v5840_v13 = vadd.f32 %v13306_v25, %v13475_v61  ;;  %v4451_v18 = vmul.f32 %v4439_v22, %v14287_v29  ;;  %v5897_v0 = vpop.f32.mrf.mxu3 }
 0x642   : > { %v4462_v52 = vpack.c.bf16 %v4449_v3, %v4448_v59  ;;  %v5955_v59 = vpop.f32.mrf.mxu1 }
 0x643   : > { %v5724_v58 = vadd.f32 %v13075_v33, %v5695_v42  ;;  %v8622_v15 = vld [vmem:[#allocation2 + $0x434] sm:$0xf0]  ;;  %v8197_v48 = vld [vmem:[#allocation2 + $0x438] sm:$0xf0]  ;;  %v5869_v16 = vadd.f32 %v5868_v35, %v5840_v13  ;;  %v4463_v19 = vpack.c.bf16 %v4451_v18, %v4450_v63 }
 0x644   : > { %4470 = vst [vmem:[#allocation2 + $0x328] sm:$0xff] %v4462_v52  ;;  %v8195_v39 = vld [vmem:[#allocation2 + $0x428] sm:$0xf]  ;;  %v8620_v11 = vld [vmem:[#allocation2 + $0x42c] sm:$0xf] }
 0x645   : > { %v5753_v41 = vadd.f32 %v13281_v30, %v5724_v58  ;;  %v8196_v55 = vor.u32 %v8622_v15, %v8195_v39  ;;  %v8200_v40 = vor.u32 %v8620_v11, %v8197_v48  ;;  %v5898_v32 = vadd.f32 %v5897_v0, %v5869_v16  ;;  %4471 = vst [vmem:[#allocation2 + $0x338] sm:$0xff] %v4463_v19 }
 0x646   : > { %v4559_v25 = vpop.permute.xlu1 %4558 }
 0x647   : > { %v5782_v33 = vadd.f32 %v13283_v43, %v5753_v41  ;;  %v4557_v42 = vpop.permute.xlu0 %4556  ;;  %6080 = vmatpush.bf16.msrb.mxu2 %v8196_v55  ;;  %6225 = vmatpush.bf16.msrb.mxu3 %v8200_v40  ;;  %v5927_v35 = vadd.f32 %v5926_v4, %v5898_v32 }
 0x648   : > { %v13494_v3 = vpop.permute.xlu2 %4821  ;;  %v4588_v39 = vsel %vm947_vm7, %v4557_v42, %v13431_v49  ;;  %v4596_v19 = vsel %vm947_vm7, %v13431_v49, %v4557_v42 }
 0x649   : > { %v5833_v22 = vadd.f32 %v13217_v46, %v13494_v3  ;;  %v4604_v16 = vmul.f32 %v13330_v5, %v4588_v39  ;;  %v4605_v11 = vmul.f32 %v13336_v9, %v4596_v19  ;;  %v13507_v43 = vadd.f32 %v13288_v53, %v5782_v33  ;;  %v8612_v39 = vld [vmem:[#allocation2 + $0x3ec] sm:$0xf] }
 0x64a   : > { %v13509_v30 = vadd.f32 %v5955_v59, %v5927_v35  ;;  %6039 = vmatmul.bf16.gmra.mxu0 %v12794_v54 }
 0x64b   : > { %v5862_v4 = vadd.f32 %v13408_v14, %v5833_v22  ;;  %v4620_v32 = vpack.c.bf16 %v4605_v11, %v4604_v16  ;;  %v8067_v46 = vld [vmem:[#allocation2 + $0x328] sm:$0xf]  ;;  %v8165_v11 = vld [vmem:[#allocation2 + $0x3f8] sm:$0xf0] }
 0x64c   : > { %v6269_v48 = vadd.f32 %v13509_v30, %v13507_v43  ;;  %v8590_v63 = vld [vmem:[#allocation2 + $0x334] sm:$0xf0]  ;;  %v8168_v20 = vor.u32 %v8612_v39, %v8165_v11  ;;  %v7989_v39 = vld [vmem:[#allocation2 + $0x298] sm:$0xf0] }
 0x64d   : > { %v5891_v49 = vadd.f32 %v13410_v24, %v5862_v4  ;;  %4628 = vst [vmem:[#allocation2 + $0x408] sm:$0xff] %v4620_v32  ;;  %v8068_v52 = vor.u32 %v8590_v63, %v8067_v46  ;;  %v14349_v11 = vld [vmem:[#allocation46_spill] sm:$0xff] }
 0x64e   : > { %6270 = vadd.xlane.f32.xlu2 %v6269_v48  ;;  %v4397_v13 = vpop.permute.xlu1 %4396 }
 0x64f   : > { %v13517_v53 = vadd.f32 %v13412_v8, %v5891_v49  ;;  %v4575_v14 = vpop.permute.xlu0 %4574  ;;  %6051 = vmatpush.bf16.msra.mxu1 %v8068_v52 }
 0x650   : > { %v13519_v58 = vpop.permute.xlu2 %4813  ;;  %v4589_v0 = vsel %vm947_vm7, %v4559_v25, %v4575_v14  ;;  %v4597_v24 = vsel %vm947_vm7, %v4575_v14, %v4559_v25 }
 0x651   : > { %v5828_v18 = vadd.f32 %v13158_v6, %v13519_v58  ;;  %v4606_v15 = vmul.f32 %v13330_v5, %v4589_v0  ;;  %v4607_v41 = vmul.f32 %v13336_v9, %v4597_v24 }
 0x653   : > { %v5857_v8 = vadd.f32 %v13356_v27, %v5828_v18  ;;  %v4621_v55 = vpack.c.bf16 %v4607_v41, %v4606_v15  ;;  %v8037_v18 = vld [vmem:[#allocation2 + $0x2f8] sm:$0xf0] }
 0x654   : > { %v8179_v19 = vld [vmem:[#allocation2 + $0x408] sm:$0xf]  ;;  %v8616_v16 = vld [vmem:[#allocation2 + $0x40c] sm:$0xf]  ;;  %v8133_v15 = vld [vmem:[#allocation2 + $0x3b8] sm:$0xf0] }
 0x655   : > { %v5886_v40 = vadd.f32 %v13358_v38, %v5857_v8  ;;  %4629 = vst [vmem:[#allocation2 + $0x418] sm:$0xff] %v4621_v55  ;;  %v8604_v8 = vld [vmem:[#allocation2 + $0x3ac] sm:$0xf] }
 0x656   : > { %v4415_v33 = vpop.permute.xlu1 %4414 }
 0x657   : > { %v13532_v6 = vadd.f32 %v13360_v62, %v5886_v40  ;;  %v4429_v59 = vsel %vm781_vm5, %v13452_v45, %v4415_v33  ;;  %v4437_v5 = vsel %vm781_vm5, %v4415_v33, %v13452_v45  ;;  %v4413_v25 = vpop.permute.xlu0 %4412  ;;  %v8136_v40 = vor.u32 %v8604_v8, %v8133_v15  ;;  %v5996_v8 = vpop.f32.mrf.mxu3 }
 0x658   : > { %v4446_v9 = vmul.f32 %v4429_v59, %v14286_v26  ;;  %v4447_v27 = vmul.f32 %v4437_v5, %v14287_v29  ;;  %v4428_v38 = vsel %vm781_vm5, %v4397_v13, %v4413_v25  ;;  %v4436_v62 = vsel %vm781_vm5, %v4413_v25, %v4397_v13  ;;  %v8600_v5 = vld [vmem:[#allocation2 + $0x38c] sm:$0xf]  ;;  %v8117_v25 = vld [vmem:[#allocation2 + $0x398] sm:$0xf0] }
 0x659   : > { %v4444_v42 = vmul.f32 %v4428_v38, %v14286_v26  ;;  %v4445_v35 = vmul.f32 %v4436_v62, %v14287_v29  ;;  %v5688_v26 = vadd.f32 %v12985_v21, %v13494_v3  ;;  %v8608_v29 = vld [vmem:[#allocation2 + $0x3cc] sm:$0xf]  ;;  %v8005_v38 = vld [vmem:[#allocation2 + $0x2b8] sm:$0xf0] }
 0x65a   : > { %v4461_v22 = vpack.c.bf16 %v4447_v27, %v4446_v9  ;;  %6140 = vmatmul.bf16.vlgmr.msrb.gmra.mxu0 %v12321_v7  ;;  %v8149_v7 = vld [vmem:[#allocation2 + $0x3d8] sm:$0xf0]  ;;  %v8120_v27 = vor.u32 %v8600_v5, %v8117_v25  ;;  %v8596_v62 = vld [vmem:[#allocation2 + $0x36c] sm:$0xf] }
 0x65b   : > { %v4460_v45 = vpack.c.bf16 %v4445_v35, %v4444_v42  ;;  %v8152_v21 = vor.u32 %v8608_v29, %v8149_v7  ;;  %v5717_v0 = vadd.f32 %v12995_v1, %v5688_v26  ;;  %v8021_v1 = vld [vmem:[#allocation2 + $0x2d8] sm:$0xf0] }
 0x65c   : > { %4469 = vst [vmem:[#allocation2 + $0x318] sm:$0xff] %v4461_v22  ;;  %v8618_v4 = vld [vmem:[#allocation2 + $0x414] sm:$0xf0]  ;;  %v8181_v32 = vld [vmem:[#allocation2 + $0x418] sm:$0xf0] }
 0x65d   : > { %4468 = vst [vmem:[#allocation2 + $0x308] sm:$0xff] %v4460_v45  ;;  %v8180_v46 = vor.u32 %v8618_v4, %v8179_v19  ;;  %v8184_v48 = vor.u32 %v8616_v16, %v8181_v32  ;;  %v8101_v42 = vld [vmem:[#allocation2 + $0x378] sm:$0xf0]  ;;  %v8568_v22 = vld [vmem:[#allocation2 + $0x28c] sm:$0xf] }
 0x65e   : > { %v8104_v35 = vor.u32 %v8596_v62, %v8101_v42  ;;  %v8085_v45 = vld [vmem:[#allocation2 + $0x358] sm:$0xf0]  ;;  %v8592_v16 = vld [vmem:[#allocation2 + $0x34c] sm:$0xf] }
 0x65f   : > { %v13551_v49 = vpop.permute.xlu0 %4829  ;;  %6081 = vmatpush.bf16.msrb.mxu2 %v8180_v46  ;;  %6226 = vmatpush.bf16.msrb.mxu3 %v8184_v48  ;;  %v8088_v4 = vor.u32 %v8592_v16, %v8085_v45  ;;  %v8588_v46 = vld [vmem:[#allocation2 + $0x32c] sm:$0xf]  ;;  %v8069_v48 = vld [vmem:[#allocation2 + $0x338] sm:$0xf0]  ;;  %v5998_v5 = vpop.f32.mrf.mxu3 }
 0x660   : > { %v5693_v63 = vadd.f32 %v13028_v50, %v13551_v49  ;;  %v5838_v13 = vadd.f32 %v13277_v2, %v13551_v49  ;;  %v8580_v50 = vld [vmem:[#allocation2 + $0x2ec] sm:$0xf]  ;;  %v7957_v26 = vld [vmem:[#allocation2 + $0x258] sm:$0xf0] }
 0x661   : > { %v8040_v55 = vor.u32 %v8580_v50, %v8037_v18  ;;  %v5967_v18 = vpop.f32.mrf.mxu2  ;;  %v8556_v50 = vld [vmem:[#allocation2 + $0x22c] sm:$0xf] }
 0x662   : > { %v5722_v52 = vadd.f32 %v13044_v51, %v5693_v63  ;;  %v5867_v14 = vadd.f32 %v13444_v60, %v5838_v13  ;;  %8241 = vmatmul.msk.bf16.vlgmr.msrb.gmra.mxu2 %vm2699_vm8, %v12639_v10  ;;  %8245 = vmatmul.msk.bf16.vlgmr.msrb.gmra.mxu3 %vm2699_vm8, %v12639_v10  ;;  %v5746_v10 = vadd.f32 %v13195_v56, %v5717_v0  ;;  %v8560_v63 = vld [vmem:[#allocation2 + $0x24c] sm:$0xf]  ;;  %v14350_v13 = vld [vmem:[#allocation34_spill] sm:$0xff]  ;;  %v13595_v0 = vpop.permute.xlu1 %4825 }
 0x663   : > { %6190 = vmatpush.bf16.msra.mxu2 %v8168_v20  ;;  %v8586_v24 = vld [vmem:[#allocation2 + $0x314] sm:$0xf0]  ;;  %v8072_v20 = vor.u32 %v8588_v46, %v8069_v48  ;;  %v8053_v7 = vld [vmem:[#allocation2 + $0x318] sm:$0xf0] }
 0x664   : > { %v5751_v2 = vadd.f32 %v13248_v36, %v5722_v52  ;;  %v5896_v41 = vadd.f32 %v13460_v12, %v5867_v14  ;;  %v8051_v51 = vld [vmem:[#allocation2 + $0x308] sm:$0xf]  ;;  %v8576_v12 = vld [vmem:[#allocation2 + $0x2cc] sm:$0xf]  ;;  %v7960_v52 = vor.u32 %v8560_v63, %v7957_v26  ;;  %v14357_v26 = vld [vmem:[#allocation62_spill] sm:$0xff] }
 0x665   : > { %v8052_v60 = vor.u32 %v8586_v24, %v8051_v51  ;;  %v8584_v29 = vld [vmem:[#allocation2 + $0x30c] sm:$0xf]  ;;  %v7941_v24 = vld [vmem:[#allocation2 + $0x238] sm:$0xf0]  ;;  %v14352_v51 = vld [vmem:[#allocation51_spill] sm:$0xff] }
 0x666   : > { %v5780_v33 = vadd.f32 %v13250_v23, %v5751_v2  ;;  %v5925_v59 = vadd.f32 %v13465_v17, %v5896_v41  ;;  %v8024_v23 = vor.u32 %v8576_v12, %v8021_v1  ;;  %v8572_v17 = vld [vmem:[#allocation2 + $0x2ac] sm:$0xf]  ;;  %v8056_v14 = vor.u32 %v8584_v29, %v8053_v7  ;;  %v7925_v2 = vld [vmem:[#allocation2 + $0x218] sm:$0xf0] }
 0x667   : > { %6191 = vmatpush.bf16.msra.mxu2 %v8152_v21  ;;  %6052 = vmatpush.bf16.msra.mxu1 %v8052_v60  ;;  %v14351_v21 = vld [vmem:[#allocation42_spill] sm:$0xff]  ;;  %v7944_v15 = vor.u32 %v8556_v50, %v7941_v24  ;;  %v8552_v41 = vld [vmem:[#allocation2 + $0x20c] sm:$0xf] }
 0x668   : > { %v13570_v36 = vadd.f32 %v13261_v28, %v5780_v33  ;;  %v13573_v9 = vadd.f32 %v13467_v31, %v5925_v59  ;;  %v5775_v28 = vadd.f32 %v13198_v44, %v5746_v10  ;;  %v8008_v31 = vor.u32 %v8572_v17, %v8005_v38  ;;  %v13603_v33 = vpop.permute.xlu0 %4809  ;;  %v14353_v10 = vld [vmem:[#allocation58_spill] sm:$0xff]  ;;  %v14354_v1 = vld [vmem:[#allocation32_spill] sm:$0xff]  ;;  %v6001_v38 = vpop.f32.mrf.mxu3 }
 0x669   : > { %v7992_v44 = vor.u32 %v8568_v22, %v7989_v39  ;;  %v7928_v60 = vor.u32 %v8552_v41, %v7925_v2  ;;  %v14356_v39 = vld [vmem:[#allocation50_spill] sm:$0xff]  ;;  %v14358_v41 = vld [vmem:[#allocation60_spill] sm:$0xff] }
 0x66a   : > { %6053 = vmatmul.bf16.vlgmr.msra.gmra.mxu1 %v12424_v37  ;;  %6145 = vmatmul.bf16.gmra.mxu0 %v12486_v47  ;;  %v6266_v56 = vadd.f32 %v13573_v9, %v13570_v36  ;;  %v13581_v19 = vadd.f32 %v13207_v34, %v5775_v28  ;;  %v13585_v47 = vadd.f32 %v13422_v57, %v13517_v53  ;;  %v7973_v34 = vld [vmem:[#allocation2 + $0x278] sm:$0xf0]  ;;  %v8564_v57 = vld [vmem:[#allocation2 + $0x26c] sm:$0xf] }
 0x66b   : > { %6161 = vmatpush.bf16.msrb.mxu1 %v8040_v55  ;;  %6192 = vmatpush.bf16.msra.mxu2 %v8136_v40  ;;  %v7976_v53 = vor.u32 %v8564_v57, %v7973_v34  ;;  %v5969_v55 = vpop.f32.mrf.mxu2  ;;  %v13601_v40 = vpop.permute.xlu1 %4817 }
 0x66c   : > { %6267 = vadd.xlane.f32.xlu1 %v6266_v56  ;;  %v6260_v32 = vadd.f32 %v13585_v47, %v13581_v19  ;;  %v5970_v59 = vadd.f32 %v5969_v55, %v13603_v33  ;;  %v14355_v56 = vld [vmem:[#allocation54_spill] sm:$0xff] }
 0x66e   : > { %v5999_v12 = vadd.f32 %v5998_v5, %v5970_v59  ;;  %v14359_v5 = vld [vmem:[#allocation26_spill] sm:$0xff] }
 0x66f   : > { %6162 = vmatpush.bf16.msrb.mxu1 %v8024_v23  ;;  %6193 = vmatpush.bf16.msra.mxu2 %v8120_v27 }
 0x670   : > { %v6003_v45 = vpop.f32.mrf.mxu3 }
 0x672   : > { %8242 = vmatmul.msk.bf16.gmra.mxu2 %vm2699_vm8, %v14349_v11  ;;  %8246 = vmatmul.msk.bf16.gmra.mxu3 %vm2699_vm8, %v14349_v11 }
 0x673   : > { %6163 = vmatpush.bf16.msrb.mxu1 %v8008_v31  ;;  %6194 = vmatpush.bf16.msra.mxu2 %v8104_v35  ;;  %v5972_v25 = vpop.f32.mrf.mxu2  ;;  %v13608_v23 = vpop.permute.xlu1 %4805 }
 0x674   : > { %6261 = vadd.xlane.f32.xlu1 %v6260_v32  ;;  %v5973_v27 = vadd.f32 %v5972_v25, %v13519_v58  ;;  %v5968_v17 = vadd.f32 %v5967_v18, %v13608_v23 }
 0x676   : > { %v6002_v42 = vadd.f32 %v6001_v38, %v5973_v27  ;;  %v5997_v28 = vadd.f32 %v5996_v8, %v5968_v17 }
 0x677   : > { %6164 = vmatpush.bf16.msrb.mxu1 %v7992_v44  ;;  %6195 = vmatpush.bf16.msra.mxu2 %v8088_v4 }
 0x678   : > { %v6006_v34 = vpop.f32.mrf.mxu3 }
 0x67a   : > { %6058 = vmatmul.bf16.gmra.mxu1 %v14350_v13  ;;  %6150 = vmatmul.bf16.gmra.mxu0 %v14351_v21 }
 0x67b   : > { %6165 = vmatpush.bf16.msrb.mxu1 %v7976_v53  ;;  %6196 = vmatpush.bf16.msra.mxu2 %v8072_v20  ;;  %v5974_v62 = vpop.f32.mrf.mxu2 }
 0x67c   : > { %v5975_v35 = vadd.f32 %v5974_v62, %v13601_v40 }
 0x67e   : > { %v6004_v11 = vadd.f32 %v6003_v45, %v5975_v35 }
 0x67f   : > { %6166 = vmatpush.bf16.msrb.mxu1 %v7960_v52  ;;  %6197 = vmatpush.bf16.msra.mxu2 %v8056_v14 }
 0x680   : > { %v6008_v29 = vpop.f32.mrf.mxu3 }
 0x682   : > { %8243 = vmatmul.msk.bf16.gmra.mxu2 %vm2699_vm8, %v14352_v51  ;;  %8247 = vmatmul.msk.bf16.gmra.mxu3 %vm2699_vm8, %v14352_v51 }
 0x683   : > { %6167 = vmatpush.bf16.msrb.mxu1 %v7944_v15  ;;  %v5977_v16 = vpop.f32.mrf.mxu2 }
 0x684   : > { %v5978_v4 = vadd.f32 %v5977_v16, %v13494_v3 }
 0x686   : > { %v6007_v48 = vadd.f32 %v6006_v34, %v5978_v4 }
 0x687   : > { %6168 = vmatpush.bf16.msrb.mxu1 %v7928_v60 }
 0x688   : > { %v6011_v18 = vpop.f32.mrf.mxu3 }
 0x68a   : > { %6063 = vmatmul.bf16.gmra.mxu1 %v14353_v10  ;;  %6155 = vmatmul.bf16.gmra.mxu0 %v14354_v1 }
 0x68b   : > { %v5979_v46 = vpop.f32.mrf.mxu2 }
 0x68c   : > { %v5980_v53 = vadd.f32 %v5979_v46, %v13595_v0 }
 0x68e   : > { %v6009_v63 = vadd.f32 %v6008_v29, %v5980_v53 }
 0x690   : > { %v6013_v51 = vpop.f32.mrf.mxu3 }
 0x692   : > { %8244 = vmatmul.msk.bf16.gmra.mxu2 %vm2699_vm8, %v14355_v56  ;;  %8248 = vmatmul.msk.bf16.gmra.mxu3 %vm2699_vm8, %v14355_v56 }
 0x693   : > { %v5982_v7 = vpop.f32.mrf.mxu2 }
 0x694   : > { %v5983_v14 = vadd.f32 %v5982_v7, %v13551_v49 }
 0x697   : > { %v6025_v31 = vpop.f32.mrf.mxu0 }
 0x698   : > { %v6026_v22 = vadd.f32 %v6025_v31, %v5997_v28 }
 0x69a   : > { %6068 = vmatmul.bf16.gmra.mxu1 %v14356_v39 }
 0x69b   : > { %v5984_v24 = vpop.f32.mrf.mxu2 }
 0x69c   : > { %v5985_v15 = vadd.f32 %v5984_v24, %v13475_v61 }
 0x69e   : > { %v6014_v60 = vadd.f32 %v6013_v51, %v5985_v15 }
 0x69f   : > { %v6027_v44 = vpop.f32.mrf.mxu0 }
 0x6a0   : > { %v6028_v32 = vadd.f32 %v6027_v44, %v5999_v12 }
 0x6a2   : > { %6198 = vmatmul.bf16.vlgmr.msra.gmra.mxu2 %v12424_v37  ;;  %v6012_v37 = vadd.f32 %v6011_v18, %v5983_v14 }
 0x6a7   : > { %v6030_v57 = vpop.f32.mrf.mxu0 }
 0x6a8   : > { %v6031_v20 = vadd.f32 %v6030_v57, %v6002_v42 }
 0x6aa   : > { %6169 = vmatmul.bf16.vlgmr.msrb.gmra.mxu1 %v14357_v26 }
 0x6af   : > { %v6032_v52 = vpop.f32.mrf.mxu0 }
 0x6b0   : > { %v6033_v21 = vadd.f32 %v6032_v52, %v6004_v11 }
 0x6b2   : > { %6203 = vmatmul.bf16.gmra.mxu2 %v14350_v13  ;;  %v13628_v13 = vpop.f32.mrf.mxu3 }
 0x6b7   : > { %v6035_v50 = vpop.f32.mrf.mxu0 }
 0x6b8   : > { %v6036_v2 = vadd.f32 %v6035_v50, %v6007_v48 }
 0x6ba   : > { %6174 = vmatmul.bf16.gmra.mxu1 %v14358_v41  ;;  %v6114_v17 = vpop.f32.mrf.mxu3 }
 0x6bb   : > { %v6115_v56 = vadd.f32 %v6114_v17, %v13603_v33 }
 0x6bf   : > { %v6037_v8 = vpop.f32.mrf.mxu0 }
 0x6c0   : > { %v6038_v55 = vadd.f32 %v6037_v8, %v6009_v63 }
 0x6c2   : > { %6208 = vmatmul.bf16.gmra.mxu2 %v14353_v10  ;;  %v6117_v10 = vpop.f32.mrf.mxu3 }
 0x6c3   : > { %v6118_v42 = vadd.f32 %v6117_v10, %v13519_v58 }
 0x6c7   : > { %v6040_v59 = vpop.f32.mrf.mxu0 }
 0x6c8   : > { %v6041_v1 = vadd.f32 %v6040_v59, %v6012_v37 }
 0x6ca   : > { %6179 = vmatmul.bf16.gmra.mxu1 %v14359_v5 }
 0x6cf   : > { %v6042_v25 = vpop.f32.mrf.mxu0 }
 0x6d0   : > { %v6043_v12 = vadd.f32 %v6042_v25, %v6014_v60 }
 0x6d2   : > { %6213 = vmatmul.bf16.gmra.mxu2 %v14356_v39  ;;  %v6119_v39 = vpop.f32.mrf.mxu3 }
 0x6d7   : > { %v13631_v27 = vpop.f32.mrf.mxu0 }
 0x6da   : > { %6184 = vmatmul.bf16.gmra.mxu1 %v12794_v54  ;;  %v13640_v48 = vpop.f32.mrf.mxu3 }
 0x6df   : > { %v6143_v38 = vpop.f32.mrf.mxu0 }
 0x6e0   : > { %v6144_v62 = vadd.f32 %v6143_v38, %v6115_v56 }
 0x6e2   : > { %v13644_v63 = vpop.f32.mrf.mxu3 }
 0x6e5   : > { %v6083_v28 = vpop.f32.mrf.mxu2 }
 0x6e7   : > { %v6054_v31 = vpop.f32.mrf.mxu1  ;;  %v6146_v35 = vpop.f32.mrf.mxu0 }
 0x6e8   : > { %v6055_v45 = vadd.f32 %v6054_v31, %v6026_v22  ;;  %v6147_v16 = vadd.f32 %v6146_v35, %v6118_v42 }
 0x6ea   : > { %v13636_v11 = vadd.f32 %v6083_v28, %v6055_v45 }
 0x6ed   : > { %v6085_v44 = vpop.f32.mrf.mxu2 }
 0x6ef   : > { %v6056_v4 = vpop.f32.mrf.mxu1 }
 0x6f0   : > { %v6057_v34 = vadd.f32 %v6056_v4, %v6028_v32  ;;  %v13648_v32 = vpop.f32.mrf.mxu3 }
 0x6f2   : > { %v13638_v46 = vadd.f32 %v6085_v44, %v6057_v34  ;;  %v6148_v44 = vpop.f32.mrf.mxu0 }
 0x6f5   : > { %v6088_v54 = vpop.f32.mrf.mxu2 }
 0x6f7   : > { %v6059_v57 = vpop.f32.mrf.mxu1 }
 0x6f8   : > { %v6060_v53 = vadd.f32 %v6059_v57, %v6031_v20  ;;  %v13654_v51 = vpop.f32.mrf.mxu3  ;;  %v14360_v57 = vld [vmem:[#allocation27_spill] sm:$0xff] }
 0x6fa   : > { %v13642_v26 = vadd.f32 %v6088_v54, %v6060_v53  ;;  %v5680_v53 = vadd.f32 %v14360_v57, %v13603_v33 }
 0x6fd   : > { %v6090_v29 = vpop.f32.mrf.mxu2 }
 0x6ff   : > { %v6061_v7 = vpop.f32.mrf.mxu1 }
 0x700   : > { %v6062_v22 = vadd.f32 %v6061_v7, %v6033_v21  ;;  %v6228_v25 = vpop.f32.mrf.mxu3  ;;  %v6120_v7 = vadd.f32 %v6119_v39, %v13601_v40  ;;  %v6113_v39 = vadd.f32 %v13628_v13, %v13608_v23 }
 0x702   : > { %v13646_v52 = vadd.f32 %v6090_v29, %v6062_v22 }
 0x705   : > { %v6093_v14 = vpop.f32.mrf.mxu2 }
 0x707   : > { %v6064_v18 = vpop.f32.mrf.mxu1 }
 0x708   : > { %v6065_v37 = vadd.f32 %v6064_v18, %v6036_v2  ;;  %v6230_v42 = vpop.f32.mrf.mxu3 }
 0x70a   : > { %v13650_v24 = vadd.f32 %v6093_v14, %v6065_v37 }
 0x70d   : > { %v6095_v50 = vpop.f32.mrf.mxu2 }
 0x70f   : > { %v6066_v15 = vpop.f32.mrf.mxu1 }
 0x710   : > { %v6067_v41 = vadd.f32 %v6066_v15, %v6038_v55  ;;  %v6233_v35 = vpop.f32.mrf.mxu3 }
 0x712   : > { %v13652_v20 = vadd.f32 %v6095_v50, %v6067_v41  ;;  %v14362_v50 = vld [vmem:[#allocation19_spill] sm:$0xff]  ;;  %v14363_v41 = vld [vmem:[#allocation37_spill] sm:$0xff] }
 0x713   : > { %v5709_v15 = vadd.f32 %v14362_v50, %v5680_v53  ;;  %v6142_v53 = vadd.f32 %v13631_v27, %v6113_v39 }
 0x715   : > { %v6098_v60 = vpop.f32.mrf.mxu2 }
 0x717   : > { %v6069_v8 = vpop.f32.mrf.mxu1 }
 0x718   : > { %v6070_v59 = vadd.f32 %v6069_v8, %v6041_v1  ;;  %v6235_v14 = vpop.f32.mrf.mxu3  ;;  %v6149_v8 = vadd.f32 %v6148_v44, %v6120_v7  ;;  %v14369_v7 = vld [vmem:[#allocation35_spill] sm:$0xff] }
 0x71a   : > { %v13656_v21 = vadd.f32 %v6098_v60, %v6070_v59 }
 0x71d   : > { %v6100_v5 = vpop.f32.mrf.mxu2 }
 0x71f   : > { %v6071_v17 = vpop.f32.mrf.mxu1 }
 0x720   : > { %v6072_v2 = vadd.f32 %v6071_v17, %v6043_v12  ;;  %v14361_v12 = vld [vmem:[#allocation17_spill] sm:$0xff] }
 0x721   : > { %v5825_v29 = vadd.f32 %v14361_v12, %v13603_v33 }
 0x722   : > { %v13658_v56 = vadd.f32 %v6100_v5, %v6072_v2  ;;  %v14364_v5 = vld [vmem:[#allocation5_spill] sm:$0xff] }
 0x723   : > { %v5854_v60 = vadd.f32 %v14363_v41, %v5825_v29  ;;  %v5738_v17 = vadd.f32 %v14364_v5, %v5709_v15  ;;  %v14365_v2 = vld [vmem:[#allocation45_spill] sm:$0xff]  ;;  %v14368_v29 = vld [vmem:[#allocation16_spill] sm:$0xff] }
 0x725   : > { %v6199_v38 = vpop.f32.mrf.mxu2 }
 0x727   : > { %v6170_v10 = vpop.f32.mrf.mxu1 }
 0x728   : > { %v6171_v12 = vadd.f32 %v6170_v10, %v6142_v53  ;;  %v14371_v10 = vld [vmem:[#allocation65_spill] sm:$0xff] }
 0x72d   : > { %v6201_v28 = vpop.f32.mrf.mxu2 }
 0x72f   : > { %v6172_v55 = vpop.f32.mrf.mxu1 }
 0x730   : > { %v6173_v31 = vadd.f32 %v6172_v55, %v6144_v62  ;;  %v6151_v62 = vpop.f32.mrf.mxu0  ;;  %v13677_v55 = vpop.f32.mrf.mxu3 }
 0x732   : > { %v6202_v45 = vadd.f32 %v6201_v28, %v6173_v31 }
 0x734   : > { %v13660_v4 = vadd.f32 %v6230_v42, %v6202_v45  ;;  %v5883_v42 = vadd.f32 %v14365_v2, %v5854_v60  ;;  %v14366_v45 = vld [vmem:[#allocation6_spill] sm:$0xff]  ;;  %v14370_v60 = vld [vmem:[#allocation31_spill] sm:$0xff] }
 0x735   : > { %v6204_v1 = vpop.f32.mrf.mxu2  ;;  %v5767_v44 = vadd.f32 %v14366_v45, %v5738_v17  ;;  %v14372_v17 = vld [vmem:[#allocation21_spill] sm:$0xff]  ;;  %v14373_v2 = vld [vmem:[#allocation43_spill] sm:$0xff] }
 0x737   : > { %v6175_v34 = vpop.f32.mrf.mxu1  ;;  %v13685_v13 = vadd.f32 %v14368_v29, %v5767_v44 }
 0x738   : > { %v6176_v54 = vadd.f32 %v6175_v34, %v6147_v16  ;;  %v6240_v15 = vpop.f32.mrf.mxu3 }
 0x73a   : > { %v6205_v22 = vadd.f32 %v6204_v1, %v6176_v54  ;;  %v14367_v1 = vld [vmem:[#allocation53_spill] sm:$0xff]  ;;  %v6153_v54 = vpop.f32.mrf.mxu0 }
 0x73b   : > { %v5912_v34 = vadd.f32 %v14367_v1, %v5883_v42  ;;  %v14374_v1 = vld [vmem:[#allocation33_spill] sm:$0xff] }
 0x73c   : > { %v13667_v18 = vadd.f32 %v6233_v35, %v6205_v22 }
 0x73d   : > { %v6206_v37 = vpop.f32.mrf.mxu2  ;;  %v13688_v22 = vadd.f32 %v14369_v7, %v5912_v34  ;;  %v6123_v7 = vadd.f32 %v13640_v48, %v13494_v3  ;;  %v14378_v3 = vld [vmem:[#allocation28_spill] sm:$0xff] }
 0x73e   : > { %v5683_v48 = vadd.f32 %v14378_v3, %v13519_v58  ;;  %v14383_v58 = vld [vmem:[#allocation29_spill] sm:$0xff] }
 0x73f   : > { %v6177_v16 = vpop.f32.mrf.mxu1  ;;  %v6251_v50 = vadd.f32 %v13688_v22, %v13685_v13 }
 0x740   : > { %v6178_v59 = vadd.f32 %v6177_v16, %v6149_v8  ;;  %v5690_v8 = vadd.f32 %v14370_v60, %v13595_v0  ;;  %v5835_v16 = vadd.f32 %v14371_v10, %v13595_v0  ;;  %v6243_v53 = vpop.f32.mrf.mxu3  ;;  %v14376_v60 = vld [vmem:[#allocation39_spill] sm:$0xff] }
 0x742   : > { %v6207_v33 = vadd.f32 %v6206_v37, %v6178_v59  ;;  %v6200_v37 = vadd.f32 %v6199_v38, %v6171_v12  ;;  %v6156_v27 = vpop.f32.mrf.mxu0  ;;  %v6128_v59 = vadd.f32 %v13648_v32, %v13551_v49  ;;  %v5719_v38 = vadd.f32 %v14372_v17, %v5690_v8  ;;  %v14375_v12 = vld [vmem:[#allocation63_spill] sm:$0xff] }
 0x743   : > { %v5864_v42 = vadd.f32 %v14373_v2, %v5835_v16  ;;  %v6130_v49 = vadd.f32 %v13654_v51, %v13475_v61  ;;  %v14377_v16 = vld [vmem:[#allocation56_spill] sm:$0xff]  ;;  %v6152_v61 = vadd.f32 %v6151_v62, %v6123_v7 }
 0x744   : > { %v13675_v28 = vadd.f32 %v6235_v14, %v6207_v33  ;;  %v13698_v5 = vadd.f32 %v6228_v25, %v6200_v37  ;;  %v6157_v33 = vadd.f32 %v6156_v27, %v6128_v59  ;;  %v5748_v34 = vadd.f32 %v14374_v1, %v5719_v38  ;;  %v14380_v2 = vld [vmem:[#allocation48_spill] sm:$0xff] }
 0x745   : > { %v6209_v31 = vpop.f32.mrf.mxu2  ;;  %v5893_v29 = vadd.f32 %v14375_v12, %v5864_v42  ;;  %v6125_v37 = vadd.f32 %v13644_v63, %v13595_v0  ;;  %v14379_v0 = vld [vmem:[#allocation30_spill] sm:$0xff]  ;;  %v5830_v42 = vadd.f32 %v14380_v2, %v13601_v40  ;;  %v14382_v62 = vld [vmem:[#allocation36_spill] sm:$0xff]  ;;  %v5712_v12 = vadd.f32 %v14383_v58, %v5683_v48  ;;  %v14398_v58 = vld [vmem:[#allocation57_spill] sm:$0xff] }
 0x746   : > { %v6296_v35 = vadd.f32 %v13675_v28, %v13646_v52  ;;  %v6287_v39 = vadd.f32 %v13698_v5, %v13636_v11  ;;  %v5777_v8 = vadd.f32 %v14376_v60, %v5748_v34  ;;  %v5685_v63 = vadd.f32 %v14379_v0, %v13601_v40  ;;  %v14391_v48 = vld [vmem:[#allocation44_spill] sm:$0xff] }
 0x747   : > { %v6180_v57 = vpop.f32.mrf.mxu1  ;;  %v5922_v59 = vadd.f32 %v14377_v16, %v5893_v29  ;;  %v6154_v51 = vadd.f32 %v6153_v54, %v6125_v37  ;;  %v14384_v29 = vld [vmem:[#allocation20_spill] sm:$0xff] }
 0x748   : > { %6297 = vadd.xlane.f32.xlu1 %v6296_v35  ;;  %v6245_v34 = vpop.f32.mrf.mxu3 }
 0x749   : > { %v13728_v54 = vadd.f32 %v14382_v62, %v5922_v59  ;;  %v14397_v62 = vld [vmem:[#allocation24_spill] sm:$0xff] }
 0x74a   : > { %v6158_v25 = vpop.f32.mrf.mxu0 }
 0x74b   : > { %v6159_v27 = vadd.f32 %v6158_v25, %v6130_v49  ;;  %v5714_v49 = vadd.f32 %v14384_v29, %v5685_v63  ;;  %v14392_v63 = vld [vmem:[#allocation18_spill] sm:$0xff]  ;;  %v14399_v29 = vld [vmem:[#allocation15_spill] sm:$0xff] }
 0x74d   : > { %v6211_v14 = vpop.f32.mrf.mxu2 }
 0x74f   : > { %v6182_v41 = vpop.f32.mrf.mxu1 }
 0x750   : > { %6252 = vadd.xlane.f32.xlu1 %v6251_v50 }
 0x755   : > { %v6214_v35 = vpop.f32.mrf.mxu2 }
 0x757   : > { %v6185_v45 = vpop.f32.mrf.mxu1 }
 0x758   : > { %v6186_v44 = vadd.f32 %v6185_v45, %v6157_v33  ;;  %6288 = vadd.xlane.f32.xlu1 %v6287_v39  ;;  %v14381_v39 = vld [vmem:[#allocation64_spill] sm:$0xff]  ;;  %v6181_v45 = vadd.f32 %v6180_v57, %v6152_v61 }
 0x75a   : > { %v6215_v32 = vadd.f32 %v6214_v35, %v6186_v44  ;;  %v13725_v35 = vadd.f32 %v14381_v39, %v5777_v8  ;;  %v6183_v44 = vadd.f32 %v6182_v41, %v6154_v51  ;;  %v6210_v40 = vadd.f32 %v6209_v31, %v6181_v45  ;;  %v14386_v41 = vld [vmem:[#allocation9_spill] sm:$0xff]  ;;  %v14389_v31 = vld [vmem:[#allocation10_spill] sm:$0xff]  ;;  %v14395_v39 = vld [vmem:[#allocation12_spill] sm:$0xff] }
 0x75b   : > { %v5741_v60 = vadd.f32 %v14386_v41, %v5712_v12  ;;  %v14387_v8 = vld [vmem:[#allocation41_spill] sm:$0xff]  ;;  %v5823_v45 = vadd.f32 %v14395_v39, %v13608_v23  ;;  %v14402_v41 = vld [vmem:[#allocation23_spill] sm:$0xff] }
 0x75c   : > { %v13712_v50 = vadd.f32 %v6243_v53, %v6215_v32  ;;  %v14385_v32 = vld [vmem:[#allocation40_spill] sm:$0xff]  ;;  %v6212_v7 = vadd.f32 %v6211_v14, %v6183_v44  ;;  %v6263_v57 = vadd.f32 %v13728_v54, %v13725_v35  ;;  %v13743_v59 = vadd.f32 %v13677_v55, %v6210_v40  ;;  %v14393_v55 = vld [vmem:[#allocation49_spill] sm:$0xff]  ;;  %v14396_v44 = vld [vmem:[#allocation66_spill] sm:$0xff] }
 0x75d   : > { %v6216_v33 = vpop.f32.mrf.mxu2  ;;  %v5859_v25 = vadd.f32 %v14385_v32, %v5830_v42  ;;  %v5770_v14 = vadd.f32 %v14389_v31, %v5741_v60  ;;  %v14394_v42 = vld [vmem:[#allocation52_spill] sm:$0xff]  ;;  %v14401_v40 = vld [vmem:[#allocation55_spill] sm:$0xff] }
 0x75e   : > { %v6305_v10 = vadd.f32 %v13712_v50, %v13656_v21  ;;  %v6299_v51 = vadd.f32 %v13743_v59, %v13650_v24  ;;  %v14405_v31 = vld [vmem:[#allocation59_spill] sm:$0xff] }
 0x75f   : > { %v6187_v17 = vpop.f32.mrf.mxu1  ;;  %v13755_v2 = vadd.f32 %v14392_v63, %v5770_v14 }
 0x760   : > { %v6188_v38 = vadd.f32 %v6187_v17, %v6159_v27  ;;  %6306 = vadd.xlane.f32.xlu2 %v6305_v10  ;;  %v5743_v27 = vadd.f32 %v14387_v8, %v5714_v49  ;;  %v14388_v10 = vld [vmem:[#allocation47_spill] sm:$0xff]  ;;  %v13745_v17 = vadd.f32 %v6240_v15, %v6212_v7  ;;  %v13759_v15 = vadd.f32 %v14393_v55, %v13532_v6  ;;  %v14403_v8 = vld [vmem:[#allocation38_spill] sm:$0xff]  ;;  %v6268_v55 = vpop.xlane.xlu1 %6267 }
 0x761   : > { %v5888_v16 = vadd.f32 %v14388_v10, %v5859_v25  ;;  %v5852_v49 = vadd.f32 %v14399_v29, %v5823_v45  ;;  %v14400_v25 = vld [vmem:[#allocation22_spill] sm:$0xff]  ;;  %v14404_v10 = vld [vmem:[#allocation11_spill] sm:$0xff] }
 0x762   : > { %v6217_v1 = vadd.f32 %v6216_v33, %v6188_v38  ;;  %v6302_v61 = vadd.f32 %v13745_v17, %v13652_v20  ;;  %v14390_v38 = vld [vmem:[#allocation61_spill] sm:$0xff]  ;;  %v5678_v33 = vadd.f32 %v14394_v42, %v13608_v23  ;;  %v6254_v32 = vadd.f32 %v13759_v15, %v13755_v2 }
 0x763   : > { %v5772_v3 = vadd.f32 %v14390_v38, %v5743_v27  ;;  %v5917_v0 = vadd.f32 %v14391_v48, %v5888_v16  ;;  %v5881_v7 = vadd.f32 %v14401_v40, %v5852_v49  ;;  %v6271_v48 = vpop.xlane.xlu2 %6270 }
 0x764   : > { %v13730_v53 = vadd.f32 %v6245_v34, %v6217_v1  ;;  %v5707_v12 = vadd.f32 %v14398_v58, %v5678_v33 }
 0x765   : > { %v13766_v1 = vadd.f32 %v14396_v44, %v5772_v3  ;;  %v13769_v34 = vadd.f32 %v14397_v62, %v5917_v0  ;;  %v5910_v27 = vadd.f32 %v14403_v8, %v5881_v7 }
 0x766   : > { %v6308_v37 = vadd.f32 %v13730_v53, %v13658_v56  ;;  %v5736_v23 = vadd.f32 %v14400_v25, %v5707_v12  ;;  %v8794_v25 = vmov 3  }
 0x767   : > { %v6257_v6 = vadd.f32 %v13769_v34, %v13766_v1  ;;  %v13789_v14 = vadd.f32 %v14405_v31, %v5910_v27  ;;  %8667 = vset.pattern.permute.xlu2 %v8794_v25  ;;  %v8795_v25 = vmov 2  }
 0x768   : > { %6309 = vadd.xlane.f32.xlu0 %v6308_v37  ;;  %6264 = vadd.xlane.f32.xlu2 %v6263_v57  ;;  %v6293_v37 = vadd.f32 %v13667_v18, %v13642_v26  ;;  %v6290_v57 = vadd.f32 %v13660_v4, %v13638_v46  ;;  %v5765_v60 = vadd.f32 %v14402_v41, %v5736_v23  ;;  %v6262_v29 = vpop.xlane.xlu1 %6261  ;;  %v8767_v23 = vld [vmem:[%s13996_s4] sm:$0xff] }
 0x769   : > { %8668 = vset.pattern.permute.xlu0 %v8795_v25  ;;  %8669 = vset.pattern.permute.xlu1 %v8795_v25 }
 0x76a   : > { %v13786_v16 = vadd.f32 %v14404_v10, %v5765_v60 }
 0x770   : > { %6303 = vadd.xlane.f32.xlu0 %v6302_v61  ;;  %6300 = vadd.xlane.f32.xlu2 %v6299_v51  ;;  %v6248_v61 = vadd.f32 %v13789_v14, %v13786_v16  ;;  %v8793_v51 = vmov 256.0  }
 0x771   : > { %8687 = vrcp.f32 %v8793_v51 }
 0x777   : > { %v8688_v38 = vpop.eup %8687 }
 0x778   : > { %6258 = vadd.xlane.f32.xlu0 %v6257_v6  ;;  %6255 = vadd.xlane.f32.xlu2 %v6254_v32  ;;  %v6273_v3 = vmul.f32 256.0, %v8688_v38  ;;  %vm6277_vm9 = vweird.f32 %v8688_v38 }
 0x77a   : > { %v6274_v0 = vsub.f32 1.0, %v6273_v3 }
 0x77c   : > { %v6275_v63 = vmul.f32 %v8688_v38, %v6274_v0 }
 0x77e   : > { %v6276_v33 = vadd.f32 %v8688_v38, %v6275_v63 }
 0x780   : > { %6294 = vadd.xlane.f32.xlu0 %v6293_v37  ;;  %6291 = vadd.xlane.f32.xlu2 %v6290_v57  ;;  %v6278_v39 = vsel %vm6277_vm9, %v8688_v38, %v6276_v33 }
 0x781   : > { %v6286_v62 = vmul.f32 %v6278_v39, %v6271_v48  ;;  %v6285_v49 = vmul.f32 %v6278_v39, %v6268_v55  ;;  %v6283_v8 = vmul.f32 %v6278_v39, %v6262_v29 }
 0x788   : > { %6249 = vadd.xlane.f32.xlu0 %v6248_v61 }
 0x798   : > { %6330 = vperm.xlu2 %8667, %v8767_v23  }
 0x79c   : > { %6366 = vperm.xlu0 %8668, %v8767_v23   ;;  %v8771_v23 = vld [vmem:[%s13996_s4 + $0x18] sm:$0xff] }
 0x7a0   : > { %8670 = vset.pattern.permute.xlu2 %v8795_v25 }
 0x7bb   : > { %v6298_v60 = vpop.xlane.xlu1 %6297 }
 0x7bc   : > { %v6314_v51 = vmul.f32 %v6298_v60, %v6278_v39  ;;  %v8774_v60 = vld [vmem:[%s13996_s4 + $0x30] sm:$0xff] }
 0x7c3   : > { %v6253_v48 = vpop.xlane.xlu1 %6252 }
 0x7d3   : > { %v6307_v42 = vpop.xlane.xlu2 %6306 }
 0x7d4   : > { %v6317_v58 = vmul.f32 %v6307_v42, %v6278_v39 }
 0x7d6   : > { %v6326_v32 = vsel %vm6319_vm10, %v6285_v49, %v6317_v58  ;;  %v6289_v58 = vpop.xlane.xlu1 %6288 }
 0x7d7   : > { %v6311_v29 = vmul.f32 %v6289_v58, %v6278_v39 }
 0x7db   : > { %v6310_v45 = vpop.xlane.xlu0 %6309  ;;  %v6265_v44 = vpop.xlane.xlu2 %6264 }
 0x7dc   : > { %v6318_v12 = vmul.f32 %v6310_v45, %v6278_v39  ;;  %v6284_v37 = vmul.f32 %v6278_v39, %v6265_v44  ;;  %v6280_v45 = vmul.f32 %v6278_v39, %v6253_v48  ;;  %v6360_v48 = vld [vmem:[%s13998_s6 + $0x18] sm:$0xff] }
 0x7de   : > { %v6327_v6 = vsel %vm6319_vm10, %v6286_v62, %v6318_v12 }
 0x7df   : > { %6344 = vmatpush.msra.mxu0 %v6327_v6  ;;  %v6328_v6 = vld [vmem:[%s13997_s5] sm:$0xf] }
 0x7e1   : > { %6345 = vmatpush.msra.mxu0 %v6326_v32 }
 0x7e3   : > { %v6304_v40 = vpop.xlane.xlu0 %6303  ;;  %v6301_v7 = vpop.xlane.xlu2 %6300 }
 0x7e4   : > { %v6316_v57 = vmul.f32 %v6304_v40, %v6278_v39  ;;  %v6315_v41 = vmul.f32 %v6301_v7, %v6278_v39  ;;  %v8768_v40 = vld [vmem:[%s13996_s4 + $0x8] sm:$0xff]  ;;  %v8770_v7 = vld [vmem:[%s13996_s4 + $0x38] sm:$0xff] }
 0x7e5   : > { %6370 = vperm.xlu1 %8669, %v8768_v40   ;;  %6394 = vperm.xlu0 %8668, %v8770_v7  }
 0x7e6   : > { %v6325_v27 = vsel %vm6319_vm10, %v6284_v37, %v6316_v57  ;;  %v6324_v10 = vsel %vm6319_vm10, %v6283_v8, %v6315_v41  ;;  %v8772_v37 = vld [vmem:[%s13996_s4 + $0x20] sm:$0xff]  ;;  %v8773_v57 = vld [vmem:[%s13996_s4 + $0x28] sm:$0xff]  ;;  %v14406_v41 = vmov 0  }
 0x7e7   : > { %6346 = vmatpush.msra.mxu0 %v6325_v27 }
 0x7e9   : > { %6347 = vmatpush.msra.mxu0 %v6324_v10 }
 0x7eb   : > { %v6259_v31 = vpop.xlane.xlu0 %6258  ;;  %v6256_v61 = vpop.xlane.xlu2 %6255 }
 0x7ec   : > { %v6282_v38 = vmul.f32 %v6278_v39, %v6259_v31  ;;  %v6281_v55 = vmul.f32 %v6278_v39, %v6256_v61  ;;  %v6357_v61 = vld [vmem:[%s13998_s6] sm:$0xff] }
 0x7ed   : > { %6378 = vperm.xlu1 %8669, %v8771_v23   ;;  %8673 = vset.pattern.permute.xlu0 %v14406_v41 }
 0x7ee   : > { %v6323_v3 = vsel %vm6319_vm10, %v6282_v38, %v6314_v51  ;;  %v6364_v51 = vld [vmem:[%s13998_s6 + $0x38] sm:$0xff]  ;;  %v6358_v38 = vld [vmem:[%s13998_s6 + $0x8] sm:$0xff] }
 0x7ef   : > { %6348 = vmatpush.msra.mxu0 %v6323_v3  ;;  %v6359_v3 = vld [vmem:[%s13998_s6 + $0x10] sm:$0xff] }
 0x7f3   : > { %v6295_v0 = vpop.xlane.xlu0 %6294  ;;  %v6292_v63 = vpop.xlane.xlu2 %6291 }
 0x7f4   : > { %v6313_v42 = vmul.f32 %v6295_v0, %v6278_v39  ;;  %v6312_v33 = vmul.f32 %v6292_v63, %v6278_v39  ;;  %v6361_v0 = vld [vmem:[%s13998_s6 + $0x20] sm:$0xff]  ;;  %v6362_v63 = vld [vmem:[%s13998_s6 + $0x28] sm:$0xff] }
 0x7f5   : > { %6386 = vperm.xlu1 %8669, %v8773_v57  }
 0x7f6   : > { %v6322_v44 = vsel %vm6319_vm10, %v6281_v55, %v6313_v42  ;;  %v6321_v62 = vsel %vm6319_vm10, %v6280_v45, %v6312_v33  ;;  %v6363_v55 = vld [vmem:[%s13998_s6 + $0x30] sm:$0xff] }
 0x7f7   : > { %6349 = vmatpush.msra.mxu0 %v6322_v44 }
 0x7f9   : > { %6350 = vmatpush.msra.mxu0 %v6321_v62 }
 0x7fb   : > { %v6250_v12 = vpop.xlane.xlu0 %6249  ;;  %v6331_v8 = vpop.permute.xlu2 %6330 }
 0x7fc   : > { %v6279_v49 = vmul.f32 %v6278_v39, %v6250_v12  ;;  %v8769_v39 = vld [vmem:[%s13996_s4 + $0x10] sm:$0xff] }
 0x7fd   : > { %6374 = vperm.xlu2 %8670, %v8769_v39   ;;  %8671 = vset.pattern.permute.xlu1 %v14406_v41 }
 0x7fe   : > { %v6320_v32 = vsel %vm6319_vm10, %v6279_v49, %v6311_v29 }
 0x7ff   : > { %6351 = vmatpush.msra.mxu0 %v6320_v32 }
 0x800   : > { %8249 = vmatmul.msk.f32.vlgmr.msra.gmra.mxu0 %vm2699_vm8, %v6328_v6 }
 0x805   : > { %6382 = vperm.xlu2 %8670, %v8772_v37  }
 0x80d   : > { %6390 = vperm.xlu2 %8670, %v8774_v60  }
 0x80e   : > { %v6367_v42 = vpop.permute.xlu0 %6366 }
 0x815   : > { %8674 = vset.pattern.permute.xlu2 %v14406_v41 }
 0x857   : > { %v6395_v62 = vpop.permute.xlu0 %6394  ;;  %v6371_v29 = vpop.permute.xlu1 %6370 }
 0x858   : > { %v6375_v7 = vpop.permute.xlu2 %6374 }
 0x87d   : > { %v6353_v27 = vpop.f32.mrf.mxu0 }
 0x87e   : > { %v6354_v10 = vadd.f32 %v6353_v27, %v6331_v8 }
 0x880   : > { %v6356_v31 = vmax.f32 %v6354_v10, 0.0 }
 0x882   : > { %8250 = vmatpush.msk.msra.mxu1 %vm6422_vm11, %v6356_v31  ;;  %8639 = vmatpush.msk.msra.mxu3 %vm6422_vm11, %v6356_v31 }
 0x883   : > { %8251 = vmatmul.msk.f32.vlgmr.msra.gmra.mxu1 %vm6397_vm12, %v6357_v61  ;;  %8258 = vmatmul.msk.f32.vlgmr.msra.gmra.mxu3 %vm6397_vm12, %v6364_v51 }
 0x88b   : > { %8252 = vmatmul.msk.f32.gmra.mxu1 %vm6397_vm12, %v6358_v38  ;;  %v6379_v38 = vpop.permute.xlu1 %6378 }
 0x893   : > { %8253 = vmatmul.msk.f32.gmra.mxu1 %vm6397_vm12, %v6359_v3 }
 0x89b   : > { %8254 = vmatmul.msk.f32.gmra.mxu1 %vm6397_vm12, %v6360_v48 }
 0x8a3   : > { %8255 = vmatmul.msk.f32.gmra.mxu1 %vm6397_vm12, %v6361_v0 }
 0x8ab   : > { %8256 = vmatmul.msk.f32.gmra.mxu1 %vm6397_vm12, %v6362_v63 }
 0x8b3   : > { %8257 = vmatmul.msk.f32.gmra.mxu1 %vm6397_vm12, %v6363_v55 }
 0x900   : > { %v6443_v33 = vpop.f32.mrf.mxu1 }
 0x901   : > { %v6444_v45 = vadd.f32 %v6443_v33, %v6367_v42 }
 0x903   : > { %v8259_v44 = vmul.f32 -1.442695, %v6444_v45 }
 0x905   : > { %8689 = vpow2.f32 %v8259_v44 }
 0x906   : > { %v6464_v58 = vpop.f32.mrf.mxu3 }
 0x907   : > { %v6465_v12 = vadd.f32 %v6464_v58, %v6395_v62 }
 0x908   : > { %v6446_v49 = vpop.f32.mrf.mxu1 }
 0x909   : > { %v8266_v6 = vmul.f32 -1.442695, %v6465_v12  ;;  %v6447_v32 = vadd.f32 %v6446_v49, %v6371_v29 }
 0x90b   : > { %v8690_v25 = vpop.eup %8689  ;;  %8691 = vpow2.f32 %v8266_v6  ;;  %v8260_v40 = vmul.f32 -1.442695, %v6447_v32 }
 0x90c   : > { %v6491_v39 = vadd.f32 1.0, %v8690_v25 }
 0x90d   : > { %8693 = vpow2.f32 %v8260_v40 }
 0x90e   : > { %8695 = vrcp.f32 %v6491_v39  ;;  %v6508_v48 = vand.u32 2147483647, %v6491_v39  ;;  %v6510_v0 = vand.u32 2147483648, %v6491_v39  ;;  %vm6504_vm14 = vweird.f32 %v6491_v39 }
 0x910   : > { %v6449_v23 = vpop.f32.mrf.mxu1  ;;  %vm6509_vm0 = vcmp.eq.f32.partialorder %v6508_v48, 8.507059e+37  ;;  %v6511_v29 = vor.u32 1.1754944e-38, %v6510_v0 }
 0x911   : > { %v8692_v37 = vpop.eup %8691  ;;  %v6450_v57 = vadd.f32 %v6449_v23, %v6375_v7 }
 0x912   : > { %v6498_v60 = vadd.f32 1.0, %v8692_v37  ;;  %v6383_v37 = vpop.permute.xlu2 %6382 }
 0x913   : > { %v8694_v8 = vpop.eup %8693  ;;  %v8261_v27 = vmul.f32 -1.442695, %v6450_v57 }
 0x914   : > { %v8696_v10 = vpop.eup %8695  ;;  %8697 = vrcp.f32 %v6498_v60  ;;  %v6492_v31 = vadd.f32 1.0, %v8694_v8  ;;  %v6613_v40 = vand.u32 2147483647, %v6498_v60  ;;  %v6615_v7 = vand.u32 2147483648, %v6498_v60 }
 0x915   : > { %8699 = vpow2.f32 %v8261_v27  ;;  %v6500_v61 = vmul.f32 %v8696_v10, %v6491_v39  ;;  %vm6505_vm13 = vweird.f32 %v8696_v10  ;;  %vm6609_vm2 = vweird.f32 %v6498_v60 }
 0x916   : > { %8701 = vrcp.f32 %v6492_v31  ;;  %vm6506_vm15 = vmor %vm6504_vm14, %vm6505_vm13  ;;  %v6523_v8 = vand.u32 2147483647, %v6492_v31  ;;  %v6525_v27 = vand.u32 2147483648, %v6492_v31  ;;  %vm6614_vm5 = vcmp.eq.f32.partialorder %v6613_v40, 8.507059e+37 }
 0x917   : > { %v6501_v51 = vsub.f32 1.0, %v6500_v61  ;;  %vm6519_vm6 = vweird.f32 %v6492_v31 }
 0x918   : > { %v6452_v3 = vpop.f32.mrf.mxu1  ;;  %vm6524_vm8 = vcmp.eq.f32.partialorder %v6523_v8, 8.507059e+37 }
 0x919   : > { %v6453_v63 = vadd.f32 %v6452_v3, %v6379_v38  ;;  %v6502_v55 = vmul.f32 %v8696_v10, %v6501_v51 }
 0x91a   : > { %v8698_v42 = vpop.eup %8697 }
 0x91b   : > { %v8700_v33 = vpop.eup %8699  ;;  %v8262_v45 = vmul.f32 -1.442695, %v6453_v63  ;;  %v6503_v44 = vadd.f32 %v8696_v10, %v6502_v55  ;;  %v6605_v62 = vmul.f32 %v8698_v42, %v6498_v60  ;;  %vm6610_vm1 = vweird.f32 %v8698_v42 }
 0x91c   : > { %v8702_v58 = vpop.eup %8701  ;;  %v13864_v12 = vadd.f32 1.0, %v8700_v33  ;;  %vm6611_vm4 = vmor %vm6609_vm2, %vm6610_vm1  ;;  %v6526_v60 = vor.u32 1.1754944e-38, %v6525_v27 }
 0x91d   : > { %8703 = vpow2.f32 %v8262_v45  ;;  %v6507_v49 = vsel %vm6506_vm15, %v8696_v10, %v6503_v44  ;;  %v6606_v6 = vsub.f32 1.0, %v6605_v62  ;;  %v6515_v32 = vmul.f32 %v8702_v58, %v6492_v31  ;;  %v6387_v31 = vpop.permute.xlu1 %6386 }
 0x91e   : > { %8705 = vrcp.f32 %v13864_v12  ;;  %v6512_v25 = vsel %vm6509_vm0, %v6511_v29, %v6507_v49  ;;  %vm6520_vm3 = vweird.f32 %v8702_v58  ;;  %v6616_v10 = vor.u32 1.1754944e-38, %v6615_v7 }
 0x91f   : > { %6621 = vperm.xlu1 %8671, %v6512_v25   ;;  %v6607_v23 = vmul.f32 %v8698_v42, %v6606_v6  ;;  %v6516_v39 = vsub.f32 1.0, %v6515_v32  ;;  %vm6521_vm7 = vmor %vm6519_vm6, %vm6520_vm3  ;;  %v14407_v49 = vmov 1   ;;  %v6540_v32 = vand.u32 2147483648, %v13864_v12 }
 0x920   : > { %v6455_v57 = vpop.f32.mrf.mxu1  ;;  %vm6534_vm10 = vweird.f32 %v13864_v12 }
 0x921   : > { %v6456_v61 = vadd.f32 %v6455_v57, %v6383_v37  ;;  %v6608_v51 = vadd.f32 %v8698_v42, %v6607_v23  ;;  %v6517_v38 = vmul.f32 %v8702_v58, %v6516_v39  ;;  %v6538_v23 = vand.u32 2147483647, %v13864_v12 }
 0x922   : > { %v6541_v27 = vor.u32 1.1754944e-38, %v6540_v32 }
 0x923   : > { %v8704_v3 = vpop.eup %8703  ;;  %v8263_v48 = vmul.f32 -1.442695, %v6456_v61  ;;  %v6612_v0 = vsel %vm6611_vm4, %v8698_v42, %v6608_v51  ;;  %v6518_v63 = vadd.f32 %v8702_v58, %v6517_v38  ;;  %vm6539_vm12 = vcmp.eq.f32.partialorder %v6538_v23, 8.507059e+37 }
 0x924   : > { %v8706_v55 = vpop.eup %8705  ;;  %v6494_v33 = vadd.f32 1.0, %v8704_v3  ;;  %v13867_v45 = vsel %vm6614_vm5, %v6616_v10, %v6612_v0  ;;  %v6391_v10 = vpop.permute.xlu2 %6390 }
 0x925   : > { %8707 = vpow2.f32 %v8263_v48  ;;  %6656 = vperm.xlu0 %8673, %v13867_v45   ;;  %v6522_v44 = vsel %vm6521_vm7, %v8702_v58, %v6518_v63  ;;  %v6530_v62 = vmul.f32 %v8706_v55, %v13864_v12  ;;  %vm6535_vm9 = vweird.f32 %v8706_v55 }
 0x926   : > { %8709 = vrcp.f32 %v6494_v33  ;;  %v6527_v29 = vsel %vm6524_vm8, %v6526_v60, %v6522_v44  ;;  %vm6536_vm11 = vmor %vm6534_vm10, %vm6535_vm9  ;;  %v6555_v12 = vand.u32 2147483648, %v6494_v33  ;;  %v6553_v63 = vand.u32 2147483647, %v6494_v33 }
 0x927   : > { %6626 = vperm.xlu2 %8674, %v6527_v29   ;;  %8672 = vset.pattern.permute.xlu1 %v14407_v49  ;;  %v6531_v42 = vsub.f32 1.0, %v6530_v62  ;;  %vm6549_vm14 = vweird.f32 %v6494_v33 }
 0x928   : > { %6724 = vperm.xlu1 %8672, %v6512_v25   ;;  %v6458_v6 = vpop.f32.mrf.mxu1  ;;  %vm6554_vm0 = vcmp.eq.f32.partialorder %v6553_v63, 8.507059e+37 }
 0x929   : > { %v6459_v40 = vadd.f32 %v6458_v6, %v6387_v31  ;;  %v6532_v7 = vmul.f32 %v8706_v55, %v6531_v42  ;;  %v6556_v31 = vor.u32 1.1754944e-38, %v6555_v12 }
 0x92b   : > { %v8708_v58 = vpop.eup %8707  ;;  %v8264_v39 = vmul.f32 -1.442695, %v6459_v40  ;;  %v6533_v37 = vadd.f32 %v8706_v55, %v6532_v7 }
 0x92c   : > { %v8710_v57 = vpop.eup %8709  ;;  %v6495_v8 = vadd.f32 1.0, %v8708_v58 }
 0x92d   : > { %8711 = vpow2.f32 %v8264_v39  ;;  %v6537_v25 = vsel %vm6536_vm11, %v8706_v55, %v6533_v37  ;;  %v6545_v61 = vmul.f32 %v8710_v57, %v6494_v33  ;;  %vm6550_vm13 = vweird.f32 %v8710_v57 }
 0x92e   : > { %8713 = vrcp.f32 %v6495_v8  ;;  %v6542_v51 = vsel %vm6539_vm12, %v6541_v27, %v6537_v25  ;;  %vm6551_vm15 = vmor %vm6549_vm14, %vm6550_vm13  ;;  %v6570_v7 = vand.u32 2147483648, %v6495_v8  ;;  %v6568_v33 = vand.u32 2147483647, %v6495_v8 }
 0x92f   : > { %8675 = vset.pattern.permute.xlu2 %v14407_v49  ;;  %6631 = vperm.xlu0 %8673, %v6542_v51   ;;  %v6546_v38 = vsub.f32 1.0, %v6545_v61  ;;  %vm6564_vm2 = vweird.f32 %v6495_v8 }
 0x930   : > { %6728 = vperm.xlu2 %8675, %v6527_v29   ;;  %v6461_v3 = vpop.f32.mrf.mxu1  ;;  %8677 = vset.pattern.permute.xlu1 %v14406_v41  ;;  %v6571_v27 = vor.u32 1.1754944e-38, %v6570_v7  ;;  %vm6569_vm4 = vcmp.eq.f32.partialorder %v6568_v33, 8.507059e+37  ;;  %v6678_v7 = vld [vmem:[%s8852_s30 + $0x18] sm:$0xff] }
 0x931   : > { %v6462_v48 = vadd.f32 %v6461_v3, %v6391_v10  ;;  %v6547_v0 = vmul.f32 %v8710_v57, %v6546_v38 }
 0x933   : > { %v8712_v60 = vpop.eup %8711  ;;  %v8265_v55 = vmul.f32 -1.442695, %v6462_v48  ;;  %v6548_v44 = vadd.f32 %v8710_v57, %v6547_v0 }
 0x934   : > { %v8714_v62 = vpop.eup %8713  ;;  %v6496_v42 = vadd.f32 1.0, %v8712_v60 }
 0x935   : > { %8715 = vpow2.f32 %v8265_v55  ;;  %v6552_v6 = vsel %vm6551_vm15, %v8710_v57, %v6548_v44  ;;  %v6560_v29 = vmul.f32 %v8714_v62, %v6495_v8  ;;  %vm6565_vm1 = vweird.f32 %v8714_v62 }
 0x936   : > { %8717 = vrcp.f32 %v6496_v42  ;;  %v6557_v32 = vsel %vm6554_vm0, %v6556_v31, %v6552_v6  ;;  %vm6566_vm3 = vmor %vm6564_vm2, %vm6565_vm1  ;;  %v6585_v3 = vand.u32 2147483648, %v6496_v42  ;;  %vm6579_vm6 = vweird.f32 %v6496_v42 }
 0x937   : > { %6636 = vperm.xlu1 %8677, %v6557_v32   ;;  %8676 = vset.pattern.permute.xlu0 %v14407_v49  ;;  %v6561_v40 = vsub.f32 1.0, %v6560_v29  ;;  %v6583_v12 = vand.u32 2147483647, %v6496_v42 }
 0x938   : > { %6732 = vperm.xlu0 %8676, %v6542_v51   ;;  %8679 = vset.pattern.permute.xlu2 %v14406_v41  ;;  %v6586_v60 = vor.u32 1.1754944e-38, %v6585_v3 }
 0x939   : > { %v6562_v23 = vmul.f32 %v8714_v62, %v6561_v40  ;;  %vm6584_vm8 = vcmp.eq.f32.partialorder %v6583_v12, 8.507059e+37  ;;  %v6677_v40 = vld [vmem:[%s8852_s30 + $0x10] sm:$0xff] }
 0x93b   : > { %v8716_v58 = vpop.eup %8715  ;;  %v6563_v39 = vadd.f32 %v8714_v62, %v6562_v23 }
 0x93c   : > { %v8718_v37 = vpop.eup %8717  ;;  %v6497_v57 = vadd.f32 1.0, %v8716_v58 }
 0x93d   : > { %v6567_v25 = vsel %vm6566_vm3, %v8714_v62, %v6563_v39  ;;  %v6575_v61 = vmul.f32 %v8718_v37, %v6496_v42  ;;  %vm6580_vm5 = vweird.f32 %v8718_v37  ;;  %v8269_v39 = vld [vmem:[%s8852_s30 + $0x90] sm:$0xff] }
 0x93e   : > { %8719 = vrcp.f32 %v6497_v57  ;;  %v6572_v38 = vsel %vm6569_vm4, %v6571_v27, %v6567_v25  ;;  %vm6581_vm7 = vmor %vm6579_vm6, %vm6580_vm5  ;;  %v6600_v62 = vand.u32 2147483648, %v6497_v57  ;;  %vm6594_vm10 = vweird.f32 %v6497_v57 }
 0x93f   : > { %6641 = vperm.xlu2 %8679, %v6572_v38   ;;  %8678 = vset.pattern.permute.xlu1 %v14407_v49  ;;  %v6576_v51 = vsub.f32 1.0, %v6575_v61  ;;  %v6598_v31 = vand.u32 2147483647, %v6497_v57  ;;  %v6675_v61 = vld [vmem:[%s8852_s30] sm:$0xff] }
 0x940   : > { %6736 = vperm.xlu1 %8678, %v6557_v32   ;;  %6752 = vperm.xlu0 %8676, %v13867_v45   ;;  %v6601_v29 = vor.u32 1.1754944e-38, %v6600_v62 }
 0x941   : > { %v6577_v10 = vmul.f32 %v8718_v37, %v6576_v51  ;;  %vm6599_vm12 = vcmp.eq.f32.partialorder %v6598_v31, 8.507059e+37 }
 0x943   : > { %v6578_v8 = vadd.f32 %v8718_v37, %v6577_v10 }
 0x944   : > { %v8720_v48 = vpop.eup %8719 }
 0x945   : > { %v6582_v0 = vsel %vm6581_vm7, %v8718_v37, %v6578_v8  ;;  %v6590_v63 = vmul.f32 %v8720_v48, %v6497_v57  ;;  %vm6595_vm9 = vweird.f32 %v8720_v48 }
 0x946   : > { %v6587_v44 = vsel %vm6584_vm8, %v6586_v60, %v6582_v0  ;;  %vm6596_vm11 = vmor %vm6594_vm10, %vm6595_vm9  ;;  %v6683_v60 = vld [vmem:[%s8852_s30 + $0x40] sm:$0xff] }
 0x947   : > { %8680 = vset.pattern.permute.xlu2 %v14407_v49  ;;  %v6591_v55 = vsub.f32 1.0, %v6590_v63 }
 0x948   : > { %6740 = vperm.xlu2 %8680, %v6572_v38   ;;  %8681 = vset.pattern.permute.xlu1 %v14406_v41  ;;  %v6676_v38 = vld [vmem:[%s8852_s30 + $0x8] sm:$0xff] }
 0x949   : > { %6646 = vperm.xlu1 %8681, %v6587_v44   ;;  %v6592_v45 = vmul.f32 %v8720_v48, %v6591_v55  ;;  %v6684_v55 = vld [vmem:[%s8852_s30 + $0x48] sm:$0xff] }
 0x94b   : > { %v6593_v42 = vadd.f32 %v8720_v48, %v6592_v45 }
 0x94d   : > { %v6597_v6 = vsel %vm6596_vm11, %v8720_v48, %v6593_v42  ;;  %v8267_v42 = vld [vmem:[%s8852_s30 + $0x80] sm:$0xff] }
 0x94e   : > { %v6602_v32 = vsel %vm6599_vm12, %v6601_v29, %v6597_v6 }
 0x950   : > { %8682 = vset.pattern.permute.xlu2 %v14406_v41 }
 0x951   : > { %6651 = vperm.xlu2 %8682, %v6602_v32   ;;  %8683 = vset.pattern.permute.xlu1 %v14407_v49 }
 0x952   : > { %6744 = vperm.xlu1 %8683, %v6587_v44  }
 0x959   : > { %8684 = vset.pattern.permute.xlu2 %v14407_v49 }
 0x95a   : > { %6748 = vperm.xlu2 %8684, %v6602_v32  }
 0x981   : > { %v6627_v23 = vpop.permute.xlu2 %6626 }
 0x982   : > { %v6661_v33 = vmul.f32 %v6627_v23, %v13685_v13  ;;  %v6662_v58 = vmul.f32 %v6627_v23, %v13688_v22  ;;  %v8270_v13 = vld [vmem:[%s8852_s30 + $0x98] sm:$0xff] }
 0x984   : > { %v6693_v41 = vadd.f32 %v6677_v40, %v6661_v33  ;;  %v6694_v49 = vadd.f32 %v6678_v7, %v6662_v58  ;;  %v6680_v7 = vld [vmem:[%s8852_s30 + $0x28] sm:$0xff]  ;;  %v8275_v33 = vld [vmem:[%s8852_s30 + $0xc0] sm:$0xff] }
 0x985   : > { %v8276_v58 = vld [vmem:[%s8852_s30 + $0xc8] sm:$0xff] }
 0x986   : > { %6709 = vst [vmem:[%s13895_s11 + $0x10] sm:$0xff] %v6693_v41 }
 0x987   : > { %6710 = vst [vmem:[%s13895_s11 + $0x18] sm:$0xff] %v6694_v49 }
 0x98a   : > { %v6729_v22 = vpop.permute.xlu2 %6728 }
 0x98b   : > { %v6757_v37 = vmul.f32 %v6729_v22, %v13638_v46  ;;  %v6758_v57 = vmul.f32 %v6729_v22, %v13660_v4  ;;  %v6689_v46 = vld [vmem:[%s8852_s30 + $0x70] sm:$0xff]  ;;  %v6690_v4 = vld [vmem:[%s8852_s30 + $0x78] sm:$0xff] }
 0x98d   : > { %v6789_v27 = vadd.f32 %v8269_v39, %v6757_v37  ;;  %v6790_v25 = vadd.f32 %v8270_v13, %v6758_v57 }
 0x98f   : > { %8285 = vst [vmem:[%s13895_s11 + $0x90] sm:$0xff] %v6789_v27 }
 0x990   : > { %8286 = vst [vmem:[%s13895_s11 + $0x98] sm:$0xff] %v6790_v25 }
 0x991   : > { %v6622_v51 = vpop.permute.xlu1 %6621 }
 0x992   : > { %v6659_v10 = vmul.f32 %v6622_v51, %v13786_v16  ;;  %v6660_v3 = vmul.f32 %v6622_v51, %v13789_v14 }
 0x994   : > { %v6691_v8 = vadd.f32 %v6675_v61, %v6659_v10  ;;  %v6692_v12 = vadd.f32 %v6676_v38, %v6660_v3  ;;  %v8271_v61 = vld [vmem:[%s8852_s30 + $0xa0] sm:$0xff] }
 0x995   : > { %v6687_v3 = vld [vmem:[%s8852_s30 + $0x60] sm:$0xff] }
 0x996   : > { %6707 = vst [vmem:[%s13895_s11] sm:$0xff] %v6691_v8 }
 0x997   : > { %6708 = vst [vmem:[%s13895_s11 + $0x8] sm:$0xff] %v6692_v12  ;;  %v6657_v48 = vpop.permute.xlu0 %6656 }
 0x998   : > { %v6673_v0 = vmul.f32 %v6657_v48, %v13507_v43  ;;  %v6674_v63 = vmul.f32 %v6657_v48, %v13509_v30  ;;  %v8268_v43 = vld [vmem:[%s8852_s30 + $0x88] sm:$0xff] }
 0x999   : > { %v6642_v16 = vpop.permute.xlu2 %6641 }
 0x99a   : > { %v6705_v14 = vadd.f32 %v6689_v46, %v6673_v0  ;;  %v6706_v44 = vadd.f32 %v6690_v4, %v6674_v63  ;;  %v6667_v45 = vmul.f32 %v6642_v16, %v13581_v19  ;;  %v6668_v62 = vmul.f32 %v6642_v16, %v13585_v47  ;;  %v6725_v31 = vpop.permute.xlu1 %6724  ;;  %v6679_v47 = vld [vmem:[%s8852_s30 + $0x20] sm:$0xff]  ;;  %v6688_v46 = vld [vmem:[%s8852_s30 + $0x68] sm:$0xff]  ;;  %v8273_v63 = vld [vmem:[%s8852_s30 + $0xb0] sm:$0xff] }
 0x99b   : > { %v6755_v30 = vmul.f32 %v6725_v31, %v13636_v11  ;;  %v6756_v6 = vmul.f32 %v6725_v31, %v13698_v5  ;;  %v8281_v16 = vld [vmem:[%s8852_s30 + $0xf0] sm:$0xff] }
 0x99c   : > { %6721 = vst [vmem:[%s13895_s11 + $0x70] sm:$0xff] %v6705_v14  ;;  %v6699_v29 = vadd.f32 %v6683_v60, %v6667_v45  ;;  %v6700_v32 = vadd.f32 %v6684_v55, %v6668_v62  ;;  %v8274_v60 = vld [vmem:[%s8852_s30 + $0xb8] sm:$0xff] }
 0x99d   : > { %6722 = vst [vmem:[%s13895_s11 + $0x78] sm:$0xff] %v6706_v44  ;;  %v6787_v40 = vadd.f32 %v8267_v42, %v6755_v30  ;;  %v6788_v19 = vadd.f32 %v8268_v43, %v6756_v6  ;;  %v8282_v44 = vld [vmem:[%s8852_s30 + $0xf8] sm:$0xff]  ;;  %v8279_v6 = vld [vmem:[%s8852_s30 + $0xe0] sm:$0xff] }
 0x99e   : > { %6715 = vst [vmem:[%s13895_s11 + $0x40] sm:$0xff] %v6699_v29  ;;  %v8280_v29 = vld [vmem:[%s8852_s30 + $0xe8] sm:$0xff] }
 0x99f   : > { %6716 = vst [vmem:[%s13895_s11 + $0x48] sm:$0xff] %v6700_v32 }
 0x9a0   : > { %8283 = vst [vmem:[%s13895_s11 + $0x80] sm:$0xff] %v6787_v40  ;;  %v6685_v40 = vld [vmem:[%s8852_s30 + $0x50] sm:$0xff] }
 0x9a1   : > { %8284 = vst [vmem:[%s13895_s11 + $0x88] sm:$0xff] %v6788_v19  ;;  %v6632_v11 = vpop.permute.xlu0 %6631  ;;  %v6686_v19 = vld [vmem:[%s8852_s30 + $0x58] sm:$0xff] }
 0x9a2   : > { %v6663_v5 = vmul.f32 %v6632_v11, %v13755_v2  ;;  %v6664_v23 = vmul.f32 %v6632_v11, %v13759_v15  ;;  %v6741_v41 = vpop.permute.xlu2 %6740  ;;  %v6681_v2 = vld [vmem:[%s8852_s30 + $0x30] sm:$0xff]  ;;  %v6682_v15 = vld [vmem:[%s8852_s30 + $0x38] sm:$0xff] }
 0x9a3   : > { %v6763_v49 = vmul.f32 %v6741_v41, %v13650_v24  ;;  %v6764_v39 = vmul.f32 %v6741_v41, %v13743_v59  ;;  %v8272_v59 = vld [vmem:[%s8852_s30 + $0xa8] sm:$0xff] }
 0x9a4   : > { %v6695_v13 = vadd.f32 %v6679_v47, %v6663_v5  ;;  %v6696_v22 = vadd.f32 %v6680_v7, %v6664_v23  ;;  %v8277_v5 = vld [vmem:[%s8852_s30 + $0xd0] sm:$0xff]  ;;  %v8278_v23 = vld [vmem:[%s8852_s30 + $0xd8] sm:$0xff] }
 0x9a5   : > { %v6795_v37 = vadd.f32 %v8275_v33, %v6763_v49  ;;  %v6796_v57 = vadd.f32 %v8276_v58, %v6764_v39 }
 0x9a6   : > { %6711 = vst [vmem:[%s13895_s11 + $0x20] sm:$0xff] %v6695_v13 }
 0x9a7   : > { %6712 = vst [vmem:[%s13895_s11 + $0x28] sm:$0xff] %v6696_v22 }
 0x9a8   : > { %8291 = vst [vmem:[%s13895_s11 + $0xc0] sm:$0xff] %v6795_v37 }
 0x9a9   : > { %8292 = vst [vmem:[%s13895_s11 + $0xc8] sm:$0xff] %v6796_v57  ;;  %v6637_v27 = vpop.permute.xlu1 %6636 }
 0x9aa   : > { %v6665_v25 = vmul.f32 %v6637_v27, %v13766_v1  ;;  %v6666_v24 = vmul.f32 %v6637_v27, %v13769_v34  ;;  %v6733_v38 = vpop.permute.xlu0 %6732 }
 0x9ab   : > { %v6759_v51 = vmul.f32 %v6733_v38, %v13642_v26  ;;  %v6760_v10 = vmul.f32 %v6733_v38, %v13667_v18  ;;  %v6652_v8 = vpop.permute.xlu2 %6651 }
 0x9ac   : > { %v6697_v12 = vadd.f32 %v6681_v2, %v6665_v25  ;;  %v6698_v1 = vadd.f32 %v6682_v15, %v6666_v24  ;;  %v6671_v34 = vmul.f32 %v6652_v8, %v13570_v36  ;;  %v6672_v4 = vmul.f32 %v6652_v8, %v13573_v9 }
 0x9ad   : > { %v6791_v48 = vadd.f32 %v8271_v61, %v6759_v51  ;;  %v6792_v0 = vadd.f32 %v8272_v59, %v6760_v10 }
 0x9ae   : > { %6713 = vst [vmem:[%s13895_s11 + $0x30] sm:$0xff] %v6697_v12  ;;  %v6703_v26 = vadd.f32 %v6687_v3, %v6671_v34  ;;  %v6704_v18 = vadd.f32 %v6688_v46, %v6672_v4 }
 0x9af   : > { %6714 = vst [vmem:[%s13895_s11 + $0x38] sm:$0xff] %v6698_v1 }
 0x9b0   : > { %8287 = vst [vmem:[%s13895_s11 + $0xa0] sm:$0xff] %v6791_v48 }
 0x9b1   : > { %8288 = vst [vmem:[%s13895_s11 + $0xa8] sm:$0xff] %v6792_v0 }
 0x9b2   : > { %6719 = vst [vmem:[%s13895_s11 + $0x60] sm:$0xff] %v6703_v26  ;;  %v6737_v55 = vpop.permute.xlu1 %6736  ;;  %v6753_v36 = vpop.permute.xlu0 %6752 }
 0x9b3   : > { %6720 = vst [vmem:[%s13895_s11 + $0x68] sm:$0xff] %v6704_v18  ;;  %v6761_v9 = vmul.f32 %v6737_v55, %v13646_v52  ;;  %v6762_v14 = vmul.f32 %v6737_v55, %v13675_v28  ;;  %v6769_v45 = vmul.f32 %v6753_v36, %v13658_v56  ;;  %v6770_v62 = vmul.f32 %v6753_v36, %v13730_v53 }
 0x9b4   : > { %v6749_v42 = vpop.permute.xlu2 %6748 }
 0x9b5   : > { %v6793_v43 = vadd.f32 %v8273_v63, %v6761_v9  ;;  %v6794_v31 = vadd.f32 %v8274_v60, %v6762_v14  ;;  %v6801_v30 = vadd.f32 %v8281_v16, %v6769_v45  ;;  %v6802_v52 = vadd.f32 %v8282_v44, %v6770_v62 }
 0x9b6   : > { %v6767_v28 = vmul.f32 %v6749_v42, %v13656_v21  ;;  %v6768_v32 = vmul.f32 %v6749_v42, %v13712_v50 }
 0x9b7   : > { %8289 = vst [vmem:[%s13895_s11 + $0xb0] sm:$0xff] %v6793_v43 }
 0x9b8   : > { %8290 = vst [vmem:[%s13895_s11 + $0xb8] sm:$0xff] %v6794_v31  ;;  %v6799_v56 = vadd.f32 %v8279_v6, %v6767_v28  ;;  %v6800_v53 = vadd.f32 %v8280_v29, %v6768_v32 }
 0x9b9   : > { %8297 = vst [vmem:[%s13895_s11 + $0xf0] sm:$0xff] %v6801_v30 }
 0x9ba   : > { %8298 = vst [vmem:[%s13895_s11 + $0xf8] sm:$0xff] %v6802_v52 }
 0x9bb   : > { %8295 = vst [vmem:[%s13895_s11 + $0xe0] sm:$0xff] %v6799_v56  ;;  %v6647_v47 = vpop.permute.xlu1 %6646 }
 0x9bc   : > { %8296 = vst [vmem:[%s13895_s11 + $0xe8] sm:$0xff] %v6800_v53  ;;  %v6669_v21 = vmul.f32 %v6647_v47, %v13725_v35  ;;  %v6670_v50 = vmul.f32 %v6647_v47, %v13728_v54 }
 0x9be   : > { %v6701_v7 = vadd.f32 %v6685_v40, %v6669_v21  ;;  %v6702_v11 = vadd.f32 %v6686_v19, %v6670_v50 }
 0x9c0   : > { %6717 = vst [vmem:[%s13895_s11 + $0x50] sm:$0xff] %v6701_v7 }
 0x9c1   : > { %6718 = vst [vmem:[%s13895_s11 + $0x58] sm:$0xff] %v6702_v11 }
 0x9c4   : > { %v6745_v33 = vpop.permute.xlu1 %6744 }
 0x9c5   : > { %v6765_v58 = vmul.f32 %v6745_v33, %v13652_v20  ;;  %v6766_v41 = vmul.f32 %v6745_v33, %v13745_v17 }
 0x9c7   : > { %v6797_v49 = vadd.f32 %v8277_v5, %v6765_v58  ;;  %v6798_v39 = vadd.f32 %v8278_v23, %v6766_v41 }
 0x9c9   : > { %8293 = vst [vmem:[%s13895_s11 + $0xd0] sm:$0xff] %v6797_v49 }
 0x9ca   : > { %8294 = vst [vmem:[%s13895_s11 + $0xd8] sm:$0xff] %v6798_v39 }
 0x9cb PF: > { %s17_s24 = sadd.s32 1, %s8781_s24  }
 0x9cc   : > { %p14_p4 = scmp.ge.s32.totalorder %s17_s24, 4  }
 0x9ce   :  { %16 = sbr.rel (!%p14_p4) target bundleno = 1 (0x1), region = 80 }

</bundles_post_ra>
